<compile_context>
chip_gen: v5e
topology: v5e:2x2
jax: 0.10.0
libtpu: 0.0.40
codegen_flags: <defaults>
</compile_context>

<pallas_src>
import jax
import jax.numpy as jnp
from jax.experimental import pallas as pl
from jax.experimental.pallas import tpu as pltpu


# --------------------------------------------------------------------------
# In-kernel 3x3 'same' conv as a single 9-tap im2col matmul
# --------------------------------------------------------------------------
def _conv3x3_9tap(x, w_ref, b_ref):
    """x: (H, W, Cin) f32 value.  w_ref: (9*Cin, Cout) (HWIO flattened kh,kw,cin).
    b_ref: (1, Cout).  Returns (H*W, Cout) f32."""
    H, W, Cin = x.shape
    # kw taps (width shifts with zero halo), lane-concatenated: order (kw, c)
    zc = jnp.zeros((H, 1, Cin), x.dtype)
    left = jnp.concatenate([zc, x[:, : W - 1, :]], axis=1)        # x[., w-1]
    right = jnp.concatenate([x[:, 1:, :], zc], axis=1)            # x[., w+1]
    cols3 = jnp.concatenate([left, x, right], axis=-1)            # (H, W, 3*Cin)
    # kh taps via zero-row-padded slices: overall order (kh, kw, c)
    zr = jnp.zeros((1, W, 3 * Cin), x.dtype)
    colsp = jnp.concatenate([zr, cols3, zr], axis=0)              # (H+2, W, 3*Cin)
    cols9 = jnp.concatenate(
        [colsp[0:H], colsp[1:H + 1], colsp[2:H + 2]], axis=-1)    # (H, W, 9*Cin)
    acc = jnp.dot(cols9.reshape(H * W, 9 * Cin), w_ref[...],
                  preferred_element_type=jnp.float32)             # one MXU matmul
    return acc + b_ref[...]                                       # (1, Cout) broadcast


# --------------------------------------------------------------------------
# Fully fused decoder kernel: convs at r == 0, height expansion every row tile
# --------------------------------------------------------------------------
def _decoder_kernel(x_ref, w1_ref, b1_ref, w2_ref, b2_ref, ah_ref, awt_ref,
                    o_ref, t_ref):
    # x_ref:   (1, H, W, Cin)
    # w1_ref:  (9*Cin, F)      b1_ref: (1, F)
    # w2_ref:  (9*F, C)        b2_ref: (1, C)
    # ah_ref:  (TOH, H)        row-interpolation block for this output row tile
    # awt_ref: (W, OW)         column-interpolation matrix (transposed)
    # o_ref:   (1, C, TOH, OW) output row tile (lane-dense: OW on lanes)
    # t_ref:   (C, H, OW)      VMEM scratch: width-expanded feature map (per image)
    r = pl.program_id(1)

    @pl.when(r == 0)
    def _():
        x = x_ref[0]                                              # (H, W, Cin)
        H, W, _ = x.shape
        F = w1_ref.shape[-1]
        C = w2_ref.shape[-1]
        h1 = jnp.maximum(_conv3x3_9tap(x, w1_ref, b1_ref), 0.0)   # (H*W, F)
        h1 = h1.reshape(H, W, F)
        h2 = _conv3x3_9tap(h1, w2_ref, b2_ref)                    # (H*W, C)
        h2_chw = h2.T.reshape(C, H, W)                            # tiny NHWC->NCHW transpose
        # width expansion once per image: contract W -> (C, H, OW), OW lane-dense
        t_ref[...] = jax.lax.dot_general(
            h2_chw, awt_ref[...], (((2,), (0,)), ((), ())),
            preferred_element_type=jnp.float32)

    # height expansion for this output-row tile, stored per channel so the peak
    # live set stays ~2x block + one (TOH, OW) chunk.
    ah = ah_ref[...]                                              # (TOH, H)
    C = t_ref.shape[0]
    for c in range(C):
        o_ref[0, c] = jnp.dot(ah, t_ref[c],
                              preferred_element_type=jnp.float32).astype(o_ref.dtype)


# --------------------------------------------------------------------------
# Bilinear matrix (matches torch F.interpolate mode='bilinear', align_corners=False)
# --------------------------------------------------------------------------
def _bilinear_matrix(in_size, out_size):
    scale = in_size / out_size
    dst = jnp.arange(out_size, dtype=jnp.float32)
    src = (dst + 0.5) * scale - 0.5
    src = jnp.maximum(src, 0.0)                       # PyTorch clamps negatives to 0
    i0 = jnp.minimum(jnp.floor(src).astype(jnp.int32), in_size - 1)
    i1 = jnp.minimum(i0 + 1, in_size - 1)
    lam = src - i0.astype(jnp.float32)
    rows = jnp.arange(out_size)
    A = jnp.zeros((out_size, in_size), dtype=jnp.float32)
    A = A.at[rows, i0].add(1.0 - lam)
    A = A.at[rows, i1].add(lam)
    return A


# --------------------------------------------------------------------------
# Tile / VMEM budget selection
# --------------------------------------------------------------------------
def _vmem_budget():
    """Returns (output_block_budget_bytes, vmem_limit_bytes)."""
    try:
        info = pltpu.get_tpu_info()
        cap = getattr(info, "vmem_capacity_bytes", None)
        if cap is not None and cap >= 100 * 1024 * 1024:
            # v5e / v6e: 128 MiB physical VMEM -> big tiles, high scoped limit
            return 14 * 1024 * 1024, 96 * 1024 * 1024
    except Exception:
        pass
    # v7x (64 MiB VMEM) safe default: ~2x block (double buffer) + chunk + scratch
    return 6 * 1024 * 1024, 48 * 1024 * 1024


def _pick_row_tile(OH, C, OW, budget_bytes):
    """Largest divisor of OH that is a multiple of 8 with block <= budget."""
    best = None
    d = 8
    while d <= OH:
        if OH % d == 0 and C * d * OW * 4 <= budget_bytes:
            best = d
        d += 8
    if best is None:
        best = 8 if OH % 8 == 0 else OH   # fallback (OH = 32*H, always mult of 8)
    return best


# --------------------------------------------------------------------------
# simple_decoder forward
# --------------------------------------------------------------------------
def simple_decoder_forward(x_nchw, w1, b1, w2, b2):
    """x_nchw: (N, Cin, H, W) f32.  w*: HWIO (3, 3, Cin, Cout).  b*: (Cout,).

    Returns (N, n_classes, 32*H, 32*W) f32 (NCHW, PyTorch convention)."""
    N, Cin, H, W = x_nchw.shape
    feat = w1.shape[-1]
    ncls = w2.shape[-1]
    OH, OW = 32 * H, 32 * W

    x_nhwc = jnp.transpose(x_nchw, (0, 2, 3, 1))
    w1f = w1.reshape(9 * Cin, feat)          # flatten (kh, kw, cin) into contraction dim
    w2f = w2.reshape(9 * feat, ncls)
    b1r = b1.reshape(1, feat)
    b2r = b2.reshape(1, ncls)
    A_h = _bilinear_matrix(H, OH)            # (OH, H)
    A_wT = _bilinear_matrix(W, OW).T         # (W, OW)

    block_budget, vmem_limit = _vmem_budget()
    toh = _pick_row_tile(OH, ncls, OW, block_budget)
    n_row_blocks = OH // toh

    return pl.pallas_call(
        _decoder_kernel,
        out_shape=jax.ShapeDtypeStruct((N, ncls, OH, OW), jnp.float32),
        grid_spec=pltpu.PrefetchScalarGridSpec(
            num_scalar_prefetch=0,
            grid=(N, n_row_blocks),
            in_specs=[
                pl.BlockSpec((1, H, W, Cin), lambda n, r: (n, 0, 0, 0)),
                pl.BlockSpec((9 * Cin, feat), lambda n, r: (0, 0)),
                pl.BlockSpec((1, feat), lambda n, r: (0, 0)),
                pl.BlockSpec((9 * feat, ncls), lambda n, r: (0, 0)),
                pl.BlockSpec((1, ncls), lambda n, r: (0, 0)),
                pl.BlockSpec((toh, H), lambda n, r: (r, 0)),
                pl.BlockSpec((W, OW), lambda n, r: (0, 0)),
            ],
            out_specs=pl.BlockSpec((1, ncls, toh, OW), lambda n, r: (n, 0, r, 0)),
            scratch_shapes=[pltpu.VMEM((ncls, H, OW), jnp.float32)],
        ),
        compiler_params=pltpu.CompilerParams(
            dimension_semantics=("parallel", "arbitrary"),
            vmem_limit_bytes=vmem_limit),
    )(x_nhwc, w1f, b1r, w2f, b2r, A_h, A_wT)


# --------------------------------------------------------------------------
# Pure-JAX reference (correctness check)
# --------------------------------------------------------------------------
def _ref_conv(x_nhwc, w, b, relu):
    y = jax.lax.conv_general_dilated(
        x_nhwc, w, (1, 1), "SAME",
        dimension_numbers=("NHWC", "HWIO", "NHWC"))
    y = y + b.reshape(1, 1, 1, -1)
    return jnp.maximum(y, 0.0) if relu else y


def _reference(x_nchw, w1, b1, w2, b2):
    x_nhwc = jnp.transpose(x_nchw, (0, 2, 3, 1))
    h1 = _ref_conv(x_nhwc, w1, b1, True)
    h2 = _ref_conv(h1, w2, b2, False)
    pred = jnp.transpose(h2, (0, 3, 1, 2))
    _, _, Hs, Ws = pred.shape
    A_h = _bilinear_matrix(Hs, Hs * 32)
    A_w = _bilinear_matrix(Ws, Ws * 32)
    return jnp.einsum("nchw,Hh,Ww->ncHW", pred, A_h, A_w)


if __name__ == "__main__":
    # Small shapes consistent with the module structure
    # (module defaults: in_channels=512, feat=256, n_classes=21 — scaled down here).
    N, Cin, H, W = 2, 16, 16, 16
    feat, n_classes = 32, 8

    key = jax.random.PRNGKey(0)
    k0, k1, k2, k3, k4 = jax.random.split(key, 5)
    x = jax.random.normal(k0, (N, Cin, H, W), jnp.float32)
    w1 = jax.random.normal(k1, (3, 3, Cin, feat), jnp.float32) * 0.1
    b1 = jax.random.normal(k2, (feat,), jnp.float32) * 0.1
    w2 = jax.random.normal(k3, (3, 3, feat, n_classes), jnp.float32) * 0.1
    b2 = jax.random.normal(k4, (n_classes,), jnp.float32) * 0.1

    out = jax.block_until_ready(simple_decoder_forward(x, w1, b1, w2, b2))
    assert out.shape == (N, n_classes, H * 32, W * 32), out.shape

    ref = jax.block_until_ready(_reference(x, w1, b1, w2, b2))
    err = float(jnp.max(jnp.abs(out - ref)))
    assert jnp.allclose(out, ref, atol=1e-3, rtol=1e-3), err

    print("KERNEL_OK")
</pallas_src>

<mosaic_0001>
module attributes {stable_mosaic.version = 11 : i64} {
  func.func @_decoder_kernel(%arg0: i32, %arg1: i32, %arg2: memref<1x16x16x16xf32, #tpu.memory_space<vmem>>, %arg3: memref<144x32xf32, #tpu.memory_space<vmem>>, %arg4: memref<1x32xf32, #tpu.memory_space<vmem>>, %arg5: memref<288x8xf32, #tpu.memory_space<vmem>>, %arg6: memref<1x8xf32, #tpu.memory_space<vmem>>, %arg7: memref<256x16xf32, #tpu.memory_space<vmem>>, %arg8: memref<16x512xf32, #tpu.memory_space<vmem>>, %arg9: memref<1x8x256x512xf32, #tpu.memory_space<vmem>>, %arg10: memref<8x16x512xf32, #tpu.memory_space<vmem>>) attributes {dimension_semantics = [#tpu.dimension_semantics<parallel>, #tpu.dimension_semantics<arbitrary>], iteration_bounds = array<i64: 2, 2>, scalar_prefetch = 0 : i64, scratch_operands = 1 : i64, tpu.core_type = #tpu.core_type<tc>, window_params = [{transform_indices = @transform_0, window_bounds = array<i64: 1, 16, 16, 16>}, {pipeline_mode = #tpu.pipeline_mode<synchronous>, transform_indices = @transform_1, window_bounds = array<i64: 144, 32>}, {pipeline_mode = #tpu.pipeline_mode<synchronous>, transform_indices = @transform_2, window_bounds = array<i64: 1, 32>}, {pipeline_mode = #tpu.pipeline_mode<synchronous>, transform_indices = @transform_3, window_bounds = array<i64: 288, 8>}, {pipeline_mode = #tpu.pipeline_mode<synchronous>, transform_indices = @transform_4, window_bounds = array<i64: 1, 8>}, {transform_indices = @transform_5, window_bounds = array<i64: 256, 16>}, {pipeline_mode = #tpu.pipeline_mode<synchronous>, transform_indices = @transform_6, window_bounds = array<i64: 16, 512>}, {transform_indices = @transform_7, window_bounds = array<i64: 1, 8, 256, 512>}]} {
    %c0_i32 = arith.constant 0 : i32
    %0 = arith.cmpi eq, %arg1, %c0_i32 : i32
    %1 = arith.extui %0 : i1 to i32
    %c0_i32_0 = arith.constant 0 : i32
    %2 = arith.cmpi ne, %1, %c0_i32_0 : i32
    scf.if %2 {
      %c0_58 = arith.constant 0 : index
      %c0_59 = arith.constant 0 : index
      %c0_60 = arith.constant 0 : index
      %c0_61 = arith.constant 0 : index
      %52 = vector.load %arg2[%c0_58, %c0_59, %c0_60, %c0_61] : memref<1x16x16x16xf32, #tpu.memory_space<vmem>>, vector<1x16x16x16xf32>
      %53 = vector.shape_cast %52 : vector<1x16x16x16xf32> to vector<16x16x16xf32>
      %cst_62 = arith.constant 0.000000e+00 : f32
      %54 = vector.broadcast %cst_62 : f32 to vector<16x1x16xf32>
      %55 = vector.extract_strided_slice %53 {offsets = [0, 0, 0], sizes = [16, 15, 16], strides = [1, 1, 1]} : vector<16x16x16xf32> to vector<16x15x16xf32>
      %56 = tpu.concatenate %54, %55 in 1 : vector<16x1x16xf32>, vector<16x15x16xf32> -> vector<16x16x16xf32>
      %57 = vector.extract_strided_slice %53 {offsets = [0, 1, 0], sizes = [16, 15, 16], strides = [1, 1, 1]} : vector<16x16x16xf32> to vector<16x15x16xf32>
      %58 = tpu.concatenate %57, %54 in 1 : vector<16x15x16xf32>, vector<16x1x16xf32> -> vector<16x16x16xf32>
      %59 = tpu.concatenate %56, %53, %58 in 2 : vector<16x16x16xf32>, vector<16x16x16xf32>, vector<16x16x16xf32> -> vector<16x16x48xf32>
      %cst_63 = arith.constant 0.000000e+00 : f32
      %60 = vector.broadcast %cst_63 : f32 to vector<1x16x48xf32>
      %61 = tpu.concatenate %60, %59, %60 in 0 : vector<1x16x48xf32>, vector<16x16x48xf32>, vector<1x16x48xf32> -> vector<18x16x48xf32>
      %62 = vector.extract_strided_slice %61 {offsets = [0, 0, 0], sizes = [16, 16, 48], strides = [1, 1, 1]} : vector<18x16x48xf32> to vector<16x16x48xf32>
      %63 = vector.extract_strided_slice %61 {offsets = [1, 0, 0], sizes = [16, 16, 48], strides = [1, 1, 1]} : vector<18x16x48xf32> to vector<16x16x48xf32>
      %64 = vector.extract_strided_slice %61 {offsets = [2, 0, 0], sizes = [16, 16, 48], strides = [1, 1, 1]} : vector<18x16x48xf32> to vector<16x16x48xf32>
      %65 = tpu.concatenate %62, %63, %64 in 2 : vector<16x16x48xf32>, vector<16x16x48xf32>, vector<16x16x48xf32> -> vector<16x16x144xf32>
      %66 = vector.shape_cast %65 : vector<16x16x144xf32> to vector<256x144xf32>
      %c0_64 = arith.constant 0 : index
      %c0_65 = arith.constant 0 : index
      %67 = vector.load %arg3[%c0_64, %c0_65] : memref<144x32xf32, #tpu.memory_space<vmem>>, vector<144x32xf32>
      %cst_66 = arith.constant dense<0.000000e+00> : vector<256x32xf32>
      %68 = tpu.matmul %66, %67, %cst_66 {dimension_numbers = #tpu.dot_dimension_numbers<[1], [0], [0], [1], [0, 0, 1, 1], [], []>} : vector<256x144xf32>, vector<144x32xf32>, vector<256x32xf32> -> vector<256x32xf32>
      %c0_67 = arith.constant 0 : index
      %c0_68 = arith.constant 0 : index
      %69 = vector.load %arg4[%c0_67, %c0_68] : memref<1x32xf32, #tpu.memory_space<vmem>>, vector<1x32xf32>
      %70 = vector.broadcast %69 : vector<1x32xf32> to vector<256x32xf32>
      %71 = arith.addf %68, %70 : vector<256x32xf32>
      %cst_69 = arith.constant 0.000000e+00 : f32
      %72 = vector.broadcast %cst_69 : f32 to vector<256x32xf32>
      %73 = arith.maximumf %71, %72 : vector<256x32xf32>
      %74 = vector.shape_cast %73 : vector<256x32xf32> to vector<16x16x32xf32>
      %cst_70 = arith.constant 0.000000e+00 : f32
      %75 = vector.broadcast %cst_70 : f32 to vector<16x1x32xf32>
      %76 = vector.extract_strided_slice %74 {offsets = [0, 0, 0], sizes = [16, 15, 32], strides = [1, 1, 1]} : vector<16x16x32xf32> to vector<16x15x32xf32>
      %77 = tpu.concatenate %75, %76 in 1 : vector<16x1x32xf32>, vector<16x15x32xf32> -> vector<16x16x32xf32>
      %78 = vector.extract_strided_slice %74 {offsets = [0, 1, 0], sizes = [16, 15, 32], strides = [1, 1, 1]} : vector<16x16x32xf32> to vector<16x15x32xf32>
      %79 = tpu.concatenate %78, %75 in 1 : vector<16x15x32xf32>, vector<16x1x32xf32> -> vector<16x16x32xf32>
      %80 = tpu.concatenate %77, %74, %79 in 2 : vector<16x16x32xf32>, vector<16x16x32xf32>, vector<16x16x32xf32> -> vector<16x16x96xf32>
      %cst_71 = arith.constant 0.000000e+00 : f32
      %81 = vector.broadcast %cst_71 : f32 to vector<1x16x96xf32>
      %82 = tpu.concatenate %81, %80, %81 in 0 : vector<1x16x96xf32>, vector<16x16x96xf32>, vector<1x16x96xf32> -> vector<18x16x96xf32>
      %83 = vector.extract_strided_slice %82 {offsets = [0, 0, 0], sizes = [16, 16, 96], strides = [1, 1, 1]} : vector<18x16x96xf32> to vector<16x16x96xf32>
      %84 = vector.extract_strided_slice %82 {offsets = [1, 0, 0], sizes = [16, 16, 96], strides = [1, 1, 1]} : vector<18x16x96xf32> to vector<16x16x96xf32>
      %85 = vector.extract_strided_slice %82 {offsets = [2, 0, 0], sizes = [16, 16, 96], strides = [1, 1, 1]} : vector<18x16x96xf32> to vector<16x16x96xf32>
      %86 = tpu.concatenate %83, %84, %85 in 2 : vector<16x16x96xf32>, vector<16x16x96xf32>, vector<16x16x96xf32> -> vector<16x16x288xf32>
      %87 = vector.shape_cast %86 : vector<16x16x288xf32> to vector<256x288xf32>
      %c0_72 = arith.constant 0 : index
      %c0_73 = arith.constant 0 : index
      %88 = vector.load %arg5[%c0_72, %c0_73] : memref<288x8xf32, #tpu.memory_space<vmem>>, vector<288x8xf32>
      %cst_74 = arith.constant dense<0.000000e+00> : vector<256x8xf32>
      %89 = tpu.matmul %87, %88, %cst_74 {dimension_numbers = #tpu.dot_dimension_numbers<[1], [0], [0], [1], [0, 0, 1, 1], [], []>} : vector<256x288xf32>, vector<288x8xf32>, vector<256x8xf32> -> vector<256x8xf32>
      %c0_75 = arith.constant 0 : index
      %c0_76 = arith.constant 0 : index
      %90 = vector.load %arg6[%c0_75, %c0_76] : memref<1x8xf32, #tpu.memory_space<vmem>>, vector<1x8xf32>
      %91 = vector.broadcast %90 : vector<1x8xf32> to vector<256x8xf32>
      %92 = arith.addf %89, %91 : vector<256x8xf32>
      %93 = tpu.transpose %92, [1, 0] : vector<256x8xf32> -> vector<8x256xf32>
      %94 = vector.shape_cast %93 : vector<8x256xf32> to vector<8x16x16xf32>
      %c0_77 = arith.constant 0 : index
      %c0_78 = arith.constant 0 : index
      %95 = vector.load %arg8[%c0_77, %c0_78] : memref<16x512xf32, #tpu.memory_space<vmem>>, vector<16x512xf32>
      %cst_79 = arith.constant dense<0.000000e+00> : vector<8x16x512xf32>
      %96 = tpu.matmul %94, %95, %cst_79 {dimension_numbers = #tpu.dot_dimension_numbers<[2], [0], [0, 1], [1], [0, 0, 0, 1, 1, 1], [], []>} : vector<8x16x16xf32>, vector<16x512xf32>, vector<8x16x512xf32> -> vector<8x16x512xf32>
      %c0_80 = arith.constant 0 : index
      %c0_81 = arith.constant 0 : index
      %c0_82 = arith.constant 0 : index
      %97 = vector.load %arg10[%c0_80, %c0_81, %c0_82] : memref<8x16x512xf32, #tpu.memory_space<vmem>>, vector<8x16x512xf32>
      tpu.vector_store %arg10[%c0_80, %c0_81, %c0_82], %96 {strides = array<i32>} : memref<8x16x512xf32, #tpu.memory_space<vmem>>, vector<8x16x512xf32>,
    } else {
    }
    %c0 = arith.constant 0 : index
    %c0_1 = arith.constant 0 : index
    %3 = vector.load %arg7[%c0, %c0_1] : memref<256x16xf32, #tpu.memory_space<vmem>>, vector<256x16xf32>
    %c0_2 = arith.constant 0 : index
    %c0_3 = arith.constant 0 : index
    %c0_4 = arith.constant 0 : index
    %4 = vector.load %arg10[%c0_2, %c0_3, %c0_4] : memref<8x16x512xf32, #tpu.memory_space<vmem>>, vector<1x16x512xf32>
    %5 = vector.shape_cast %4 : vector<1x16x512xf32> to vector<16x512xf32>
    %cst = arith.constant dense<0.000000e+00> : vector<256x512xf32>
    %6 = tpu.matmul %3, %5, %cst {dimension_numbers = #tpu.dot_dimension_numbers<[1], [0], [0], [1], [0, 0, 1, 1], [], []>} : vector<256x16xf32>, vector<16x512xf32>, vector<256x512xf32> -> vector<256x512xf32>
    %c0_5 = arith.constant 0 : index
    %c0_6 = arith.constant 0 : index
    %c0_7 = arith.constant 0 : index
    %c0_8 = arith.constant 0 : index
    %7 = vector.load %arg9[%c0_5, %c0_6, %c0_7, %c0_8] : memref<1x8x256x512xf32, #tpu.memory_space<vmem>>, vector<1x1x256x512xf32>
    %8 = vector.shape_cast %7 : vector<1x1x256x512xf32> to vector<256x512xf32>
    %9 = vector.shape_cast %6 : vector<256x512xf32> to vector<1x1x256x512xf32>
    tpu.vector_store %arg9[%c0_5, %c0_6, %c0_7, %c0_8], %9 {strides = array<i32>} : memref<1x8x256x512xf32, #tpu.memory_space<vmem>>, vector<1x1x256x512xf32>,
    %c1 = arith.constant 1 : index
    %c0_9 = arith.constant 0 : index
    %c0_10 = arith.constant 0 : index
    %10 = vector.load %arg10[%c1, %c0_9, %c0_10] : memref<8x16x512xf32, #tpu.memory_space<vmem>>, vector<1x16x512xf32>
    %11 = vector.shape_cast %10 : vector<1x16x512xf32> to vector<16x512xf32>
    %cst_11 = arith.constant dense<0.000000e+00> : vector<256x512xf32>
    %12 = tpu.matmul %3, %11, %cst_11 {dimension_numbers = #tpu.dot_dimension_numbers<[1], [0], [0], [1], [0, 0, 1, 1], [], []>} : vector<256x16xf32>, vector<16x512xf32>, vector<256x512xf32> -> vector<256x512xf32>
    %c0_12 = arith.constant 0 : index
    %c1_13 = arith.constant 1 : index
    %c0_14 = arith.constant 0 : index
    %c0_15 = arith.constant 0 : index
    %13 = vector.load %arg9[%c0_12, %c1_13, %c0_14, %c0_15] : memref<1x8x256x512xf32, #tpu.memory_space<vmem>>, vector<1x1x256x512xf32>
    %14 = vector.shape_cast %13 : vector<1x1x256x512xf32> to vector<256x512xf32>
    %15 = vector.shape_cast %12 : vector<256x512xf32> to vector<1x1x256x512xf32>
    tpu.vector_store %arg9[%c0_12, %c1_13, %c0_14, %c0_15], %15 {strides = array<i32>} : memref<1x8x256x512xf32, #tpu.memory_space<vmem>>, vector<1x1x256x512xf32>,
    %c2 = arith.constant 2 : index
    %c0_16 = arith.constant 0 : index
    %c0_17 = arith.constant 0 : index
    %16 = vector.load %arg10[%c2, %c0_16, %c0_17] : memref<8x16x512xf32, #tpu.memory_space<vmem>>, vector<1x16x512xf32>
    %17 = vector.shape_cast %16 : vector<1x16x512xf32> to vector<16x512xf32>
    %cst_18 = arith.constant dense<0.000000e+00> : vector<256x512xf32>
    %18 = tpu.matmul %3, %17, %cst_18 {dimension_numbers = #tpu.dot_dimension_numbers<[1], [0], [0], [1], [0, 0, 1, 1], [], []>} : vector<256x16xf32>, vector<16x512xf32>, vector<256x512xf32> -> vector<256x512xf32>
    %c0_19 = arith.constant 0 : index
    %c2_20 = arith.constant 2 : index
    %c0_21 = arith.constant 0 : index
    %c0_22 = arith.constant 0 : index
    %19 = vector.load %arg9[%c0_19, %c2_20, %c0_21, %c0_22] : memref<1x8x256x512xf32, #tpu.memory_space<vmem>>, vector<1x1x256x512xf32>
    %20 = vector.shape_cast %19 : vector<1x1x256x512xf32> to vector<256x512xf32>
    %21 = vector.shape_cast %18 : vector<256x512xf32> to vector<1x1x256x512xf32>
    tpu.vector_store %arg9[%c0_19, %c2_20, %c0_21, %c0_22], %21 {strides = array<i32>} : memref<1x8x256x512xf32, #tpu.memory_space<vmem>>, vector<1x1x256x512xf32>,
    %c3 = arith.constant 3 : index
    %c0_23 = arith.constant 0 : index
    %c0_24 = arith.constant 0 : index
    %22 = vector.load %arg10[%c3, %c0_23, %c0_24] : memref<8x16x512xf32, #tpu.memory_space<vmem>>, vector<1x16x512xf32>
    %23 = vector.shape_cast %22 : vector<1x16x512xf32> to vector<16x512xf32>
    %cst_25 = arith.constant dense<0.000000e+00> : vector<256x512xf32>
    %24 = tpu.matmul %3, %23, %cst_25 {dimension_numbers = #tpu.dot_dimension_numbers<[1], [0], [0], [1], [0, 0, 1, 1], [], []>} : vector<256x16xf32>, vector<16x512xf32>, vector<256x512xf32> -> vector<256x512xf32>
    %c0_26 = arith.constant 0 : index
    %c3_27 = arith.constant 3 : index
    %c0_28 = arith.constant 0 : index
    %c0_29 = arith.constant 0 : index
    %25 = vector.load %arg9[%c0_26, %c3_27, %c0_28, %c0_29] : memref<1x8x256x512xf32, #tpu.memory_space<vmem>>, vector<1x1x256x512xf32>
    %26 = vector.shape_cast %25 : vector<1x1x256x512xf32> to vector<256x512xf32>
    %27 = vector.shape_cast %24 : vector<256x512xf32> to vector<1x1x256x512xf32>
    tpu.vector_store %arg9[%c0_26, %c3_27, %c0_28, %c0_29], %27 {strides = array<i32>} : memref<1x8x256x512xf32, #tpu.memory_space<vmem>>, vector<1x1x256x512xf32>,
    %c4 = arith.constant 4 : index
    %c0_30 = arith.constant 0 : index
    %c0_31 = arith.constant 0 : index
    %28 = vector.load %arg10[%c4, %c0_30, %c0_31] : memref<8x16x512xf32, #tpu.memory_space<vmem>>, vector<1x16x512xf32>
    %29 = vector.shape_cast %28 : vector<1x16x512xf32> to vector<16x512xf32>
    %cst_32 = arith.constant dense<0.000000e+00> : vector<256x512xf32>
    %30 = tpu.matmul %3, %29, %cst_32 {dimension_numbers = #tpu.dot_dimension_numbers<[1], [0], [0], [1], [0, 0, 1, 1], [], []>} : vector<256x16xf32>, vector<16x512xf32>, vector<256x512xf32> -> vector<256x512xf32>
    %c0_33 = arith.constant 0 : index
    %c4_34 = arith.constant 4 : index
    %c0_35 = arith.constant 0 : index
    %c0_36 = arith.constant 0 : index
    %31 = vector.load %arg9[%c0_33, %c4_34, %c0_35, %c0_36] : memref<1x8x256x512xf32, #tpu.memory_space<vmem>>, vector<1x1x256x512xf32>
    %32 = vector.shape_cast %31 : vector<1x1x256x512xf32> to vector<256x512xf32>
    %33 = vector.shape_cast %30 : vector<256x512xf32> to vector<1x1x256x512xf32>
    tpu.vector_store %arg9[%c0_33, %c4_34, %c0_35, %c0_36], %33 {strides = array<i32>} : memref<1x8x256x512xf32, #tpu.memory_space<vmem>>, vector<1x1x256x512xf32>,
    %c5 = arith.constant 5 : index
    %c0_37 = arith.constant 0 : index
    %c0_38 = arith.constant 0 : index
    %34 = vector.load %arg10[%c5, %c0_37, %c0_38] : memref<8x16x512xf32, #tpu.memory_space<vmem>>, vector<1x16x512xf32>
    %35 = vector.shape_cast %34 : vector<1x16x512xf32> to vector<16x512xf32>
    %cst_39 = arith.constant dense<0.000000e+00> : vector<256x512xf32>
    %36 = tpu.matmul %3, %35, %cst_39 {dimension_numbers = #tpu.dot_dimension_numbers<[1], [0], [0], [1], [0, 0, 1, 1], [], []>} : vector<256x16xf32>, vector<16x512xf32>, vector<256x512xf32> -> vector<256x512xf32>
    %c0_40 = arith.constant 0 : index
    %c5_41 = arith.constant 5 : index
    %c0_42 = arith.constant 0 : index
    %c0_43 = arith.constant 0 : index
    %37 = vector.load %arg9[%c0_40, %c5_41, %c0_42, %c0_43] : memref<1x8x256x512xf32, #tpu.memory_space<vmem>>, vector<1x1x256x512xf32>
    %38 = vector.shape_cast %37 : vector<1x1x256x512xf32> to vector<256x512xf32>
    %39 = vector.shape_cast %36 : vector<256x512xf32> to vector<1x1x256x512xf32>
    tpu.vector_store %arg9[%c0_40, %c5_41, %c0_42, %c0_43], %39 {strides = array<i32>} : memref<1x8x256x512xf32, #tpu.memory_space<vmem>>, vector<1x1x256x512xf32>,
    %c6 = arith.constant 6 : index
    %c0_44 = arith.constant 0 : index
    %c0_45 = arith.constant 0 : index
    %40 = vector.load %arg10[%c6, %c0_44, %c0_45] : memref<8x16x512xf32, #tpu.memory_space<vmem>>, vector<1x16x512xf32>
    %41 = vector.shape_cast %40 : vector<1x16x512xf32> to vector<16x512xf32>
    %cst_46 = arith.constant dense<0.000000e+00> : vector<256x512xf32>
    %42 = tpu.matmul %3, %41, %cst_46 {dimension_numbers = #tpu.dot_dimension_numbers<[1], [0], [0], [1], [0, 0, 1, 1], [], []>} : vector<256x16xf32>, vector<16x512xf32>, vector<256x512xf32> -> vector<256x512xf32>
    %c0_47 = arith.constant 0 : index
    %c6_48 = arith.constant 6 : index
    %c0_49 = arith.constant 0 : index
    %c0_50 = arith.constant 0 : index
    %43 = vector.load %arg9[%c0_47, %c6_48, %c0_49, %c0_50] : memref<1x8x256x512xf32, #tpu.memory_space<vmem>>, vector<1x1x256x512xf32>
    %44 = vector.shape_cast %43 : vector<1x1x256x512xf32> to vector<256x512xf32>
    %45 = vector.shape_cast %42 : vector<256x512xf32> to vector<1x1x256x512xf32>
    tpu.vector_store %arg9[%c0_47, %c6_48, %c0_49, %c0_50], %45 {strides = array<i32>} : memref<1x8x256x512xf32, #tpu.memory_space<vmem>>, vector<1x1x256x512xf32>,
    %c7 = arith.constant 7 : index
    %c0_51 = arith.constant 0 : index
    %c0_52 = arith.constant 0 : index
    %46 = vector.load %arg10[%c7, %c0_51, %c0_52] : memref<8x16x512xf32, #tpu.memory_space<vmem>>, vector<1x16x512xf32>
    %47 = vector.shape_cast %46 : vector<1x16x512xf32> to vector<16x512xf32>
    %cst_53 = arith.constant dense<0.000000e+00> : vector<256x512xf32>
    %48 = tpu.matmul %3, %47, %cst_53 {dimension_numbers = #tpu.dot_dimension_numbers<[1], [0], [0], [1], [0, 0, 1, 1], [], []>} : vector<256x16xf32>, vector<16x512xf32>, vector<256x512xf32> -> vector<256x512xf32>
    %c0_54 = arith.constant 0 : index
    %c7_55 = arith.constant 7 : index
    %c0_56 = arith.constant 0 : index
    %c0_57 = arith.constant 0 : index
    %49 = vector.load %arg9[%c0_54, %c7_55, %c0_56, %c0_57] : memref<1x8x256x512xf32, #tpu.memory_space<vmem>>, vector<1x1x256x512xf32>
    %50 = vector.shape_cast %49 : vector<1x1x256x512xf32> to vector<256x512xf32>
    %51 = vector.shape_cast %48 : vector<256x512xf32> to vector<1x1x256x512xf32>
    tpu.vector_store %arg9[%c0_54, %c7_55, %c0_56, %c0_57], %51 {strides = array<i32>} : memref<1x8x256x512xf32, #tpu.memory_space<vmem>>, vector<1x1x256x512xf32>,
    return
  }
  func.func @transform_0(%arg0: i32, %arg1: i32) -> (i32, i32, i32, i32) {
    %c0_i32 = arith.constant 0 : i32
    %c0_i32_0 = arith.constant 0 : i32
    %c0_i32_1 = arith.constant 0 : i32
    %c0_i32_2 = arith.constant 0 : i32
    return %arg0, %c0_i32, %c0_i32_0, %c0_i32_1 : i32, i32, i32, i32
  }
  func.func @transform_1(%arg0: i32, %arg1: i32) -> (i32, i32) {
    %c0_i32 = arith.constant 0 : i32
    %c0_i32_0 = arith.constant 0 : i32
    %c0_i32_1 = arith.constant 0 : i32
    return %c0_i32, %c0_i32_0 : i32, i32
  }
  func.func @transform_2(%arg0: i32, %arg1: i32) -> (i32, i32) {
    %c0_i32 = arith.constant 0 : i32
    %c0_i32_0 = arith.constant 0 : i32
    %c0_i32_1 = arith.constant 0 : i32
    return %c0_i32, %c0_i32_0 : i32, i32
  }
  func.func @transform_3(%arg0: i32, %arg1: i32) -> (i32, i32) {
    %c0_i32 = arith.constant 0 : i32
    %c0_i32_0 = arith.constant 0 : i32
    %c0_i32_1 = arith.constant 0 : i32
    return %c0_i32, %c0_i32_0 : i32, i32
  }
  func.func @transform_4(%arg0: i32, %arg1: i32) -> (i32, i32) {
    %c0_i32 = arith.constant 0 : i32
    %c0_i32_0 = arith.constant 0 : i32
    %c0_i32_1 = arith.constant 0 : i32
    return %c0_i32, %c0_i32_0 : i32, i32
  }
  func.func @transform_5(%arg0: i32, %arg1: i32) -> (i32, i32) {
    %c0_i32 = arith.constant 0 : i32
    %c0_i32_0 = arith.constant 0 : i32
    return %arg1, %c0_i32 : i32, i32
  }
  func.func @transform_6(%arg0: i32, %arg1: i32) -> (i32, i32) {
    %c0_i32 = arith.constant 0 : i32
    %c0_i32_0 = arith.constant 0 : i32
    %c0_i32_1 = arith.constant 0 : i32
    return %c0_i32, %c0_i32_0 : i32, i32
  }
  func.func @transform_7(%arg0: i32, %arg1: i32) -> (i32, i32, i32, i32) {
    %c0_i32 = arith.constant 0 : i32
    %c0_i32_0 = arith.constant 0 : i32
    %c0_i32_1 = arith.constant 0 : i32
    return %arg0, %c0_i32, %arg1, %c0_i32_0 : i32, i32, i32, i32
  }
}

</mosaic_0001>

<bundles_post_ra>
// kernel: tpu_custom_call.1
= control target key start
LH: loop header
LB: loop body
LE: loop exit
PB: predicated region body
PF: predicated region fallthrough
CT: control target
= control target key end

     0   :  { %s17091_s0 = inlined_call_operand.hbm [shape: f32[2,16,16,16], index: 0, kind: input, shape index: {}]   ;;  %s17092_s1 = inlined_call_operand.vmem [shape: f32[144,32], index: 1, kind: input, shape index: {}]   ;;  %s17093_s2 = inlined_call_operand.hbm [shape: f32[1,32], index: 2, kind: input, shape index: {}]   ;;  %s17094_s3 = inlined_call_operand.vmem [shape: f32[288,8], index: 3, kind: input, shape index: {}]   ;;  %s17095_s4 = inlined_call_operand.hbm [shape: f32[1,8], index: 4, kind: input, shape index: {}]   ;;  %s17096_s5 = inlined_call_operand.vmem [shape: f32[512,16], index: 5, kind: input, shape index: {}]   ;;  %s17097_s6 = inlined_call_operand.hbm [shape: f32[16,512], index: 6, kind: input, shape index: {}]   ;;  %s17098_s7 = inlined_call_operand.hbm [shape: f32[2,8,512,512], index: 7, kind: output, shape index: {}]  }
   0x1   :  { %17107 = sst [smem:[#allocation29_spill]] %s17093_s2 }
   0x2   :  { %17108 = sst [smem:[#allocation30_spill]] %s17094_s3 }
   0x3   :  { %17109 = sst [smem:[#allocation31_spill]] %s17095_s4 }
   0x4   :  { %17110 = sst [smem:[#allocation32_spill]] %s17097_s6 }
   0x5   :  { %17111 = sst [smem:[#allocation33_spill]] %s17098_s7 }
   0x6   :  { %12 = vsyncpa [#allocation4], 0 }
   0x7   :  { %14 = vsyncpa [#allocation4 + $0x1], 0 }
   0x8   :  { %15 = vsyncpa [#allocation7], 0 }
   0x9   :  { %16 = vsyncpa [#allocation10], 0 }
   0xa   :  { %17 = vsyncpa [#allocation5], 0 }
   0xb   :  { %19 = vsyncpa [#allocation5 + $0x1], 0  ;;  %s11266_s24 = smov 0   ;;  %s11268_s25 = smov 0  }
   0xc   :  { %s11270_s26 = smov 0   ;;  %s11272_s27 = smov 0  }
   0xd   :  { %s11274_s28 = smov 0   ;;  %s11276_s29 = smov 0  }
   0xe   :  { %s11278_s30 = smov 0   ;;  %s11280_s8 = smov 0  }
   0xf   :  { %s11282_s9 = smov 0   ;;  %s11284_s10 = smov 0  }
  0x10   :  { %s11286_s11 = smov 0  }
  0x11 LB: > { %17112 = sst [smem:[#allocation18_spill]] %s11161_s24  ;;  %s8469_s12 = sadd.s32 4294967295, %s11201_s11   ;;  %s11201_s11 = sphi %s11286_s11, %s25_s11   ;;  %s11197_s10 = sphi %s11284_s10, %s17157_s10   ;;  %s11193_s9 = sphi %s11282_s9, %s17149_s9   ;;  %s11189_s8 = sphi %s11280_s8, %s17156_s8   ;;  %s11185_s30 = sphi %s11278_s30, %s17148_s30   ;;  %s11181_s29 = sphi %s11276_s29, %s17155_s29   ;;  %s11177_s28 = sphi %s11274_s28, %s17154_s28   ;;  %s11173_s27 = sphi %s11272_s27, %s17153_s27   ;;  %s11169_s26 = sphi %s11270_s26, %s17152_s26   ;;  %s11165_s25 = sphi %s11268_s25, %s17151_s25   ;;  %s11161_s24 = sphi %s11266_s24, %s17150_s24  }
  0x12   : > { %17113 = sst [smem:[#allocation19_spill]] %s11189_s8  ;;  %s8470_s13 = sadd.s32 4294967294, %s11201_s11  }
  0x13   : > { %17114 = sst [smem:[#allocation20_spill]] %s11193_s9  ;;  %p57_p0 = scmp.ne.s32.totalorder %s11177_s28, %s11173_s27 }
  0x14   : > { %p11322_p1 = scmp.eq.s32.totalorder %s8469_s12, 0  ;;  %p213_p2 = scmp.ne.s32.totalorder %s11169_s26, %s11165_s25 }
  0x15   : > { %p214_p4 = scmp.eq.s32.totalorder %s8469_s12, 3  ;;  %p219_p5 = scmp.ne.s32.totalorder %s11165_s25, %s11161_s24 }
  0x16   : > { %p11331_p3 = por %p11322_p1, %p57_p0  ;;  %p220_p6 = scmp.eq.s32.totalorder %s8470_s13, 3 }
  0x17   : > { %p11337_p7 = por %p214_p4, %p213_p2  ;;  %p8471_p8 = scmp.ge.s32.totalorder %s11201_s11, 1 }
  0x18   : > { %p11342_p9 = por %p220_p6, %p219_p5  ;;  %p227_p10 = scmp.lt.s32.totalorder %s11201_s11, 5 }
  0x19   : > { %s17117_s17 = scalar_select %p11337_p7, 1, 0 }
  0x1a   : > { %s17119_s18 = scalar_select %p11342_p9, 1, 0 }
  0x1b   : > { %17118 = sst [smem:[#allocation21_spill]] %s17117_s17  ;;  %p11350_p11 = pnand %p8471_p8, %p227_p10 }
  0x1c   : > { %17120 = sst [smem:[#allocation22_spill]] %s17119_s18  ;;  %s11203_s23 = smov [#allocation6]  }
  0x1d   : > { %s17121_s2 = sld [smem:[#allocation29_spill]]  ;;  %p10593_p12 = pneg %p11350_p11 }
  0x1e   : > { %s244_s27 = sshll.u32 %s11203_s23, 4  ;;  %s17123_s4 = sld [smem:[#allocation31_spill]]  ;;  %s245_s27 = int_to_ptr.vmem [resolvable:$true] %s244_s27 }
  0x1f   : > { %p11361_p13 = pnand %p10593_p12, %p11322_p1  ;;  %s17125_s6 = sld [smem:[#allocation32_spill]] }
  0x20   : > { %s11204_s18 = smov [#allocation8]   ;;  %s11205_s13 = smov [#allocation9]  }
  0x21   : > { %s259_s12 = sshll.u32 %s11204_s18, 4  ;;  %s11207_s20 = smov 32   ;;  %s260_s12 = int_to_ptr.vmem [resolvable:$true] %s259_s12 }
  0x22   : > { %s34_s18 = sadd.s32 1, %s11193_s9  ;;  %p51_p2 = scmp.ne.s32.totalorder %s11181_s29, %s11177_s28 }
  0x23   : > { %s242_s21 = sshll.u32 %s17121_s2, 4  ;;  %s11206_s2 = smov 512   ;;  %s243_s21 = int_to_ptr.hbm [resolvable:$true] %s242_s21 }
  0x24   : > { %s257_s15 = sshll.u32 %s17123_s4, 4  ;;  %s270_s4 = sshll.u32 %s11205_s13, 4  ;;  %s258_s15 = int_to_ptr.hbm [resolvable:$true] %s257_s15  ;;  %s271_s4 = int_to_ptr.vmem [resolvable:$true] %s270_s4 }
  0x25   : > { %s268_s23 = sshll.u32 %s17125_s6, 4  ;;  %p35_p0 = scmp.ge.s32.totalorder %s34_s18, 2  ;;  %s269_s23 = int_to_ptr.hbm [resolvable:$true] %s268_s23 }
  0x26   : > { %10596 = dma.hbm_to_vmem [thread:$0]  (!%p11361_p13), %s243_s21, 16, %s245_s27, [#allocation7]  }
  0x27   : > { %10599 = dma.hbm_to_vmem [thread:$0]  (!%p11361_p13), %s258_s15, 16, %s260_s12, [#allocation7]  }
  0x28   : > { %10602 = dma.hbm_to_vmem [thread:$0]  (!%p11361_p13), %s269_s23, 1024, %s271_s4, [#allocation10], %s11206_s2, %s11206_s2, %s11207_s20  }
  0x29   : > { %s37_s21 = sadd.s32 1, %s11197_s10  ;;  %s44_s27 = sadd.s32 1, %s11181_s29 }
  0x2a   : > { %s17159_s18 = smov (%p35_p0, %s34_s18), 0  ;;  %s17161_s21 = smov (!%p35_p0, %s37_s21), %s11197_s10 }
  0x2b   : > { %17126 = sst [smem:[#allocation23_spill]] %s17159_s18  ;;  %p52_p4 = scmp.eq.s32.totalorder %s11201_s11, 0 }
  0x2c   : > { %s199_s15 = ssub.s32 %s11193_s9, %s17159_s18  ;;  %p39_p5 = scmp.ge.s32.totalorder %s17161_s21, 2 }
  0x2d   : > { %p10614_p6 = scmp.lt.s32.totalorder %s11201_s11, 4  ;;  %p11386_p8 = por %p52_p4, %p51_p2 }
  0x2e   : > { %s284_s19 = sand.u32 1, %s11181_s29   ;;  %s17163_s21 = smov (%p39_p5, %s17161_s21), 0 }
  0x2f   : > { %s8476_s23 = sshll.u32 %s284_s19, 8  ;;  %s41_s12 = ssub.s32 %s11197_s10, %s17163_s21 }
  0x30   : > { %p42_p10 = scmp.eq.s32.totalorder %s41_s12, 0  ;;  %s200_s13 = sor.u32 %s199_s15, %s41_s12 }
  0x31   : > { %p201_p12 = scmp.eq.s32.totalorder %s200_s13, 0  ;;  %s10547_s2 = sshll.u32 %s11197_s10, 8 }
  0x32   : > { %s11397_s20 = scalar_select %p42_p10, %s11181_s29, %s44_s27  }
  0x33   : > { %s17128_s6 = sadd.s32 1, %s11169_s26  ;;  %s293_s7 = scalar_lea.hbm %s17091_s0, %s10547_s2 }
  0x34   : > { %s11402_s18 = scalar_select %p201_p12, %s11169_s26, %s17128_s6  }
  0x35   : > { %s288_s17 = scalar_lea.vmem [#allocation3], %s8476_s23  ;;  %s294_s3 = sshll.u32 %s293_s7, 4  ;;  %s295_s3 = int_to_ptr.hbm [resolvable:$true] %s294_s3 }
  0x36   : > { %s296_s8 = sshll.u32 %s288_s17, 4  ;;  %p10604_p13 = pnand %p10614_p6, %p11386_p8  ;;  %s297_s8 = int_to_ptr.vmem [resolvable:$true] %s296_s8 }
  0x37   : > { %s285_s15 = scalar_lea.sflag [#allocation4], %s284_s19  ;;  %s11208_s12 = smov 128  }
  0x38   : > { %s11209_s13 = smov 8   ;;  %317 = sbr.rel (%p11350_p11) target bundleno = 4208 (0x1070), region = 48 }
  0x39   : > { %10606 = dma.hbm_to_vmem [thread:$0]  (!%p10604_p13), %s295_s3, 4096, %s297_s8, %s285_s15, %s11208_s12, %s11208_s12, %s11209_s13  }
  0x3a   : > { %s319_s6 = sand.u32 (!%p11350_p11), 1, %s11177_s28  }
  0x3b   : > { %s8480_s24 = sshll.u32 (!%p11350_p11), %s319_s6, 8  ;;  %s320_s9 = scalar_lea.sflag (!%p11350_p11), [#allocation4], %s319_s6 }
  0x3c   : > { %s11414_s27 = scalar_lea.vmem (!%p11350_p11), [#allocation3], %s8480_s24 }
  0x3d   : > { %11144 = dma.done.wait (%p11331_p3), %s320_s9, 4096  }
  0x3e   : > { %11146 = vsyncadd (%p11331_p3), %s320_s9, 4294963200 }
  0x3f   : > { %11148 = dma.done.wait (%p11322_p1), [#allocation7], 32  }
  0x40   : > { %11150 = vsyncadd (%p11322_p1), [#allocation7], 4294967264 }
  0x41   : > { %11152 = dma.done.wait (%p11322_p1), [#allocation10], 1024  }
  0x42   : > { %11154 = vsyncadd (%p11322_p1), [#allocation10], 4294966272  ;;  %s17106_s3 = sand.u32 1, %s11165_s25   ;;  %s8485_s7 = sshll.u32 %s11185_s30, 5 }
  0x43   : > { %s8484_s8 = sshll.u32 %s17106_s3, 13  ;;  %p376_p3 = scmp.lt.s32.totalorder %s8485_s7, 63 }
  0x44   : > { %s11437_s19 = scalar_lea.vmem [#allocation11], %s8484_s8  ;;  %p8487_p11 = scmp.ne.s32.totalorder %s11185_s30, 0 }
  0x45   : > { %s17165_s7 = smov (!%p376_p3, %s8485_s7), 63 }
  0x46   : > { %s8486_s16 = sshll.u32 %s17165_s7, 3  ;;  %385 = sbr.rel (%p8487_p11) target bundleno = 2017 (0x7e1), region = 68 }
  0x47   : > { %s11435_s4 = scalar_lea.vmem %s17096_s5, %s8486_s16 }
  0x4b   : > { %v11441_v0 = vld [vmem:[%s11414_s27] sm:$0xff]  ;;  %v11444_v1 = vld [vmem:[%s11414_s27 + $0x8] sm:$0xff]  ;;  %vm547_vm0 = vcmask 1046528   ;;  %v11450_v4 = vld [vmem:[%s11414_s27 + $0x18] sm:$0xff]  ;;  %s11210_s14 = smov 16   ;;  %s11211_s23 = smov 32  }
  0x4c   : > { %v10730_v2 = vpack.i.bf16 %v11444_v1, %v11441_v0  ;;  %v548_v3 = vrot.slane %v11441_v0, 1  ;;  %v549_v5 = vrot.slane %v11444_v1, 1  ;;  %634 = vrot.lane.b32.xlu2 %v11450_v4, %s11210_s14  ;;  %v11459_v9 = vld [vmem:[%s11414_s27 + $0x10] sm:$0xff]  ;;  %v552_v10 = vrot.slane %v11450_v4, 1  ;;  %v11470_v14 = vld [vmem:[%s11414_s27 + $0x20] sm:$0xff]  ;;  %v11473_v15 = vld [vmem:[%s11414_s27 + $0x28] sm:$0xff] }
  0x4d   : > { %v551_v12 = vrot.slane %v11459_v9, 1  ;;  %v554_v16 = vrot.slane %v11470_v14, 1  ;;  %v555_v17 = vrot.slane %v11473_v15, 1  ;;  %v11479_v18 = vld [vmem:[%s11414_s27 + $0x30] sm:$0xff]  ;;  %v11482_v19 = vld [vmem:[%s11414_s27 + $0x38] sm:$0xff]  ;;  %v11500_v26 = vld [vmem:[%s11414_s27 + $0x48] sm:$0xff] }
  0x4e   : > { %10731 = vrot.lane.b32.xlu0 %v10730_v2, %s11210_s14  ;;  %v550_v6 = vsel %vm547_vm0, %v548_v3, %v549_v5  ;;  %v612_v7 = vsel %vm547_vm0, %v549_v5, 0.0  ;;  %v613_v11 = vsel %vm547_vm0, %v552_v10, 0.0  ;;  %v557_v20 = vrot.slane %v11479_v18, 1  ;;  %v11503_v27 = vld [vmem:[%s11414_s27 + $0x40] sm:$0xff]  ;;  %v11515_v32 = vld [vmem:[%s11414_s27 + $0x50] sm:$0xff]  ;;  %v11518_v33 = vld [vmem:[%s11414_s27 + $0x58] sm:$0xff] }
  0x4f   : > { %v10735_v8 = vpack.i.bf16 %v612_v7, %v550_v6  ;;  %v553_v13 = vsel %vm547_vm0, %v551_v12, %v552_v10  ;;  %v558_v21 = vrot.slane %v11482_v19, 1  ;;  %v556_v22 = vsel %vm547_vm0, %v554_v16, %v555_v17  ;;  %v11532_v38 = vld [vmem:[%s11414_s27 + $0x60] sm:$0xff]  ;;  %v11535_v39 = vld [vmem:[%s11414_s27 + $0x68] sm:$0xff]  ;;  %v11551_v47 = vld [vmem:[%s11414_s27 + $0x78] sm:$0xff]  ;;  %s11212_s2 = smov 48   ;;  %s11213_s15 = smov 96  }
  0x50   : > { %v614_v24 = vsel %vm547_vm0, %v555_v17, 0.0  ;;  %v560_v28 = vrot.slane %v11503_v27, 1  ;;  %v561_v29 = vrot.slane %v11500_v26, 1  ;;  %v563_v34 = vrot.slane %v11515_v32, 1  ;;  %v11554_v48 = vld [vmem:[%s11414_s27 + $0x70] sm:$0xff]  ;;  %v11566_v53 = vld [vmem:[%s11414_s27 + $0x80] sm:$0xff] }
  0x51   : > { %10736 = vrot.lane.b32.xlu1 %v10735_v8, %s11211_s23  ;;  %v559_v23 = vsel %vm547_vm0, %v557_v20, %v558_v21  ;;  %v615_v25 = vsel %vm547_vm0, %v558_v21, 0.0  ;;  %v564_v35 = vrot.slane %v11518_v33, 1  ;;  %v566_v40 = vrot.slane %v11532_v38, 1  ;;  %v11569_v54 = vld [vmem:[%s11414_s27 + $0x88] sm:$0xff]  ;;  %s17129_s17 = sld [smem:[#allocation30_spill]]  ;;  %s11216_s12 = smov 80  }
  0x52   : > { %v562_v30 = vsel %vm547_vm0, %v560_v28, %v561_v29  ;;  %v616_v31 = vsel %vm547_vm0, %v561_v29, 0.0  ;;  %v567_v41 = vrot.slane %v11535_v39, 1  ;;  %v454_v42 = vrot.slane %v11459_v9, 7  ;;  %s11217_s13 = smov 112  }
  0x53   : > { %v565_v36 = vsel %vm547_vm0, %v563_v34, %v564_v35  ;;  %v617_v37 = vsel %vm547_vm0, %v564_v35, 0.0  ;;  %vm450_vm1 = vcmask 1040384   ;;  %v455_v44 = vrot.slane %v11450_v4, 7 }
  0x54   : > { %746 = vrot.lane.b32.xlu2 %v613_v11, %s11211_s23  ;;  %v568_v43 = vsel %vm547_vm0, %v566_v40, %v567_v41  ;;  %v618_v46 = vsel %vm547_vm0, %v567_v41, 0.0  ;;  %v569_v49 = vrot.slane %v11554_v48, 1  ;;  %v570_v50 = vrot.slane %v11551_v47, 1 }
  0x55   : > { %v456_v45 = vsel %vm450_vm1, %v454_v42, %v455_v44  ;;  %v572_v55 = vrot.slane %v11566_v53, 1  ;;  %v573_v56 = vrot.slane %v11569_v54, 1  ;;  %v452_v58 = vrot.slane %v11444_v1, 7 }
  0x56   : > { %632 = vrot.lane.b32.xlu0 %v11459_v9, %s11210_s14  ;;  %v571_v51 = vsel %vm547_vm0, %v569_v49, %v570_v50  ;;  %v619_v52 = vsel %vm547_vm0, %v570_v50, 0.0  ;;  %v451_v59 = vrot.slane %v11441_v0, 7  ;;  %v461_v63 = vrot.slane %v11482_v19, 7 }
  0x57   : > { %v574_v57 = vsel %vm547_vm0, %v572_v55, %v573_v56  ;;  %v460_v2 = vrot.slane %v11479_v18, 7  ;;  %v464_v0 = vrot.slane %v11500_v26, 7  ;;  %vm836_vm2 = vcmask 130048  }
  0x58   : > { %v453_v60 = vsel %vm450_vm1, %v451_v59, %v452_v58  ;;  %v531_v1 = vsel %vm450_vm1, 0.0, %v451_v59  ;;  %v463_v11 = vrot.slane %v11503_v27, 7  ;;  %vm869_vm3 = vcmask 261120  }
  0x59   : > { %744 = vrot.lane.b32.xlu1 %v553_v13, %s11211_s23  ;;  %v462_v4 = vsel %vm450_vm1, %v460_v2, %v461_v63  ;;  %v466_v63 = vrot.slane %v11515_v32, 7  ;;  %vm1124_vm4 = vcmask 392192   ;;  %vm1157_vm5 = vcmask 785408  }
  0x5a   : > { %v465_v21 = vsel %vm450_vm1, %v463_v11, %v464_v0  ;;  %vm1980_vm6 = vcmask 523264   ;;  %vm12678_vm7 = vmneg %vm1157_vm5  ;;  %vm2848_vm8 = vcmask 1047556  }
  0x5c   : > { %638 = vrot.lane.b32.xlu2 %v11473_v15, %s11210_s14 }
  0x5e   : > { %636 = vrot.lane.b32.xlu0 %v11470_v14, %s11210_s14 }
  0x61   : > { %748 = vrot.lane.b32.xlu1 %v556_v22, %s11211_s23  ;;  %v532_v22 = vsel %vm450_vm1, 0.0, %v454_v42 }
  0x64   : > { %752 = vrot.lane.b32.xlu2 %v559_v23, %s11211_s23 }
  0x66   : > { %750 = vrot.lane.b32.xlu0 %v614_v24, %s11211_s23 }
  0x69   : > { %640 = vrot.lane.b32.xlu1 %v11479_v18, %s11210_s14 }
  0x6c   : > { %754 = vrot.lane.b32.xlu2 %v615_v25, %s11211_s23 }
  0x6e   : > { %642 = vrot.lane.b32.xlu0 %v11482_v19, %s11210_s14 }
  0x71   : > { %644 = vrot.lane.b32.xlu1 %v11503_v27, %s11210_s14 }
  0x74   : > { %756 = vrot.lane.b32.xlu2 %v562_v30, %s11211_s23 }
  0x76   : > { %758 = vrot.lane.b32.xlu0 %v616_v31, %s11211_s23  ;;  %v458_v31 = vrot.slane %v11473_v15, 7 }
  0x79   : > { %646 = vrot.lane.b32.xlu1 %v11500_v26, %s11210_s14  ;;  %v457_v26 = vrot.slane %v11470_v14, 7 }
  0x7b   : > { %v533_v14 = vsel %vm450_vm1, 0.0, %v457_v26 }
  0x7c   : > { %648 = vrot.lane.b32.xlu2 %v11515_v32, %s11210_s14 }
  0x7e   : > { %760 = vrot.lane.b32.xlu0 %v565_v36, %s11211_s23 }
  0x81   : > { %762 = vrot.lane.b32.xlu1 %v617_v37, %s11211_s23  ;;  %v459_v37 = vsel %vm450_vm1, %v457_v26, %v458_v31 }
  0x84   : > { %650 = vrot.lane.b32.xlu2 %v11518_v33, %s11210_s14 }
  0x86   : > { %652 = vrot.lane.b32.xlu0 %v11532_v38, %s11210_s14 }
  0x89   : > { %764 = vrot.lane.b32.xlu1 %v568_v43, %s11211_s23  ;;  %v534_v43 = vsel %vm450_vm1, 0.0, %v460_v2 }
  0x8c   : > { %766 = vrot.lane.b32.xlu2 %v618_v46, %s11211_s23 }
  0x8e   : > { %654 = vrot.lane.b32.xlu0 %v11535_v39, %s11210_s14 }
  0x91   : > { %656 = vrot.lane.b32.xlu1 %v11554_v48, %s11210_s14 }
  0x94   : > { %768 = vrot.lane.b32.xlu2 %v571_v51, %s11211_s23 }
  0x96   : > { %770 = vrot.lane.b32.xlu0 %v619_v52, %s11211_s23 }
  0x99   : > { %658 = vrot.lane.b32.xlu1 %v11551_v47, %s11210_s14 }
  0x9c   : > { %660 = vrot.lane.b32.xlu2 %v11566_v53, %s11210_s14 }
  0x9e   : > { %772 = vrot.lane.b32.xlu0 %v574_v57, %s11211_s23  ;;  %v535_v57 = vsel %vm450_vm1, 0.0, %v463_v11 }
  0xa4   : > { %662 = vrot.lane.b32.xlu2 %v11569_v54, %s11210_s14 }
  0xa6   : > { %v635_v61 = vpop.permute.xlu2 %634 }
  0xa7   : > { %v840_v23 = vsel %vm836_vm2, %v456_v45, %v635_v61 }
  0xae   : > { %v747_v62 = vpop.permute.xlu2 %746 }
  0xaf   : > { %v11611_v27 = vsel %vm869_vm3, %v840_v23, %v747_v62 }
  0xb6   : > { %v639_v3 = vpop.permute.xlu2 %638 }
  0xb7   : > { %v842_v41 = vsel %vm836_vm2, %v459_v37, %v639_v3  ;;  %v536_v3 = vsel %vm450_vm1, 0.0, %v466_v63 }
  0xbe   : > { %v753_v18 = vpop.permute.xlu2 %752 }
  0xc0   : > { %v10732_v5 = vpop.permute.xlu0 %10731 }
  0xc1   : > { %v10734_v6 = vunpack.i.h.bf16 %v10732_v5  ;;  %v10733_v7 = vunpack.i.l.bf16 %v10732_v5 }
  0xc3   : > { %v10737_v8 = vpop.permute.xlu1 %10736  ;;  %v837_v12 = vsel %vm836_vm2, %v531_v1, %v10733_v7  ;;  %v838_v13 = vsel %vm836_vm2, %v453_v60, %v10734_v6  ;;  %v473_v7 = vrot.slane %v11551_v47, 7 }
  0xc4   : > { %v10739_v9 = vunpack.i.h.bf16 %v10737_v8  ;;  %v10738_v10 = vunpack.i.l.bf16 %v10737_v8 }
  0xc6   : > { %v11597_v16 = vsel %vm869_vm3, %v837_v12, %v10738_v10  ;;  %v11600_v17 = vsel %vm869_vm3, %v838_v13, %v10739_v9  ;;  %v755_v34 = vpop.permute.xlu2 %754  ;;  %v469_v13 = vrot.slane %v11532_v38, 7  ;;  %v470_v38 = vrot.slane %v11535_v39, 7 }
  0xc7   : > { %v10740_v20 = vpack.i.bf16 %v11600_v17, %v11597_v16 }
  0xc8   : > { %v633_v19 = vpop.permute.xlu0 %632  ;;  %v471_v26 = vsel %vm450_vm1, %v469_v13, %v470_v38  ;;  %v1190_v38 = vld [vmem:[%s17092_s1] sm:$0xff] }
  0xc9   : > { %10741 = vrot.lane.b32.xlu1 %v10740_v20, %s11212_s2  ;;  %v839_v24 = vsel %vm836_vm2, %v532_v22, %v633_v19  ;;  %v537_v20 = vsel %vm450_vm1, 0.0, %v469_v13  ;;  %v1192_v13 = vld [vmem:[%s17092_s1 + $0x10] sm:$0xff] }
  0xcb   : > { %v745_v25 = vpop.permute.xlu1 %744 }
  0xcc   : > { %v11614_v28 = vsel %vm869_vm3, %v839_v24, %v745_v25  ;;  %v11705_v25 = vld [vmem:[%s11414_s27 + $0x90] sm:$0xff] }
  0xcd   : > { %1031 = vrot.lane.b32.xlu0 %v11614_v28, %s11213_s15  ;;  %v10745_v29 = vpack.i.bf16 %v11611_v27, %v11614_v28 }
  0xce   : > { %v757_v45 = vpop.permute.xlu2 %756 }
  0xcf   : > { %10746 = vrot.lane.b32.xlu2 %v10745_v29, %s11212_s2  ;;  %v1205_v29 = vld [vmem:[%s17092_s1 + $0x78] sm:$0xff] }
  0xd0   : > { %v637_v30 = vpop.permute.xlu0 %636  ;;  %1274 = vmatpush.msra.mxu0 %v1205_v29  ;;  %10549 = vmatpush.msra.mxu2 %v1205_v29 }
  0xd1   : > { %v841_v35 = vsel %vm836_vm2, %v533_v14, %v637_v30  ;;  %v620_v30 = vsel %vm547_vm0, %v573_v56, 0.0  ;;  %v11719_v14 = vld [vmem:[%s11414_s27 + $0x98] sm:$0xff]  ;;  %v1203_v56 = vld [vmem:[%s17092_s1 + $0x68] sm:$0xff] }
  0xd3   : > { %v749_v36 = vpop.permute.xlu1 %748 }
  0xd4   : > { %v11626_v40 = vsel %vm869_vm3, %v841_v35, %v749_v36  ;;  %v1204_v35 = vld [vmem:[%s17092_s1 + $0x70] sm:$0xff]  ;;  %v575_v36 = vrot.slane %v11705_v25, 1 }
  0xd5   : > { %1033 = vrot.lane.b32.xlu0 %v11611_v27, %s11213_s15  ;;  %1035 = vrot.lane.b32.xlu1 %v11626_v40, %s11213_s15 }
  0xd6   : > { %v649_v61 = vpop.permute.xlu2 %648  ;;  %1275 = vmatpush.msra.mxu0 %v1204_v35  ;;  %10550 = vmatpush.msra.mxu2 %v1204_v35 }
  0xd7   : > { %v847_v1 = vsel %vm836_vm2, %v536_v3, %v649_v61 }
  0xd8   : > { %v751_v15 = vpop.permute.xlu0 %750  ;;  %1276 = vmatpush.msra.mxu0 %v1203_v56  ;;  %10551 = vmatpush.msra.mxu2 %v1203_v56 }
  0xd9   : > { %v11634_v42 = vsel %vm869_vm3, %v842_v41, %v751_v15  ;;  %v576_v41 = vrot.slane %v11719_v14, 1  ;;  %v1202_v15 = vld [vmem:[%s17092_s1 + $0x60] sm:$0xff] }
  0xda   : > { %v10750_v44 = vpack.i.bf16 %v11634_v42, %v11626_v40  ;;  %1277 = vmatpush.msra.mxu0 %v1202_v15  ;;  %10552 = vmatpush.msra.mxu2 %v1202_v15 }
  0xdb   : > { %v641_v46 = vpop.permute.xlu1 %640 }
  0xdc   : > { %v843_v49 = vsel %vm836_vm2, %v534_v43, %v641_v46 }
  0xdd   : > { %10751 = vrot.lane.b32.xlu0 %v10750_v44, %s11212_s2  ;;  %1037 = vrot.lane.b32.xlu1 %v11634_v42, %s11213_s15  ;;  %v11644_v50 = vsel %vm869_vm3, %v843_v49, %v753_v18  ;;  %v577_v44 = vsel %vm547_vm0, %v575_v36, %v576_v41 }
  0xde   : > { %1039 = vrot.lane.b32.xlu2 %v11644_v50, %s11213_s15  ;;  %v651_v9 = vpop.permute.xlu2 %650 }
  0xe0   : > { %v643_v51 = vpop.permute.xlu0 %642 }
  0xe1   : > { %v844_v52 = vsel %vm836_vm2, %v462_v4, %v643_v51  ;;  %v467_v4 = vrot.slane %v11518_v33, 7  ;;  %v472_v33 = vrot.slane %v11554_v48, 7  ;;  %v1201_v51 = vld [vmem:[%s17092_s1 + $0x58] sm:$0xff] }
  0xe2   : > { %v11650_v55 = vsel %vm869_vm3, %v844_v52, %v755_v34  ;;  %v621_v52 = vsel %vm547_vm0, %v576_v41, 0.0  ;;  %1278 = vmatpush.msra.mxu0 %v1201_v51  ;;  %10553 = vmatpush.msra.mxu2 %v1201_v51 }
  0xe3   : > { %v10755_v58 = vpack.i.bf16 %v11650_v55, %v11644_v50  ;;  %v645_v59 = vpop.permute.xlu1 %644  ;;  %v468_v8 = vsel %vm450_vm1, %v466_v63, %v467_v4  ;;  %v11687_v12 = vsel %vm450_vm1, %v472_v33, %v473_v7 }
  0xe4   : > { %v845_v60 = vsel %vm836_vm2, %v535_v57, %v645_v59  ;;  %v848_v11 = vsel %vm836_vm2, %v468_v8, %v651_v9  ;;  %v1200_v57 = vld [vmem:[%s17092_s1 + $0x50] sm:$0xff]  ;;  %v11756_v59 = vld [vmem:[%s11414_s27 + $0xa8] sm:$0xff] }
  0xe5   : > { %10756 = vrot.lane.b32.xlu1 %v10755_v58, %s11212_s2  ;;  %v11658_v62 = vsel %vm869_vm3, %v845_v60, %v757_v45  ;;  %v538_v45 = vsel %vm450_vm1, 0.0, %v472_v33  ;;  %v11753_v58 = vld [vmem:[%s11414_s27 + $0xa0] sm:$0xff]  ;;  %v1199_v60 = vld [vmem:[%s17092_s1 + $0x48] sm:$0xff]  ;;  %1279 = vmatpush.msra.mxu0 %v1200_v57 }
  0xe6   : > { %1041 = vrot.lane.b32.xlu2 %v11650_v55, %s11213_s15  ;;  %1043 = vrot.lane.b32.xlu0 %v11658_v62, %s11213_s15  ;;  %v767_v31 = vpop.permute.xlu2 %766  ;;  %v578_v4 = vrot.slane %v11753_v58, 1  ;;  %v1195_v9 = vld [vmem:[%s17092_s1 + $0x28] sm:$0xff] }
  0xe7   : > { %10554 = vmatpush.msra.mxu2 %v1200_v57  ;;  %1280 = vmatpush.msra.mxu0 %v1199_v60 }
  0xe8   : > { %v759_v2 = vpop.permute.xlu0 %758 }
  0xe9   : > { %10555 = vmatpush.msra.mxu2 %v1199_v60 }
  0xeb   : > { %v647_v5 = vpop.permute.xlu1 %646 }
  0xec   : > { %v846_v6 = vsel %vm836_vm2, %v465_v21, %v647_v5  ;;  %v579_v5 = vrot.slane %v11756_v59, 1 }
  0xed   : > { %v11671_v0 = vsel %vm869_vm3, %v846_v6, %v759_v2  ;;  %v1198_v2 = vld [vmem:[%s17092_s1 + $0x40] sm:$0xff]  ;;  %v1197_v6 = vld [vmem:[%s17092_s1 + $0x38] sm:$0xff] }
  0xee   : > { %1045 = vrot.lane.b32.xlu0 %v11671_v0, %s11213_s15  ;;  %v10760_v32 = vpack.i.bf16 %v11671_v0, %v11658_v62  ;;  %v769_v49 = vpop.permute.xlu2 %768  ;;  %1281 = vmatpush.msra.mxu0 %v1198_v2  ;;  %v580_v8 = vsel %vm547_vm0, %v578_v4, %v579_v5 }
  0xef   : > { %10556 = vmatpush.msra.mxu2 %v1198_v2 }
  0xf0   : > { %v761_v10 = vpop.permute.xlu0 %760  ;;  %10761 = vrot.lane.b32.xlu2 %v10760_v32, %s11212_s2  ;;  %v1196_v32 = vld [vmem:[%s17092_s1 + $0x30] sm:$0xff]  ;;  %1282 = vmatpush.msra.mxu0 %v1197_v6 }
  0xf1   : > { %v11681_v47 = vsel %vm869_vm3, %v847_v1, %v761_v10  ;;  %10557 = vmatpush.msra.mxu2 %v1197_v6  ;;  %v1194_v10 = vld [vmem:[%s17092_s1 + $0x20] sm:$0xff] }
  0xf2   : > { %1047 = vrot.lane.b32.xlu1 %v11681_v47, %s11213_s15  ;;  %1283 = vmatpush.msra.mxu0 %v1196_v32 }
  0xf3   : > { %v763_v18 = vpop.permute.xlu1 %762  ;;  %10558 = vmatpush.msra.mxu2 %v1196_v32  ;;  %v479_v32 = vrot.slane %v11719_v14, 7 }
  0xf4   : > { %v11691_v48 = vsel %vm869_vm3, %v848_v11, %v763_v18  ;;  %1284 = vmatpush.msra.mxu0 %v1195_v9  ;;  %v1193_v11 = vld [vmem:[%s17092_s1 + $0x18] sm:$0xff]  ;;  %v475_v18 = vrot.slane %v11566_v53, 7 }
  0xf5   : > { %v10765_v19 = vpack.i.bf16 %v11691_v48, %v11681_v47  ;;  %10559 = vmatpush.msra.mxu2 %v1195_v9 }
  0xf6   : > { %1285 = vmatpush.msra.mxu0 %v1194_v10 }
  0xf7   : > { %10766 = vrot.lane.b32.xlu0 %v10765_v19, %s11212_s2  ;;  %10560 = vmatpush.msra.mxu2 %v1194_v10  ;;  %v622_v19 = vsel %vm547_vm0, %v579_v5, 0.0 }
  0xf8   : > { %v653_v21 = vpop.permute.xlu0 %652  ;;  %1286 = vmatpush.msra.mxu0 %v1193_v11 }
  0xf9   : > { %v849_v22 = vsel %vm836_vm2, %v537_v20, %v653_v21  ;;  %10561 = vmatpush.msra.mxu2 %v1193_v11  ;;  %v1207_v20 = vld [vmem:[%s17092_s1 + $0x88] sm:$0xff] }
  0xfa   : > { %1049 = vrot.lane.b32.xlu1 %v11691_v48, %s11213_s15  ;;  %1287 = vmatpush.msra.mxu0 %v1192_v13  ;;  %v1191_v21 = vld [vmem:[%s17092_s1 + $0x8] sm:$0xff] }
  0xfb   : > { %v765_v23 = vpop.permute.xlu1 %764  ;;  %10562 = vmatpush.msra.mxu2 %v1192_v13  ;;  %1401 = vmatpush.msra.mxu1 %v1207_v20 }
  0xfc   : > { %v11702_v24 = vsel %vm869_vm3, %v849_v22, %v765_v23  ;;  %v1206_v22 = vld [vmem:[%s17092_s1 + $0x80] sm:$0xff]  ;;  %1288 = vmatpush.msra.mxu0 %v1191_v21  ;;  %v539_v23 = vsel %vm450_vm1, 0.0, %v475_v18  ;;  %10565 = vmatpush.msra.mxu3 %v1207_v20 }
  0xfd   : > { %1051 = vrot.lane.b32.xlu2 %v11702_v24, %s11213_s15  ;;  %10563 = vmatpush.msra.mxu2 %v1191_v21 }
  0xfe   : > { %1402 = vmatpush.msra.mxu1 %v1206_v22  ;;  %1289 = vmatpush.msra.mxu0 %v1190_v38 }
  0xff   : > { %664 = vrot.lane.b32.xlu0 %v11705_v25, %s11210_s14  ;;  %10564 = vmatpush.msra.mxu2 %v1190_v38 }
 0x100   : > { %v655_v39 = vpop.permute.xlu0 %654  ;;  %10566 = vmatpush.msra.mxu3 %v1206_v22 }
 0x101   : > { %v850_v34 = vsel %vm836_vm2, %v471_v26, %v655_v39  ;;  %v661_v26 = vpop.permute.xlu2 %660 }
 0x102   : > { %774 = vrot.lane.b32.xlu1 %v620_v30, %s11211_s23  ;;  %v11731_v37 = vsel %vm869_vm3, %v850_v34, %v767_v31  ;;  %v853_v29 = vsel %vm836_vm2, %v539_v23, %v661_v26  ;;  %v11834_v31 = vld [vmem:[%s11414_s27 + $0xb0] sm:$0xff]  ;;  %v11837_v34 = vld [vmem:[%s11414_s27 + $0xb8] sm:$0xff] }
 0x103   : > { %v657_v43 = vpop.permute.xlu1 %656  ;;  %v10770_v63 = vpack.i.bf16 %v11731_v37, %v11702_v24  ;;  %v581_v35 = vrot.slane %v11834_v31, 1  ;;  %v582_v56 = vrot.slane %v11837_v34, 1 }
 0x104   : > { %v851_v46 = vsel %vm836_vm2, %v538_v45, %v657_v43 }
 0x105   : > { %1053 = vrot.lane.b32.xlu2 %v11731_v37, %s11213_s15  ;;  %v11762_v61 = vsel %vm869_vm3, %v851_v46, %v769_v49  ;;  %v583_v36 = vsel %vm547_vm0, %v581_v35, %v582_v56 }
 0x107   : > { %666 = vrot.lane.b32.xlu0 %v11719_v14, %s11210_s14 }
 0x108   : > { %v771_v1 = vpop.permute.xlu0 %770 }
 0x109   : > { %v663_v43 = vpop.permute.xlu2 %662 }
 0x10a   : > { %776 = vrot.lane.b32.xlu1 %v577_v44, %s11211_s23 }
 0x10b   : > { %v659_v3 = vpop.permute.xlu1 %658 }
 0x10c   : > { %v852_v7 = vsel %vm836_vm2, %v11687_v12, %v659_v3 }
 0x10d   : > { %778 = vrot.lane.b32.xlu2 %v621_v52, %s11211_s23  ;;  %v11788_v33 = vsel %vm869_vm3, %v852_v7, %v771_v1  ;;  %v478_v1 = vrot.slane %v11705_v25, 7 }
 0x10e   : > { %v10775_v12 = vpack.i.bf16 %v11788_v33, %v11762_v61 }
 0x10f   : > { %1055 = vrot.lane.b32.xlu0 %v11762_v61, %s11213_s15 }
 0x110   : > { %v773_v30 = vpop.permute.xlu0 %772 }
 0x111   : > { %v11829_v39 = vsel %vm869_vm3, %v853_v29, %v773_v30 }
 0x112   : > { %10771 = vrot.lane.b32.xlu1 %v10770_v63, %s11212_s2 }
 0x115   : > { %780 = vrot.lane.b32.xlu2 %v580_v8, %s11211_s23 }
 0x117   : > { %1057 = vrot.lane.b32.xlu0 %v11788_v33, %s11213_s15 }
 0x11a   : > { %668 = vrot.lane.b32.xlu1 %v11753_v58, %s11210_s14 }
 0x11d   : > { %10776 = vrot.lane.b32.xlu2 %v10775_v12, %s11212_s2 }
 0x11f   : > { %782 = vrot.lane.b32.xlu0 %v622_v19, %s11211_s23 }
 0x122   : > { %670 = vrot.lane.b32.xlu1 %v11756_v59, %s11210_s14 }
 0x125   : > { %672 = vrot.lane.b32.xlu2 %v11834_v31, %s11210_s14 }
 0x127   : > { %784 = vrot.lane.b32.xlu0 %v583_v36, %s11211_s23 }
 0x129   : > { %v10747_v60 = vpop.permute.xlu2 %10746 }
 0x12a   : > { %1059 = vrot.lane.b32.xlu1 %v11829_v39, %s11213_s15  ;;  %v10748_v2 = vunpack.i.l.bf16 %v10747_v60  ;;  %v10749_v7 = vunpack.i.h.bf16 %v10747_v60  ;;  %v11905_v60 = vld [vmem:[%s11414_s27 + $0xc0] sm:$0xff] }
 0x12c   : > { %v1127_v3 = vsel %vm1124_vm4, %v11597_v16, %v10748_v2  ;;  %v1128_v8 = vsel %vm1124_vm4, %v11600_v17, %v10749_v7  ;;  %v11866_v16 = vsel %vm450_vm1, %v478_v1, %v479_v32  ;;  %v11915_v2 = vld [vmem:[%s11414_s27 + $0xd8] sm:$0xff] }
 0x12d   : > { %674 = vrot.lane.b32.xlu2 %v11837_v34, %s11210_s14 }
 0x138   : > { %v1040_v12 = vpop.permute.xlu2 %1039 }
 0x13b   : > { %v10742_v41 = vpop.permute.xlu1 %10741 }
 0x13c   : > { %v10743_v15 = vunpack.i.l.bf16 %v10742_v41  ;;  %v10744_v49 = vunpack.i.h.bf16 %v10742_v41 }
 0x13e   : > { %v1125_v44 = vsel %vm1124_vm4, 0.0, %v10743_v15  ;;  %v1126_v57 = vsel %vm1124_vm4, 0.0, %v10744_v49 }
 0x13f   : > { %v1032_v45 = vpop.permute.xlu0 %1031 }
 0x140   : > { %8488 = vmatmul.msk.f32.vlgmr.msra.gmra.mxu1 %vm836_vm2, %v1032_v45  ;;  %v1158_v46 = vsel %vm1157_vm5, %v1125_v44, %v1032_v45  ;;  %v1042_v21 = vpop.permute.xlu2 %1041 }
 0x141   : > { %1290 = vmatmul.f32.vlgmr.msra.gmra.mxu0 %v1158_v46 }
 0x147   : > { %v1034_v51 = vpop.permute.xlu0 %1033  ;;  %v1036_v52 = vpop.permute.xlu1 %1035 }
 0x148   : > { %8489 = vmatmul.msk.f32.gmra.mxu1 %vm836_vm2, %v1034_v51  ;;  %v1159_v63 = vsel %vm1157_vm5, %v1126_v57, %v1034_v51  ;;  %v1160_v5 = vsel %vm1157_vm5, %v1127_v3, %v1036_v52  ;;  %v623_v51 = vsel %vm547_vm0, %v582_v56, 0.0  ;;  %v11920_v3 = vld [vmem:[%s11414_s27 + $0xc8] sm:$0xff]  ;;  %v584_v56 = vrot.slane %v11905_v60, 1 }
 0x149   : > { %1293 = vmatmul.f32.gmra.mxu0 %v1159_v63  ;;  %v11908_v63 = vld [vmem:[%s11414_s27 + $0xd0] sm:$0xff]  ;;  %v585_v32 = vrot.slane %v11920_v3, 1 }
 0x14a   : > { %v10762_v29 = vpop.permute.xlu2 %10761  ;;  %v587_v7 = vrot.slane %v11908_v63, 1 }
 0x14f   : > { %v10752_v4 = vpop.permute.xlu0 %10751  ;;  %v1038_v6 = vpop.permute.xlu1 %1037 }
 0x150   : > { %8490 = vmatmul.msk.f32.gmra.mxu1 %vm836_vm2, %v1036_v52  ;;  %v1161_v9 = vsel %vm1157_vm5, %v1128_v8, %v1038_v6  ;;  %v10753_v10 = vunpack.i.l.bf16 %v10752_v4  ;;  %v10754_v17 = vunpack.i.h.bf16 %v10752_v4  ;;  %v10763_v52 = vunpack.i.l.bf16 %v10762_v29 }
 0x151   : > { %1296 = vmatmul.f32.gmra.mxu0 %v1160_v5  ;;  %v586_v8 = vsel %vm547_vm0, %v584_v56, %v585_v32 }
 0x152   : > { %v1129_v25 = vsel %vm1124_vm4, %v11614_v28, %v10753_v10  ;;  %v1130_v22 = vsel %vm1124_vm4, %v11611_v27, %v10754_v17  ;;  %v476_v28 = vrot.slane %v11569_v54, 7  ;;  %v1133_v5 = vsel %vm1124_vm4, %v11644_v50, %v10763_v52 }
 0x153   : > { %v1162_v14 = vsel %vm1157_vm5, %v1129_v25, %v1040_v12  ;;  %v1163_v38 = vsel %vm1157_vm5, %v1130_v22, %v1042_v21 }
 0x154   : > { %v477_v35 = vsel %vm450_vm1, %v475_v18, %v476_v28  ;;  %v540_v18 = vsel %vm450_vm1, 0.0, %v478_v1  ;;  %v588_v1 = vrot.slane %v11915_v2, 1 }
 0x155   : > { %v854_v41 = vsel %vm836_vm2, %v477_v35, %v663_v43  ;;  %v11972_v35 = vld [vmem:[%s11414_s27 + $0xe8] sm:$0xff] }
 0x157   : > { %v10757_v13 = vpop.permute.xlu1 %10756 }
 0x158   : > { %8491 = vmatmul.msk.f32.gmra.mxu1 %vm836_vm2, %v1038_v6  ;;  %v1044_v11 = vpop.permute.xlu0 %1043  ;;  %v10758_v23 = vunpack.i.l.bf16 %v10757_v13  ;;  %v10759_v15 = vunpack.i.h.bf16 %v10757_v13 }
 0x159   : > { %1299 = vmatmul.f32.gmra.mxu0 %v1161_v9  ;;  %v10764_v9 = vunpack.i.h.bf16 %v10762_v29 }
 0x15a   : > { %v1131_v30 = vsel %vm1124_vm4, %v11626_v40, %v10758_v23  ;;  %v1052_v40 = vpop.permute.xlu2 %1051  ;;  %v1132_v43 = vsel %vm1124_vm4, %v11634_v42, %v10759_v15 }
 0x15b   : > { %v1164_v27 = vsel %vm1157_vm5, %v1131_v30, %v1044_v11  ;;  %v11969_v30 = vld [vmem:[%s11414_s27 + $0xe0] sm:$0xff] }
 0x160   : > { %8492 = vmatmul.msk.f32.gmra.mxu1 %vm836_vm2, %v1040_v12  ;;  %v1046_v20 = vpop.permute.xlu0 %1045  ;;  %v1134_v12 = vsel %vm1124_vm4, %v11650_v55, %v10764_v9  ;;  %v481_v55 = vrot.slane %v11753_v58, 7 }
 0x161   : > { %1302 = vmatmul.f32.gmra.mxu0 %v1162_v14  ;;  %v1165_v46 = vsel %vm1157_vm5, %v1132_v43, %v1046_v20 }
 0x162   : > { %v1054_v4 = vpop.permute.xlu2 %1053 }
 0x164   : > { %v1048_v19 = vpop.permute.xlu1 %1047 }
 0x165   : > { %v1166_v6 = vsel %vm1157_vm5, %v1133_v5, %v1048_v19 }
 0x168   : > { %8493 = vmatmul.msk.f32.gmra.mxu1 %vm836_vm2, %v1042_v21 }
 0x169   : > { %1305 = vmatmul.f32.gmra.mxu0 %v1163_v38  ;;  %v11882_v36 = vpop.permute.xlu0 %10766  ;;  %v624_v38 = vsel %vm547_vm0, %v585_v32, 0.0 }
 0x16a   : > { %v779_v25 = vpop.permute.xlu2 %778  ;;  %v10768_v14 = vunpack.i.l.bf16 %v11882_v36  ;;  %v10769_v22 = vunpack.i.h.bf16 %v11882_v36 }
 0x16c   : > { %v1050_v26 = vpop.permute.xlu1 %1049  ;;  %v1136_v58 = vsel %vm1124_vm4, %v11671_v0, %v10769_v22  ;;  %v591_v0 = vrot.slane %v11972_v35, 1 }
 0x16d   : > { %v1167_v13 = vsel %vm1157_vm5, %v1134_v12, %v1050_v26  ;;  %v1169_v15 = vsel %vm1157_vm5, %v1136_v58, %v1054_v4 }
 0x170   : > { %8494 = vmatmul.msk.f32.gmra.mxu1 %vm836_vm2, %v1044_v11  ;;  %v589_v11 = vsel %vm547_vm0, %v587_v7, %v588_v1 }
 0x171   : > { %1308 = vmatmul.f32.gmra.mxu0 %v1164_v27  ;;  %v665_v45 = vpop.permute.xlu0 %664 }
 0x172   : > { %v855_v49 = vsel %vm836_vm2, %v540_v18, %v665_v45  ;;  %v781_v23 = vpop.permute.xlu2 %780 }
 0x174   : > { %v775_v54 = vpop.permute.xlu1 %774 }
 0x175   : > { %v11888_v44 = vsel %vm869_vm3, %v854_v41, %v775_v54  ;;  %v482_v41 = vrot.slane %v11756_v59, 7  ;;  %v590_v54 = vrot.slane %v11969_v30, 1 }
 0x176   : > { %1061 = vrot.lane.b32.xlu1 %v11888_v44, %s11213_s15  ;;  %v10780_v53 = vpack.i.bf16 %v11888_v44, %v11829_v39 }
 0x177   : > { %v483_v18 = vsel %vm450_vm1, %v481_v55, %v482_v41  ;;  %v592_v43 = vsel %vm547_vm0, %v590_v54, %v591_v0 }
 0x178   : > { %10781 = vrot.lane.b32.xlu0 %v10780_v53, %s11212_s2  ;;  %8495 = vmatmul.msk.f32.gmra.mxu1 %vm836_vm2, %v1046_v20 }
 0x179   : > { %1311 = vmatmul.f32.gmra.mxu0 %v1165_v46  ;;  %v667_v10 = vpop.permute.xlu0 %666 }
 0x17a   : > { %v856_v50 = vsel %vm836_vm2, %v11866_v16, %v667_v10  ;;  %v1135_v16 = vsel %vm1124_vm4, %v11658_v62, %v10768_v14  ;;  %v625_v62 = vsel %vm547_vm0, %v588_v1, 0.0  ;;  %v10777_v45 = vpop.permute.xlu2 %10776 }
 0x17b   : > { %v1168_v21 = vsel %vm1157_vm5, %v1135_v16, %v1052_v40  ;;  %v10778_v10 = vunpack.i.l.bf16 %v10777_v45 }
 0x17c   : > { %v777_v57 = vpop.permute.xlu1 %776 }
 0x17d   : > { %v11911_v42 = vsel %vm869_vm3, %v855_v49, %v777_v57 }
 0x17e   : > { %786 = vrot.lane.b32.xlu1 %v623_v51, %s11211_s23  ;;  %1063 = vrot.lane.b32.xlu2 %v11911_v42, %s11213_s15 }
 0x180   : > { %676 = vrot.lane.b32.xlu0 %v11905_v60, %s11210_s14  ;;  %8496 = vmatmul.msk.f32.gmra.mxu1 %vm836_vm2, %v1048_v19  ;;  %v11946_v19 = vsel %vm869_vm3, %v856_v50, %v779_v25  ;;  %v12022_v50 = vld [vmem:[%s11414_s27 + $0xf8] sm:$0xff]  ;;  %v1139_v25 = vsel %vm1124_vm4, %v11702_v24, %v10778_v10 }
 0x181   : > { %1314 = vmatmul.f32.gmra.mxu0 %v1166_v6  ;;  %v1056_v20 = vpop.permute.xlu0 %1055  ;;  %v10785_v28 = vpack.i.bf16 %v11946_v19, %v11911_v42 }
 0x182   : > { %v673_v5 = vpop.permute.xlu2 %672 }
 0x184   : > { %v10772_v17 = vpop.permute.xlu1 %10771 }
 0x185   : > { %v10774_v56 = vunpack.i.h.bf16 %v10772_v17 }
 0x186   : > { %680 = vrot.lane.b32.xlu1 %v11908_v63, %s11210_s14  ;;  %788 = vrot.lane.b32.xlu2 %v586_v8, %s11211_s23 }
 0x187   : > { %v1138_v7 = vsel %vm1124_vm4, %v11691_v48, %v10774_v56 }
 0x188   : > { %792 = vrot.lane.b32.xlu0 %v589_v11, %s11211_s23  ;;  %8497 = vmatmul.msk.f32.gmra.mxu1 %vm836_vm2, %v1050_v26  ;;  %v541_v26 = vsel %vm450_vm1, 0.0, %v481_v55  ;;  %v12019_v11 = vld [vmem:[%s11414_s27 + $0xf0] sm:$0xff]  ;;  %v487_v55 = vrot.slane %v11905_v60, 7  ;;  %s11214_s27 = smov 64  }
 0x189   : > { %1317 = vmatmul.f32.gmra.mxu0 %v1167_v13  ;;  %v1058_v36 = vpop.permute.xlu0 %1057  ;;  %v593_v12 = vrot.slane %v12019_v11, 1  ;;  %v594_v13 = vrot.slane %v12022_v50, 1 }
 0x18a   : > { %v675_v24 = vpop.permute.xlu2 %674 }
 0x18c   : > { %v669_v29 = vpop.permute.xlu1 %668 }
 0x18d   : > { %v857_v27 = vsel %vm836_vm2, %v541_v26, %v669_v29 }
 0x18e   : > { %1065 = vrot.lane.b32.xlu1 %v11946_v19, %s11213_s15  ;;  %678 = vrot.lane.b32.xlu2 %v11920_v3, %s11210_s14  ;;  %v11983_v53 = vsel %vm869_vm3, %v857_v27, %v781_v23  ;;  %v10779_v23 = vunpack.i.h.bf16 %v10777_v45 }
 0x190   : > { %682 = vrot.lane.b32.xlu0 %v11915_v2, %s11210_s14  ;;  %8498 = vmatmul.msk.f32.gmra.mxu1 %vm836_vm2, %v1052_v40  ;;  %v10773_v40 = vunpack.i.l.bf16 %v10772_v17  ;;  %v595_v17 = vsel %vm547_vm0, %v593_v12, %v594_v13 }
 0x191   : > { %1320 = vmatmul.f32.gmra.mxu0 %v1168_v21  ;;  %v783_v51 = vpop.permute.xlu0 %782 }
 0x192   : > { %v1137_v59 = vsel %vm1124_vm4, %v11681_v47, %v10773_v40  ;;  %v626_v47 = vsel %vm547_vm0, %v591_v0, 0.0 }
 0x193   : > { %v1170_v52 = vsel %vm1157_vm5, %v1137_v59, %v1056_v20 }
 0x194   : > { %v671_v46 = vpop.permute.xlu1 %670 }
 0x195   : > { %v858_v49 = vsel %vm836_vm2, %v483_v18, %v671_v46 }
 0x196   : > { %790 = vrot.lane.b32.xlu1 %v624_v38, %s11211_s23  ;;  %794 = vrot.lane.b32.xlu2 %v625_v62, %s11211_s23  ;;  %v11998_v57 = vsel %vm869_vm3, %v858_v49, %v783_v51 }
 0x197   : > { %v10790_v8 = vpack.i.bf16 %v11998_v57, %v11983_v53 }
 0x198   : > { %10786 = vrot.lane.b32.xlu0 %v10785_v28, %s11212_s2  ;;  %8499 = vmatmul.msk.f32.gmra.mxu1 %vm836_vm2, %v1054_v4  ;;  %v484_v4 = vrot.slane %v11834_v31, 7  ;;  %v1171_v31 = vsel %vm1157_vm5, %v1138_v7, %v1058_v36  ;;  %v485_v28 = vrot.slane %v11837_v34, 7 }
 0x199   : > { %1323 = vmatmul.f32.gmra.mxu0 %v1169_v15  ;;  %v785_v32 = vpop.permute.xlu0 %784 }
 0x19a   : > { %v542_v6 = vsel %vm450_vm1, 0.0, %v484_v4 }
 0x19b   : > { %v859_v1 = vsel %vm836_vm2, %v542_v6, %v673_v5 }
 0x19c   : > { %v12016_v9 = vsel %vm869_vm3, %v859_v1, %v785_v32  ;;  %v1060_v48 = vpop.permute.xlu1 %1059  ;;  %v491_v32 = vrot.slane %v11915_v2, 7 }
 0x19d   : > { %v1172_v14 = vsel %vm1157_vm5, %v1139_v25, %v1060_v48 }
 0x19e   : > { %1067 = vrot.lane.b32.xlu1 %v11983_v53, %s11213_s15  ;;  %684 = vrot.lane.b32.xlu2 %v11969_v30, %s11210_s14 }
 0x1a0   : > { %796 = vrot.lane.b32.xlu0 %v592_v43, %s11211_s23  ;;  %8500 = vmatmul.msk.f32.gmra.mxu1 %vm836_vm2, %v1056_v20  ;;  %v488_v20 = vrot.slane %v11920_v3, 7  ;;  %v1140_v3 = vsel %vm1124_vm4, %v11731_v37, %v10779_v23  ;;  %v543_v37 = vsel %vm450_vm1, 0.0, %v487_v55  ;;  %v490_v43 = vrot.slane %v11908_v63, 7 }
 0x1a1   : > { %1326 = vmatmul.f32.gmra.mxu0 %v1170_v52  ;;  %v627_v63 = vsel %vm547_vm0, %v594_v13, 0.0 }
 0x1a2   : > { %v489_v21 = vsel %vm450_vm1, %v487_v55, %v488_v20  ;;  %v544_v52 = vsel %vm450_vm1, 0.0, %v490_v43  ;;  %v492_v10 = vsel %vm450_vm1, %v490_v43, %v491_v32  ;;  %v493_v55 = vrot.slane %v11969_v30, 7 }
 0x1a6   : > { %1069 = vrot.lane.b32.xlu1 %v11998_v57, %s11213_s15  ;;  %686 = vrot.lane.b32.xlu2 %v11972_v35, %s11210_s14 }
 0x1a8   : > { %798 = vrot.lane.b32.xlu0 %v626_v47, %s11211_s23  ;;  %8501 = vmatmul.msk.f32.gmra.mxu1 %vm836_vm2, %v1058_v36  ;;  %v486_v36 = vsel %vm450_vm1, %v484_v4, %v485_v28 }
 0x1a9   : > { %1329 = vmatmul.f32.gmra.mxu0 %v1171_v31  ;;  %v860_v34 = vsel %vm836_vm2, %v486_v36, %v675_v24 }
 0x1ae   : > { %10791 = vrot.lane.b32.xlu1 %v10790_v8, %s11212_s2  ;;  %1071 = vrot.lane.b32.xlu2 %v12016_v9, %s11213_s15 }
 0x1b0   : > { %688 = vrot.lane.b32.xlu0 %v12019_v11, %s11210_s14  ;;  %8502 = vmatmul.msk.f32.gmra.mxu1 %vm836_vm2, %v1060_v48 }
 0x1b1   : > { %1332 = vmatmul.f32.gmra.mxu0 %v1172_v14 }
 0x1b6   : > { %800 = vrot.lane.b32.xlu1 %v595_v17, %s11211_s23 }
 0x1b8   : > { %690 = vrot.lane.b32.xlu0 %v12022_v50, %s11210_s14 }
 0x1bd   : > { %v12044_v22 = vpop.f32.mrf.mxu1 }
 0x1be   : > { %v12040_v16 = vpop.f32.mrf.mxu0 }
 0x1c5   : > { %v12049_v26 = vpop.f32.mrf.mxu1 }
 0x1c6   : > { %v12046_v38 = vpop.f32.mrf.mxu0 }
 0x1cd   : > { %v12068_v45 = vpop.f32.mrf.mxu1 }
 0x1ce   : > { %v12056_v41 = vpop.f32.mrf.mxu0 }
 0x1d5   : > { %v12088_v7 = vpop.f32.mrf.mxu1 }
 0x1d6   : > { %v12078_v51 = vpop.f32.mrf.mxu0 }
 0x1d8   : > { %v1064_v62 = vpop.permute.xlu2 %1063 }
 0x1dd   : > { %v12108_v17 = vpop.f32.mrf.mxu1 }
 0x1de   : > { %v12095_v31 = vpop.f32.mrf.mxu0 }
 0x1e0   : > { %v789_v15 = vpop.permute.xlu2 %788 }
 0x1e8   : > { %v1062_v29 = vpop.permute.xlu1 %1061  ;;  %v679_v56 = vpop.permute.xlu2 %678 }
 0x1e9   : > { %8503 = vmatmul.msk.f32.gmra.mxu1 %vm836_vm2, %v1062_v29  ;;  %v1173_v60 = vsel %vm1157_vm5, %v1140_v3, %v1062_v29  ;;  %v862_v20 = vsel %vm836_vm2, %v489_v21, %v679_v56  ;;  %v545_v21 = vsel %vm450_vm1, 0.0, %v493_v55 }
 0x1ea   : > { %v10782_v58 = vpop.permute.xlu0 %10781  ;;  %1335 = vmatmul.f32.gmra.mxu0 %v1173_v60  ;;  %v12123_v60 = vld [vmem:[#allocation6] ss:$0 sm:$0xff] }
 0x1eb   : > { %v10783_v27 = vunpack.i.l.bf16 %v10782_v58  ;;  %v10784_v1 = vunpack.i.h.bf16 %v10782_v58  ;;  %v12125_v58 = vpop.f32.mrf.mxu1  ;;  %v1295_v56 = vadd.f32 %v12123_v60, %v12046_v38  ;;  %v1298_v38 = vadd.f32 %v12123_v60, %v12056_v41 }
 0x1ed   : > { %v1141_v54 = vsel %vm1124_vm4, %v11762_v61, %v10783_v27  ;;  %v1142_v48 = vsel %vm1124_vm4, %v11788_v33, %v10784_v1  ;;  %v1408_v32 = vadd.f32 %v12049_v26, %v1295_v56 }
 0x1ee   : > { %v1174_v18 = vsel %vm1157_vm5, %v1141_v54, %v1064_v62  ;;  %v494_v54 = vrot.slane %v11972_v35, 7 }
 0x1f0   : > { %v787_v0 = vpop.permute.xlu1 %786  ;;  %v795_v13 = vpop.permute.xlu2 %794 }
 0x1f1   : > { %v12063_v40 = vsel %vm869_vm3, %v860_v34, %v787_v0  ;;  %8504 = vmatmul.msk.f32.gmra.mxu1 %vm836_vm2, %v1064_v62  ;;  %v12115_v62 = vpop.f32.mrf.mxu0  ;;  %v1292_v0 = vadd.f32 %v12123_v60, %v12040_v16 }
 0x1f2   : > { %v677_v59 = vpop.permute.xlu0 %676  ;;  %1073 = vrot.lane.b32.xlu2 %v12063_v40, %s11213_s15  ;;  %1338 = vmatmul.f32.gmra.mxu0 %v1174_v18 }
 0x1f3   : > { %v861_v61 = vsel %vm836_vm2, %v543_v37, %v677_v59  ;;  %v495_v59 = vsel %vm450_vm1, %v493_v55, %v494_v54  ;;  %v1405_v35 = vadd.f32 %v12044_v22, %v1292_v0  ;;  %v1301_v22 = vadd.f32 %v12123_v60, %v12078_v51 }
 0x1f4   : > { %v12074_v46 = vsel %vm869_vm3, %v861_v61, %v789_v15  ;;  %v496_v51 = vrot.slane %v12019_v11, 7  ;;  %v1307_v54 = vadd.f32 %v12123_v60, %v12115_v62 }
 0x1f5   : > { %v10795_v49 = vpack.i.bf16 %v12016_v9, %v12074_v46 }
 0x1f7   : > { %10796 = vrot.lane.b32.xlu1 %v10795_v49, %s11212_s2 }
 0x1f8   : > { %v681_v47 = vpop.permute.xlu1 %680  ;;  %v685_v29 = vpop.permute.xlu2 %684 }
 0x1f9   : > { %v863_v4 = vsel %vm836_vm2, %v544_v52, %v681_v47  ;;  %v865_v36 = vsel %vm836_vm2, %v545_v21, %v685_v29  ;;  %v12140_v43 = vpop.f32.mrf.mxu0  ;;  %v12154_v47 = vpop.f32.mrf.mxu1 }
 0x1fa   : > { %v793_v5 = vpop.permute.xlu0 %792  ;;  %802 = vrot.lane.b32.xlu2 %v627_v63, %s11211_s23 }
 0x1fb   : > { %v12086_v6 = vsel %vm869_vm3, %v863_v4, %v793_v5  ;;  %v12156_v5 = vmax.f32 %v1405_v35, 0.0 }
 0x1fc   : > { %1079 = vrot.lane.b32.xlu0 %v12086_v6, %s11213_s15 }
 0x1ff   : > { %1075 = vrot.lane.b32.xlu1 %v12074_v46, %s11213_s15 }
 0x200   : > { %v1066_v8 = vpop.permute.xlu1 %1065  ;;  %v687_v61 = vpop.permute.xlu2 %686 }
 0x201   : > { %v1175_v12 = vsel %vm1157_vm5, %v1142_v48, %v1066_v8  ;;  %8505 = vmatmul.msk.f32.gmra.mxu1 %vm836_vm2, %v1066_v8  ;;  %v866_v16 = vsel %vm836_vm2, %v495_v59, %v687_v61  ;;  %v1312_v8 = vpop.f32.mrf.mxu0  ;;  %v1420_v59 = vadd.f32 %v12125_v58, %v1307_v54 }
 0x202   : > { %v683_v25 = vpop.permute.xlu0 %682  ;;  %1341 = vmatmul.f32.gmra.mxu0 %v1175_v12 }
 0x203   : > { %v864_v2 = vsel %vm836_vm2, %v492_v10, %v683_v25  ;;  %v1414_v10 = vadd.f32 %v12088_v7, %v1301_v22  ;;  %v546_v7 = vsel %vm450_vm1, 0.0, %v496_v51  ;;  %v12218_v62 = vmax.f32 %v1420_v59, 0.0 }
 0x204   : > { %v12104_v14 = vsel %vm869_vm3, %v864_v2, %v795_v13  ;;  %v1411_v13 = vadd.f32 %v12068_v45, %v1298_v38  ;;  %v12180_v2 = vmax.f32 %v1408_v32, 0.0 }
 0x205   : > { %1081 = vrot.lane.b32.xlu0 %v12104_v14, %s11213_s15  ;;  %v10805_v15 = vpack.i.bf16 %v12104_v14, %v12086_v6  ;;  %v12182_v41 = vmax.f32 %v1414_v10, 0.0 }
 0x206   : > { %v12192_v55 = vmax.f32 %v1411_v13, 0.0 }
 0x208   : > { %v791_v33 = vpop.permute.xlu1 %790  ;;  %v1072_v12 = vpop.permute.xlu2 %1071  ;;  %v1663_v21 = vrot.slane %v12192_v55, 1 }
 0x209   : > { %v12112_v24 = vsel %vm869_vm3, %v862_v20, %v791_v33  ;;  %v1425_v33 = vpop.f32.mrf.mxu1  ;;  %v1315_v29 = vpop.f32.mrf.mxu0 }
 0x20a   : > { %v10787_v23 = vpop.permute.xlu0 %10786  ;;  %1077 = vrot.lane.b32.xlu1 %v12112_v24, %s11213_s15  ;;  %v10800_v28 = vpack.i.bf16 %v12063_v40, %v12112_v24 }
 0x20b   : > { %v10788_v3 = vunpack.i.l.bf16 %v10787_v23 }
 0x20c   : > { %10801 = vrot.lane.b32.xlu2 %v10800_v28, %s11212_s2  ;;  %v1664_v28 = vrot.slane %v12182_v41, 1 }
 0x20d   : > { %v1143_v27 = vsel %vm1124_vm4, %v11829_v39, %v10788_v3  ;;  %v10789_v39 = vunpack.i.h.bf16 %v10787_v23 }
 0x20f   : > { %v1144_v52 = vsel %vm1124_vm4, %v11888_v44, %v10789_v39  ;;  %v1304_v39 = vadd.f32 %v12123_v60, %v12095_v31  ;;  %v1310_v31 = vadd.f32 %v12123_v60, %v12140_v43 }
 0x210   : > { %v1068_v30 = vpop.permute.xlu1 %1067 }
 0x211   : > { %v1176_v34 = vsel %vm1157_vm5, %v1143_v27, %v1068_v30  ;;  %8506 = vmatmul.msk.f32.gmra.mxu1 %vm836_vm2, %v1068_v30  ;;  %v1665_v30 = vsel %vm547_vm0, %v1663_v21, %v1664_v28  ;;  %v1428_v27 = vpop.f32.mrf.mxu1  ;;  %v1318_v0 = vpop.f32.mrf.mxu0  ;;  %v1417_v35 = vadd.f32 %v12108_v17, %v1304_v39  ;;  %v1667_v17 = vrot.slane %v12218_v62, 1 }
 0x212   : > { %v797_v37 = vpop.permute.xlu0 %796  ;;  %1344 = vmatmul.f32.gmra.mxu0 %v1176_v34  ;;  %v1423_v56 = vadd.f32 %v12154_v47, %v1310_v31  ;;  %v1316_v47 = vadd.f32 %v12123_v60, %v1315_v29 }
 0x213   : > { %v12138_v18 = vsel %vm869_vm3, %v865_v36, %v797_v37  ;;  %v1661_v36 = vrot.slane %v12180_v2, 1  ;;  %v1725_v37 = vsel %vm547_vm0, %v1664_v28, 0.0 }
 0x214   : > { %1083 = vrot.lane.b32.xlu0 %v12138_v18, %s11213_s15  ;;  %10806 = vrot.lane.b32.xlu2 %v10805_v15, %s11212_s2  ;;  %v1660_v15 = vrot.slane %v12156_v5, 1  ;;  %v12238_v43 = vmax.f32 %v1423_v56, 0.0 }
 0x216   : > { %v1662_v34 = vsel %vm547_vm0, %v1660_v15, %v1661_v36  ;;  %v1669_v13 = vrot.slane %v12238_v43, 1 }
 0x218   : > { %v1070_v49 = vpop.permute.xlu1 %1069 }
 0x219   : > { %v1177_v63 = vsel %vm1157_vm5, %v1144_v52, %v1070_v49  ;;  %8507 = vmatmul.msk.f32.gmra.mxu1 %vm836_vm2, %v1070_v49  ;;  %v1431_v61 = vpop.f32.mrf.mxu1  ;;  %v1724_v49 = vsel %vm547_vm0, %v1661_v36, 0.0  ;;  %v1321_v52 = vpop.f32.mrf.mxu0  ;;  %v1319_v36 = vadd.f32 %v12123_v60, %v1318_v0 }
 0x21a   : > { %v799_v4 = vpop.permute.xlu0 %798  ;;  %1347 = vmatmul.f32.gmra.mxu0 %v1177_v63  ;;  %v12225_v63 = vmax.f32 %v1417_v35, 0.0 }
 0x21b   : > { %v12161_v1 = vsel %vm869_vm3, %v866_v16, %v799_v4  ;;  %v1313_v16 = vadd.f32 %v12123_v60, %v1312_v8  ;;  %v1432_v54 = vadd.f32 %v1431_v61, %v1319_v36 }
 0x21c   : > { %1085 = vrot.lane.b32.xlu1 %v12161_v1, %s11213_s15  ;;  %1740 = vrot.lane.b32.xlu2 %v12156_v5, %s11211_s23  ;;  %v10810_v44 = vpack.i.bf16 %v12161_v1, %v12138_v18  ;;  %v1666_v4 = vrot.slane %v12225_v63, 1 }
 0x21d   : > { %v1426_v58 = vadd.f32 %v1425_v33, %v1313_v16  ;;  %v1429_v33 = vadd.f32 %v1428_v27, %v1316_v47  ;;  %v12278_v39 = vmax.f32 %v1432_v54, 0.0 }
 0x21e   : > { %10811 = vrot.lane.b32.xlu0 %v10810_v44, %s11212_s2  ;;  %v1668_v38 = vsel %vm547_vm0, %v1666_v4, %v1667_v17 }
 0x21f   : > { %v12232_v44 = vmax.f32 %v1426_v58, 0.0 }
 0x220   : > { %v12175_v48 = vpop.permute.xlu1 %10791 }
 0x221   : > { %v10793_v25 = vunpack.i.l.bf16 %v12175_v48  ;;  %8508 = vmatmul.msk.f32.gmra.mxu1 %vm836_vm2, %v1072_v12  ;;  %v1434_v22 = vpop.f32.mrf.mxu1  ;;  %v1324_v32 = vpop.f32.mrf.mxu0  ;;  %v1670_v8 = vrot.slane %v12232_v44, 1  ;;  %v10794_v10 = vunpack.i.h.bf16 %v12175_v48 }
 0x222   : > { %v689_v20 = vpop.permute.xlu0 %688 }
 0x223   : > { %v1145_v26 = vsel %vm1124_vm4, %v11911_v42, %v10793_v25  ;;  %v867_v23 = vsel %vm836_vm2, %v546_v7, %v689_v20  ;;  %v1671_v7 = vsel %vm547_vm0, %v1669_v13, %v1670_v8  ;;  %v497_v20 = vrot.slane %v12022_v50, 7 }
 0x224   : > { %1742 = vrot.lane.b32.xlu2 %v12180_v2, %s11211_s23  ;;  %v1178_v45 = vsel %vm1157_vm5, %v1145_v26, %v1072_v12  ;;  %v1325_v12 = vadd.f32 %v12123_v60, %v1324_v32  ;;  %v1322_v26 = vadd.f32 %v12123_v60, %v1321_v52  ;;  %v1146_v48 = vsel %vm1124_vm4, %v11946_v19, %v10794_v10 }
 0x225   : > { %1350 = vmatmul.f32.gmra.mxu0 %v1178_v45  ;;  %v12258_v50 = vmax.f32 %v1429_v33, 0.0  ;;  %v1727_v15 = vsel %vm547_vm0, %v1670_v8, 0.0  ;;  %v1673_v13 = vrot.slane %v12278_v39, 1 }
 0x226   : > { %v1435_v29 = vadd.f32 %v1434_v22, %v1322_v26 }
 0x228   : > { %v801_v42 = vpop.permute.xlu1 %800  ;;  %v12266_v27 = vmax.f32 %v1435_v29, 0.0 }
 0x229   : > { %v12197_v3 = vsel %vm869_vm3, %v867_v23, %v801_v42  ;;  %v1437_v25 = vpop.f32.mrf.mxu1  ;;  %v498_v42 = vsel %vm450_vm1, %v496_v51, %v497_v20  ;;  %v1327_v29 = vpop.f32.mrf.mxu0 }
 0x22a   : > { %1087 = vrot.lane.b32.xlu1 %v12197_v3, %s11213_s15  ;;  %v1438_v23 = vadd.f32 %v1437_v25, %v1325_v12  ;;  %v691_v21 = vpop.permute.xlu0 %690  ;;  %v1675_v0 = vrot.slane %v12266_v27, 1  ;;  %v1672_v25 = vrot.slane %v12258_v50, 1 }
 0x22b   : > { %v868_v19 = vsel %vm836_vm2, %v498_v42, %v691_v21 }
 0x22c   : > { %1856 = vrot.lane.b32.xlu2 %v1665_v30, %s11214_s27  ;;  %v12260_v30 = vmax.f32 %v1438_v23, 0.0  ;;  %v1674_v26 = vsel %vm547_vm0, %v1672_v25, %v1673_v13 }
 0x22e   : > { %v1676_v51 = vrot.slane %v12260_v30, 1 }
 0x231   : > { %v1440_v21 = vpop.f32.mrf.mxu1 }
 0x232   : > { %1852 = vrot.lane.b32.xlu1 %v1662_v34, %s11214_s27 }
 0x234   : > { %1858 = vrot.lane.b32.xlu2 %v1725_v37, %s11214_s27  ;;  %v1677_v37 = vsel %vm547_vm0, %v1675_v0, %v1676_v51 }
 0x23a   : > { %1854 = vrot.lane.b32.xlu1 %v1724_v49, %s11214_s27 }
 0x23c   : > { %1750 = vrot.lane.b32.xlu2 %v12218_v62, %s11211_s23 }
 0x242   : > { %1748 = vrot.lane.b32.xlu1 %v12225_v63, %s11211_s23 }
 0x244   : > { %1860 = vrot.lane.b32.xlu2 %v1668_v38, %s11214_s27  ;;  %v1726_v38 = vsel %vm547_vm0, %v1667_v17, 0.0 }
 0x24a   : > { %1752 = vrot.lane.b32.xlu1 %v12238_v43, %s11211_s23 }
 0x24c   : > { %v1074_v45 = vpop.permute.xlu2 %1073  ;;  %1864 = vrot.lane.b32.xlu2 %v1671_v7, %s11214_s27 }
 0x24d   : > { %8509 = vmatmul.msk.f32.gmra.mxu1 %vm836_vm2, %v1074_v45  ;;  %v1179_v28 = vsel %vm1157_vm5, %v1146_v48, %v1074_v45  ;;  %v1728_v45 = vsel %vm547_vm0, %v1673_v13, 0.0 }
 0x24e   : > { %1353 = vmatmul.f32.gmra.mxu0 %v1179_v28 }
 0x252   : > { %1756 = vrot.lane.b32.xlu1 %v12258_v50, %s11211_s23 }
 0x254   : > { %v803_v34 = vpop.permute.xlu2 %802  ;;  %1866 = vrot.lane.b32.xlu2 %v1727_v15, %s11214_s27 }
 0x255   : > { %v901_v11 = vsel %vm869_vm3, %v868_v19, %v803_v34  ;;  %v1564_v34 = vrot.slane %v12156_v5, 7  ;;  %v1565_v5 = vrot.slane %v12180_v2, 7 }
 0x256   : > { %1089 = vrot.lane.b32.xlu0 %v901_v11, %s11213_s15  ;;  %v10815_v59 = vpack.i.bf16 %v901_v11, %v12197_v3  ;;  %v1330_v11 = vpop.f32.mrf.mxu0 }
 0x257   : > { %v1644_v54 = vsel %vm450_vm1, 0.0, %v1564_v34 }
 0x25a   : > { %1872 = vrot.lane.b32.xlu1 %v1677_v37, %s11214_s27 }
 0x25c   : > { %1758 = vrot.lane.b32.xlu2 %v12278_v39, %s11211_s23 }
 0x25e   : > { %10816 = vrot.lane.b32.xlu0 %v10815_v59, %s11212_s2 }
 0x266   : > { %1744 = vrot.lane.b32.xlu0 %v12192_v55, %s11211_s23  ;;  %v10802_v31 = vpop.permute.xlu2 %10801 }
 0x267   : > { %v10803_v22 = vunpack.i.l.bf16 %v10802_v31  ;;  %v10804_v8 = vunpack.i.h.bf16 %v10802_v31 }
 0x269   : > { %v10797_v61 = vpop.permute.xlu1 %10796  ;;  %v1150_v32 = vsel %vm1124_vm4, %v12063_v40, %v10803_v22  ;;  %v1148_v10 = vsel %vm1124_vm4, %v11998_v57, %v10804_v8 }
 0x26a   : > { %v10798_v35 = vunpack.i.l.bf16 %v10797_v61  ;;  %v10799_v49 = vunpack.i.h.bf16 %v10797_v61  ;;  %v1443_v61 = vpop.f32.mrf.mxu1 }
 0x26c   : > { %v1149_v52 = vsel %vm1124_vm4, %v12016_v9, %v10798_v35  ;;  %v1147_v56 = vsel %vm1124_vm4, %v11983_v53, %v10799_v49  ;;  %v1328_v35 = vadd.f32 %v12123_v60, %v1327_v29 }
 0x26e   : > { %v1080_v16 = vpop.permute.xlu0 %1079  ;;  %1746 = vrot.lane.b32.xlu0 %v12182_v41, %s11211_s23  ;;  %v10807_v17 = vpop.permute.xlu2 %10806 }
 0x26f   : > { %v1182_v3 = vsel %vm1157_vm5, %v1149_v52, %v1080_v16  ;;  %v10808_v40 = vunpack.i.l.bf16 %v10807_v17  ;;  %v10809_v33 = vunpack.i.h.bf16 %v10807_v17  ;;  %v1441_v52 = vadd.f32 %v1440_v21, %v1328_v35 }
 0x270   : > { %1362 = vmatmul.f32.vlgmr.msra.gmra.mxu2 %v1182_v3  ;;  %v1566_v3 = vsel %vm450_vm1, %v1564_v34, %v1565_v5 }
 0x271   : > { %v1076_v58 = vpop.permute.xlu1 %1075  ;;  %v1151_v57 = vsel %vm1124_vm4, %v12074_v46, %v10808_v40  ;;  %v1152_v23 = vsel %vm1124_vm4, %v12112_v24, %v10809_v33  ;;  %v12352_v22 = vmax.f32 %v1441_v52, 0.0 }
 0x272   : > { %v1180_v4 = vsel %vm1157_vm5, %v1147_v56, %v1076_v58  ;;  %8510 = vmatmul.msk.f32.gmra.mxu1 %vm836_vm2, %v1076_v58 }
 0x273   : > { %1356 = vmatmul.f32.gmra.mxu0 %v1180_v4 }
 0x276   : > { %1862 = vrot.lane.b32.xlu0 %v1726_v38, %s11214_s27  ;;  %v1741_v24 = vpop.permute.xlu2 %1740  ;;  %v1678_v38 = vrot.slane %v12352_v22, 1 }
 0x277   : > { %v1082_v9 = vpop.permute.xlu0 %1081  ;;  %v1948_v0 = vsel %vm869_vm3, %v1644_v54, %v1741_v24 }
 0x278   : > { %v1183_v47 = vsel %vm1157_vm5, %v1150_v32, %v1082_v9  ;;  %v1333_v32 = vpop.f32.mrf.mxu0 }
 0x279   : > { %1365 = vmatmul.f32.gmra.mxu2 %v1183_v47  ;;  %v1334_v8 = vadd.f32 %v12123_v60, %v1333_v32  ;;  %v1446_v47 = vpop.f32.mrf.mxu1 }
 0x27c   : > { %v1078_v53 = vpop.permute.xlu1 %1077 }
 0x27d   : > { %8511 = vmatmul.msk.f32.gmra.mxu1 %vm836_vm2, %v1078_v53  ;;  %v1181_v12 = vsel %vm1157_vm5, %v1148_v10, %v1078_v53  ;;  %v1447_v10 = vadd.f32 %v1446_v47, %v1334_v8 }
 0x27e   : > { %1359 = vmatmul.f32.gmra.mxu0 %v1181_v12  ;;  %1754 = vrot.lane.b32.xlu0 %v12232_v44, %s11211_s23 }
 0x27f   : > { %v12361_v17 = vmax.f32 %v1447_v10, 0.0 }
 0x281   : > { %v1681_v35 = vrot.slane %v12361_v17, 1 }
 0x285   : > { %8512 = vmatmul.msk.f32.gmra.mxu1 %vm836_vm2, %v1080_v16  ;;  %v1743_v16 = vpop.permute.xlu2 %1742 }
 0x286   : > { %v1084_v7 = vpop.permute.xlu0 %1083  ;;  %1868 = vrot.lane.b32.xlu0 %v1674_v26, %s11214_s27  ;;  %v1949_v31 = vsel %vm869_vm3, %v1566_v3, %v1743_v16 }
 0x287   : > { %v1184_v20 = vsel %vm1157_vm5, %v1151_v57, %v1084_v7  ;;  %8514 = vmatmul.msk.f32.vlgmr.msra.gmra.mxu3 %vm836_vm2, %v1084_v7  ;;  %v1336_v7 = vpop.f32.mrf.mxu0 }
 0x288   : > { %1368 = vmatmul.f32.gmra.mxu2 %v1184_v20  ;;  %v1337_v33 = vadd.f32 %v12123_v60, %v1336_v7 }
 0x28d   : > { %8513 = vmatmul.msk.f32.gmra.mxu1 %vm836_vm2, %v1082_v9  ;;  %v1857_v12 = vpop.permute.xlu2 %1856 }
 0x28e   : > { %v1086_v48 = vpop.permute.xlu1 %1085  ;;  %1870 = vrot.lane.b32.xlu0 %v1728_v45, %s11214_s27  ;;  %v1449_v45 = vpop.f32.mrf.mxu1 }
 0x28f   : > { %v1185_v28 = vsel %vm1157_vm5, %v1152_v23, %v1086_v48  ;;  %8515 = vmatmul.msk.f32.gmra.mxu3 %vm836_vm2, %v1086_v48  ;;  %v1567_v48 = vrot.slane %v12192_v55, 7  ;;  %v1450_v23 = vadd.f32 %v1449_v45, %v1337_v33  ;;  %v11215_v55 = vmov 0.0  }
 0x290   : > { %1371 = vmatmul.f32.gmra.mxu2 %v1185_v28  ;;  %v10812_v46 = vpop.permute.xlu0 %10811  ;;  %v1339_v28 = vpop.f32.mrf.mxu0 }
 0x291   : > { %v10813_v42 = vunpack.i.l.bf16 %v10812_v46  ;;  %v10814_v13 = vunpack.i.h.bf16 %v10812_v46  ;;  %v12375_v21 = vmax.f32 %v1450_v23, 0.0  ;;  %v1340_v32 = vadd.f32 %v12123_v60, %v1339_v28 }
 0x293   : > { %v1153_v19 = vsel %vm1124_vm4, %v12086_v6, %v10813_v42  ;;  %v1331_v6 = vadd.f32 %v12123_v60, %v1330_v11  ;;  %v1154_v25 = vsel %vm1124_vm4, %v12104_v14, %v10814_v13  ;;  %v1645_v14 = vsel %vm450_vm1, 0.0, %v1567_v48 }
 0x294   : > { %v1568_v11 = vrot.slane %v12182_v41, 7 }
 0x295   : > { %v1444_v49 = vadd.f32 %v1443_v61, %v1331_v6  ;;  %v1859_v57 = vpop.permute.xlu2 %1858 }
 0x296   : > { %1760 = vrot.lane.b32.xlu0 %v12266_v27, %s11211_s23  ;;  %v1569_v61 = vsel %vm450_vm1, %v1567_v48, %v1568_v11 }
 0x297   : > { %v12345_v56 = vmax.f32 %v1444_v49, 0.0 }
 0x299   : > { %v1679_v2 = vrot.slane %v12345_v56, 1 }
 0x29b   : > { %v1680_v9 = vsel %vm547_vm0, %v1678_v38, %v1679_v2  ;;  %v1730_v53 = vsel %vm547_vm0, %v1679_v2, 0.0  ;;  %v1571_v2 = vrot.slane %v12218_v62, 7 }
 0x29c   : > { %v1088_v36 = vpop.permute.xlu1 %1087 }
 0x29d   : > { %v1186_v15 = vsel %vm1157_vm5, %v1153_v19, %v1088_v36  ;;  %8516 = vmatmul.msk.f32.gmra.mxu3 %vm836_vm2, %v1088_v36  ;;  %v1751_v46 = vpop.permute.xlu2 %1750  ;;  %v1570_v36 = vrot.slane %v12225_v63, 7  ;;  %v1682_v63 = vrot.slane %v12375_v21, 1 }
 0x29e   : > { %1374 = vmatmul.f32.gmra.mxu2 %v1186_v15  ;;  %1762 = vrot.lane.b32.xlu0 %v12260_v30, %s11211_s23  ;;  %v1452_v15 = vpop.f32.mrf.mxu1 }
 0x29f   : > { %v1646_v54 = vsel %vm450_vm1, 0.0, %v1570_v36  ;;  %v1683_v52 = vsel %vm547_vm0, %v1681_v35, %v1682_v63  ;;  %v1572_v8 = vsel %vm450_vm1, %v1570_v36, %v1571_v2  ;;  %v1731_v47 = vsel %vm547_vm0, %v1682_v63, 0.0 }
 0x2a0   : > { %v1953_v10 = vsel %vm869_vm3, %v1572_v8, %v1751_v46  ;;  %v1453_v13 = vadd.f32 %v1452_v15, %v1340_v32 }
 0x2a4   : > { %v1853_v37 = vpop.permute.xlu1 %1852 }
 0x2a5   : > { %v12337_v59 = vsel %vm1980_vm6, %v1948_v0, %v1853_v37  ;;  %v1342_v0 = vpop.f32.mrf.mxu0  ;;  %v1861_v5 = vpop.permute.xlu2 %1860 }
 0x2a6   : > { %2045 = vrot.lane.b32.xlu1 %v12337_v59, %s11213_s15  ;;  %v1455_v3 = vpop.f32.mrf.mxu1  ;;  %v1343_v36 = vadd.f32 %v12123_v60, %v1342_v0 }
 0x2ac   : > { %v1855_v58 = vpop.permute.xlu1 %1854 }
 0x2ad   : > { %v12348_v4 = vsel %vm1980_vm6, %v1949_v31, %v1855_v58  ;;  %v1729_v58 = vsel %vm547_vm0, %v1676_v51, 0.0  ;;  %v1345_v38 = vpop.f32.mrf.mxu0  ;;  %v1573_v51 = vrot.slane %v12238_v43, 7  ;;  %v1865_v43 = vpop.permute.xlu2 %1864 }
 0x2ae   : > { %2047 = vrot.lane.b32.xlu2 %v12348_v4, %s11213_s15  ;;  %v1346_v23 = vadd.f32 %v12123_v60, %v1345_v38  ;;  %v1579_v38 = vrot.slane %v12266_v27, 7  ;;  %v1582_v27 = vrot.slane %v12352_v22, 7 }
 0x2b4   : > { %v1749_v34 = vpop.permute.xlu1 %1748 }
 0x2b5   : > { %v1952_v37 = vsel %vm869_vm3, %v1646_v54, %v1749_v34  ;;  %v1348_v7 = vpop.f32.mrf.mxu0  ;;  %v1867_v0 = vpop.permute.xlu2 %1866 }
 0x2b6   : > { %1876 = vrot.lane.b32.xlu2 %v1680_v9, %s11214_s27  ;;  %v12394_v16 = vsel %vm1980_vm6, %v1952_v37, %v1861_v5  ;;  %v1349_v33 = vadd.f32 %v12123_v60, %v1348_v7  ;;  %v1576_v5 = vrot.slane %v12258_v50, 7 }
 0x2b8   : > { %v1648_v2 = vsel %vm450_vm1, 0.0, %v1576_v5 }
 0x2bc   : > { %v1753_v62 = vpop.permute.xlu1 %1752 }
 0x2bd   : > { %v1351_v11 = vpop.f32.mrf.mxu0 }
 0x2be   : > { %1878 = vrot.lane.b32.xlu2 %v1730_v53, %s11214_s27  ;;  %v1458_v53 = vpop.f32.mrf.mxu1 }
 0x2c6   : > { %1768 = vrot.lane.b32.xlu2 %v12361_v17, %s11211_s23  ;;  %v1461_v48 = vpop.f32.mrf.mxu1 }
 0x2c7   : > { %v1462_v28 = vadd.f32 %v1461_v48, %v1349_v33 }
 0x2c8   : > { %v1090_v40 = vpop.permute.xlu0 %1089 }
 0x2c9   : > { %8517 = vmatmul.msk.f32.gmra.mxu3 %vm836_vm2, %v1090_v40  ;;  %v1187_v26 = vsel %vm1157_vm5, %v1154_v25, %v1090_v40  ;;  %v1647_v40 = vsel %vm450_vm1, 0.0, %v1573_v51  ;;  %v12442_v15 = vmax.f32 %v1462_v28, 0.0 }
 0x2ca   : > { %1377 = vmatmul.f32.gmra.mxu2 %v1187_v26  ;;  %v12423_v26 = vmax.f32 %v1453_v13, 0.0 }
 0x2cb   : > { %v1688_v63 = vrot.slane %v12442_v15, 1 }
 0x2cc   : > { %v1684_v50 = vrot.slane %v12423_v26, 1 }
 0x2cd   : > { %v1733_v13 = vsel %vm547_vm0, %v1688_v63, 0.0 }
 0x2d0   : > { %v12369_v20 = vpop.permute.xlu0 %10816 }
 0x2d8   : > { %v1745_v29 = vpop.permute.xlu0 %1744 }
 0x2d9   : > { %v1950_v42 = vsel %vm869_vm3, %v1645_v14, %v1745_v29  ;;  %v1459_v14 = vadd.f32 %v1458_v53, %v1346_v23  ;;  %v1577_v53 = vrot.slane %v12278_v39, 7  ;;  %v1759_v39 = vpop.permute.xlu2 %1758 }
 0x2da   : > { %v12379_v19 = vsel %vm1980_vm6, %v1950_v42, %v1857_v12  ;;  %v1574_v42 = vrot.slane %v12232_v44, 7  ;;  %v1456_v44 = vadd.f32 %v1455_v3, %v1343_v36  ;;  %v1757_v3 = vpop.permute.xlu1 %1756 }
 0x2db   : > { %2141 = vrot.lane.b32.xlu0 %v12379_v19, %s11214_s27  ;;  %v10820_v24 = vpack.i.bf16 %v12379_v19, %v11215_v55  ;;  %v1578_v33 = vsel %vm450_vm1, %v1576_v5, %v1577_v53  ;;  %v2327_v5 = vld [vmem:[%s17129_s17 + $0xe8] sm:$0xff]  ;;  %v2324_v53 = vld [vmem:[%s17129_s17 + $0xd0] sm:$0xff] }
 0x2dc   : > { %v1575_v34 = vsel %vm450_vm1, %v1573_v51, %v1574_v42  ;;  %v12459_v35 = vmax.f32 %v1456_v44, 0.0  ;;  %v1649_v51 = vsel %vm450_vm1, 0.0, %v1579_v38  ;;  %v1957_v23 = vsel %vm869_vm3, %v1578_v33, %v1759_v39  ;;  %v2329_v44 = vld [vmem:[%s17129_s17 + $0xf8] sm:$0xff]  ;;  %v2306_v39 = vld [vmem:[%s17129_s17 + $0x40] sm:$0xff]  ;;  %v2320_v33 = vld [vmem:[%s17129_s17 + $0xb0] sm:$0xff] }
 0x2dd   : > { %10821 = vrot.lane.b32.xlu1 %v10820_v24, %s11213_s15  ;;  %v12448_v24 = vmax.f32 %v1459_v14, 0.0  ;;  %2513 = vmatpush.msrb.mxu3 %v2329_v44 }
 0x2e0   : > { %v1747_v6 = vpop.permute.xlu0 %1746 }
 0x2e1   : > { %v1951_v49 = vsel %vm869_vm3, %v1569_v61, %v1747_v6  ;;  %v1687_v6 = vrot.slane %v12448_v24, 1 }
 0x2e2   : > { %v12397_v41 = vsel %vm1980_vm6, %v1951_v49, %v1859_v57  ;;  %v1954_v57 = vsel %vm869_vm3, %v1647_v40, %v1753_v62 }
 0x2e3   : > { %1880 = vrot.lane.b32.xlu0 %v1683_v52, %s11214_s27  ;;  %v10825_v31 = vpack.i.bf16 %v12394_v16, %v12397_v41  ;;  %v12430_v45 = vsel %vm1980_vm6, %v1954_v57, %v1865_v43  ;;  %v1689_v49 = vsel %vm547_vm0, %v1687_v6, %v1688_v63  ;;  %v1464_v52 = vpop.f32.mrf.mxu1  ;;  %v1873_v57 = vpop.permute.xlu1 %1872  ;;  %v2313_v63 = vld [vmem:[%s17129_s17 + $0x78] sm:$0xff]  ;;  %v2312_v6 = vld [vmem:[%s17129_s17 + $0x70] sm:$0xff] }
 0x2e4   : > { %2400 = vmatpush.msrb.mxu2 %v2313_v63  ;;  %v2302_v63 = vld [vmem:[%s17129_s17 + $0x20] sm:$0xff] }
 0x2e5   : > { %1874 = vrot.lane.b32.xlu1 %v1729_v58, %s11214_s27  ;;  %10826 = vrot.lane.b32.xlu2 %v10825_v31, %s11213_s15  ;;  %v1354_v31 = vpop.f32.mrf.mxu0  ;;  %v1685_v58 = vrot.slane %v12459_v35, 1 }
 0x2e6   : > { %v1355_v32 = vadd.f32 %v12123_v60, %v1354_v31  ;;  %2401 = vmatpush.msrb.mxu2 %v2312_v6  ;;  %v2332_v31 = vld [vmem:[%s17129_s17 + $0x110] sm:$0xff] }
 0x2e7   : > { %v1686_v62 = vsel %vm547_vm0, %v1684_v50, %v1685_v58  ;;  %v1732_v42 = vsel %vm547_vm0, %v1685_v58, 0.0  ;;  %v2310_v58 = vld [vmem:[%s17129_s17 + $0x60] sm:$0xff] }
 0x2e8   : > { %v1863_v9 = vpop.permute.xlu0 %1862 }
 0x2e9   : > { %v12416_v12 = vsel %vm1980_vm6, %v1953_v10, %v1863_v9  ;;  %v1956_v9 = vsel %vm869_vm3, %v1648_v2, %v1757_v3  ;;  %v1352_v10 = vadd.f32 %v12123_v60, %v1351_v11  ;;  %v2326_v3 = vld [vmem:[%s17129_s17 + $0xe0] sm:$0xff]  ;;  %v2325_v2 = vld [vmem:[%s17129_s17 + $0xd8] sm:$0xff] }
 0x2ea   : > { %v10830_v29 = vpack.i.bf16 %v12430_v45, %v12416_v12 }
 0x2eb   : > { %1882 = vrot.lane.b32.xlu0 %v1731_v47, %s11214_s27  ;;  %v1467_v40 = vpop.f32.mrf.mxu1  ;;  %v1465_v43 = vadd.f32 %v1464_v52, %v1352_v10  ;;  %v2311_v52 = vld [vmem:[%s17129_s17 + $0x68] sm:$0xff]  ;;  %v2330_v10 = vld [vmem:[%s17129_s17 + $0x100] sm:$0xff] }
 0x2ec   : > { %v1468_v7 = vadd.f32 %v1467_v40, %v1355_v32  ;;  %2402 = vmatpush.msrb.mxu2 %v2311_v52  ;;  %v2309_v32 = vld [vmem:[%s17129_s17 + $0x58] sm:$0xff]  ;;  %v2307_v40 = vld [vmem:[%s17129_s17 + $0x48] sm:$0xff]  ;;  %v2300_v52 = vld [vmem:[%s17129_s17 + $0x10] sm:$0xff] }
 0x2ed   : > { %1764 = vrot.lane.b32.xlu1 %v12352_v22, %s11211_s23  ;;  %2147 = vrot.lane.b32.xlu2 %v12416_v12, %s11214_s27  ;;  %v12501_v14 = vmax.f32 %v1465_v43, 0.0 }
 0x2ee   : > { %v12492_v28 = vmax.f32 %v1468_v7, 0.0  ;;  %2403 = vmatpush.msrb.mxu2 %v2310_v58  ;;  %v2321_v7 = vld [vmem:[%s17129_s17 + $0xb8] sm:$0xff]  ;;  %v2299_v58 = vld [vmem:[%s17129_s17 + $0x8] sm:$0xff] }
 0x2f0   : > { %v1755_v25 = vpop.permute.xlu0 %1754  ;;  %v1691_v36 = vrot.slane %v12492_v28, 1  ;;  %v1357_v50 = vpop.f32.mrf.mxu0  ;;  %2404 = vmatpush.msrb.mxu2 %v2309_v32 }
 0x2f1   : > { %v1955_v54 = vsel %vm869_vm3, %v1575_v34, %v1755_v25  ;;  %v1690_v34 = vrot.slane %v12501_v14, 1 }
 0x2f2   : > { %v12455_v61 = vsel %vm1980_vm6, %v1955_v54, %v1867_v0  ;;  %v1734_v0 = vsel %vm547_vm0, %v1691_v36, 0.0 }
 0x2f3   : > { %1772 = vrot.lane.b32.xlu0 %v12423_v26, %s11211_s23  ;;  %v1692_v11 = vsel %vm547_vm0, %v1690_v34, %v1691_v36 }
 0x2f5   : > { %2149 = vrot.lane.b32.xlu2 %v12430_v45, %s11214_s27  ;;  %2143 = vrot.lane.b32.xlu1 %v12397_v41, %s11214_s27 }
 0x2f8   : > { %v1869_v46 = vpop.permute.xlu0 %1868 }
 0x2f9   : > { %v12473_v8 = vsel %vm1980_vm6, %v1956_v9, %v1869_v46  ;;  %v2331_v9 = vld [vmem:[%s17129_s17 + $0x108] sm:$0xff] }
 0x2fa   : > { %v10835_v54 = vpack.i.bf16 %v12473_v8, %v12455_v61 }
 0x2fb   : > { %10831 = vrot.lane.b32.xlu0 %v10830_v29, %s11213_s15 }
 0x2fd   : > { %1770 = vrot.lane.b32.xlu2 %v12375_v21, %s11211_s23  ;;  %2145 = vrot.lane.b32.xlu1 %v12394_v16, %s11214_s27 }
 0x300   : > { %v1871_v37 = vpop.permute.xlu0 %1870 }
 0x301   : > { %v12495_v46 = vsel %vm1980_vm6, %v1957_v23, %v1871_v37  ;;  %v2328_v37 = vld [vmem:[%s17129_s17 + $0xf0] sm:$0xff]  ;;  %v1358_v23 = vadd.f32 %v12123_v60, %v1357_v50 }
 0x302   : > { %2514 = vmatpush.msrb.mxu3 %v2328_v37  ;;  %v2317_v37 = vld [vmem:[%s17129_s17 + $0x98] sm:$0xff] }
 0x303   : > { %2151 = vrot.lane.b32.xlu0 %v12455_v61, %s11214_s27 }
 0x304   : > { %2515 = vmatpush.msrb.mxu3 %v2327_v5  ;;  %v2316_v5 = vld [vmem:[%s17129_s17 + $0x90] sm:$0xff] }
 0x305   : > { %1888 = vrot.lane.b32.xlu2 %v1689_v49, %s11214_s27  ;;  %1766 = vrot.lane.b32.xlu1 %v12345_v56, %s11211_s23  ;;  %v2333_v49 = vld [vmem:[%s17129_s17 + $0x118] sm:$0xff] }
 0x306   : > { %2638 = vmatpush.msrb.mxu1 %v2333_v49  ;;  %2516 = vmatpush.msrb.mxu3 %v2326_v3  ;;  %v2315_v3 = vld [vmem:[%s17129_s17 + $0x88] sm:$0xff] }
 0x308   : > { %v1761_v47 = vpop.permute.xlu0 %1760  ;;  %2639 = vmatpush.msrb.mxu1 %v2332_v31  ;;  %2517 = vmatpush.msrb.mxu3 %v2325_v2  ;;  %v2314_v2 = vld [vmem:[%s17129_s17 + $0x80] sm:$0xff] }
 0x309   : > { %v1958_v25 = vsel %vm869_vm3, %v1649_v51, %v1761_v47  ;;  %v1470_v47 = vpop.f32.mrf.mxu1  ;;  %v2308_v51 = vld [vmem:[%s17129_s17 + $0x50] sm:$0xff] }
 0x30a   : > { %v12489_v48 = vsel %vm1980_vm6, %v1958_v25, %v1873_v57  ;;  %2640 = vmatpush.msrb.mxu1 %v2331_v9  ;;  %2518 = vmatpush.msrb.mxu3 %v2324_v53  ;;  %v2322_v25 = vld [vmem:[%s17129_s17 + $0xc0] sm:$0xff]  ;;  %v2305_v57 = vld [vmem:[%s17129_s17 + $0x38] sm:$0xff]  ;;  %v1471_v44 = vadd.f32 %v1470_v47, %v1358_v23 }
 0x30b   : > { %2153 = vrot.lane.b32.xlu0 %v12473_v8, %s11214_s27  ;;  %v10840_v29 = vpack.i.bf16 %v12489_v48, %v12495_v46  ;;  %2405 = vmatpush.msrb.mxu2 %v2308_v51  ;;  %v2298_v9 = vld [vmem:[%s17129_s17] sm:$0xff] }
 0x30c   : > { %2641 = vmatpush.msrb.mxu1 %v2330_v10  ;;  %v12622_v49 = vmax.f32 %v1471_v44, 0.0 }
 0x30d   : > { %1890 = vrot.lane.b32.xlu2 %v1733_v13, %s11214_s27  ;;  %1884 = vrot.lane.b32.xlu1 %v1686_v62, %s11214_s27  ;;  %v2323_v13 = vld [vmem:[%s17129_s17 + $0xc8] sm:$0xff]  ;;  %v1360_v62 = vpop.f32.mrf.mxu0 }
 0x30e   : > { %2519 = vmatpush.msrb.mxu3 %v2323_v13  ;;  %2406 = vmatpush.msrb.mxu2 %v2307_v40  ;;  %v1361_v43 = vadd.f32 %v12123_v60, %v1360_v62  ;;  %v2318_v60 = vld [vmem:[%s17129_s17 + $0xa0] sm:$0xff]  ;;  %v1693_v50 = vrot.slane %v12622_v49, 1  ;;  %v10818_v13 = vunpack.i.l.bf16 %v12369_v20 }
 0x310   : > { %2520 = vmatpush.msrb.mxu3 %v2322_v25  ;;  %2407 = vmatpush.msrb.mxu2 %v2306_v39  ;;  %v1763_v53 = vpop.permute.xlu0 %1762  ;;  %v1155_v39 = vsel %vm1124_vm4, %v12138_v18, %v10818_v13 }
 0x311   : > { %v1473_v36 = vpop.f32.mrf.mxu1 }
 0x312   : > { %2521 = vmatpush.msrb.mxu3 %v2321_v7  ;;  %2408 = vmatpush.msrb.mxu2 %v2305_v57  ;;  %v1474_v34 = vadd.f32 %v1473_v36, %v1361_v43  ;;  %v1580_v7 = vrot.slane %v12260_v30, 7  ;;  %v10819_v43 = vunpack.i.h.bf16 %v12369_v20 }
 0x313   : > { %1774 = vrot.lane.b32.xlu0 %v12459_v35, %s11211_s23 }
 0x314   : > { %2522 = vmatpush.msrb.mxu3 %v2320_v33  ;;  %v12615_v6 = vmax.f32 %v1474_v34, 0.0  ;;  %v1581_v23 = vsel %vm450_vm1, %v1579_v38, %v1580_v7  ;;  %v1156_v30 = vsel %vm1124_vm4, %v12161_v1, %v10819_v43  ;;  %v1363_v34 = vpop.f32.mrf.mxu2 }
 0x315   : > { %10841 = vrot.lane.b32.xlu2 %v10840_v29, %s11213_s15  ;;  %1886 = vrot.lane.b32.xlu1 %v1732_v42, %s11214_s27  ;;  %v2304_v29 = vld [vmem:[%s17129_s17 + $0x30] sm:$0xff]  ;;  %v2319_v42 = vld [vmem:[%s17129_s17 + $0xa8] sm:$0xff] }
 0x316   : > { %2409 = vmatpush.msrb.mxu2 %v2304_v29  ;;  %2523 = vmatpush.msrb.mxu3 %v2319_v42  ;;  %v1694_v31 = vrot.slane %v12615_v6, 1  ;;  %v1959_v42 = vsel %vm869_vm3, %v1581_v23, %v1763_v53  ;;  %v1583_v23 = vrot.slane %v12345_v56, 7 }
 0x318   : > { %2524 = vmatpush.msrb.mxu3 %v2318_v60  ;;  %v1695_v47 = vsel %vm547_vm0, %v1693_v50, %v1694_v31  ;;  %v2046_v10 = vpop.permute.xlu1 %2045  ;;  %v1650_v60 = vsel %vm450_vm1, 0.0, %v1582_v27 }
 0x31a   : > { %2525 = vmatpush.msrb.mxu3 %v2317_v37 }
 0x31b   : > { %1892 = vrot.lane.b32.xlu0 %v1692_v11, %s11214_s27  ;;  %v12598_v11 = vpop.permute.xlu2 %2047 }
 0x31c   : > { %2526 = vmatpush.msrb.mxu3 %v2316_v5 }
 0x31d   : > { %10836 = vrot.lane.b32.xlu1 %v10835_v54, %s11213_s15  ;;  %v2303_v54 = vld [vmem:[%s17129_s17 + $0x28] sm:$0xff] }
 0x31e   : > { %2410 = vmatpush.msrb.mxu2 %v2303_v54  ;;  %2527 = vmatpush.msrb.mxu3 %v2315_v3 }
 0x320   : > { %2411 = vmatpush.msrb.mxu2 %v2302_v63  ;;  %2528 = vmatpush.msrb.mxu3 %v2314_v2  ;;  %v1476_v63 = vpop.f32.mrf.mxu1 }
 0x323   : > { %1894 = vrot.lane.b32.xlu0 %v1734_v0, %s11214_s27  ;;  %v2301_v0 = vld [vmem:[%s17129_s17 + $0x18] sm:$0xff]  ;;  %v1877_v32 = vpop.permute.xlu2 %1876 }
 0x324   : > { %2412 = vmatpush.msrb.mxu2 %v2301_v0 }
 0x325   : > { %2155 = vrot.lane.b32.xlu1 %v12495_v46, %s11214_s27 }
 0x326   : > { %2413 = vmatpush.msrb.mxu2 %v2300_v52 }
 0x328   : > { %2414 = vmatpush.msrb.mxu2 %v2299_v58  ;;  %v1366_v58 = vpop.f32.mrf.mxu2  ;;  %v1479_v50 = vpop.f32.mrf.mxu1 }
 0x32a   : > { %2415 = vmatpush.msrb.mxu2 %v2298_v9 }
 0x32b   : > { %v12645_v51 = vpop.permute.xlu2 %1878 }
 0x32d   : > { %2157 = vrot.lane.b32.xlu1 %v12489_v48, %s11214_s27 }
 0x333   : > { %v1769_v29 = vpop.permute.xlu2 %1768 }
 0x335   : > { %1776 = vrot.lane.b32.xlu1 %v12448_v24, %s11211_s23 }
 0x33d   : > { %1778 = vrot.lane.b32.xlu1 %v12442_v15, %s11211_s23 }
 0x33f   : > { %v12673_v54 = vpop.permute.xlu2 %10826 }
 0x345   : > { %1896 = vrot.lane.b32.xlu1 %v1695_v47, %s11214_s27 }
 0x347   : > { %v2148_v2 = vpop.permute.xlu2 %2147 }
 0x34d   : > { %v2142_v62 = vpop.permute.xlu0 %2141 }
 0x34e   : > { %8524 = vmatmul.msk.f32.vlgmr.msrb.gmra.mxu1 %vm869_vm3, %v2142_v62  ;;  %v2266_v0 = vsel %vm1980_vm6, %v2046_v10, %v2142_v62 }
 0x34f   : > { %v10822_v40 = vpop.permute.xlu1 %10821  ;;  %v2150_v43 = vpop.permute.xlu2 %2149 }
 0x350   : > { %v10823_v25 = vunpack.i.l.bf16 %v10822_v40  ;;  %v10824_v62 = vunpack.i.h.bf16 %v10822_v40  ;;  %v1585_v40 = vrot.slane %v12361_v17, 7 }
 0x352   : > { %8518 = vmatmul.msk.f32.gmra.mxu3 %vm836_vm2, %v10823_v25  ;;  %v1188_v57 = vsel %vm1157_vm5, %v1155_v39, %v10823_v25  ;;  %v1189_v20 = vsel %vm1157_vm5, %v1156_v30, %v10823_v25 }
 0x353   : > { %1380 = vmatmul.f32.gmra.mxu2 %v1188_v57 }
 0x355   : > { %v12655_v33 = vpop.permute.xlu0 %1880 }
 0x357   : > { %v1875_v36 = vpop.permute.xlu1 %1874 }
 0x358   : > { %v12662_v18 = vsel %vm1980_vm6, %v1959_v42, %v1875_v36 }
 0x359   : > { %2159 = vrot.lane.b32.xlu2 %v12662_v18, %s11214_s27 }
 0x35a   : > { %8519 = vmatmul.msk.f32.gmra.mxu3 %vm836_vm2, %v10823_v25 }
 0x35b   : > { %1383 = vmatmul.f32.gmra.mxu2 %v1189_v20  ;;  %v10828_v20 = vunpack.i.l.bf16 %v12673_v54 }
 0x35d   : > { %v12671_v38 = vpop.permute.xlu0 %1882  ;;  %v2269_v1 = vsel %vm1980_vm6, %v10828_v20, %v2148_v2 }
 0x35f   : > { %v1765_v44 = vpop.permute.xlu1 %1764 }
 0x360   : > { %v1960_v37 = vsel %vm869_vm3, %v1650_v60, %v1765_v44  ;;  %v1651_v60 = vsel %vm450_vm1, 0.0, %v1585_v40  ;;  %v1584_v44 = vsel %vm450_vm1, %v1582_v27, %v1583_v23 }
 0x361   : > { %v12684_v22 = vsel %vm1980_vm6, %v1960_v37, %v1877_v32  ;;  %v12698_v32 = vld [vmem:[#allocation6] ss:$0 sm:$0xff] }
 0x362   : > { %2529 = vmatmul.f32.vlgmr.msrb.gmra.mxu3 %v2266_v0  ;;  %v10845_v5 = vpack.i.bf16 %v12684_v22, %v12662_v18  ;;  %2161 = vrot.lane.b32.xlu2 %v12684_v22, %s11214_s27  ;;  %v1367_v47 = vadd.f32 %v12698_v32, %v1366_v58  ;;  %v1364_v53 = vadd.f32 %v12698_v32, %v1363_v34  ;;  %v1588_v0 = vrot.slane %v12423_v26, 7 }
 0x363   : > { %8521 = vmatmul.msk.f32.vlgmr.msrb.gmra.mxu2 %vm12678_vm7, %v2046_v10  ;;  %v10829_v26 = vunpack.i.h.bf16 %v12673_v54 }
 0x364   : > { %10846 = vrot.lane.b32.xlu0 %v10845_v5, %s11213_s15  ;;  %v1480_v10 = vadd.f32 %v1479_v50, %v1367_v47  ;;  %v1477_v25 = vadd.f32 %v1476_v63, %v1364_v53  ;;  %v2237_v5 = vsel %vm1157_vm5, %v12348_v4, %v10828_v20 }
 0x365   : > { %v1773_v52 = vpop.permute.xlu0 %1772 }
 0x366   : > { %v12709_v57 = vmax.f32 %v1480_v10, 0.0  ;;  %v12716_v42 = vmax.f32 %v1477_v25, 0.0  ;;  %v1482_v10 = vpop.f32.mrf.mxu3  ;;  %v1589_v25 = vrot.slane %v12459_v35, 7 }
 0x367   : > { %v2144_v3 = vpop.permute.xlu1 %2143 }
 0x368   : > { %8525 = vmatmul.msk.f32.gmra.mxu1 %vm869_vm3, %v2144_v3  ;;  %v2267_v9 = vsel %vm1980_vm6, %v12598_v11, %v2144_v3  ;;  %v1697_v36 = vrot.slane %v12709_v57, 1  ;;  %v1696_v34 = vrot.slane %v12716_v42, 1  ;;  %v1771_v3 = vpop.permute.xlu2 %1770 }
 0x36a   : > { %1780 = vrot.lane.b32.xlu2 %v12501_v14, %s11211_s23  ;;  %2532 = vmatmul.f32.gmra.mxu3 %v2267_v9  ;;  %v1698_v37 = vsel %vm547_vm0, %v1696_v34, %v1697_v36 }
 0x36b   : > { %8523 = vmatmul.msk.f32.gmra.mxu2 %vm12678_vm7, %v12598_v11  ;;  %v2236_v11 = vsel %vm1157_vm5, %v12337_v59, %v10824_v62  ;;  %v1962_v59 = vsel %vm869_vm3, %v1651_v60, %v1769_v29  ;;  %v1586_v29 = vrot.slane %v12375_v21, 7 }
 0x36c   : > { %v12729_v17 = vsel %vm1980_vm6, %v1962_v59, %v12655_v33 }
 0x36d   : > { %v12705_v13 = vpop.permute.xlu0 %10831  ;;  %v1587_v58 = vsel %vm450_vm1, %v1585_v40, %v1586_v29 }
 0x36e   : > { %v1963_v9 = vsel %vm869_vm3, %v1587_v58, %v1771_v3  ;;  %v1485_v20 = vpop.f32.mrf.mxu3 }
 0x36f   : > { %v2146_v39 = vpop.permute.xlu1 %2145  ;;  %v12756_v47 = vsel %vm1980_vm6, %v1963_v9, %v12671_v38 }
 0x370   : > { %8526 = vmatmul.msk.f32.gmra.mxu1 %vm869_vm3, %v2146_v39  ;;  %v2268_v7 = vsel %vm1980_vm6, %v10824_v62, %v2146_v39  ;;  %v2270_v62 = vsel %vm1980_vm6, %v10829_v26, %v2150_v43  ;;  %v10833_v39 = vunpack.i.l.bf16 %v12705_v13 }
 0x372   : > { %1782 = vrot.lane.b32.xlu2 %v12492_v28, %s11211_s23  ;;  %2535 = vmatmul.f32.gmra.mxu3 %v2268_v7  ;;  %v2239_v40 = vsel %vm1157_vm5, %v12397_v41, %v10833_v39  ;;  %v1889_v41 = vpop.permute.xlu2 %1888 }
 0x373   : > { %2422 = vmatmul.f32.gmra.mxu2 %v2236_v11 }
 0x375   : > { %v2152_v30 = vpop.permute.xlu0 %2151 }
 0x376   : > { %v2271_v35 = vsel %vm1980_vm6, %v10833_v39, %v2152_v30 }
 0x377   : > { %v1767_v63 = vpop.permute.xlu1 %1766 }
 0x378   : > { %v1961_v56 = vsel %vm869_vm3, %v1584_v44, %v1767_v63  ;;  %8527 = vmatmul.msk.f32.gmra.mxu1 %vm869_vm3, %v2148_v2  ;;  %v1652_v2 = vsel %vm450_vm1, 0.0, %v1588_v0  ;;  %v10834_v44 = vunpack.i.h.bf16 %v12705_v13  ;;  %v1735_v13 = vsel %vm547_vm0, %v1694_v31, 0.0 }
 0x379   : > { %v12737_v27 = vsel %vm1980_vm6, %v1961_v56, %v12645_v51  ;;  %v1369_v51 = vpop.f32.mrf.mxu2  ;;  %v1964_v50 = vsel %vm869_vm3, %v1652_v2, %v1773_v52  ;;  %v2238_v52 = vsel %vm1157_vm5, %v12379_v19, %v10829_v26 }
 0x37a   : > { %1900 = vrot.lane.b32.xlu2 %v1698_v37, %s11214_s27  ;;  %2538 = vmatmul.f32.gmra.mxu3 %v2269_v1  ;;  %v10850_v33 = vpack.i.bf16 %v12729_v17, %v12737_v27  ;;  %v1370_v60 = vadd.f32 %v12698_v32, %v1369_v51  ;;  %v2240_v1 = vsel %vm1157_vm5, %v12394_v16, %v10834_v44  ;;  %v1891_v51 = vpop.permute.xlu2 %1890 }
 0x37b   : > { %2163 = vrot.lane.b32.xlu0 %v12737_v27, %s11214_s27  ;;  %2425 = vmatmul.f32.gmra.mxu2 %v2237_v5 }
 0x37c   : > { %10851 = vrot.lane.b32.xlu1 %v10850_v33, %s11213_s15  ;;  %v1483_v59 = vadd.f32 %v1482_v10, %v1370_v60 }
 0x37d   : > { %v2154_v21 = vpop.permute.xlu0 %2153 }
 0x37e   : > { %v2272_v56 = vsel %vm1980_vm6, %v10834_v44, %v2154_v21  ;;  %v12803_v29 = vmax.f32 %v1483_v59, 0.0 }
 0x37f   : > { %v1885_v4 = vpop.permute.xlu1 %1884 }
 0x380   : > { %v12759_v53 = vsel %vm1980_vm6, %v1964_v50, %v1885_v4  ;;  %8528 = vmatmul.msk.f32.gmra.mxu1 %vm869_vm3, %v2150_v43  ;;  %v1590_v43 = vsel %vm450_vm1, %v1588_v0, %v1589_v25  ;;  %v1699_v3 = vrot.slane %v12803_v29, 1 }
 0x381   : > { %v10855_v54 = vpack.i.bf16 %v12759_v53, %v12756_v47  ;;  %v1372_v7 = vpop.f32.mrf.mxu2 }
 0x382   : > { %2541 = vmatmul.f32.gmra.mxu3 %v2270_v62  ;;  %v1373_v23 = vadd.f32 %v12698_v32, %v1372_v7  ;;  %v10842_v50 = vpop.permute.xlu2 %10841 }
 0x383   : > { %2165 = vrot.lane.b32.xlu0 %v12729_v17, %s11214_s27  ;;  %2428 = vmatmul.f32.gmra.mxu2 %v2238_v52  ;;  %v10843_v4 = vunpack.i.l.bf16 %v10842_v50 }
 0x384   : > { %10856 = vrot.lane.b32.xlu2 %v10855_v54, %s11213_s15  ;;  %2167 = vrot.lane.b32.xlu1 %v12756_v47, %s11214_s27 }
 0x385   : > { %v1775_v38 = vpop.permute.xlu0 %1774 }
 0x386   : > { %v1965_v19 = vsel %vm869_vm3, %v1590_v43, %v1775_v38  ;;  %v10844_v38 = vunpack.i.h.bf16 %v10842_v50 }
 0x387   : > { %v1887_v11 = vpop.permute.xlu1 %1886 }
 0x388   : > { %8529 = vmatmul.msk.f32.gmra.mxu1 %vm869_vm3, %v2152_v30  ;;  %v12782_v34 = vsel %vm1980_vm6, %v1965_v19, %v1887_v11  ;;  %v1486_v30 = vadd.f32 %v1485_v20, %v1373_v23  ;;  %v1736_v11 = vsel %vm547_vm0, %v1697_v36, 0.0  ;;  %v1594_v23 = vrot.slane %v12501_v14, 7 }
 0x389   : > { %v1595_v14 = vrot.slane %v12492_v28, 7 }
 0x38a   : > { %2544 = vmatmul.f32.gmra.mxu3 %v2271_v35  ;;  %v12794_v37 = vmax.f32 %v1486_v30, 0.0  ;;  %v1654_v20 = vsel %vm450_vm1, 0.0, %v1594_v23  ;;  %v1488_v30 = vpop.f32.mrf.mxu3 }
 0x38b   : > { %1784 = vrot.lane.b32.xlu0 %v12622_v49, %s11211_s23  ;;  %2431 = vmatmul.f32.gmra.mxu2 %v2239_v40 }
 0x38c   : > { %2171 = vrot.lane.b32.xlu2 %v12782_v34, %s11214_s27  ;;  %2169 = vrot.lane.b32.xlu1 %v12759_v53, %s11214_s27  ;;  %v1700_v0 = vrot.slane %v12794_v37, 1 }
 0x38d   : > { %v1893_v40 = vpop.permute.xlu0 %1892 }
 0x38f   : > { %v10837_v63 = vpop.permute.xlu1 %10836 }
 0x390   : > { %8530 = vmatmul.msk.f32.gmra.mxu1 %vm869_vm3, %v2154_v21  ;;  %v10838_v33 = vunpack.i.l.bf16 %v10837_v63  ;;  %v1701_v21 = vsel %vm547_vm0, %v1699_v3, %v1700_v0  ;;  %v10839_v26 = vunpack.i.h.bf16 %v10837_v63 }
 0x392   : > { %2547 = vmatmul.f32.gmra.mxu3 %v2272_v56  ;;  %v2241_v31 = vsel %vm1157_vm5, %v12416_v12, %v10838_v33  ;;  %v2242_v9 = vsel %vm1157_vm5, %v12430_v45, %v10839_v26  ;;  %v1591_v12 = vrot.slane %v12448_v24, 7  ;;  %v2243_v45 = vsel %vm1157_vm5, %v12455_v61, %v10843_v4 }
 0x393   : > { %1786 = vrot.lane.b32.xlu0 %v12615_v6, %s11211_s23  ;;  %2434 = vmatmul.f32.gmra.mxu2 %v2240_v1  ;;  %v1592_v24 = vrot.slane %v12442_v15, 7  ;;  %v2244_v61 = vsel %vm1157_vm5, %v12473_v8, %v10844_v38  ;;  %v1596_v56 = vsel %vm450_vm1, %v1594_v23, %v1595_v14 }
 0x394   : > { %1898 = vrot.lane.b32.xlu1 %v1735_v13, %s11214_s27  ;;  %v1653_v10 = vsel %vm450_vm1, 0.0, %v1591_v12 }
 0x395   : > { %v1593_v39 = vsel %vm450_vm1, %v1591_v12, %v1592_v24 }
 0x397   : > { %v2156_v5 = vpop.permute.xlu1 %2155 }
 0x398   : > { %8531 = vmatmul.msk.f32.gmra.mxu1 %vm869_vm3, %v2156_v5  ;;  %v2273_v16 = vsel %vm1980_vm6, %v10838_v33, %v2156_v5  ;;  %v1491_v33 = vpop.f32.mrf.mxu3 }
 0x39a   : > { %2550 = vmatmul.f32.gmra.mxu3 %v2273_v16  ;;  %v1895_v16 = vpop.permute.xlu0 %1894 }
 0x39b   : > { %1904 = vrot.lane.b32.xlu0 %v1701_v21, %s11214_s27  ;;  %2437 = vmatmul.f32.gmra.mxu2 %v2241_v31 }
 0x39c   : > { %1788 = vrot.lane.b32.xlu1 %v12716_v42, %s11211_s23 }
 0x39f   : > { %v2158_v58 = vpop.permute.xlu1 %2157 }
 0x3a0   : > { %8532 = vmatmul.msk.f32.gmra.mxu1 %vm869_vm3, %v2158_v58  ;;  %v2274_v2 = vsel %vm1980_vm6, %v10839_v26, %v2158_v58 }
 0x3a2   : > { %2553 = vmatmul.f32.gmra.mxu3 %v2274_v2 }
 0x3a3   : > { %2440 = vmatmul.f32.gmra.mxu2 %v2242_v9 }
 0x3a4   : > { %1790 = vrot.lane.b32.xlu1 %v12709_v57, %s11211_s23 }
 0x3a7   : > { %v1777_v54 = vpop.permute.xlu1 %1776 }
 0x3a8   : > { %v1966_v62 = vsel %vm869_vm3, %v1653_v10, %v1777_v54 }
 0x3a9   : > { %v12828_v52 = vsel %vm1980_vm6, %v1966_v62, %v1889_v41  ;;  %v1375_v41 = vpop.f32.mrf.mxu2 }
 0x3aa   : > { %v10860_v25 = vpack.i.bf16 %v12828_v52, %v12782_v34  ;;  %2173 = vrot.lane.b32.xlu2 %v12828_v52, %s11214_s27  ;;  %v1376_v13 = vadd.f32 %v12698_v32, %v1375_v41  ;;  %v1597_v41 = vrot.slane %v12622_v49, 7 }
 0x3ab   : > { %2443 = vmatmul.f32.gmra.mxu2 %v2243_v45 }
 0x3ac   : > { %10861 = vrot.lane.b32.xlu0 %v10860_v25, %s11213_s15  ;;  %v1489_v21 = vadd.f32 %v1488_v30, %v1376_v13  ;;  %v1655_v14 = vsel %vm450_vm1, 0.0, %v1597_v41 }
 0x3ae   : > { %v12883_v31 = vmax.f32 %v1489_v21, 0.0 }
 0x3af   : > { %v1779_v7 = vpop.permute.xlu1 %1778 }
 0x3b0   : > { %v1967_v43 = vsel %vm869_vm3, %v1593_v39, %v1779_v7  ;;  %v1702_v21 = vrot.slane %v12883_v31, 1 }
 0x3b1   : > { %v12847_v15 = vsel %vm1980_vm6, %v1967_v43, %v1891_v51  ;;  %v1378_v3 = vpop.f32.mrf.mxu2  ;;  %v1737_v51 = vsel %vm547_vm0, %v1700_v0, 0.0 }
 0x3b2   : > { %1902 = vrot.lane.b32.xlu2 %v1736_v11, %s11214_s27  ;;  %v1379_v26 = vadd.f32 %v12698_v32, %v1378_v3  ;;  %v1598_v3 = vrot.slane %v12615_v6, 7 }
 0x3b3   : > { %v2160_v19 = vpop.permute.xlu2 %2159  ;;  %2446 = vmatmul.f32.gmra.mxu2 %v2244_v61 }
 0x3b4   : > { %8533 = vmatmul.msk.f32.gmra.mxu1 %vm869_vm3, %v2160_v19  ;;  %2175 = vrot.lane.b32.xlu0 %v12847_v15, %s11214_s27  ;;  %v2275_v35 = vsel %vm1980_vm6, %v10843_v4, %v2160_v19  ;;  %v1492_v0 = vadd.f32 %v1491_v33, %v1379_v26  ;;  %v1599_v26 = vsel %vm450_vm1, %v1597_v41, %v1598_v3  ;;  %v1603_v41 = vrot.slane %v12803_v29, 7 }
 0x3b5   : > { %2556 = vmatmul.f32.gmra.mxu3 %v2275_v35 }
 0x3b6   : > { %v12891_v10 = vmax.f32 %v1492_v0, 0.0 }
 0x3b7   : > { %v1897_v61 = vpop.permute.xlu1 %1896 }
 0x3ba   : > { %1792 = vrot.lane.b32.xlu2 %v12803_v29, %s11211_s23 }
 0x3bc   : > { %v2162_v36 = vpop.permute.xlu2 %2161 }
 0x3bd   : > { %8534 = vmatmul.msk.f32.gmra.mxu1 %vm869_vm3, %v2162_v36  ;;  %v2276_v8 = vsel %vm1980_vm6, %v10844_v38, %v2162_v36 }
 0x3be   : > { %2559 = vmatmul.f32.gmra.mxu3 %v2276_v8 }
 0x3c2   : > { %1794 = vrot.lane.b32.xlu2 %v12794_v37, %s11211_s23 }
 0x3c4   : > { %v1781_v60 = vpop.permute.xlu2 %1780 }
 0x3c5   : > { %v1968_v44 = vsel %vm869_vm3, %v1654_v20, %v1781_v60 }
 0x3c6   : > { %v12863_v63 = vsel %vm1980_vm6, %v1968_v44, %v1893_v40 }
 0x3c7   : > { %v10865_v59 = vpack.i.bf16 %v12863_v63, %v12847_v15  ;;  %2177 = vrot.lane.b32.xlu0 %v12863_v63, %s11214_s27 }
 0x3c9   : > { %10866 = vrot.lane.b32.xlu1 %v10865_v59, %s11213_s15 }
 0x3cc   : > { %v1783_v1 = vpop.permute.xlu2 %1782 }
 0x3cd   : > { %v1969_v5 = vsel %vm869_vm3, %v1596_v56, %v1783_v1 }
 0x3ce   : > { %v12879_v28 = vsel %vm1980_vm6, %v1969_v5, %v1895_v16 }
 0x3cf   : > { %1906 = vrot.lane.b32.xlu0 %v1737_v51, %s11214_s27  ;;  %v1703_v51 = vrot.slane %v12891_v10, 1 }
 0x3d1   : > { %2179 = vrot.lane.b32.xlu1 %v12879_v28, %s11214_s27  ;;  %v1704_v0 = vsel %vm547_vm0, %v1702_v21, %v1703_v51 }
 0x3d4   : > { %v12909_v19 = vpop.permute.xlu2 %1900 }
 0x3d5   : > { %v1494_v58 = vpop.f32.mrf.mxu3 }
 0x3d6   : > { %v1381_v2 = vpop.f32.mrf.mxu2  ;;  %v10847_v9 = vpop.permute.xlu0 %10846 }
 0x3d7   : > { %v10848_v50 = vunpack.i.l.bf16 %v10847_v9  ;;  %1796 = vrot.lane.b32.xlu0 %v12883_v31, %s11211_s23  ;;  %v1382_v4 = vadd.f32 %v12698_v32, %v1381_v2  ;;  %v10849_v54 = vunpack.i.h.bf16 %v10847_v9 }
 0x3d9   : > { %v2245_v12 = vsel %vm1157_vm5, %v12495_v46, %v10848_v50  ;;  %v1495_v62 = vadd.f32 %v1494_v58, %v1382_v4  ;;  %v2246_v39 = vsel %vm1157_vm5, %v12489_v48, %v10849_v54 }
 0x3da   : > { %2449 = vmatmul.f32.gmra.mxu2 %v2245_v12 }
 0x3db   : > { %v12898_v7 = vmax.f32 %v1495_v62, 0.0 }
 0x3dd   : > { %v1497_v24 = vpop.f32.mrf.mxu3  ;;  %v1609_v11 = vrot.slane %v12898_v7, 7 }
 0x3de   : > { %v1384_v25 = vpop.f32.mrf.mxu2  ;;  %v10857_v30 = vpop.permute.xlu2 %10856 }
 0x3df   : > { %v1385_v45 = vadd.f32 %v12698_v32, %v1384_v25  ;;  %1798 = vrot.lane.b32.xlu0 %v12891_v10, %s11211_s23  ;;  %v10859_v2 = vunpack.i.h.bf16 %v10857_v30 }
 0x3e1   : > { %v1498_v38 = vadd.f32 %v1497_v24, %v1385_v45  ;;  %v2250_v4 = vsel %vm1157_vm5, %v12729_v17, %v10859_v2 }
 0x3e2   : > { %2452 = vmatmul.f32.gmra.mxu2 %v2246_v39 }
 0x3e3   : > { %v12900_v46 = vmax.f32 %v1498_v38, 0.0  ;;  %v1738_v38 = vsel %vm547_vm0, %v1703_v51, 0.0 }
 0x3e5   : > { %v1610_v43 = vrot.slane %v12900_v46, 7  ;;  %v12959_v17 = vpop.f32.mrf.mxu3 }
 0x3e6   : > { %v12951_v62 = vpop.f32.mrf.mxu2 }
 0x3e7   : > { %v12907_v32 = vsel %vm450_vm1, %v1609_v11, %v1610_v43 }
 0x3ed   : > { %v2164_v35 = vpop.permute.xlu0 %2163 }
 0x3ee   : > { %8535 = vmatmul.msk.f32.gmra.mxu1 %vm869_vm3, %v2164_v35  ;;  %v2277_v48 = vsel %vm1980_vm6, %v10848_v50, %v2164_v35  ;;  %v10852_v36 = vpop.permute.xlu1 %10851 }
 0x3ef   : > { %2562 = vmatmul.f32.gmra.mxu3 %v2277_v48  ;;  %v10853_v8 = vunpack.i.l.bf16 %v10852_v36  ;;  %v10854_v20 = vunpack.i.h.bf16 %v10852_v36  ;;  %v1706_v48 = vrot.slane %v12900_v46, 1 }
 0x3f1   : > { %v2247_v23 = vsel %vm1157_vm5, %v12662_v18, %v10853_v8  ;;  %v2248_v59 = vsel %vm1157_vm5, %v12684_v22, %v10854_v20  ;;  %v10858_v18 = vunpack.i.l.bf16 %v10857_v30  ;;  %v2172_v22 = vpop.permute.xlu2 %2171  ;;  %v1739_v29 = vsel %vm547_vm0, %v1706_v48, 0.0 }
 0x3f2   : > { %2455 = vmatmul.f32.gmra.mxu2 %v2247_v23 }
 0x3f3   : > { %v2249_v16 = vsel %vm1157_vm5, %v12737_v27, %v10858_v18  ;;  %v2281_v25 = vsel %vm1980_vm6, %v10858_v18, %v2172_v22  ;;  %v1657_v18 = vsel %vm450_vm1, 0.0, %v1603_v41 }
 0x3f5   : > { %v2166_v40 = vpop.permute.xlu0 %2165 }
 0x3f6   : > { %8536 = vmatmul.msk.f32.gmra.mxu1 %vm869_vm3, %v2166_v40  ;;  %v2278_v60 = vsel %vm1980_vm6, %v10849_v54, %v2166_v40  ;;  %v2168_v44 = vpop.permute.xlu1 %2167  ;;  %v1600_v54 = vrot.slane %v12716_v42, 7 }
 0x3f7   : > { %2565 = vmatmul.f32.gmra.mxu3 %v2278_v60  ;;  %v2279_v13 = vsel %vm1980_vm6, %v10853_v8, %v2168_v44  ;;  %v12978_v60 = vpop.f32.mrf.mxu1 }
 0x3f8   : > { %v1656_v45 = vsel %vm450_vm1, 0.0, %v1600_v54 }
 0x3fa   : > { %2458 = vmatmul.f32.gmra.mxu2 %v2248_v59 }
 0x3fd   : > { %v1785_v56 = vpop.permute.xlu0 %1784 }
 0x3fe   : > { %v1970_v1 = vsel %vm869_vm3, %v1655_v14, %v1785_v56  ;;  %8537 = vmatmul.msk.f32.gmra.mxu1 %vm869_vm3, %v2168_v44  ;;  %v2170_v33 = vpop.permute.xlu1 %2169  ;;  %v12985_v44 = vpop.f32.mrf.mxu3 }
 0x3ff   : > { %2568 = vmatmul.f32.gmra.mxu3 %v2279_v13  ;;  %v12925_v5 = vsel %vm1980_vm6, %v1970_v1, %v1897_v61  ;;  %v2280_v6 = vsel %vm1980_vm6, %v10854_v20, %v2170_v33  ;;  %v1601_v61 = vrot.slane %v12709_v57, 7  ;;  %v1705_v20 = vrot.slane %v12898_v7, 1  ;;  %v12994_v13 = vpop.f32.mrf.mxu1 }
 0x400   : > { %v10870_v49 = vpack.i.bf16 %v12925_v5, %v12879_v28  ;;  %2181 = vrot.lane.b32.xlu1 %v12925_v5, %s11214_s27 }
 0x401   : > { %v1602_v23 = vsel %vm450_vm1, %v1600_v54, %v1601_v61  ;;  %v1707_v30 = vsel %vm547_vm0, %v1705_v20, %v1706_v48 }
 0x402   : > { %10871 = vrot.lane.b32.xlu2 %v10870_v49, %s11213_s15  ;;  %2461 = vmatmul.f32.gmra.mxu2 %v2249_v16 }
 0x404   : > { %v2174_v12 = vpop.permute.xlu2 %2173 }
 0x405   : > { %v1787_v58 = vpop.permute.xlu0 %1786  ;;  %v2282_v8 = vsel %vm1980_vm6, %v10859_v2, %v2174_v12 }
 0x406   : > { %v1971_v9 = vsel %vm869_vm3, %v1599_v26, %v1787_v58  ;;  %8538 = vmatmul.msk.f32.gmra.mxu1 %vm869_vm3, %v2170_v33  ;;  %v1899_v50 = vpop.permute.xlu1 %1898  ;;  %v13010_v16 = vpop.f32.mrf.mxu3 }
 0x407   : > { %2571 = vmatmul.f32.gmra.mxu3 %v2280_v6  ;;  %v12943_v27 = vsel %vm1980_vm6, %v1971_v9, %v1899_v50  ;;  %v13018_v26 = vpop.f32.mrf.mxu1 }
 0x408   : > { %1908 = vrot.lane.b32.xlu1 %v1704_v0, %s11214_s27 }
 0x40a   : > { %2183 = vrot.lane.b32.xlu2 %v12943_v27, %s11214_s27  ;;  %2464 = vmatmul.f32.gmra.mxu2 %v2250_v4  ;;  %v1604_v4 = vrot.slane %v12794_v37, 7 }
 0x40c   : > { %v1903_v35 = vpop.permute.xlu2 %1902 }
 0x40d   : > { %v1905_v36 = vpop.permute.xlu0 %1904 }
 0x40e   : > { %8539 = vmatmul.msk.f32.gmra.mxu1 %vm869_vm3, %v2172_v22  ;;  %v1789_v24 = vpop.permute.xlu1 %1788  ;;  %v13024_v2 = vpop.f32.mrf.mxu3 }
 0x40f   : > { %2574 = vmatmul.f32.gmra.mxu3 %v2281_v25  ;;  %v1972_v39 = vsel %vm869_vm3, %v1656_v45, %v1789_v24  ;;  %v13026_v9 = vpop.f32.mrf.mxu1 }
 0x410   : > { %1910 = vrot.lane.b32.xlu1 %v1738_v38, %s11214_s27  ;;  %v12963_v42 = vsel %vm1980_vm6, %v1972_v39, %v12909_v19  ;;  %v12974_v19 = vpop.f32.mrf.mxu2  ;;  %v1605_v39 = vsel %vm450_vm1, %v1603_v41, %v1604_v4 }
 0x411   : > { %v10875_v43 = vpack.i.bf16 %v12963_v42, %v12943_v27 }
 0x412   : > { %2185 = vrot.lane.b32.xlu2 %v12963_v42, %s11214_s27 }
 0x413   : > { %10876 = vrot.lane.b32.xlu0 %v10875_v43, %s11213_s15 }
 0x414   : > { %v1793_v14 = vpop.permute.xlu2 %1792 }
 0x415   : > { %v1974_v33 = vsel %vm869_vm3, %v1657_v18, %v1793_v14 }
 0x416   : > { %8540 = vmatmul.msk.f32.gmra.mxu1 %vm869_vm3, %v2174_v12  ;;  %v1791_v40 = vpop.permute.xlu1 %1790  ;;  %v13006_v3 = vsel %vm1980_vm6, %v1974_v33, %v1905_v36  ;;  %v13030_v50 = vpop.f32.mrf.mxu3 }
 0x417   : > { %2577 = vmatmul.f32.gmra.mxu3 %v2282_v8  ;;  %v1973_v57 = vsel %vm869_vm3, %v1602_v23, %v1791_v40  ;;  %v13035_v25 = vpop.f32.mrf.mxu1 }
 0x418   : > { %1800 = vrot.lane.b32.xlu1 %v12898_v7, %s11211_s23  ;;  %v12989_v59 = vsel %vm1980_vm6, %v1973_v57, %v1903_v35  ;;  %v12999_v49 = vpop.f32.mrf.mxu2 }
 0x41a   : > { %1912 = vrot.lane.b32.xlu2 %v1707_v30, %s11214_s27 }
 0x41b   : > { %2187 = vrot.lane.b32.xlu0 %v12989_v59, %s11214_s27 }
 0x41c   : > { %v1795_v45 = vpop.permute.xlu2 %1794 }
 0x41d   : > { %v1975_v43 = vsel %vm869_vm3, %v1605_v39, %v1795_v45 }
 0x41e   : > { %v10862_v56 = vpop.permute.xlu0 %10861  ;;  %v13046_v37 = vpop.f32.mrf.mxu3 }
 0x41f   : > { %v10863_v1 = vunpack.i.l.bf16 %v10862_v56  ;;  %v10864_v51 = vunpack.i.h.bf16 %v10862_v56  ;;  %v13054_v23 = vpop.f32.mrf.mxu1 }
 0x420   : > { %1802 = vrot.lane.b32.xlu1 %v12900_v46, %s11211_s23  ;;  %v13020_v58 = vpop.f32.mrf.mxu2 }
 0x421   : > { %v2251_v22 = vsel %vm1157_vm5, %v12756_v47, %v10863_v1  ;;  %v2252_v47 = vsel %vm1157_vm5, %v12759_v53, %v10864_v51 }
 0x422   : > { %1914 = vrot.lane.b32.xlu2 %v1739_v29, %s11214_s27  ;;  %2467 = vmatmul.f32.gmra.mxu2 %v2251_v22 }
 0x423   : > { %2189 = vrot.lane.b32.xlu0 %v13006_v3, %s11214_s27 }
 0x426   : > { %v2176_v46 = vpop.permute.xlu0 %2175  ;;  %v13060_v20 = vpop.f32.mrf.mxu3 }
 0x427   : > { %8541 = vmatmul.msk.f32.gmra.mxu1 %vm869_vm3, %v2176_v46  ;;  %v2283_v21 = vsel %vm1980_vm6, %v10863_v1, %v2176_v46  ;;  %v13062_v57 = vpop.f32.mrf.mxu1 }
 0x428   : > { %2095 = vrot.lane.b32.xlu1 %v12989_v59, %s11213_s15  ;;  %2580 = vmatmul.f32.gmra.mxu3 %v2283_v21  ;;  %v13028_v6 = vpop.f32.mrf.mxu2 }
 0x42a   : > { %2470 = vmatmul.f32.gmra.mxu2 %v2252_v47 }
 0x42b   : > { %2097 = vrot.lane.b32.xlu0 %v13006_v3, %s11213_s15 }
 0x42e   : > { %v13066_v41 = vpop.f32.mrf.mxu3 }
 0x42f   : > { %v13068_v14 = vpop.f32.mrf.mxu1 }
 0x430   : > { %v13039_v38 = vpop.f32.mrf.mxu2 }
 0x436   : > { %v13074_v33 = vpop.f32.mrf.mxu3 }
 0x437   : > { %v13076_v22 = vpop.f32.mrf.mxu1 }
 0x438   : > { %v13056_v40 = vpop.f32.mrf.mxu2 }
 0x439   : > { %v2178_v0 = vpop.permute.xlu0 %2177 }
 0x43a   : > { %8542 = vmatmul.msk.f32.gmra.mxu1 %vm869_vm3, %v2178_v0  ;;  %v2284_v53 = vsel %vm1980_vm6, %v10864_v51, %v2178_v0 }
 0x43b   : > { %v10867_v12 = vpop.permute.xlu1 %10866  ;;  %2583 = vmatmul.f32.gmra.mxu3 %v2284_v53 }
 0x43c   : > { %v10868_v54 = vunpack.i.l.bf16 %v10867_v12  ;;  %v10869_v35 = vunpack.i.h.bf16 %v10867_v12 }
 0x43e   : > { %v2253_v24 = vsel %vm1157_vm5, %v12782_v34, %v10868_v54  ;;  %v2254_v8 = vsel %vm1157_vm5, %v12828_v52, %v10869_v35  ;;  %v13082_v21 = vpop.f32.mrf.mxu3 }
 0x43f   : > { %2473 = vmatmul.f32.gmra.mxu2 %v2253_v24  ;;  %v13084_v47 = vpop.f32.mrf.mxu1 }
 0x440   : > { %v13064_v30 = vpop.f32.mrf.mxu2 }
 0x441   : > { %v1907_v61 = vpop.permute.xlu0 %1906 }
 0x442   : > { %v13044_v48 = vsel %vm1980_vm6, %v1975_v43, %v1907_v61 }
 0x443   : > { %2191 = vrot.lane.b32.xlu2 %v13044_v48, %s11214_s27  ;;  %v2180_v36 = vpop.permute.xlu1 %2179 }
 0x444   : > { %8543 = vmatmul.msk.f32.gmra.mxu1 %vm869_vm3, %v2180_v36  ;;  %v2285_v34 = vsel %vm1980_vm6, %v10868_v54, %v2180_v36  ;;  %v1606_v54 = vrot.slane %v12883_v31, 7  ;;  %v1607_v31 = vrot.slane %v12891_v10, 7 }
 0x445   : > { %2586 = vmatmul.f32.gmra.mxu3 %v2285_v34 }
 0x446   : > { %v1658_v24 = vsel %vm450_vm1, 0.0, %v1606_v54 }
 0x447   : > { %2476 = vmatmul.f32.gmra.mxu2 %v2254_v8 }
 0x448   : > { %v13070_v52 = vpop.f32.mrf.mxu2 }
 0x449   : > { %v1797_v4 = vpop.permute.xlu0 %1796 }
 0x44a   : > { %v1976_v43 = vsel %vm869_vm3, %v1658_v24, %v1797_v4 }
 0x44b   : > { %2099 = vrot.lane.b32.xlu2 %v13044_v48, %s11213_s15 }
 0x450   : > { %v13078_v51 = vpop.f32.mrf.mxu2 }
 0x451   : > { %v1799_v8 = vpop.permute.xlu0 %1798 }
 0x458   : > { %v13086_v0 = vpop.f32.mrf.mxu2 }
 0x45c   : > { %v10872_v56 = vpop.permute.xlu2 %10871 }
 0x45d   : > { %v10873_v18 = vunpack.i.l.bf16 %v10872_v56  ;;  %v10874_v29 = vunpack.i.h.bf16 %v10872_v56 }
 0x45f   : > { %v2255_v1 = vsel %vm1157_vm5, %v12847_v15, %v10873_v18  ;;  %v2256_v46 = vsel %vm1157_vm5, %v12863_v63, %v10874_v29  ;;  %v13088_v15 = vpop.f32.mrf.mxu3  ;;  %v13093_v63 = vpop.f32.mrf.mxu1 }
 0x460   : > { %2479 = vmatmul.f32.gmra.mxu2 %v2255_v1  ;;  %v13096_v39 = vpop.f32.mrf.mxu2 }
 0x464   : > { %v2184_v45 = vpop.permute.xlu2 %2183 }
 0x468   : > { %2482 = vmatmul.f32.gmra.mxu2 %v2256_v46  ;;  %v1608_v46 = vsel %vm450_vm1, %v1606_v54, %v1607_v31  ;;  %v13113_v4 = vpop.f32.mrf.mxu2  ;;  %v1659_v31 = vsel %vm450_vm1, 0.0, %v1609_v11 }
 0x46b   : > { %v13109_v1 = vpop.f32.mrf.mxu1 }
 0x46c   : > { %v2186_v56 = vpop.permute.xlu2 %2185 }
 0x46d   : > { %v2288_v10 = vsel %vm1980_vm6, %v10874_v29, %v2186_v56 }
 0x472   : > { %v2182_v53 = vpop.permute.xlu1 %2181  ;;  %v13099_v36 = vpop.f32.mrf.mxu3 }
 0x473   : > { %8544 = vmatmul.msk.f32.gmra.mxu1 %vm869_vm3, %v2182_v53  ;;  %v2286_v12 = vsel %vm1980_vm6, %v10869_v35, %v2182_v53  ;;  %v2287_v35 = vsel %vm1980_vm6, %v10873_v18, %v2184_v45  ;;  %v1977_v53 = vsel %vm869_vm3, %v1608_v46, %v1799_v8 }
 0x474   : > { %2589 = vmatmul.f32.gmra.mxu3 %v2286_v12 }
 0x475   : > { %v13133_v46 = vpop.f32.mrf.mxu2 }
 0x47a   : > { %v1909_v61 = vpop.permute.xlu1 %1908  ;;  %v13124_v18 = vpop.f32.mrf.mxu3 }
 0x47b   : > { %v13102_v34 = vsel %vm1980_vm6, %v1976_v43, %v1909_v61  ;;  %8545 = vmatmul.msk.f32.gmra.mxu1 %vm869_vm3, %v2184_v45  ;;  %v1913_v43 = vpop.permute.xlu2 %1912 }
 0x47c   : > { %2193 = vrot.lane.b32.xlu1 %v13102_v34, %s11214_s27  ;;  %2592 = vmatmul.f32.gmra.mxu3 %v2287_v35  ;;  %v13128_v35 = vpop.f32.mrf.mxu1 }
 0x482   : > { %v1911_v12 = vpop.permute.xlu1 %1910 }
 0x483   : > { %v13116_v24 = vsel %vm1980_vm6, %v1977_v53, %v1911_v12  ;;  %8546 = vmatmul.msk.f32.gmra.mxu1 %vm869_vm3, %v2186_v56  ;;  %v13140_v12 = vpop.f32.mrf.mxu3 }
 0x484   : > { %2101 = vrot.lane.b32.xlu1 %v13102_v34, %s11213_s15  ;;  %2195 = vrot.lane.b32.xlu0 %v13116_v24, %s11214_s27 }
 0x485   : > { %2595 = vmatmul.f32.gmra.mxu3 %v2288_v10  ;;  %v10877_v54 = vpop.permute.xlu0 %10876 }
 0x486   : > { %v10878_v45 = vunpack.i.l.bf16 %v10877_v54  ;;  %v10879_v53 = vunpack.i.h.bf16 %v10877_v54  ;;  %v13148_v54 = vpop.f32.mrf.mxu1 }
 0x488   : > { %v2257_v61 = vsel %vm1157_vm5, %v12879_v28, %v10878_v45  ;;  %v2258_v11 = vsel %vm1157_vm5, %v12925_v5, %v10879_v53 }
 0x489   : > { %2485 = vmatmul.f32.gmra.mxu2 %v2257_v61  ;;  %v1915_v61 = vpop.permute.xlu2 %1914 }
 0x48a   : > { %v1801_v8 = vpop.permute.xlu1 %1800 }
 0x48b   : > { %v1978_v29 = vsel %vm869_vm3, %v1659_v31, %v1801_v8  ;;  %v13153_v8 = vpop.f32.mrf.mxu2 }
 0x48c   : > { %2103 = vrot.lane.b32.xlu0 %v13116_v24, %s11213_s15  ;;  %v2011_v56 = vsel %vm1980_vm6, %v1978_v29, %v1913_v43 }
 0x48d   : > { %2197 = vrot.lane.b32.xlu2 %v2011_v56, %s11214_s27  ;;  %v2188_v28 = vpop.permute.xlu0 %2187 }
 0x48e   : > { %8547 = vmatmul.msk.f32.gmra.mxu1 %vm869_vm3, %v2188_v28  ;;  %v2289_v7 = vsel %vm1980_vm6, %v10878_v45, %v2188_v28 }
 0x48f   : > { %2598 = vmatmul.f32.gmra.mxu3 %v2289_v7  ;;  %v13164_v7 = vpop.f32.mrf.mxu1 }
 0x490   : > { %17133 = vst [vmem:[#allocation25_spill] sm:$0xff] %v13164_v7 }
 0x491   : > { %2488 = vmatmul.f32.gmra.mxu2 %v2258_v11 }
 0x492   : > { %v1803_v10 = vpop.permute.xlu1 %1802 }
 0x493   : > { %v1979_v43 = vsel %vm869_vm3, %v12907_v32, %v1803_v10  ;;  %v13159_v32 = vpop.f32.mrf.mxu3  ;;  %v13167_v11 = vpop.f32.mrf.mxu2 }
 0x494   : > { %2201 = vrot.lane.b32.xlu0 %v11215_v55, %s11214_s27  ;;  %v2012_v31 = vsel %vm1980_vm6, %v1979_v43, %v1915_v61  ;;  %17132 = vst [vmem:[#allocation24_spill] sm:$0xff] %v13159_v32 }
 0x495   : > { %2105 = vrot.lane.b32.xlu2 %v2011_v56, %s11213_s15  ;;  %2199 = vrot.lane.b32.xlu1 %v2012_v31, %s11214_s27  ;;  %v2190_v5 = vpop.permute.xlu0 %2189  ;;  %17134 = vst [vmem:[#allocation26_spill] sm:$0xff] %v13167_v11 }
 0x496   : > { %8548 = vmatmul.msk.f32.gmra.mxu1 %vm869_vm3, %v2190_v5  ;;  %v2290_v45 = vsel %vm1980_vm6, %v10879_v53, %v2190_v5 }
 0x497   : > { %2601 = vmatmul.f32.gmra.mxu3 %v2290_v45  ;;  %v13177_v61 = vpop.f32.mrf.mxu1  ;;  %v13184_v45 = vld [vmem:[#allocation8] ss:$0 sm:$0xff] }
 0x498   : > { %17136 = vst [vmem:[#allocation28_spill] sm:$0xff] %v13177_v61 }
 0x49a   : > { %v2096_v29 = vpop.permute.xlu1 %2095 }
 0x49b   : > { %v2259_v55 = vsel %vm1157_vm5, %v12943_v27, %v2096_v29  ;;  %v13172_v10 = vpop.f32.mrf.mxu3 }
 0x49c   : > { %2491 = vmatmul.f32.gmra.mxu2 %v2259_v55  ;;  %17135 = vst [vmem:[#allocation27_spill] sm:$0xff] %v13172_v10 }
 0x49d   : > { %2107 = vrot.lane.b32.xlu1 %v2012_v31, %s11213_s15  ;;  %v2192_v28 = vpop.permute.xlu2 %2191  ;;  %v13170_v53 = vpop.permute.xlu0 %2097 }
 0x49e   : > { %v2291_v56 = vsel %vm1980_vm6, %v2096_v29, %v2192_v28  ;;  %8549 = vmatmul.msk.f32.gmra.mxu1 %vm869_vm3, %v2192_v28  ;;  %v2260_v27 = vsel %vm1157_vm5, %v12963_v42, %v13170_v53  ;;  %v2465_v31 = vpop.f32.mrf.mxu2  ;;  %v2418_v42 = vadd.f32 %v13184_v45, %v12951_v62 }
 0x49f   : > { %2604 = vmatmul.f32.gmra.mxu3 %v2291_v56  ;;  %v2466_v55 = vadd.f32 %v13184_v45, %v2465_v31 }
 0x4a0   : > { %v2531_v10 = vadd.f32 %v12959_v17, %v2418_v42 }
 0x4a2   : > { %v2644_v32 = vadd.f32 %v12978_v60, %v2531_v10 }
 0x4a3   : > { %v2578_v29 = vpop.f32.mrf.mxu3 }
 0x4a4   : > { %2494 = vmatmul.f32.gmra.mxu2 %v2260_v27  ;;  %v2579_v28 = vadd.f32 %v2578_v29, %v2466_v55  ;;  %v2691_v27 = vpop.f32.mrf.mxu1 }
 0x4a5   : > { %v13179_v43 = vpop.permute.xlu2 %2099 }
 0x4a6   : > { %v2261_v5 = vsel %vm1157_vm5, %v12989_v59, %v13179_v43  ;;  %v2468_v56 = vpop.f32.mrf.mxu2  ;;  %v2692_v61 = vadd.f32 %v2691_v27, %v2579_v28 }
 0x4a7   : > { %v2469_v7 = vadd.f32 %v13184_v45, %v2468_v56  ;;  %v2427_v56 = vadd.f32 %v13184_v45, %v13020_v58  ;;  %v2433_v58 = vadd.f32 %v13184_v45, %v13039_v38 }
 0x4ab   : > { %v2581_v11 = vpop.f32.mrf.mxu3 }
 0x4ac   : > { %2497 = vmatmul.f32.gmra.mxu2 %v2261_v5  ;;  %v2582_v59 = vadd.f32 %v2581_v11, %v2469_v7  ;;  %v2421_v5 = vadd.f32 %v13184_v45, %v12974_v19  ;;  %v2694_v31 = vpop.f32.mrf.mxu1 }
 0x4ae   : > { %v2471_v29 = vpop.f32.mrf.mxu2  ;;  %v2695_v55 = vadd.f32 %v2694_v31, %v2582_v59  ;;  %v2534_v62 = vadd.f32 %v12985_v44, %v2421_v5  ;;  %v2430_v31 = vadd.f32 %v13184_v45, %v13028_v6 }
 0x4af   : > { %v2472_v28 = vadd.f32 %v13184_v45, %v2471_v29 }
 0x4b0   : > { %v2647_v7 = vadd.f32 %v12994_v13, %v2534_v62  ;;  %v2540_v13 = vadd.f32 %v13024_v2, %v2427_v56  ;;  %v2543_v29 = vadd.f32 %v13030_v50, %v2430_v31  ;;  %v2436_v2 = vadd.f32 %v13184_v45, %v13056_v40 }
 0x4b2   : > { %v2549_v6 = vadd.f32 %v13060_v20, %v2436_v2 }
 0x4b4   : > { %v2662_v50 = vadd.f32 %v13062_v57, %v2549_v6 }
 0x4b6   : > { %2771 = vxpose.xlu0.b32.start [1/16] (narrow) %v2692_v61, 8  ;;  %v2424_v61 = vadd.f32 %v13184_v45, %v12999_v49 }
 0x4b7   : > { %v2697_v11 = vpop.f32.mrf.mxu1 }
 0x4b8   : > { %v2537_v10 = vadd.f32 %v13010_v16, %v2424_v61  ;;  %v2653_v16 = vadd.f32 %v13026_v9, %v2540_v13  ;;  %v2439_v9 = vadd.f32 %v13184_v45, %v13064_v30 }
 0x4ba   : > { %v2650_v59 = vadd.f32 %v13018_v26, %v2537_v10  ;;  %v2546_v26 = vadd.f32 %v13046_v37, %v2433_v58  ;;  %v2552_v38 = vadd.f32 %v13066_v41, %v2439_v9 }
 0x4bb   : > { %2739 = vxpose.xlu2.b32.start [1/16] (narrow) %v2644_v32, 8 }
 0x4bc   : > { %v2659_v62 = vadd.f32 %v13054_v23, %v2546_v26  ;;  %v2442_v23 = vadd.f32 %v13184_v45, %v13070_v52  ;;  %v2665_v40 = vadd.f32 %v13068_v14, %v2552_v38 }
 0x4be   : > { %2772 = vxpose.xlu0.b32.cont [2/16] (narrow) %v2695_v55, 8  ;;  %v2584_v17 = vpop.f32.mrf.mxu3  ;;  %v2656_v55 = vadd.f32 %v13035_v25, %v2543_v29  ;;  %v2555_v30 = vadd.f32 %v13074_v33, %v2442_v23 }
 0x4bf   : > { %v2585_v42 = vadd.f32 %v2584_v17, %v2472_v28 }
 0x4c0   : > { %v2668_v14 = vadd.f32 %v13076_v22, %v2555_v30 }
 0x4c1   : > { %v2698_v19 = vadd.f32 %v2697_v11, %v2585_v42  ;;  %v2700_v5 = vpop.f32.mrf.mxu1 }
 0x4c2   : > { %v2474_v60 = vpop.f32.mrf.mxu2 }
 0x4c3   : > { %2740 = vxpose.xlu2.b32.cont [2/16] (narrow) %v2647_v7, 8  ;;  %v2475_v32 = vadd.f32 %v13184_v45, %v2474_v60 }
 0x4c6   : > { %2773 = vxpose.xlu0.b32.cont [3/16] (narrow) %v2698_v19, 8  ;;  %v2445_v19 = vadd.f32 %v13184_v45, %v13078_v51 }
 0x4c8   : > { %v2587_v44 = vpop.f32.mrf.mxu3  ;;  %v2558_v60 = vadd.f32 %v13082_v21, %v2445_v19  ;;  %v2448_v21 = vadd.f32 %v13184_v45, %v13086_v0  ;;  %v17139_v19 = vld [vmem:[#allocation26_spill] sm:$0xff] }
 0x4c9   : > { %v2588_v27 = vadd.f32 %v2587_v44, %v2475_v32 }
 0x4ca   : > { %v2477_v20 = vpop.f32.mrf.mxu2  ;;  %v2671_v51 = vadd.f32 %v13084_v47, %v2558_v60  ;;  %v2463_v60 = vadd.f32 %v13184_v45, %v17139_v19 }
 0x4cb   : > { %v2701_v49 = vadd.f32 %v2700_v5, %v2588_v27  ;;  %2741 = vxpose.xlu2.b32.cont [3/16] (narrow) %v2650_v59, 8  ;;  %v2478_v28 = vadd.f32 %v13184_v45, %v2477_v20 }
 0x4ce   : > { %2774 = vxpose.xlu0.b32.cont [4/16] (narrow) %v2701_v49, 8  ;;  %v2561_v49 = vadd.f32 %v13088_v15, %v2448_v21  ;;  %v2451_v15 = vadd.f32 %v13184_v45, %v13096_v39 }
 0x4d0   : > { %v2674_v0 = vadd.f32 %v13093_v63, %v2561_v49  ;;  %v2564_v26 = vadd.f32 %v13099_v36, %v2451_v15  ;;  %v2454_v36 = vadd.f32 %v13184_v45, %v13113_v4  ;;  %v2457_v4 = vadd.f32 %v13184_v45, %v13133_v46  ;;  %v17137_v46 = vld [vmem:[#allocation24_spill] sm:$0xff] }
 0x4d2   : > { %v2677_v9 = vadd.f32 %v13109_v1, %v2564_v26 }
 0x4d3   : > { %2742 = vxpose.xlu2.b32.cont [4/16] (narrow) %v2653_v16, 8 }
 0x4db   : > { %2743 = vxpose.xlu2.b32.cont [5/16] (narrow) %v2656_v55, 8 }
 0x4e3   : > { %2744 = vxpose.xlu2.b32.cont [6/16] (narrow) %v2659_v62, 8  ;;  %v2480_v33 = vpop.f32.mrf.mxu2 }
 0x4e7   : > { %v2198_v7 = vpop.permute.xlu2 %2197 }
 0x4eb   : > { %2745 = vxpose.xlu2.b32.cont [7/16] (narrow) %v2662_v50, 8  ;;  %v2483_v59 = vpop.f32.mrf.mxu2 }
 0x4ec   : > { %v2484_v13 = vadd.f32 %v13184_v45, %v2483_v59 }
 0x4ee   : > { %v2194_v25 = vpop.permute.xlu1 %2193 }
 0x4ef   : > { %8550 = vmatmul.msk.f32.gmra.mxu1 %vm869_vm3, %v2194_v25  ;;  %v2292_v37 = vsel %vm1980_vm6, %v13170_v53, %v2194_v25  ;;  %v2106_v5 = vpop.permute.xlu2 %2105 }
 0x4f0   : > { %2607 = vmatmul.f32.gmra.mxu3 %v2292_v37  ;;  %v2703_v57 = vpop.f32.mrf.mxu1  ;;  %v2264_v31 = vsel %vm1157_vm5, %v13102_v34, %v2106_v5  ;;  %v2567_v37 = vadd.f32 %v13124_v18, %v2454_v36  ;;  %v2570_v18 = vadd.f32 %v13140_v12, %v2457_v4 }
 0x4f3   : > { %2746 = vxpose.xlu2.b32.cont [8/16] (narrow) %v2665_v40, 8 }
 0x4f6   : > { %v2196_v41 = vpop.permute.xlu0 %2195  ;;  %v2102_v17 = vpop.permute.xlu1 %2101 }
 0x4f7   : > { %v2590_v42 = vpop.f32.mrf.mxu3  ;;  %8551 = vmatmul.msk.f32.gmra.mxu1 %vm869_vm3, %v2196_v41  ;;  %v2262_v53 = vsel %vm1157_vm5, %v13006_v3, %v2102_v17  ;;  %v2293_v52 = vsel %vm1980_vm6, %v13179_v43, %v2196_v41  ;;  %v2481_v3 = vadd.f32 %v13184_v45, %v2480_v33  ;;  %v2294_v44 = vsel %vm1980_vm6, %v2102_v17, %v2198_v7 }
 0x4f8   : > { %v2591_v61 = vadd.f32 %v2590_v42, %v2478_v28  ;;  %2500 = vmatmul.f32.gmra.mxu2 %v2262_v53  ;;  %2610 = vmatmul.f32.gmra.mxu3 %v2293_v52  ;;  %v2706_v32 = vpop.f32.mrf.mxu1  ;;  %v2683_v42 = vadd.f32 %v13148_v54, %v2570_v18  ;;  %v17140_v54 = vld [vmem:[#allocation27_spill] sm:$0xff] }
 0x4fa   : > { %v2704_v11 = vadd.f32 %v2703_v57, %v2591_v61 }
 0x4fb   : > { %2747 = vxpose.xlu2.b32.cont [9/16] (narrow) %v2668_v14, 8 }
 0x4fc   : > { %2775 = vxpose.xlu0.b32.cont [5/16] (narrow) %v2704_v11, 8  ;;  %v17138_v11 = vld [vmem:[#allocation25_spill] sm:$0xff] }
 0x4fe   : > { %v2104_v10 = vpop.permute.xlu0 %2103 }
 0x4ff   : > { %v2593_v43 = vpop.f32.mrf.mxu3  ;;  %8552 = vmatmul.msk.f32.gmra.mxu1 %vm869_vm3, %v2198_v7  ;;  %v2263_v22 = vsel %vm1157_vm5, %v13044_v48, %v2104_v10 }
 0x500   : > { %v2594_v56 = vadd.f32 %v2593_v43, %v2481_v3  ;;  %2503 = vmatmul.f32.gmra.mxu2 %v2263_v22  ;;  %2613 = vmatmul.f32.gmra.mxu3 %v2294_v44  ;;  %v2709_v29 = vpop.f32.mrf.mxu1  ;;  %v2576_v3 = vadd.f32 %v17140_v54, %v2463_v60 }
 0x502   : > { %v2707_v27 = vadd.f32 %v2706_v32, %v2594_v56 }
 0x503   : > { %2748 = vxpose.xlu2.b32.cont [10/16] (narrow) %v2671_v51, 8 }
 0x504   : > { %2776 = vxpose.xlu0.b32.cont [6/16] (narrow) %v2707_v27, 8 }
 0x506   : > { %v2202_v2 = vpop.permute.xlu0 %2201 }
 0x507   : > { %v2200_v48 = vpop.permute.xlu1 %2199  ;;  %v2296_v63 = vsel %vm1980_vm6, %v2106_v5, %v2202_v2 }
 0x508   : > { %v2596_v16 = vpop.f32.mrf.mxu3  ;;  %2506 = vmatmul.f32.gmra.mxu2 %v2264_v31  ;;  %8553 = vmatmul.msk.f32.gmra.mxu1 %vm869_vm3, %v2200_v48  ;;  %v2295_v47 = vsel %vm1980_vm6, %v2104_v10, %v2200_v48  ;;  %v17141_v10 = vld [vmem:[#allocation28_spill] sm:$0xff] }
 0x509   : > { %v2597_v58 = vadd.f32 %v2596_v16, %v2484_v13  ;;  %2616 = vmatmul.f32.gmra.mxu3 %v2295_v47  ;;  %v2689_v32 = vadd.f32 %v17141_v10, %v2576_v3  ;;  %v3076_v47 = vld [vmem:[#allocation9 + $0x20] sm:$0xff] }
 0x50a   : > { %3142 = vmatpush.msrb.mxu0 %v3076_v47  ;;  %10567 = vmatpush.msra.mxu3 %v3076_v47 }
 0x50b   : > { %v2710_v55 = vadd.f32 %v2709_v29, %v2597_v58  ;;  %2749 = vxpose.xlu2.b32.cont [11/16] (narrow) %v2674_v0, 8  ;;  %v2712_v50 = vpop.f32.mrf.mxu1 }
 0x50c   : > { %v2486_v34 = vpop.f32.mrf.mxu2 }
 0x50d   : > { %2777 = vxpose.xlu0.b32.cont [7/16] (narrow) %v2710_v55, 8  ;;  %v2487_v39 = vadd.f32 %v13184_v45, %v2486_v34 }
 0x50f   : > { %v2108_v62 = vpop.permute.xlu1 %2107 }
 0x510   : > { %8554 = vmatmul.msk.f32.gmra.mxu1 %vm869_vm3, %v2202_v2  ;;  %v2265_v6 = vsel %vm1157_vm5, %v13116_v24, %v2108_v62  ;;  %v2297_v1 = vsel %vm1980_vm6, %v2108_v62, %v2202_v2  ;;  %v2680_v24 = vadd.f32 %v13128_v35, %v2567_v37  ;;  %v2460_v35 = vadd.f32 %v13184_v45, %v13153_v8 }
 0x511   : > { %2509 = vmatmul.f32.gmra.mxu2 %v2265_v6  ;;  %2619 = vmatmul.f32.gmra.mxu3 %v2296_v63 }
 0x512   : > { %v2599_v38 = vpop.f32.mrf.mxu3  ;;  %v2573_v14 = vadd.f32 %v17137_v46, %v2460_v35 }
 0x513   : > { %2750 = vxpose.xlu2.b32.cont [12/16] (narrow) %v2677_v9, 8  ;;  %v2600_v25 = vadd.f32 %v2599_v38, %v2487_v39  ;;  %v2715_v30 = vpop.f32.mrf.mxu1 }
 0x514   : > { %v2489_v40 = vpop.f32.mrf.mxu2  ;;  %v2686_v12 = vadd.f32 %v17138_v11, %v2573_v14 }
 0x515   : > { %v2713_v23 = vadd.f32 %v2712_v50, %v2600_v25  ;;  %v2490_v20 = vadd.f32 %v13184_v45, %v2489_v40 }
 0x517   : > { %2778 = vxpose.xlu0.b32.cont [8/16] (narrow) %v2713_v23, 8 }
 0x518   : > { %8555 = vmatmul.msk.f32.gmra.mxu1 %vm869_vm3, %v2202_v2 }
 0x519   : > { %2622 = vmatmul.f32.gmra.mxu3 %v2297_v1 }
 0x51a   : > { %v2602_v57 = vpop.f32.mrf.mxu3 }
 0x51b   : > { %2751 = vxpose.xlu2.b32.cont [13/16] (narrow) %v2680_v24, 8  ;;  %v2603_v28 = vadd.f32 %v2602_v57, %v2490_v20  ;;  %v2718_v33 = vpop.f32.mrf.mxu1 }
 0x51d   : > { %v2716_v41 = vadd.f32 %v2715_v30, %v2603_v28  ;;  %v3077_v30 = vld [vmem:[#allocation9 + $0x28] sm:$0xff] }
 0x51e   : > { %3207 = vmatpush.msra.mxu2 %v3077_v30 }
 0x51f   : > { %v2492_v17 = vpop.f32.mrf.mxu2  ;;  %2779 = vxpose.xlu0.b32.cont [9/16] (narrow) %v2716_v41, 8  ;;  %v3072_v41 = vld [vmem:[#allocation9] sm:$0xff] }
 0x520   : > { %v2493_v53 = vadd.f32 %v13184_v45, %v2492_v17  ;;  %v3073_v17 = vld [vmem:[#allocation9 + $0x8] sm:$0xff]  ;;  %3143 = vmatpush.msrb.mxu0 %v3072_v41  ;;  %10568 = vmatpush.msra.mxu3 %v3072_v41 }
 0x521   : > { %3208 = vmatpush.msra.mxu2 %v3073_v17 }
 0x522   : > { %v2605_v52 = vpop.f32.mrf.mxu3  ;;  %10569 = vmatpush.msrb.mxu3 %v3077_v30 }
 0x523   : > { %2752 = vxpose.xlu2.b32.cont [14/16] (narrow) %v2683_v42, 8  ;;  %v2606_v61 = vadd.f32 %v2605_v52, %v2493_v53  ;;  %v11218_v53 = vmov 1983009808  }
 0x524   : > { %v2853_v35 = vunpack.c.l.s4 %v11218_v53  ;;  %10570 = vmatpush.msrb.mxu3 %v3073_v17 }
 0x525   : > { %v2719_v7 = vadd.f32 %v2718_v33, %v2606_v61 }
 0x526   : > { %v13315_v61 = vunpack.c.0.s8 %v2853_v35 }
 0x527   : > { %2780 = vxpose.xlu0.b32.cont [10/16] (narrow) %v2719_v7, 8  ;;  %v2495_v43 = vpop.f32.mrf.mxu2 }
 0x528   : > { %v2496_v44 = vadd.f32 %v13184_v45, %v2495_v43 }
 0x52b   : > { %2753 = vxpose.xlu2.b32.cont [15/16] (narrow) %v2686_v12, 8 }
 0x52f   : > { %v2498_v56 = vpop.f32.mrf.mxu2 }
 0x530   : > { %v2499_v5 = vadd.f32 %v13184_v45, %v2498_v56 }
 0x533   : > { %2754 = vxpose.xlu2.b32.end [16/16] (narrow) %v2689_v32, 8 }
 0x554   : > { %v13282_v8 = vpop.trf.xlu2 }
 0x555   : > { %2822 = vrot.lane.b32.xlu1 %v13282_v8, %s11210_s14  ;;  %v2850_v60 = vrot.slane %v13282_v8, 4 }
 0x55d   : > { %2810 = vrot.lane.b32.xlu1 %v13282_v8, %s11216_s12 }
 0x565   : > { %2816 = vrot.lane.b32.xlu1 %v13282_v8, %s11212_s2 }
 0x56c   : > { %v2721_v22 = vpop.f32.mrf.mxu1 }
 0x56d   : > { %2819 = vrot.lane.b32.xlu1 %v13282_v8, %s11211_s23 }
 0x573   : > { %v2608_v51 = vpop.f32.mrf.mxu3 }
 0x574   : > { %v2609_v27 = vadd.f32 %v2608_v51, %v2496_v44  ;;  %v2724_v59 = vpop.f32.mrf.mxu1  ;;  %v11219_v51 = vmov 1934713408  }
 0x575   : > { %2804 = vrot.lane.b32.xlu1 %v13282_v8, %s11217_s13 }
 0x576   : > { %v2722_v21 = vadd.f32 %v2721_v22, %v2609_v27  ;;  %v2901_v27 = vunpack.c.l.s4 %v11219_v51 }
 0x578   : > { %2781 = vxpose.xlu0.b32.cont [11/16] (narrow) %v2722_v21, 8 }
 0x57b   : > { %v2501_v49 = vpop.f32.mrf.mxu2  ;;  %v2611_v13 = vpop.f32.mrf.mxu3 }
 0x57c   : > { %v2612_v48 = vadd.f32 %v2611_v13, %v2499_v5  ;;  %v2727_v16 = vpop.f32.mrf.mxu1  ;;  %v2502_v0 = vadd.f32 %v13184_v45, %v2501_v49 }
 0x57d   : > { %2807 = vrot.lane.b32.xlu1 %v13282_v8, %s11213_s15 }
 0x57e   : > { %v2725_v31 = vadd.f32 %v2724_v59, %v2612_v48 }
 0x580   : > { %2782 = vxpose.xlu0.b32.cont [12/16] (narrow) %v2725_v31, 8 }
 0x583   : > { %v2614_v29 = vpop.f32.mrf.mxu3  ;;  %v2504_v58 = vpop.f32.mrf.mxu2 }
 0x584   : > { %v2615_v15 = vadd.f32 %v2614_v29, %v2502_v0  ;;  %v2505_v2 = vadd.f32 %v13184_v45, %v2504_v58 }
 0x585   : > { %2813 = vrot.lane.b32.xlu1 %v13282_v8, %s11214_s27  ;;  %v2730_v26 = vpop.f32.mrf.mxu1 }
 0x586   : > { %v2728_v55 = vadd.f32 %v2727_v16, %v2615_v15 }
 0x588   : > { %2783 = vxpose.xlu0.b32.cont [13/16] (narrow) %v2728_v55, 8 }
 0x58b   : > { %v2507_v6 = vpop.f32.mrf.mxu2 }
 0x58c   : > { %v2617_v34 = vpop.f32.mrf.mxu3  ;;  %v2508_v9 = vadd.f32 %v13184_v45, %v2507_v6 }
 0x58d   : > { %v2618_v62 = vadd.f32 %v2617_v34, %v2505_v2  ;;  %v2733_v50 = vpop.f32.mrf.mxu1 }
 0x58f   : > { %v2731_v63 = vadd.f32 %v2730_v26, %v2618_v62 }
 0x591   : > { %2784 = vxpose.xlu0.b32.cont [14/16] (narrow) %v2731_v63, 8 }
 0x594   : > { %v2620_v39 = vpop.f32.mrf.mxu3  ;;  %v2510_v25 = vpop.f32.mrf.mxu2 }
 0x595   : > { %v2621_v36 = vadd.f32 %v2620_v39, %v2508_v9  ;;  %v2511_v37 = vadd.f32 %v13184_v45, %v2510_v25  ;;  %v2736_v1 = vpop.f32.mrf.mxu1 }
 0x597   : > { %v2734_v38 = vadd.f32 %v2733_v50, %v2621_v36 }
 0x599   : > { %2785 = vxpose.xlu0.b32.cont [15/16] (narrow) %v2734_v38, 8 }
 0x59c   : > { %v2623_v23 = vpop.f32.mrf.mxu3 }
 0x59d   : > { %v2624_v40 = vadd.f32 %v2623_v23, %v2511_v37 }
 0x59f   : > { %v2737_v24 = vadd.f32 %v2736_v1, %v2624_v40 }
 0x5a1   : > { %2786 = vxpose.xlu0.b32.end [16/16] (narrow) %v2737_v24, 8 }
 0x5c7   : > { %v2823_v20 = vpop.permute.xlu1 %2822 }
 0x5c8   : > { %v2884_v12 = vrot.slane %v2823_v20, 4 }
 0x5cd   : > { %v13304_v4 = vpop.trf.xlu0 }
 0x5ce   : > { %2844 = vrot.lane.b32.xlu1 %v13304_v4, %s11210_s14 }
 0x5cf   : > { %v2811_v57 = vpop.permute.xlu1 %2810 }
 0x5d0   : > { %v2860_v52 = vrot.slane %v2811_v57, 4 }
 0x5d6   : > { %2832 = vrot.lane.b32.xlu1 %v13304_v4, %s11216_s12 }
 0x5d7   : > { %v2817_v28 = vpop.permute.xlu1 %2816 }
 0x5d8   : > { %v2886_v18 = vrot.slane %v2817_v28, 4  ;;  %v2885_v10 = vsel %vm2848_vm8, %v2884_v12, %v2817_v28 }
 0x5d9   : > { %v2891_v21 = vperm.slane %v2885_v10, %v13315_v61 }
 0x5da   : > { %v2887_v45 = vsel %vm2848_vm8, %v2823_v20, %v2886_v18 }
 0x5db   : > { %v2895_v48 = vperm.slane %v2887_v45, %v13315_v61  ;;  %v2920_v0 = vrot.slane %v2891_v21, 4 }
 0x5dd   : > { %v2932_v2 = vrot.slane %v2895_v48, 4 }
 0x5de   : > { %2838 = vrot.lane.b32.xlu1 %v13304_v4, %s11212_s2 }
 0x5df   : > { %v2820_v42 = vpop.permute.xlu1 %2819 }
 0x5e0   : > { %v2872_v13 = vrot.slane %v2820_v42, 4 }
 0x5e6   : > { %2841 = vrot.lane.b32.xlu1 %v13304_v4, %s11211_s23 }
 0x5e7   : > { %v2805_v46 = vpop.permute.xlu1 %2804 }
 0x5e8   : > { %v2862_v14 = vrot.slane %v2805_v46, 4  ;;  %v2861_v33 = vsel %vm2848_vm8, %v2860_v52, %v2805_v46 }
 0x5e9   : > { %v2867_v19 = vperm.slane %v2861_v33, %v13315_v61 }
 0x5ea   : > { %v2863_v7 = vsel %vm2848_vm8, %v2811_v57, %v2862_v14 }
 0x5eb   : > { %v2871_v11 = vperm.slane %v2863_v7, %v13315_v61  ;;  %v2896_v22 = vrot.slane %v2867_v19, 4 }
 0x5ed   : > { %v2908_v54 = vrot.slane %v2871_v11, 4 }
 0x5ee   : > { %2826 = vrot.lane.b32.xlu1 %v13304_v4, %s11217_s13 }
 0x5ef   : > { %v2808_v3 = vpop.permute.xlu1 %2807 }
 0x5f0   : > { %v2847_v32 = vrot.slane %v2808_v3, 4  ;;  %v2851_v43 = vsel %vm2848_vm8, %v2808_v3, %v2850_v60  ;;  %v3079_v3 = vld [vmem:[#allocation9 + $0x38] sm:$0xff] }
 0x5f1   : > { %v2859_v44 = vperm.slane %v2851_v43, %v13315_v61  ;;  %3337 = vmatpush.msra.mxu0 %v3079_v3 }
 0x5f2   : > { %v2849_v56 = vsel %vm2848_vm8, %v2847_v32, %v13282_v8  ;;  %v13337_v8 = vunpack.c.0.s8 %v2901_v27  ;;  %v2962_v32 = vrot.slane %v13304_v4, 4 }
 0x5f3   : > { %v2855_v59 = vperm.slane %v2849_v56, %v13315_v61  ;;  %v2909_v5 = vsel %vm2848_vm8, %v2908_v54, %v2859_v44  ;;  %v2910_v49 = vrot.slane %v2859_v44, 4 }
 0x5f4   : > { %v2915_v39 = vperm.slane %v2909_v5, %v13337_v8 }
 0x5f5   : > { %v2898_v31 = vrot.slane %v2855_v59, 4  ;;  %v2897_v16 = vsel %vm2848_vm8, %v2896_v22, %v2855_v59  ;;  %v2911_v47 = vsel %vm2848_vm8, %v2871_v11, %v2910_v49 }
 0x5f6   : > { %2829 = vrot.lane.b32.xlu1 %v13304_v4, %s11213_s15  ;;  %v2903_v26 = vperm.slane %v2897_v16, %v13337_v8  ;;  %v2919_v25 = vperm.slane %v2911_v47, %v13337_v8  ;;  %v2954_v28 = vrot.slane %v2915_v39, 4 }
 0x5f7   : > { %v2814_v29 = vpop.permute.xlu1 %2813  ;;  %v2899_v58 = vsel %vm2848_vm8, %v2867_v19, %v2898_v31 }
 0x5f8   : > { %v2873_v15 = vsel %vm2848_vm8, %v2872_v13, %v2814_v29  ;;  %v2874_v55 = vrot.slane %v2814_v29, 4  ;;  %v2907_v62 = vperm.slane %v2899_v58, %v13337_v8  ;;  %v2946_v38 = vrot.slane %v2903_v26, 4 }
 0x5f9   : > { %v2879_v34 = vperm.slane %v2873_v15, %v13315_v61  ;;  %v2958_v52 = vrot.slane %v2919_v25, 4 }
 0x5fa   : > { %v2875_v6 = vsel %vm2848_vm8, %v2820_v42, %v2874_v55  ;;  %v2950_v40 = vrot.slane %v2907_v62, 4 }
 0x5fb   : > { %v2883_v63 = vperm.slane %v2875_v6, %v13315_v61  ;;  %v2921_v9 = vsel %vm2848_vm8, %v2920_v0, %v2879_v34  ;;  %v2922_v50 = vrot.slane %v2879_v34, 4 }
 0x5fc   : > { %v2927_v36 = vperm.slane %v2921_v9, %v13337_v8 }
 0x5fd   : > { %v2923_v37 = vsel %vm2848_vm8, %v2891_v21, %v2922_v50  ;;  %v2934_v23 = vrot.slane %v2883_v63, 4  ;;  %v2933_v1 = vsel %vm2848_vm8, %v2932_v2, %v2883_v63 }
 0x5fe   : > { %2835 = vrot.lane.b32.xlu1 %v13304_v4, %s11214_s27  ;;  %v2944_v24 = vrot.slane %v2927_v36, 4  ;;  %v13355_v20 = vsel %vm2848_vm8, %v2927_v36, %v2946_v38  ;;  %v2931_v30 = vperm.slane %v2923_v37, %v13337_v8  ;;  %v2939_v57 = vperm.slane %v2933_v1, %v13337_v8 }
 0x5ff   : > { %v2935_v18 = vsel %vm2848_vm8, %v2895_v48, %v2934_v23 }
 0x600   : > { %v13361_v45 = vsel %vm2848_vm8, %v2944_v24, %v2903_v26  ;;  %v2948_v41 = vrot.slane %v2931_v30, 4  ;;  %v13364_v17 = vsel %vm2848_vm8, %v2931_v30, %v2950_v40  ;;  %v2952_v42 = vrot.slane %v2939_v57, 4 }
 0x601   : > { %8556 = vmatmul.msk.f32.vlgmr.msrb.gmra.mxu0 %vm836_vm2, %v13361_v45  ;;  %8572 = vmatmul.msk.f32.vlgmr.msra.gmra.mxu2 %vm836_vm2, %v13361_v45  ;;  %v13371_v53 = vsel %vm2848_vm8, %v2939_v57, %v2954_v28  ;;  %v2943_v35 = vperm.slane %v2935_v18, %v13337_v8  ;;  %v3078_v28 = vld [vmem:[#allocation9 + $0x30] sm:$0xff] }
 0x602   : > { %v13375_v46 = vsel %vm2848_vm8, %v2948_v41, %v2907_v62  ;;  %v13378_v14 = vsel %vm2848_vm8, %v2952_v42, %v2915_v39  ;;  %v3074_v41 = vld [vmem:[#allocation9 + $0x10] sm:$0xff] }
 0x603   : > { %v2956_v33 = vrot.slane %v2943_v35, 4  ;;  %v13381_v7 = vsel %vm2848_vm8, %v2943_v35, %v2958_v52 }
 0x605   : > { %v13384_v11 = vsel %vm2848_vm8, %v2956_v33, %v2919_v25 }
 0x640   : > { %v2845_v12 = vpop.permute.xlu1 %2844 }
 0x641   : > { %v2996_v43 = vrot.slane %v2845_v12, 4 }
 0x648   : > { %v2833_v19 = vpop.permute.xlu1 %2832 }
 0x649   : > { %v2972_v44 = vrot.slane %v2833_v19, 4 }
 0x650   : > { %v2839_v60 = vpop.permute.xlu1 %2838 }
 0x651   : > { %v2997_v59 = vsel %vm2848_vm8, %v2996_v43, %v2839_v60  ;;  %v2998_v47 = vrot.slane %v2839_v60, 4  ;;  %v3075_v60 = vld [vmem:[#allocation9 + $0x18] sm:$0xff] }
 0x652   : > { %v3003_v48 = vperm.slane %v2997_v59, %v13315_v61  ;;  %3338 = vmatpush.msra.mxu0 %v3075_v60 }
 0x653   : > { %v2999_v6 = vsel %vm2848_vm8, %v2845_v12, %v2998_v47 }
 0x654   : > { %v3032_v2 = vrot.slane %v3003_v48, 4  ;;  %v3007_v25 = vperm.slane %v2999_v6, %v13315_v61 }
 0x658   : > { %v2842_v54 = vpop.permute.xlu1 %2841 }
 0x659   : > { %v2984_v0 = vrot.slane %v2842_v54, 4 }
 0x660   : > { %v2827_v10 = vpop.permute.xlu1 %2826 }
 0x661   : > { %v2974_v56 = vrot.slane %v2827_v10, 4  ;;  %v2973_v5 = vsel %vm2848_vm8, %v2972_v44, %v2827_v10 }
 0x662   : > { %v2979_v31 = vperm.slane %v2973_v5, %v13315_v61 }
 0x663   : > { %v2975_v49 = vsel %vm2848_vm8, %v2833_v19, %v2974_v56 }
 0x664   : > { %v13400_v29 = vperm.slane %v2975_v49, %v13315_v61  ;;  %v3008_v34 = vrot.slane %v2979_v31, 4 }
 0x666   : > { %v3020_v49 = vrot.slane %v13400_v29, 4 }
 0x668   : > { %v2830_v22 = vpop.permute.xlu1 %2829 }
 0x669   : > { %v2960_v51 = vrot.slane %v2830_v22, 4  ;;  %v2963_v27 = vsel %vm2848_vm8, %v2830_v22, %v2962_v32 }
 0x66a   : > { %v13389_v21 = vperm.slane %v2963_v27, %v13315_v61  ;;  %v3044_v27 = vrot.slane %v3007_v25, 4 }
 0x66b   : > { %v2961_v13 = vsel %vm2848_vm8, %v2960_v51, %v13304_v4 }
 0x66c   : > { %v3022_v16 = vrot.slane %v13389_v21, 4  ;;  %v2967_v58 = vperm.slane %v2961_v13, %v13315_v61  ;;  %v3021_v13 = vsel %vm2848_vm8, %v3020_v49, %v13389_v21 }
 0x66e   : > { %v3023_v4 = vsel %vm2848_vm8, %v13400_v29, %v3022_v16  ;;  %v3009_v39 = vsel %vm2848_vm8, %v3008_v34, %v2967_v58  ;;  %v3010_v3 = vrot.slane %v2967_v58, 4 }
 0x66f   : > { %v3031_v36 = vperm.slane %v3023_v4, %v13337_v8  ;;  %v3015_v23 = vperm.slane %v3009_v39, %v13337_v8 }
 0x670   : > { %v2836_v15 = vpop.permute.xlu1 %2835  ;;  %v3011_v32 = vsel %vm2848_vm8, %v2979_v31, %v3010_v3  ;;  %v3027_v31 = vperm.slane %v3021_v13, %v13337_v8 }
 0x671   : > { %v2985_v55 = vsel %vm2848_vm8, %v2984_v0, %v2836_v15  ;;  %v2986_v26 = vrot.slane %v2836_v15, 4  ;;  %v3070_v24 = vrot.slane %v3031_v36, 4  ;;  %v3058_v33 = vrot.slane %v3015_v23, 4 }
 0x672   : > { %v2991_v62 = vperm.slane %v2985_v55, %v13315_v61  ;;  %v3019_v22 = vperm.slane %v3011_v32, %v13337_v8 }
 0x673   : > { %v2987_v63 = vsel %vm2848_vm8, %v2842_v54, %v2986_v26 }
 0x674   : > { %v2995_v9 = vperm.slane %v2987_v63, %v13315_v61  ;;  %v3033_v50 = vsel %vm2848_vm8, %v3032_v2, %v2991_v62  ;;  %v3034_v19 = vrot.slane %v2991_v62, 4  ;;  %v3062_v56 = vrot.slane %v3019_v22, 4 }
 0x675   : > { %v3039_v38 = vperm.slane %v3033_v50, %v13337_v8 }
 0x676   : > { %v3046_v37 = vrot.slane %v2995_v9, 4  ;;  %v3035_v54 = vsel %vm2848_vm8, %v3003_v48, %v3034_v19  ;;  %v3045_v59 = vsel %vm2848_vm8, %v3044_v27, %v2995_v9 }
 0x677   : > { %v3056_v40 = vrot.slane %v3039_v38, 4  ;;  %v13440_v12 = vsel %vm2848_vm8, %v3039_v38, %v3058_v33  ;;  %v3043_v10 = vperm.slane %v3035_v54, %v13337_v8  ;;  %v3051_v5 = vperm.slane %v3045_v59, %v13337_v8 }
 0x678   : > { %v3047_v1 = vsel %vm2848_vm8, %v3007_v25, %v3046_v37 }
 0x679   : > { %v13418_v30 = vsel %vm2848_vm8, %v3056_v40, %v3015_v23  ;;  %v3055_v57 = vperm.slane %v3047_v1, %v13337_v8  ;;  %v3060_v43 = vrot.slane %v3043_v10, 4  ;;  %v13474_v51 = vsel %vm2848_vm8, %v3043_v10, %v3062_v56 }
 0x67a   : > { %8557 = vmatmul.msk.f32.gmra.mxu0 %vm836_vm2, %v13418_v30  ;;  %8573 = vmatmul.msk.f32.gmra.mxu2 %vm836_vm2, %v13418_v30  ;;  %v3064_v48 = vrot.slane %v3051_v5, 4  ;;  %v3066_v8 = vrot.slane %v3027_v31, 4 }
 0x67b   : > { %v13426_v61 = vsel %vm2848_vm8, %v3055_v57, %v3070_v24  ;;  %v3068_v18 = vrot.slane %v3055_v57, 4  ;;  %v13459_v44 = vsel %vm2848_vm8, %v3060_v43, %v3019_v22 }
 0x67c   : > { %8571 = vmatmul.msk.f32.vlgmr.msra.gmra.mxu3 %vm836_vm2, %v13426_v61  ;;  %v13495_v16 = vsel %vm2848_vm8, %v3064_v48, %v3027_v31  ;;  %v13510_v21 = vsel %vm2848_vm8, %v3051_v5, %v3066_v8 }
 0x67d   : > { %3272 = vmatpush.msra.mxu3 %v3078_v28  ;;  %v13431_v42 = vsel %vm2848_vm8, %v3068_v18, %v3031_v36 }
 0x67e   : > { %v3145_v35 = vpop.f32.mrf.mxu0 }
 0x67f   : > { %3388 = vst [vmem:[#allocation2 + $0xb0] sm:$0xff] %v3145_v35  ;;  %3273 = vmatpush.msra.mxu3 %v3074_v41 }
 0x682   : > { %8558 = vmatmul.msk.f32.gmra.mxu0 %vm836_vm2, %v13355_v20  ;;  %8574 = vmatmul.msk.f32.gmra.mxu2 %vm836_vm2, %v13355_v20 }
 0x684   : > { %v3210_v52 = vpop.f32.mrf.mxu2  ;;  %8587 = vmatmul.msk.f32.vlgmr.msrb.gmra.mxu3 %vm836_vm2, %v13426_v61 }
 0x685   : > { %3389 = vst [vmem:[#allocation2 + $0x1b0] sm:$0xff] %v3210_v52 }
 0x68a   : > { %8559 = vmatmul.msk.f32.gmra.mxu0 %vm836_vm2, %v13440_v12  ;;  %8575 = vmatmul.msk.f32.gmra.mxu2 %vm836_vm2, %v13440_v12 }
 0x68c   : > { %8588 = vmatmul.msk.f32.vlgmr.msra.gmra.mxu3 %vm836_vm2, %v13361_v45 }
 0x692   : > { %8560 = vmatmul.msk.f32.gmra.mxu0 %vm836_vm2, %v13375_v46  ;;  %8576 = vmatmul.msk.f32.gmra.mxu2 %vm836_vm2, %v13375_v46 }
 0x694   : > { %8589 = vmatmul.msk.f32.gmra.mxu3 %vm836_vm2, %v13418_v30 }
 0x69a   : > { %8561 = vmatmul.msk.f32.gmra.mxu0 %vm836_vm2, %v13459_v44  ;;  %8577 = vmatmul.msk.f32.gmra.mxu2 %vm836_vm2, %v13459_v44 }
 0x69c   : > { %8590 = vmatmul.msk.f32.gmra.mxu3 %vm836_vm2, %v13355_v20 }
 0x6a2   : > { %8562 = vmatmul.msk.f32.gmra.mxu0 %vm836_vm2, %v13364_v17  ;;  %8578 = vmatmul.msk.f32.gmra.mxu2 %vm836_vm2, %v13364_v17 }
 0x6a4   : > { %8591 = vmatmul.msk.f32.gmra.mxu3 %vm836_vm2, %v13440_v12 }
 0x6aa   : > { %8563 = vmatmul.msk.f32.gmra.mxu0 %vm836_vm2, %v13474_v51  ;;  %8579 = vmatmul.msk.f32.gmra.mxu2 %vm836_vm2, %v13474_v51 }
 0x6ac   : > { %8592 = vmatmul.msk.f32.gmra.mxu3 %vm836_vm2, %v13375_v46 }
 0x6b2   : > { %8564 = vmatmul.msk.f32.gmra.mxu0 %vm836_vm2, %v13378_v14  ;;  %8580 = vmatmul.msk.f32.gmra.mxu2 %vm836_vm2, %v13378_v14 }
 0x6b4   : > { %8593 = vmatmul.msk.f32.gmra.mxu3 %vm836_vm2, %v13459_v44 }
 0x6ba   : > { %8565 = vmatmul.msk.f32.gmra.mxu0 %vm836_vm2, %v13495_v16  ;;  %8581 = vmatmul.msk.f32.gmra.mxu2 %vm836_vm2, %v13495_v16 }
 0x6bc   : > { %8594 = vmatmul.msk.f32.gmra.mxu3 %vm836_vm2, %v13364_v17 }
 0x6c2   : > { %8566 = vmatmul.msk.f32.gmra.mxu0 %vm836_vm2, %v13371_v53  ;;  %8582 = vmatmul.msk.f32.gmra.mxu2 %vm836_vm2, %v13371_v53 }
 0x6c4   : > { %8595 = vmatmul.msk.f32.gmra.mxu3 %vm836_vm2, %v13474_v51 }
 0x6ca   : > { %8567 = vmatmul.msk.f32.gmra.mxu0 %vm836_vm2, %v13510_v21  ;;  %8583 = vmatmul.msk.f32.gmra.mxu2 %vm836_vm2, %v13510_v21 }
 0x6cc   : > { %8596 = vmatmul.msk.f32.gmra.mxu3 %vm836_vm2, %v13378_v14 }
 0x6d2   : > { %8568 = vmatmul.msk.f32.gmra.mxu0 %vm836_vm2, %v13384_v11  ;;  %8584 = vmatmul.msk.f32.gmra.mxu2 %vm836_vm2, %v13384_v11 }
 0x6d4   : > { %8597 = vmatmul.msk.f32.gmra.mxu3 %vm836_vm2, %v13495_v16 }
 0x6da   : > { %8569 = vmatmul.msk.f32.gmra.mxu0 %vm836_vm2, %v13431_v42  ;;  %8585 = vmatmul.msk.f32.gmra.mxu2 %vm836_vm2, %v13431_v42 }
 0x6dc   : > { %8598 = vmatmul.msk.f32.gmra.mxu3 %vm836_vm2, %v13371_v53 }
 0x6e2   : > { %8570 = vmatmul.msk.f32.gmra.mxu0 %vm836_vm2, %v13381_v7  ;;  %8586 = vmatmul.msk.f32.gmra.mxu2 %vm836_vm2, %v13381_v7 }
 0x6e4   : > { %8599 = vmatmul.msk.f32.gmra.mxu3 %vm836_vm2, %v13510_v21 }
 0x6ea   : > { %8604 = vmatmul.msk.f32.vlgmr.msra.gmra.mxu0 %vm836_vm2, %v13361_v45 }
 0x6ec   : > { %8600 = vmatmul.msk.f32.gmra.mxu3 %vm836_vm2, %v13384_v11 }
 0x6f2   : > { %8605 = vmatmul.msk.f32.gmra.mxu0 %vm836_vm2, %v13418_v30 }
 0x6f4   : > { %8601 = vmatmul.msk.f32.gmra.mxu3 %vm836_vm2, %v13431_v42 }
 0x6f7   : > { %v3148_v47 = vpop.f32.mrf.mxu0 }
 0x6f8   : > { %3392 = vst [vmem:[#allocation2 + $0x50] sm:$0xff] %v3148_v47 }
 0x6fa   : > { %8606 = vmatmul.msk.f32.gmra.mxu0 %vm836_vm2, %v13355_v20 }
 0x6fc   : > { %8602 = vmatmul.msk.f32.gmra.mxu3 %vm836_vm2, %v13381_v7 }
 0x6fd   : > { %v3213_v0 = vpop.f32.mrf.mxu2 }
 0x6fe   : > { %3393 = vst [vmem:[#allocation2 + $0x168] sm:$0xff] %v3213_v0 }
 0x6ff   : > { %v3151_v45 = vpop.f32.mrf.mxu0  ;;  %v3190_v29 = vpop.f32.mrf.mxu3 }
 0x700   : > { %3396 = vst [vmem:[#allocation2 + $0x180] sm:$0xff] %v3151_v45 }
 0x701   : > { %3448 = vst [vmem:[#allocation2 + $0x158] sm:$0xff] %v3190_v29 }
 0x702   : > { %8607 = vmatmul.msk.f32.gmra.mxu0 %vm836_vm2, %v13440_v12 }
 0x704   : > { %8603 = vmatmul.msk.f32.gmra.mxu3 %vm836_vm2, %v13426_v61 }
 0x705   : > { %v3216_v58 = vpop.f32.mrf.mxu2 }
 0x706   : > { %3397 = vst [vmem:[#allocation2 + $0x110] sm:$0xff] %v3216_v58 }
 0x707   : > { %v3154_v15 = vpop.f32.mrf.mxu0  ;;  %v3255_v55 = vpop.f32.mrf.mxu3 }
 0x708   : > { %3400 = vst [vmem:[#allocation2 + $0x120] sm:$0xff] %v3154_v15 }
 0x709   : > { %3449 = vst [vmem:[#allocation2 + $0x10] sm:$0xff] %v3255_v55 }
 0x70a   : > { %8608 = vmatmul.msk.f32.gmra.mxu0 %vm836_vm2, %v13375_v46 }
 0x70d   : > { %v3219_v20 = vpop.f32.mrf.mxu2 }
 0x70e   : > { %3401 = vst [vmem:[#allocation2 + $0x150] sm:$0xff] %v3219_v20 }
 0x70f   : > { %v3157_v26 = vpop.f32.mrf.mxu0  ;;  %v3275_v2 = vpop.f32.mrf.mxu3 }
 0x710   : > { %3404 = vst [vmem:[#allocation2 + $0xe0] sm:$0xff] %v3157_v26 }
 0x711   : > { %3390 = vst [vmem:[#allocation2 + $0xd8] sm:$0xff] %v3275_v2 }
 0x712   : > { %8609 = vmatmul.msk.f32.gmra.mxu0 %vm836_vm2, %v13459_v44 }
 0x715   : > { %v3222_v34 = vpop.f32.mrf.mxu2 }
 0x716   : > { %3405 = vst [vmem:[#allocation2 + $0x188] sm:$0xff] %v3222_v34 }
 0x717   : > { %v3160_v4 = vpop.f32.mrf.mxu0  ;;  %v3278_v62 = vpop.f32.mrf.mxu3 }
 0x718   : > { %3408 = vst [vmem:[#allocation2 + $0x80] sm:$0xff] %v3160_v4 }
 0x719   : > { %3394 = vst [vmem:[#allocation2 + $0x130] sm:$0xff] %v3278_v62 }
 0x71a   : > { %8610 = vmatmul.msk.f32.gmra.mxu0 %vm836_vm2, %v13364_v17 }
 0x71d   : > { %v3225_v6 = vpop.f32.mrf.mxu2 }
 0x71e   : > { %3409 = vst [vmem:[#allocation2 + $0x1a8] sm:$0xff] %v3225_v6 }
 0x71f   : > { %v3163_v46 = vpop.f32.mrf.mxu0  ;;  %v3281_v63 = vpop.f32.mrf.mxu3 }
 0x720   : > { %3412 = vst [vmem:[#allocation2 + $0x1e8] sm:$0xff] %v3163_v46 }
 0x721   : > { %3398 = vst [vmem:[#allocation2 + $0x118] sm:$0xff] %v3281_v63 }
 0x722   : > { %8611 = vmatmul.msk.f32.gmra.mxu0 %vm836_vm2, %v13474_v51 }
 0x725   : > { %v3228_v9 = vpop.f32.mrf.mxu2 }
 0x726   : > { %3413 = vst [vmem:[#allocation2 + $0xf8] sm:$0xff] %v3228_v9 }
 0x727   : > { %v3166_v50 = vpop.f32.mrf.mxu0  ;;  %v3284_v39 = vpop.f32.mrf.mxu3 }
 0x728   : > { %3416 = vst [vmem:[#allocation2 + $0x1e0] sm:$0xff] %v3166_v50 }
 0x729   : > { %3402 = vst [vmem:[#allocation2 + $0x108] sm:$0xff] %v3284_v39 }
 0x72a   : > { %8612 = vmatmul.msk.f32.gmra.mxu0 %vm836_vm2, %v13378_v14 }
 0x72d   : > { %v3231_v36 = vpop.f32.mrf.mxu2 }
 0x72e   : > { %3417 = vst [vmem:[#allocation2] sm:$0xff] %v3231_v36 }
 0x72f   : > { %v3169_v17 = vpop.f32.mrf.mxu0  ;;  %v3287_v38 = vpop.f32.mrf.mxu3 }
 0x730   : > { %3420 = vst [vmem:[#allocation2 + $0x148] sm:$0xff] %v3169_v17 }
 0x731   : > { %3406 = vst [vmem:[#allocation2 + $0x138] sm:$0xff] %v3287_v38 }
 0x732   : > { %8613 = vmatmul.msk.f32.gmra.mxu0 %vm836_vm2, %v13495_v16 }
 0x735   : > { %v3234_v25 = vpop.f32.mrf.mxu2 }
 0x736   : > { %3421 = vst [vmem:[#allocation2 + $0x1d0] sm:$0xff] %v3234_v25 }
 0x737   : > { %v3172_v37 = vpop.f32.mrf.mxu0  ;;  %v3290_v23 = vpop.f32.mrf.mxu3 }
 0x738   : > { %3424 = vst [vmem:[#allocation2 + $0x40] sm:$0xff] %v3172_v37 }
 0x739   : > { %3410 = vst [vmem:[#allocation2 + $0x1b8] sm:$0xff] %v3290_v23 }
 0x73a   : > { %8614 = vmatmul.msk.f32.gmra.mxu0 %vm836_vm2, %v13371_v53 }
 0x73d   : > { %v3237_v40 = vpop.f32.mrf.mxu2 }
 0x73e   : > { %3425 = vst [vmem:[#allocation2 + $0x1f8] sm:$0xff] %v3237_v40 }
 0x73f   : > { %v3175_v14 = vpop.f32.mrf.mxu0  ;;  %v3293_v1 = vpop.f32.mrf.mxu3 }
 0x740   : > { %3428 = vst [vmem:[#allocation2 + $0x1a0] sm:$0xff] %v3175_v14 }
 0x741   : > { %3414 = vst [vmem:[#allocation2 + $0x160] sm:$0xff] %v3293_v1 }
 0x742   : > { %8615 = vmatmul.msk.f32.gmra.mxu0 %vm836_vm2, %v13510_v21 }
 0x745   : > { %v3240_v24 = vpop.f32.mrf.mxu2 }
 0x746   : > { %3429 = vst [vmem:[#allocation2 + $0x1f0] sm:$0xff] %v3240_v24 }
 0x747   : > { %v3178_v30 = vpop.f32.mrf.mxu0  ;;  %v3296_v57 = vpop.f32.mrf.mxu3 }
 0x748   : > { %3432 = vst [vmem:[#allocation2 + $0x70] sm:$0xff] %v3178_v30 }
 0x749   : > { %3418 = vst [vmem:[#allocation2 + $0xf0] sm:$0xff] %v3296_v57 }
 0x74a   : > { %8616 = vmatmul.msk.f32.gmra.mxu0 %vm836_vm2, %v13384_v11 }
 0x74d   : > { %v3243_v28 = vpop.f32.mrf.mxu2 }
 0x74e   : > { %3433 = vst [vmem:[#allocation2 + $0x90] sm:$0xff] %v3243_v28 }
 0x74f   : > { %v3181_v53 = vpop.f32.mrf.mxu0  ;;  %v3299_v18 = vpop.f32.mrf.mxu3 }
 0x750   : > { %3436 = vst [vmem:[#allocation2 + $0xb8] sm:$0xff] %v3181_v53 }
 0x751   : > { %3422 = vst [vmem:[#allocation2 + $0x100] sm:$0xff] %v3299_v18 }
 0x752   : > { %8617 = vmatmul.msk.f32.gmra.mxu0 %vm836_vm2, %v13431_v42 }
 0x755   : > { %v3246_v41 = vpop.f32.mrf.mxu2 }
 0x756   : > { %3437 = vst [vmem:[#allocation2 + $0x88] sm:$0xff] %v3246_v41 }
 0x757   : > { %v3184_v35 = vpop.f32.mrf.mxu0  ;;  %v3302_v52 = vpop.f32.mrf.mxu3 }
 0x758   : > { %3440 = vst [vmem:[#allocation2 + $0x170] sm:$0xff] %v3184_v35 }
 0x759   : > { %3426 = vst [vmem:[#allocation2 + $0x20] sm:$0xff] %v3302_v52 }
 0x75a   : > { %8618 = vmatmul.msk.f32.gmra.mxu0 %vm836_vm2, %v13381_v7 }
 0x75d   : > { %v3249_v33 = vpop.f32.mrf.mxu2 }
 0x75e   : > { %3441 = vst [vmem:[#allocation2 + $0x178] sm:$0xff] %v3249_v33 }
 0x75f   : > { %v3187_v11 = vpop.f32.mrf.mxu0  ;;  %v3305_v12 = vpop.f32.mrf.mxu3 }
 0x760   : > { %3444 = vst [vmem:[#allocation2 + $0x198] sm:$0xff] %v3187_v11 }
 0x761   : > { %3430 = vst [vmem:[#allocation2 + $0xe8] sm:$0xff] %v3305_v12 }
 0x762   : > { %8619 = vmatmul.msk.f32.gmra.mxu0 %vm836_vm2, %v13426_v61 }
 0x765   : > { %v3252_v19 = vpop.f32.mrf.mxu2 }
 0x766   : > { %3445 = vst [vmem:[#allocation2 + $0x38] sm:$0xff] %v3252_v19 }
 0x767   : > { %v3308_v42 = vpop.f32.mrf.mxu3  ;;  %v3340_v60 = vpop.f32.mrf.mxu0 }
 0x768   : > { %3434 = vst [vmem:[#allocation2 + $0x1d8] sm:$0xff] %v3308_v42 }
 0x769   : > { %3391 = vst [vmem:[#allocation2 + $0x18] sm:$0xff] %v3340_v60 }
 0x76f   : > { %v3311_v54 = vpop.f32.mrf.mxu3  ;;  %v3343_v3 = vpop.f32.mrf.mxu0 }
 0x770   : > { %3438 = vst [vmem:[#allocation2 + $0xa8] sm:$0xff] %v3311_v54 }
 0x771   : > { %3395 = vst [vmem:[#allocation2 + $0x48] sm:$0xff] %v3343_v3 }
 0x777   : > { %v3314_v7 = vpop.f32.mrf.mxu3  ;;  %v3346_v10 = vpop.f32.mrf.mxu0 }
 0x778   : > { %3442 = vst [vmem:[#allocation2 + $0x68] sm:$0xff] %v3314_v7 }
 0x779   : > { %3399 = vst [vmem:[#allocation2 + $0x98] sm:$0xff] %v3346_v10 }
 0x77f   : > { %v3317_v32 = vpop.f32.mrf.mxu3  ;;  %v3349_v43 = vpop.f32.mrf.mxu0 }
 0x780   : > { %3446 = vst [vmem:[#allocation2 + $0xc0] sm:$0xff] %v3317_v32 }
 0x781   : > { %3403 = vst [vmem:[#allocation2 + $0x60] sm:$0xff] %v3349_v43 }
 0x787   : > { %v3320_v22 = vpop.f32.mrf.mxu3  ;;  %v3352_v61 = vpop.f32.mrf.mxu0 }
 0x788   : > { %3450 = vst [vmem:[#allocation2 + $0x58] sm:$0xff] %v3320_v22 }
 0x789   : > { %3407 = vst [vmem:[#allocation2 + $0x140] sm:$0xff] %v3352_v61 }
 0x78f   : > { %v3355_v44 = vpop.f32.mrf.mxu0 }
 0x790   : > { %3411 = vst [vmem:[#allocation2 + $0x28] sm:$0xff] %v3355_v44 }
 0x797   : > { %v3358_v56 = vpop.f32.mrf.mxu0 }
 0x798   : > { %3415 = vst [vmem:[#allocation2 + $0x30] sm:$0xff] %v3358_v56 }
 0x79f   : > { %v3361_v51 = vpop.f32.mrf.mxu0 }
 0x7a0   : > { %3419 = vst [vmem:[#allocation2 + $0x8] sm:$0xff] %v3361_v51 }
 0x7a7   : > { %v3364_v27 = vpop.f32.mrf.mxu0 }
 0x7a8   : > { %3423 = vst [vmem:[#allocation2 + $0xc8] sm:$0xff] %v3364_v27 }
 0x7af   : > { %v3367_v59 = vpop.f32.mrf.mxu0 }
 0x7b0   : > { %3427 = vst [vmem:[#allocation2 + $0x128] sm:$0xff] %v3367_v59 }
 0x7b7   : > { %v3370_v5 = vpop.f32.mrf.mxu0 }
 0x7b8   : > { %3431 = vst [vmem:[#allocation2 + $0x78] sm:$0xff] %v3370_v5 }
 0x7bf   : > { %v3373_v49 = vpop.f32.mrf.mxu0 }
 0x7c0   : > { %3435 = vst [vmem:[#allocation2 + $0xd0] sm:$0xff] %v3373_v49 }
 0x7c7   : > { %v3376_v13 = vpop.f32.mrf.mxu0 }
 0x7c8   : > { %3439 = vst [vmem:[#allocation2 + $0x1c8] sm:$0xff] %v3376_v13 }
 0x7cf   : > { %v3379_v48 = vpop.f32.mrf.mxu0 }
 0x7d0   : > { %3443 = vst [vmem:[#allocation2 + $0x190] sm:$0xff] %v3379_v48 }
 0x7d7   : > { %v3382_v31 = vpop.f32.mrf.mxu0 }
 0x7d8   : > { %3447 = vst [vmem:[#allocation2 + $0x1c0] sm:$0xff] %v3382_v31 }
 0x7df   : > { %v3385_v16 = vpop.f32.mrf.mxu0 }
 0x7e0   : > { %3451 = vst [vmem:[#allocation2 + $0xa0] sm:$0xff] %v3385_v16 }
 0x7e1 PF: > { %v3490_v8 = vld [vmem:[#allocation2 + $0x130] sm:$0xff]  ;;  %v3491_v21 = vld [vmem:[#allocation2 + $0x48] sm:$0xff]  ;;  %v3486_v47 = vld [vmem:[#allocation2 + $0xd8] sm:$0xff]  ;;  %vm3492_vm9 = vcmask 130048  }
 0x7e2   : > { %3829 = vmatpush.msra.mxu2 %v3490_v8  ;;  %3942 = vmatpush.msra.mxu3 %v3491_v21  ;;  %v3487_v0 = vld [vmem:[#allocation2 + $0x18] sm:$0xff]  ;;  %v13577_v45 = vld [vmem:[%s11435_s4] sm:$0xff]  ;;  %v4176_v29 = vld [vmem:[#allocation2 + $0x108] sm:$0xff] }
 0x7e3   : > { %v4177_v58 = vld [vmem:[#allocation2 + $0x60] sm:$0xff]  ;;  %v3488_v15 = vld [vmem:[#allocation2 + $0x50] sm:$0xff]  ;;  %v3489_v55 = vld [vmem:[#allocation2 + $0x168] sm:$0xff] }
 0x7e4   : > { %3830 = vmatpush.msra.mxu2 %v3486_v47  ;;  %3943 = vmatpush.msra.mxu3 %v3487_v0  ;;  %v3484_v20 = vld [vmem:[#allocation2 + $0xb0] sm:$0xff]  ;;  %v4174_v2 = vld [vmem:[#allocation2 + $0x120] sm:$0xff]  ;;  %v13588_v4 = vld [vmem:[%s11435_s4 + $0x8] sm:$0xff] }
 0x7e5   : > { %8684 = vmatmul.msk.f32.vlgmr.msra.gmra.mxu2 %vm3492_vm9, %v13577_v45  ;;  %8716 = vmatmul.msk.f32.vlgmr.msra.gmra.mxu3 %vm3492_vm9, %v13577_v45  ;;  %v3485_v26 = vld [vmem:[#allocation2 + $0x1b0] sm:$0xff]  ;;  %v13610_v6 = vld [vmem:[%s11435_s4 + $0x18] sm:$0xff]  ;;  %v13621_v46 = vld [vmem:[%s11435_s4 + $0x20] sm:$0xff] }
 0x7e6   : > { %4418 = vmatpush.msrb.mxu2 %v4176_v29  ;;  %4531 = vmatpush.msrb.mxu3 %v4177_v58  ;;  %v4175_v34 = vld [vmem:[#allocation2 + $0x150] sm:$0xff]  ;;  %v13632_v63 = vld [vmem:[%s11435_s4 + $0x28] sm:$0xff]  ;;  %v13654_v50 = vld [vmem:[%s11435_s4 + $0x38] sm:$0xff] }
 0x7e7   : > { %3603 = vmatpush.msra.mxu0 %v3488_v15  ;;  %3716 = vmatpush.msra.mxu1 %v3489_v55  ;;  %v13599_v62 = vld [vmem:[%s11435_s4 + $0x10] sm:$0xff]  ;;  %v13665_v39 = vld [vmem:[%s11435_s4 + $0x40] sm:$0xff]  ;;  %v13676_v36 = vld [vmem:[%s11435_s4 + $0x48] sm:$0xff] }
 0x7e8   : > { %v13643_v9 = vld [vmem:[%s11435_s4 + $0x30] sm:$0xff]  ;;  %v13698_v38 = vld [vmem:[%s11435_s4 + $0x58] sm:$0xff]  ;;  %v13709_v25 = vld [vmem:[%s11435_s4 + $0x60] sm:$0xff] }
 0x7e9   : > { %3604 = vmatpush.msra.mxu0 %v3484_v20  ;;  %3717 = vmatpush.msra.mxu1 %v3485_v26  ;;  %v13687_v17 = vld [vmem:[%s11435_s4 + $0x50] sm:$0xff]  ;;  %v4172_v37 = vld [vmem:[#allocation2 + $0x118] sm:$0xff]  ;;  %v13720_v40 = vld [vmem:[%s11435_s4 + $0x68] sm:$0xff] }
 0x7ea   : > { %8620 = vmatmul.msk.f32.vlgmr.msra.gmra.mxu0 %vm3492_vm9, %v13577_v45  ;;  %8652 = vmatmul.msk.f32.vlgmr.msra.gmra.mxu1 %vm3492_vm9, %v13577_v45  ;;  %v4173_v23 = vld [vmem:[#allocation2 + $0x98] sm:$0xff]  ;;  %v4170_v14 = vld [vmem:[#allocation2 + $0x180] sm:$0xff]  ;;  %v4171_v1 = vld [vmem:[#allocation2 + $0x110] sm:$0xff] }
 0x7eb   : > { %4192 = vmatpush.msrb.mxu0 %v4174_v2  ;;  %4305 = vmatpush.msrb.mxu1 %v4175_v34  ;;  %v13731_v24 = vld [vmem:[%s11435_s4 + $0x70] sm:$0xff]  ;;  %v13742_v30 = vld [vmem:[%s11435_s4 + $0x78] sm:$0xff]  ;;  %v13753_v57 = vld [vmem:[%s11435_s4 + $0x80] sm:$0xff] }
 0x7ec   : > { %4419 = vmatpush.msrb.mxu2 %v4172_v37  ;;  %4532 = vmatpush.msrb.mxu3 %v4173_v23  ;;  %v13767_v35 = vld [vmem:[%s11435_s4 + $0x88] sm:$0xff]  ;;  %v13782_v19 = vld [vmem:[%s11435_s4 + $0x90] sm:$0xff]  ;;  %v13797_v7 = vld [vmem:[%s11435_s4 + $0x98] sm:$0xff] }
 0x7ed   : > { %8685 = vmatmul.msk.f32.gmra.mxu2 %vm3492_vm9, %v13588_v4  ;;  %8717 = vmatmul.msk.f32.gmra.mxu3 %vm3492_vm9, %v13588_v4  ;;  %v13812_v61 = vld [vmem:[%s11435_s4 + $0xa0] sm:$0xff]  ;;  %v13827_v59 = vld [vmem:[%s11435_s4 + $0xa8] sm:$0xff]  ;;  %v13842_v31 = vld [vmem:[%s11435_s4 + $0xb0] sm:$0xff] }
 0x7ee   : > { %4193 = vmatpush.msrb.mxu0 %v4170_v14  ;;  %4306 = vmatpush.msrb.mxu1 %v4171_v1  ;;  %v13857_v0 = vld [vmem:[%s11435_s4 + $0xb8] sm:$0xff]  ;;  %v13872_v20 = vld [vmem:[%s11435_s4 + $0xc0] sm:$0xff]  ;;  %v13887_v23 = vld [vmem:[%s11435_s4 + $0xc8] sm:$0xff] }
 0x7f2   : > { %8621 = vmatmul.msk.f32.gmra.mxu0 %vm3492_vm9, %v13588_v4  ;;  %8653 = vmatmul.msk.f32.gmra.mxu1 %vm3492_vm9, %v13588_v4 }
 0x7f5   : > { %8686 = vmatmul.msk.f32.gmra.mxu2 %vm3492_vm9, %v13599_v62  ;;  %8718 = vmatmul.msk.f32.gmra.mxu3 %vm3492_vm9, %v13599_v62 }
 0x7fa   : > { %8622 = vmatmul.msk.f32.gmra.mxu0 %vm3492_vm9, %v13599_v62  ;;  %8654 = vmatmul.msk.f32.gmra.mxu1 %vm3492_vm9, %v13599_v62 }
 0x7fd   : > { %8687 = vmatmul.msk.f32.gmra.mxu2 %vm3492_vm9, %v13610_v6  ;;  %8719 = vmatmul.msk.f32.gmra.mxu3 %vm3492_vm9, %v13610_v6 }
 0x802   : > { %8623 = vmatmul.msk.f32.gmra.mxu0 %vm3492_vm9, %v13610_v6  ;;  %8655 = vmatmul.msk.f32.gmra.mxu1 %vm3492_vm9, %v13610_v6 }
 0x805   : > { %8688 = vmatmul.msk.f32.gmra.mxu2 %vm3492_vm9, %v13621_v46  ;;  %8720 = vmatmul.msk.f32.gmra.mxu3 %vm3492_vm9, %v13621_v46 }
 0x80a   : > { %8624 = vmatmul.msk.f32.gmra.mxu0 %vm3492_vm9, %v13621_v46  ;;  %8656 = vmatmul.msk.f32.gmra.mxu1 %vm3492_vm9, %v13621_v46 }
 0x80d   : > { %8689 = vmatmul.msk.f32.gmra.mxu2 %vm3492_vm9, %v13632_v63  ;;  %8721 = vmatmul.msk.f32.gmra.mxu3 %vm3492_vm9, %v13632_v63 }
 0x812   : > { %8625 = vmatmul.msk.f32.gmra.mxu0 %vm3492_vm9, %v13632_v63  ;;  %8657 = vmatmul.msk.f32.gmra.mxu1 %vm3492_vm9, %v13632_v63 }
 0x815   : > { %8690 = vmatmul.msk.f32.gmra.mxu2 %vm3492_vm9, %v13643_v9  ;;  %8722 = vmatmul.msk.f32.gmra.mxu3 %vm3492_vm9, %v13643_v9 }
 0x81a   : > { %8626 = vmatmul.msk.f32.gmra.mxu0 %vm3492_vm9, %v13643_v9  ;;  %8658 = vmatmul.msk.f32.gmra.mxu1 %vm3492_vm9, %v13643_v9 }
 0x81d   : > { %8691 = vmatmul.msk.f32.gmra.mxu2 %vm3492_vm9, %v13654_v50  ;;  %8723 = vmatmul.msk.f32.gmra.mxu3 %vm3492_vm9, %v13654_v50 }
 0x822   : > { %8627 = vmatmul.msk.f32.gmra.mxu0 %vm3492_vm9, %v13654_v50  ;;  %8659 = vmatmul.msk.f32.gmra.mxu1 %vm3492_vm9, %v13654_v50 }
 0x825   : > { %8692 = vmatmul.msk.f32.gmra.mxu2 %vm3492_vm9, %v13665_v39  ;;  %8724 = vmatmul.msk.f32.gmra.mxu3 %vm3492_vm9, %v13665_v39 }
 0x82a   : > { %8628 = vmatmul.msk.f32.gmra.mxu0 %vm3492_vm9, %v13665_v39  ;;  %8660 = vmatmul.msk.f32.gmra.mxu1 %vm3492_vm9, %v13665_v39 }
 0x82d   : > { %8693 = vmatmul.msk.f32.gmra.mxu2 %vm3492_vm9, %v13676_v36  ;;  %8725 = vmatmul.msk.f32.gmra.mxu3 %vm3492_vm9, %v13676_v36 }
 0x832   : > { %8629 = vmatmul.msk.f32.gmra.mxu0 %vm3492_vm9, %v13676_v36  ;;  %8661 = vmatmul.msk.f32.gmra.mxu1 %vm3492_vm9, %v13676_v36 }
 0x835   : > { %8694 = vmatmul.msk.f32.gmra.mxu2 %vm3492_vm9, %v13687_v17  ;;  %8726 = vmatmul.msk.f32.gmra.mxu3 %vm3492_vm9, %v13687_v17 }
 0x83a   : > { %8630 = vmatmul.msk.f32.gmra.mxu0 %vm3492_vm9, %v13687_v17  ;;  %8662 = vmatmul.msk.f32.gmra.mxu1 %vm3492_vm9, %v13687_v17 }
 0x83d   : > { %8695 = vmatmul.msk.f32.gmra.mxu2 %vm3492_vm9, %v13698_v38  ;;  %8727 = vmatmul.msk.f32.gmra.mxu3 %vm3492_vm9, %v13698_v38 }
 0x842   : > { %8631 = vmatmul.msk.f32.gmra.mxu0 %vm3492_vm9, %v13698_v38  ;;  %8663 = vmatmul.msk.f32.gmra.mxu1 %vm3492_vm9, %v13698_v38 }
 0x845   : > { %8696 = vmatmul.msk.f32.gmra.mxu2 %vm3492_vm9, %v13709_v25  ;;  %8728 = vmatmul.msk.f32.gmra.mxu3 %vm3492_vm9, %v13709_v25 }
 0x84a   : > { %8632 = vmatmul.msk.f32.gmra.mxu0 %vm3492_vm9, %v13709_v25  ;;  %8664 = vmatmul.msk.f32.gmra.mxu1 %vm3492_vm9, %v13709_v25 }
 0x84d   : > { %8697 = vmatmul.msk.f32.gmra.mxu2 %vm3492_vm9, %v13720_v40  ;;  %8729 = vmatmul.msk.f32.gmra.mxu3 %vm3492_vm9, %v13720_v40 }
 0x852   : > { %8633 = vmatmul.msk.f32.gmra.mxu0 %vm3492_vm9, %v13720_v40  ;;  %8665 = vmatmul.msk.f32.gmra.mxu1 %vm3492_vm9, %v13720_v40 }
 0x855   : > { %8698 = vmatmul.msk.f32.gmra.mxu2 %vm3492_vm9, %v13731_v24  ;;  %8730 = vmatmul.msk.f32.gmra.mxu3 %vm3492_vm9, %v13731_v24 }
 0x85a   : > { %8634 = vmatmul.msk.f32.gmra.mxu0 %vm3492_vm9, %v13731_v24  ;;  %8666 = vmatmul.msk.f32.gmra.mxu1 %vm3492_vm9, %v13731_v24 }
 0x85d   : > { %8699 = vmatmul.msk.f32.gmra.mxu2 %vm3492_vm9, %v13742_v30  ;;  %8731 = vmatmul.msk.f32.gmra.mxu3 %vm3492_vm9, %v13742_v30 }
 0x862   : > { %8635 = vmatmul.msk.f32.gmra.mxu0 %vm3492_vm9, %v13742_v30  ;;  %8667 = vmatmul.msk.f32.gmra.mxu1 %vm3492_vm9, %v13742_v30 }
 0x865   : > { %8700 = vmatmul.msk.f32.gmra.mxu2 %vm3492_vm9, %v13753_v57  ;;  %8732 = vmatmul.msk.f32.gmra.mxu3 %vm3492_vm9, %v13753_v57 }
 0x867   : > { %v3606_v28 = vpop.f32.mrf.mxu0  ;;  %v3719_v53 = vpop.f32.mrf.mxu1 }
 0x868   : > { %4041 = vst [vmem:[%s11437_s19] sm:$0xff] %v3606_v28  ;;  %v3832_v18 = vpop.f32.mrf.mxu2  ;;  %v3945_v41 = vpop.f32.mrf.mxu3 }
 0x869   : > { %4042 = vst [vmem:[%s11437_s19 + $0x8] sm:$0xff] %v3719_v53 }
 0x86a   : > { %4043 = vst [vmem:[%s11437_s19 + $0x10] sm:$0xff] %v3832_v18  ;;  %8636 = vmatmul.msk.f32.gmra.mxu0 %vm3492_vm9, %v13753_v57  ;;  %8668 = vmatmul.msk.f32.gmra.mxu1 %vm3492_vm9, %v13753_v57  ;;  %v13902_v18 = vld [vmem:[%s11435_s4 + $0xd0] sm:$0xff] }
 0x86b   : > { %4044 = vst [vmem:[%s11437_s19 + $0x18] sm:$0xff] %v3945_v41 }
 0x86d   : > { %8701 = vmatmul.msk.f32.gmra.mxu2 %vm3492_vm9, %v13767_v35  ;;  %8733 = vmatmul.msk.f32.gmra.mxu3 %vm3492_vm9, %v13767_v35 }
 0x86f   : > { %v3609_v52 = vpop.f32.mrf.mxu0  ;;  %v3722_v33 = vpop.f32.mrf.mxu1 }
 0x870   : > { %4045 = vst [vmem:[%s11437_s19 + $0x20] sm:$0xff] %v3609_v52  ;;  %v3835_v11 = vpop.f32.mrf.mxu2  ;;  %v3948_v12 = vpop.f32.mrf.mxu3 }
 0x871   : > { %4046 = vst [vmem:[%s11437_s19 + $0x28] sm:$0xff] %v3722_v33 }
 0x872   : > { %4047 = vst [vmem:[%s11437_s19 + $0x30] sm:$0xff] %v3835_v11  ;;  %8637 = vmatmul.msk.f32.gmra.mxu0 %vm3492_vm9, %v13767_v35  ;;  %8669 = vmatmul.msk.f32.gmra.mxu1 %vm3492_vm9, %v13767_v35 }
 0x873   : > { %4048 = vst [vmem:[%s11437_s19 + $0x38] sm:$0xff] %v3948_v12  ;;  %v13917_v12 = vld [vmem:[%s11435_s4 + $0xd8] sm:$0xff] }
 0x875   : > { %8702 = vmatmul.msk.f32.gmra.mxu2 %vm3492_vm9, %v13782_v19  ;;  %8734 = vmatmul.msk.f32.gmra.mxu3 %vm3492_vm9, %v13782_v19 }
 0x877   : > { %v3612_v42 = vpop.f32.mrf.mxu0  ;;  %v3725_v60 = vpop.f32.mrf.mxu1 }
 0x878   : > { %4049 = vst [vmem:[%s11437_s19 + $0x40] sm:$0xff] %v3612_v42  ;;  %v3838_v54 = vpop.f32.mrf.mxu2  ;;  %v3951_v3 = vpop.f32.mrf.mxu3 }
 0x879   : > { %4050 = vst [vmem:[%s11437_s19 + $0x48] sm:$0xff] %v3725_v60 }
 0x87a   : > { %4051 = vst [vmem:[%s11437_s19 + $0x50] sm:$0xff] %v3838_v54  ;;  %8638 = vmatmul.msk.f32.gmra.mxu0 %vm3492_vm9, %v13782_v19  ;;  %8670 = vmatmul.msk.f32.gmra.mxu1 %vm3492_vm9, %v13782_v19 }
 0x87b   : > { %4052 = vst [vmem:[%s11437_s19 + $0x58] sm:$0xff] %v3951_v3 }
 0x87d   : > { %8703 = vmatmul.msk.f32.gmra.mxu2 %vm3492_vm9, %v13797_v7  ;;  %8735 = vmatmul.msk.f32.gmra.mxu3 %vm3492_vm9, %v13797_v7 }
 0x87f   : > { %v3615_v10 = vpop.f32.mrf.mxu0  ;;  %v3728_v32 = vpop.f32.mrf.mxu1 }
 0x880   : > { %4053 = vst [vmem:[%s11437_s19 + $0x60] sm:$0xff] %v3615_v10  ;;  %v3841_v43 = vpop.f32.mrf.mxu2  ;;  %v3954_v22 = vpop.f32.mrf.mxu3  ;;  %v13932_v10 = vld [vmem:[%s11435_s4 + $0xe0] sm:$0xff] }
 0x881   : > { %4054 = vst [vmem:[%s11437_s19 + $0x68] sm:$0xff] %v3728_v32  ;;  %v4766_v32 = vld [vmem:[#allocation2 + $0x1b8] sm:$0xff] }
 0x882   : > { %4055 = vst [vmem:[%s11437_s19 + $0x70] sm:$0xff] %v3841_v43  ;;  %8639 = vmatmul.msk.f32.gmra.mxu0 %vm3492_vm9, %v13797_v7  ;;  %8671 = vmatmul.msk.f32.gmra.mxu1 %vm3492_vm9, %v13797_v7  ;;  %v4767_v43 = vld [vmem:[#allocation2 + $0x28] sm:$0xff] }
 0x883   : > { %4056 = vst [vmem:[%s11437_s19 + $0x78] sm:$0xff] %v3954_v22  ;;  %5008 = vmatpush.msra.mxu2 %v4766_v32  ;;  %5121 = vmatpush.msra.mxu3 %v4767_v43 }
 0x885   : > { %8704 = vmatmul.msk.f32.gmra.mxu2 %vm3492_vm9, %v13812_v61  ;;  %8736 = vmatmul.msk.f32.gmra.mxu3 %vm3492_vm9, %v13812_v61 }
 0x887   : > { %v3618_v44 = vpop.f32.mrf.mxu0  ;;  %v3731_v56 = vpop.f32.mrf.mxu1 }
 0x888   : > { %4057 = vst [vmem:[%s11437_s19 + $0x80] sm:$0xff] %v3618_v44  ;;  %v3844_v51 = vpop.f32.mrf.mxu2  ;;  %v3957_v27 = vpop.f32.mrf.mxu3 }
 0x889   : > { %4058 = vst [vmem:[%s11437_s19 + $0x88] sm:$0xff] %v3731_v56 }
 0x88a   : > { %4059 = vst [vmem:[%s11437_s19 + $0x90] sm:$0xff] %v3844_v51  ;;  %8640 = vmatmul.msk.f32.gmra.mxu0 %vm3492_vm9, %v13812_v61  ;;  %8672 = vmatmul.msk.f32.gmra.mxu1 %vm3492_vm9, %v13812_v61 }
 0x88b   : > { %4060 = vst [vmem:[%s11437_s19 + $0x98] sm:$0xff] %v3957_v27  ;;  %v13947_v27 = vld [vmem:[%s11435_s4 + $0xe8] sm:$0xff] }
 0x88d   : > { %8705 = vmatmul.msk.f32.gmra.mxu2 %vm3492_vm9, %v13827_v59  ;;  %8737 = vmatmul.msk.f32.gmra.mxu3 %vm3492_vm9, %v13827_v59 }
 0x88f   : > { %v3621_v5 = vpop.f32.mrf.mxu0  ;;  %v3734_v49 = vpop.f32.mrf.mxu1 }
 0x890   : > { %4061 = vst [vmem:[%s11437_s19 + $0xa0] sm:$0xff] %v3621_v5  ;;  %v3847_v13 = vpop.f32.mrf.mxu2  ;;  %v3960_v48 = vpop.f32.mrf.mxu3  ;;  %v4764_v5 = vld [vmem:[#allocation2 + $0x80] sm:$0xff] }
 0x891   : > { %4062 = vst [vmem:[%s11437_s19 + $0xa8] sm:$0xff] %v3734_v49  ;;  %v4765_v49 = vld [vmem:[#allocation2 + $0x1a8] sm:$0xff]  ;;  %4782 = vmatpush.msra.mxu0 %v4764_v5 }
 0x892   : > { %4063 = vst [vmem:[%s11437_s19 + $0xb0] sm:$0xff] %v3847_v13  ;;  %8641 = vmatmul.msk.f32.gmra.mxu0 %vm3492_vm9, %v13827_v59  ;;  %8673 = vmatmul.msk.f32.gmra.mxu1 %vm3492_vm9, %v13827_v59 }
 0x893   : > { %4064 = vst [vmem:[%s11437_s19 + $0xb8] sm:$0xff] %v3960_v48  ;;  %4895 = vmatpush.msra.mxu1 %v4765_v49 }
 0x895   : > { %8706 = vmatmul.msk.f32.gmra.mxu2 %vm3492_vm9, %v13842_v31  ;;  %8738 = vmatmul.msk.f32.gmra.mxu3 %vm3492_vm9, %v13842_v31 }
 0x897   : > { %v3624_v16 = vpop.f32.mrf.mxu0  ;;  %v3737_v8 = vpop.f32.mrf.mxu1 }
 0x898   : > { %4065 = vst [vmem:[%s11437_s19 + $0xc0] sm:$0xff] %v3624_v16  ;;  %v3850_v21 = vpop.f32.mrf.mxu2  ;;  %v3963_v47 = vpop.f32.mrf.mxu3 }
 0x899   : > { %4066 = vst [vmem:[%s11437_s19 + $0xc8] sm:$0xff] %v3737_v8 }
 0x89a   : > { %4067 = vst [vmem:[%s11437_s19 + $0xd0] sm:$0xff] %v3850_v21  ;;  %8642 = vmatmul.msk.f32.gmra.mxu0 %vm3492_vm9, %v13842_v31  ;;  %8674 = vmatmul.msk.f32.gmra.mxu1 %vm3492_vm9, %v13842_v31  ;;  %v13962_v21 = vld [vmem:[%s11435_s4 + $0xf0] sm:$0xff] }
 0x89b   : > { %4068 = vst [vmem:[%s11437_s19 + $0xd8] sm:$0xff] %v3963_v47 }
 0x89d   : > { %8707 = vmatmul.msk.f32.gmra.mxu2 %vm3492_vm9, %v13857_v0  ;;  %8739 = vmatmul.msk.f32.gmra.mxu3 %vm3492_vm9, %v13857_v0 }
 0x89f   : > { %v3627_v29 = vpop.f32.mrf.mxu0  ;;  %v3740_v58 = vpop.f32.mrf.mxu1 }
 0x8a0   : > { %4069 = vst [vmem:[%s11437_s19 + $0xe0] sm:$0xff] %v3627_v29  ;;  %v3853_v15 = vpop.f32.mrf.mxu2  ;;  %v3966_v55 = vpop.f32.mrf.mxu3 }
 0x8a1   : > { %4070 = vst [vmem:[%s11437_s19 + $0xe8] sm:$0xff] %v3740_v58 }
 0x8a2   : > { %4071 = vst [vmem:[%s11437_s19 + $0xf0] sm:$0xff] %v3853_v15  ;;  %8643 = vmatmul.msk.f32.gmra.mxu0 %vm3492_vm9, %v13857_v0  ;;  %8675 = vmatmul.msk.f32.gmra.mxu1 %vm3492_vm9, %v13857_v0 }
 0x8a3   : > { %4072 = vst [vmem:[%s11437_s19 + $0xf8] sm:$0xff] %v3966_v55  ;;  %v13977_v55 = vld [vmem:[%s11435_s4 + $0xf8] sm:$0xff] }
 0x8a5   : > { %8708 = vmatmul.msk.f32.gmra.mxu2 %vm3492_vm9, %v13872_v20  ;;  %8740 = vmatmul.msk.f32.gmra.mxu3 %vm3492_vm9, %v13872_v20 }
 0x8a7   : > { %v3630_v26 = vpop.f32.mrf.mxu0  ;;  %v3743_v2 = vpop.f32.mrf.mxu1 }
 0x8a8   : > { %4073 = vst [vmem:[%s11437_s19 + $0x100] sm:$0xff] %v3630_v26  ;;  %v3856_v34 = vpop.f32.mrf.mxu2  ;;  %v3969_v37 = vpop.f32.mrf.mxu3 }
 0x8a9   : > { %4074 = vst [vmem:[%s11437_s19 + $0x108] sm:$0xff] %v3743_v2 }
 0x8aa   : > { %4075 = vst [vmem:[%s11437_s19 + $0x110] sm:$0xff] %v3856_v34  ;;  %8644 = vmatmul.msk.f32.gmra.mxu0 %vm3492_vm9, %v13872_v20  ;;  %8676 = vmatmul.msk.f32.gmra.mxu1 %vm3492_vm9, %v13872_v20 }
 0x8ab   : > { %4076 = vst [vmem:[%s11437_s19 + $0x118] sm:$0xff] %v3969_v37 }
 0x8ad   : > { %8709 = vmatmul.msk.f32.gmra.mxu2 %vm3492_vm9, %v13887_v23  ;;  %8741 = vmatmul.msk.f32.gmra.mxu3 %vm3492_vm9, %v13887_v23 }
 0x8af   : > { %v3633_v14 = vpop.f32.mrf.mxu0  ;;  %v3746_v1 = vpop.f32.mrf.mxu1 }
 0x8b0   : > { %4077 = vst [vmem:[%s11437_s19 + $0x120] sm:$0xff] %v3633_v14  ;;  %v3859_v28 = vpop.f32.mrf.mxu2  ;;  %v3972_v53 = vpop.f32.mrf.mxu3 }
 0x8b1   : > { %4078 = vst [vmem:[%s11437_s19 + $0x128] sm:$0xff] %v3746_v1 }
 0x8b2   : > { %4079 = vst [vmem:[%s11437_s19 + $0x130] sm:$0xff] %v3859_v28  ;;  %8645 = vmatmul.msk.f32.gmra.mxu0 %vm3492_vm9, %v13887_v23  ;;  %8677 = vmatmul.msk.f32.gmra.mxu1 %vm3492_vm9, %v13887_v23 }
 0x8b3   : > { %4080 = vst [vmem:[%s11437_s19 + $0x138] sm:$0xff] %v3972_v53 }
 0x8b5   : > { %8710 = vmatmul.msk.f32.gmra.mxu2 %vm3492_vm9, %v13902_v18  ;;  %8742 = vmatmul.msk.f32.gmra.mxu3 %vm3492_vm9, %v13902_v18 }
 0x8b7   : > { %v3636_v41 = vpop.f32.mrf.mxu0  ;;  %v3749_v52 = vpop.f32.mrf.mxu1 }
 0x8b8   : > { %4081 = vst [vmem:[%s11437_s19 + $0x140] sm:$0xff] %v3636_v41  ;;  %v3862_v33 = vpop.f32.mrf.mxu2  ;;  %v3975_v11 = vpop.f32.mrf.mxu3 }
 0x8b9   : > { %4082 = vst [vmem:[%s11437_s19 + $0x148] sm:$0xff] %v3749_v52 }
 0x8ba   : > { %4083 = vst [vmem:[%s11437_s19 + $0x150] sm:$0xff] %v3862_v33  ;;  %8646 = vmatmul.msk.f32.gmra.mxu0 %vm3492_vm9, %v13902_v18  ;;  %8678 = vmatmul.msk.f32.gmra.mxu1 %vm3492_vm9, %v13902_v18 }
 0x8bb   : > { %4084 = vst [vmem:[%s11437_s19 + $0x158] sm:$0xff] %v3975_v11 }
 0x8bd   : > { %8711 = vmatmul.msk.f32.gmra.mxu2 %vm3492_vm9, %v13917_v12  ;;  %8743 = vmatmul.msk.f32.gmra.mxu3 %vm3492_vm9, %v13917_v12 }
 0x8bf   : > { %v3639_v42 = vpop.f32.mrf.mxu0  ;;  %v3752_v60 = vpop.f32.mrf.mxu1 }
 0x8c0   : > { %4085 = vst [vmem:[%s11437_s19 + $0x160] sm:$0xff] %v3639_v42  ;;  %v3865_v54 = vpop.f32.mrf.mxu2  ;;  %v3978_v3 = vpop.f32.mrf.mxu3 }
 0x8c1   : > { %4086 = vst [vmem:[%s11437_s19 + $0x168] sm:$0xff] %v3752_v60 }
 0x8c2   : > { %4087 = vst [vmem:[%s11437_s19 + $0x170] sm:$0xff] %v3865_v54  ;;  %8647 = vmatmul.msk.f32.gmra.mxu0 %vm3492_vm9, %v13917_v12  ;;  %8679 = vmatmul.msk.f32.gmra.mxu1 %vm3492_vm9, %v13917_v12 }
 0x8c3   : > { %4088 = vst [vmem:[%s11437_s19 + $0x178] sm:$0xff] %v3978_v3 }
 0x8c5   : > { %8712 = vmatmul.msk.f32.gmra.mxu2 %vm3492_vm9, %v13932_v10  ;;  %8744 = vmatmul.msk.f32.gmra.mxu3 %vm3492_vm9, %v13932_v10 }
 0x8c7   : > { %v3642_v22 = vpop.f32.mrf.mxu0  ;;  %v3755_v44 = vpop.f32.mrf.mxu1 }
 0x8c8   : > { %4089 = vst [vmem:[%s11437_s19 + $0x180] sm:$0xff] %v3642_v22  ;;  %v3868_v56 = vpop.f32.mrf.mxu2  ;;  %v3981_v51 = vpop.f32.mrf.mxu3 }
 0x8c9   : > { %4090 = vst [vmem:[%s11437_s19 + $0x188] sm:$0xff] %v3755_v44 }
 0x8ca   : > { %4091 = vst [vmem:[%s11437_s19 + $0x190] sm:$0xff] %v3868_v56  ;;  %8648 = vmatmul.msk.f32.gmra.mxu0 %vm3492_vm9, %v13932_v10  ;;  %8680 = vmatmul.msk.f32.gmra.mxu1 %vm3492_vm9, %v13932_v10 }
 0x8cb   : > { %4092 = vst [vmem:[%s11437_s19 + $0x198] sm:$0xff] %v3981_v51 }
 0x8cd   : > { %8713 = vmatmul.msk.f32.gmra.mxu2 %vm3492_vm9, %v13947_v27  ;;  %8745 = vmatmul.msk.f32.gmra.mxu3 %vm3492_vm9, %v13947_v27 }
 0x8cf   : > { %v3645_v13 = vpop.f32.mrf.mxu0  ;;  %v3758_v48 = vpop.f32.mrf.mxu1 }
 0x8d0   : > { %4093 = vst [vmem:[%s11437_s19 + $0x1a0] sm:$0xff] %v3645_v13  ;;  %v3871_v16 = vpop.f32.mrf.mxu2  ;;  %v3984_v8 = vpop.f32.mrf.mxu3 }
 0x8d1   : > { %4094 = vst [vmem:[%s11437_s19 + $0x1a8] sm:$0xff] %v3758_v48 }
 0x8d2   : > { %4095 = vst [vmem:[%s11437_s19 + $0x1b0] sm:$0xff] %v3871_v16  ;;  %8649 = vmatmul.msk.f32.gmra.mxu0 %vm3492_vm9, %v13947_v27  ;;  %8681 = vmatmul.msk.f32.gmra.mxu1 %vm3492_vm9, %v13947_v27 }
 0x8d3   : > { %4096 = vst [vmem:[%s11437_s19 + $0x1b8] sm:$0xff] %v3984_v8 }
 0x8d5   : > { %8714 = vmatmul.msk.f32.gmra.mxu2 %vm3492_vm9, %v13962_v21  ;;  %8746 = vmatmul.msk.f32.gmra.mxu3 %vm3492_vm9, %v13962_v21 }
 0x8d7   : > { %v3648_v47 = vpop.f32.mrf.mxu0  ;;  %v3761_v29 = vpop.f32.mrf.mxu1 }
 0x8d8   : > { %4097 = vst [vmem:[%s11437_s19 + $0x1c0] sm:$0xff] %v3648_v47  ;;  %v3874_v58 = vpop.f32.mrf.mxu2  ;;  %v3987_v15 = vpop.f32.mrf.mxu3 }
 0x8d9   : > { %4098 = vst [vmem:[%s11437_s19 + $0x1c8] sm:$0xff] %v3761_v29 }
 0x8da   : > { %4099 = vst [vmem:[%s11437_s19 + $0x1d0] sm:$0xff] %v3874_v58  ;;  %8650 = vmatmul.msk.f32.gmra.mxu0 %vm3492_vm9, %v13962_v21  ;;  %8682 = vmatmul.msk.f32.gmra.mxu1 %vm3492_vm9, %v13962_v21 }
 0x8db   : > { %4100 = vst [vmem:[%s11437_s19 + $0x1d8] sm:$0xff] %v3987_v15 }
 0x8dd   : > { %8715 = vmatmul.msk.f32.gmra.mxu2 %vm3492_vm9, %v13977_v55  ;;  %8747 = vmatmul.msk.f32.gmra.mxu3 %vm3492_vm9, %v13977_v55 }
 0x8df   : > { %v3651_v26 = vpop.f32.mrf.mxu0  ;;  %v3764_v2 = vpop.f32.mrf.mxu1 }
 0x8e0   : > { %4101 = vst [vmem:[%s11437_s19 + $0x1e0] sm:$0xff] %v3651_v26  ;;  %v3877_v34 = vpop.f32.mrf.mxu2  ;;  %v3990_v37 = vpop.f32.mrf.mxu3 }
 0x8e1   : > { %4102 = vst [vmem:[%s11437_s19 + $0x1e8] sm:$0xff] %v3764_v2 }
 0x8e2   : > { %4103 = vst [vmem:[%s11437_s19 + $0x1f0] sm:$0xff] %v3877_v34  ;;  %8651 = vmatmul.msk.f32.gmra.mxu0 %vm3492_vm9, %v13977_v55  ;;  %8683 = vmatmul.msk.f32.gmra.mxu1 %vm3492_vm9, %v13977_v55 }
 0x8e3   : > { %4104 = vst [vmem:[%s11437_s19 + $0x1f8] sm:$0xff] %v3990_v37 }
 0x8e5   : > { %8812 = vmatmul.msk.f32.vlgmr.msrb.gmra.mxu2 %vm3492_vm9, %v13577_v45  ;;  %8844 = vmatmul.msk.f32.vlgmr.msrb.gmra.mxu3 %vm3492_vm9, %v13577_v45 }
 0x8e7   : > { %v3654_v14 = vpop.f32.mrf.mxu0  ;;  %v3767_v1 = vpop.f32.mrf.mxu1 }
 0x8e8   : > { %4105 = vst [vmem:[%s11437_s19 + $0x200] sm:$0xff] %v3654_v14  ;;  %v3880_v28 = vpop.f32.mrf.mxu2  ;;  %v3993_v53 = vpop.f32.mrf.mxu3 }
 0x8e9   : > { %4106 = vst [vmem:[%s11437_s19 + $0x208] sm:$0xff] %v3767_v1 }
 0x8ea   : > { %4107 = vst [vmem:[%s11437_s19 + $0x210] sm:$0xff] %v3880_v28  ;;  %8748 = vmatmul.msk.f32.vlgmr.msrb.gmra.mxu0 %vm3492_vm9, %v13577_v45  ;;  %8780 = vmatmul.msk.f32.vlgmr.msrb.gmra.mxu1 %vm3492_vm9, %v13577_v45 }
 0x8eb   : > { %4108 = vst [vmem:[%s11437_s19 + $0x218] sm:$0xff] %v3993_v53 }
 0x8ed   : > { %8813 = vmatmul.msk.f32.gmra.mxu2 %vm3492_vm9, %v13588_v4  ;;  %8845 = vmatmul.msk.f32.gmra.mxu3 %vm3492_vm9, %v13588_v4 }
 0x8ef   : > { %v3657_v41 = vpop.f32.mrf.mxu0  ;;  %v3770_v52 = vpop.f32.mrf.mxu1 }
 0x8f0   : > { %4109 = vst [vmem:[%s11437_s19 + $0x220] sm:$0xff] %v3657_v41  ;;  %v3883_v33 = vpop.f32.mrf.mxu2  ;;  %v3996_v11 = vpop.f32.mrf.mxu3 }
 0x8f1   : > { %4110 = vst [vmem:[%s11437_s19 + $0x228] sm:$0xff] %v3770_v52 }
 0x8f2   : > { %4111 = vst [vmem:[%s11437_s19 + $0x230] sm:$0xff] %v3883_v33  ;;  %8749 = vmatmul.msk.f32.gmra.mxu0 %vm3492_vm9, %v13588_v4  ;;  %8781 = vmatmul.msk.f32.gmra.mxu1 %vm3492_vm9, %v13588_v4  ;;  %v4763_v33 = vld [vmem:[#allocation2 + $0x140] sm:$0xff] }
 0x8f3   : > { %4112 = vst [vmem:[%s11437_s19 + $0x238] sm:$0xff] %v3996_v11  ;;  %5122 = vmatpush.msra.mxu3 %v4763_v33 }
 0x8f5   : > { %8814 = vmatmul.msk.f32.gmra.mxu2 %vm3492_vm9, %v13599_v62  ;;  %8846 = vmatmul.msk.f32.gmra.mxu3 %vm3492_vm9, %v13599_v62 }
 0x8f7   : > { %v3660_v45 = vpop.f32.mrf.mxu0  ;;  %v3773_v42 = vpop.f32.mrf.mxu1 }
 0x8f8   : > { %4113 = vst [vmem:[%s11437_s19 + $0x240] sm:$0xff] %v3660_v45  ;;  %v3886_v60 = vpop.f32.mrf.mxu2  ;;  %v3999_v54 = vpop.f32.mrf.mxu3 }
 0x8f9   : > { %4114 = vst [vmem:[%s11437_s19 + $0x248] sm:$0xff] %v3773_v42 }
 0x8fa   : > { %4115 = vst [vmem:[%s11437_s19 + $0x250] sm:$0xff] %v3886_v60  ;;  %8750 = vmatmul.msk.f32.gmra.mxu0 %vm3492_vm9, %v13599_v62  ;;  %8782 = vmatmul.msk.f32.gmra.mxu1 %vm3492_vm9, %v13599_v62 }
 0x8fb   : > { %4116 = vst [vmem:[%s11437_s19 + $0x258] sm:$0xff] %v3999_v54  ;;  %v4761_v54 = vld [vmem:[#allocation2 + $0x188] sm:$0xff] }
 0x8fc   : > { %4896 = vmatpush.msra.mxu1 %v4761_v54 }
 0x8fd   : > { %8815 = vmatmul.msk.f32.gmra.mxu2 %vm3492_vm9, %v13610_v6  ;;  %8847 = vmatmul.msk.f32.gmra.mxu3 %vm3492_vm9, %v13610_v6 }
 0x8ff   : > { %v3663_v4 = vpop.f32.mrf.mxu0  ;;  %v3776_v3 = vpop.f32.mrf.mxu1 }
 0x900   : > { %4117 = vst [vmem:[%s11437_s19 + $0x260] sm:$0xff] %v3663_v4  ;;  %v3889_v32 = vpop.f32.mrf.mxu2  ;;  %v4002_v43 = vpop.f32.mrf.mxu3 }
 0x901   : > { %4118 = vst [vmem:[%s11437_s19 + $0x268] sm:$0xff] %v3776_v3 }
 0x902   : > { %4119 = vst [vmem:[%s11437_s19 + $0x270] sm:$0xff] %v3889_v32  ;;  %8751 = vmatmul.msk.f32.gmra.mxu0 %vm3492_vm9, %v13610_v6  ;;  %8783 = vmatmul.msk.f32.gmra.mxu1 %vm3492_vm9, %v13610_v6 }
 0x903   : > { %4120 = vst [vmem:[%s11437_s19 + $0x278] sm:$0xff] %v4002_v43 }
 0x905   : > { %8816 = vmatmul.msk.f32.gmra.mxu2 %vm3492_vm9, %v13621_v46  ;;  %8848 = vmatmul.msk.f32.gmra.mxu3 %vm3492_vm9, %v13621_v46 }
 0x907   : > { %v3666_v62 = vpop.f32.mrf.mxu0  ;;  %v3779_v22 = vpop.f32.mrf.mxu1 }
 0x908   : > { %4121 = vst [vmem:[%s11437_s19 + $0x280] sm:$0xff] %v3666_v62  ;;  %v3892_v44 = vpop.f32.mrf.mxu2  ;;  %v4005_v56 = vpop.f32.mrf.mxu3 }
 0x909   : > { %4122 = vst [vmem:[%s11437_s19 + $0x288] sm:$0xff] %v3779_v22 }
 0x90a   : > { %4123 = vst [vmem:[%s11437_s19 + $0x290] sm:$0xff] %v3892_v44  ;;  %8752 = vmatmul.msk.f32.gmra.mxu0 %vm3492_vm9, %v13621_v46  ;;  %8784 = vmatmul.msk.f32.gmra.mxu1 %vm3492_vm9, %v13621_v46 }
 0x90b   : > { %4124 = vst [vmem:[%s11437_s19 + $0x298] sm:$0xff] %v4005_v56 }
 0x90d   : > { %8817 = vmatmul.msk.f32.gmra.mxu2 %vm3492_vm9, %v13632_v63  ;;  %8849 = vmatmul.msk.f32.gmra.mxu3 %vm3492_vm9, %v13632_v63 }
 0x90f   : > { %v3669_v6 = vpop.f32.mrf.mxu0  ;;  %v3782_v51 = vpop.f32.mrf.mxu1 }
 0x910   : > { %4125 = vst [vmem:[%s11437_s19 + $0x2a0] sm:$0xff] %v3669_v6  ;;  %v3895_v5 = vpop.f32.mrf.mxu2  ;;  %v4008_v49 = vpop.f32.mrf.mxu3 }
 0x911   : > { %4126 = vst [vmem:[%s11437_s19 + $0x2a8] sm:$0xff] %v3782_v51 }
 0x912   : > { %4127 = vst [vmem:[%s11437_s19 + $0x2b0] sm:$0xff] %v3895_v5  ;;  %8753 = vmatmul.msk.f32.gmra.mxu0 %vm3492_vm9, %v13632_v63  ;;  %8785 = vmatmul.msk.f32.gmra.mxu1 %vm3492_vm9, %v13632_v63 }
 0x913   : > { %4128 = vst [vmem:[%s11437_s19 + $0x2b8] sm:$0xff] %v4008_v49 }
 0x915   : > { %8818 = vmatmul.msk.f32.gmra.mxu2 %vm3492_vm9, %v13643_v9  ;;  %8850 = vmatmul.msk.f32.gmra.mxu3 %vm3492_vm9, %v13643_v9 }
 0x917   : > { %v3672_v46 = vpop.f32.mrf.mxu0  ;;  %v3785_v13 = vpop.f32.mrf.mxu1 }
 0x918   : > { %4129 = vst [vmem:[%s11437_s19 + $0x2c0] sm:$0xff] %v3672_v46  ;;  %v3898_v48 = vpop.f32.mrf.mxu2  ;;  %v4011_v16 = vpop.f32.mrf.mxu3 }
 0x919   : > { %4130 = vst [vmem:[%s11437_s19 + $0x2c8] sm:$0xff] %v3785_v13 }
 0x91a   : > { %4131 = vst [vmem:[%s11437_s19 + $0x2d0] sm:$0xff] %v3898_v48  ;;  %8754 = vmatmul.msk.f32.gmra.mxu0 %vm3492_vm9, %v13643_v9  ;;  %8786 = vmatmul.msk.f32.gmra.mxu1 %vm3492_vm9, %v13643_v9 }
 0x91b   : > { %4132 = vst [vmem:[%s11437_s19 + $0x2d8] sm:$0xff] %v4011_v16 }
 0x91d   : > { %8819 = vmatmul.msk.f32.gmra.mxu2 %vm3492_vm9, %v13654_v50  ;;  %8851 = vmatmul.msk.f32.gmra.mxu3 %vm3492_vm9, %v13654_v50 }
 0x91f   : > { %v3675_v63 = vpop.f32.mrf.mxu0  ;;  %v3788_v8 = vpop.f32.mrf.mxu1 }
 0x920   : > { %4133 = vst [vmem:[%s11437_s19 + $0x2e0] sm:$0xff] %v3675_v63  ;;  %v3901_v47 = vpop.f32.mrf.mxu2  ;;  %v4014_v29 = vpop.f32.mrf.mxu3 }
 0x921   : > { %4134 = vst [vmem:[%s11437_s19 + $0x2e8] sm:$0xff] %v3788_v8 }
 0x922   : > { %4135 = vst [vmem:[%s11437_s19 + $0x2f0] sm:$0xff] %v3901_v47  ;;  %8755 = vmatmul.msk.f32.gmra.mxu0 %vm3492_vm9, %v13654_v50  ;;  %8787 = vmatmul.msk.f32.gmra.mxu1 %vm3492_vm9, %v13654_v50 }
 0x923   : > { %4136 = vst [vmem:[%s11437_s19 + $0x2f8] sm:$0xff] %v4014_v29 }
 0x925   : > { %8820 = vmatmul.msk.f32.gmra.mxu2 %vm3492_vm9, %v13665_v39  ;;  %8852 = vmatmul.msk.f32.gmra.mxu3 %vm3492_vm9, %v13665_v39 }
 0x927   : > { %v3678_v9 = vpop.f32.mrf.mxu0  ;;  %v3791_v58 = vpop.f32.mrf.mxu1 }
 0x928   : > { %4137 = vst [vmem:[%s11437_s19 + $0x300] sm:$0xff] %v3678_v9  ;;  %v3904_v15 = vpop.f32.mrf.mxu2  ;;  %v4017_v26 = vpop.f32.mrf.mxu3 }
 0x929   : > { %4138 = vst [vmem:[%s11437_s19 + $0x308] sm:$0xff] %v3791_v58 }
 0x92a   : > { %4139 = vst [vmem:[%s11437_s19 + $0x310] sm:$0xff] %v3904_v15  ;;  %8756 = vmatmul.msk.f32.gmra.mxu0 %vm3492_vm9, %v13665_v39  ;;  %8788 = vmatmul.msk.f32.gmra.mxu1 %vm3492_vm9, %v13665_v39 }
 0x92b   : > { %4140 = vst [vmem:[%s11437_s19 + $0x318] sm:$0xff] %v4017_v26 }
 0x92d   : > { %8821 = vmatmul.msk.f32.gmra.mxu2 %vm3492_vm9, %v13676_v36  ;;  %8853 = vmatmul.msk.f32.gmra.mxu3 %vm3492_vm9, %v13676_v36 }
 0x92f   : > { %v3681_v50 = vpop.f32.mrf.mxu0  ;;  %v3794_v2 = vpop.f32.mrf.mxu1 }
 0x930   : > { %4141 = vst [vmem:[%s11437_s19 + $0x320] sm:$0xff] %v3681_v50  ;;  %v3907_v34 = vpop.f32.mrf.mxu2  ;;  %v4020_v37 = vpop.f32.mrf.mxu3 }
 0x931   : > { %4142 = vst [vmem:[%s11437_s19 + $0x328] sm:$0xff] %v3794_v2 }
 0x932   : > { %4143 = vst [vmem:[%s11437_s19 + $0x330] sm:$0xff] %v3907_v34  ;;  %8757 = vmatmul.msk.f32.gmra.mxu0 %vm3492_vm9, %v13676_v36  ;;  %8789 = vmatmul.msk.f32.gmra.mxu1 %vm3492_vm9, %v13676_v36 }
 0x933   : > { %4144 = vst [vmem:[%s11437_s19 + $0x338] sm:$0xff] %v4020_v37 }
 0x935   : > { %8822 = vmatmul.msk.f32.gmra.mxu2 %vm3492_vm9, %v13687_v17  ;;  %8854 = vmatmul.msk.f32.gmra.mxu3 %vm3492_vm9, %v13687_v17 }
 0x937   : > { %v3684_v39 = vpop.f32.mrf.mxu0  ;;  %v3797_v14 = vpop.f32.mrf.mxu1 }
 0x938   : > { %4145 = vst [vmem:[%s11437_s19 + $0x340] sm:$0xff] %v3684_v39  ;;  %v3910_v1 = vpop.f32.mrf.mxu2  ;;  %v4023_v28 = vpop.f32.mrf.mxu3 }
 0x939   : > { %4146 = vst [vmem:[%s11437_s19 + $0x348] sm:$0xff] %v3797_v14 }
 0x93a   : > { %4147 = vst [vmem:[%s11437_s19 + $0x350] sm:$0xff] %v3910_v1  ;;  %8758 = vmatmul.msk.f32.gmra.mxu0 %vm3492_vm9, %v13687_v17  ;;  %8790 = vmatmul.msk.f32.gmra.mxu1 %vm3492_vm9, %v13687_v17  ;;  %v4762_v17 = vld [vmem:[#allocation2 + $0x138] sm:$0xff] }
 0x93b   : > { %4148 = vst [vmem:[%s11437_s19 + $0x358] sm:$0xff] %v4023_v28  ;;  %5009 = vmatpush.msra.mxu2 %v4762_v17 }
 0x93d   : > { %8823 = vmatmul.msk.f32.gmra.mxu2 %vm3492_vm9, %v13698_v38  ;;  %8855 = vmatmul.msk.f32.gmra.mxu3 %vm3492_vm9, %v13698_v38 }
 0x93f   : > { %v3687_v36 = vpop.f32.mrf.mxu0  ;;  %v3800_v53 = vpop.f32.mrf.mxu1 }
 0x940   : > { %4149 = vst [vmem:[%s11437_s19 + $0x360] sm:$0xff] %v3687_v36  ;;  %v3913_v41 = vpop.f32.mrf.mxu2  ;;  %v4026_v52 = vpop.f32.mrf.mxu3 }
 0x941   : > { %4150 = vst [vmem:[%s11437_s19 + $0x368] sm:$0xff] %v3800_v53 }
 0x942   : > { %4151 = vst [vmem:[%s11437_s19 + $0x370] sm:$0xff] %v3913_v41  ;;  %8759 = vmatmul.msk.f32.gmra.mxu0 %vm3492_vm9, %v13698_v38  ;;  %8791 = vmatmul.msk.f32.gmra.mxu1 %vm3492_vm9, %v13698_v38  ;;  %v4760_v38 = vld [vmem:[#allocation2 + $0xe0] sm:$0xff] }
 0x943   : > { %4152 = vst [vmem:[%s11437_s19 + $0x378] sm:$0xff] %v4026_v52  ;;  %4783 = vmatpush.msra.mxu0 %v4760_v38 }
 0x945   : > { %8824 = vmatmul.msk.f32.gmra.mxu2 %vm3492_vm9, %v13709_v25  ;;  %8856 = vmatmul.msk.f32.gmra.mxu3 %vm3492_vm9, %v13709_v25 }
 0x947   : > { %v3690_v11 = vpop.f32.mrf.mxu0  ;;  %v3803_v45 = vpop.f32.mrf.mxu1 }
 0x948   : > { %4153 = vst [vmem:[%s11437_s19 + $0x380] sm:$0xff] %v3690_v11  ;;  %v3916_v42 = vpop.f32.mrf.mxu2  ;;  %v4029_v60 = vpop.f32.mrf.mxu3 }
 0x949   : > { %4154 = vst [vmem:[%s11437_s19 + $0x388] sm:$0xff] %v3803_v45 }
 0x94a   : > { %4155 = vst [vmem:[%s11437_s19 + $0x390] sm:$0xff] %v3916_v42  ;;  %8760 = vmatmul.msk.f32.gmra.mxu0 %vm3492_vm9, %v13709_v25  ;;  %8792 = vmatmul.msk.f32.gmra.mxu1 %vm3492_vm9, %v13709_v25 }
 0x94b   : > { %4156 = vst [vmem:[%s11437_s19 + $0x398] sm:$0xff] %v4029_v60 }
 0x94d   : > { %8825 = vmatmul.msk.f32.gmra.mxu2 %vm3492_vm9, %v13720_v40  ;;  %8857 = vmatmul.msk.f32.gmra.mxu3 %vm3492_vm9, %v13720_v40 }
 0x94f   : > { %v3693_v4 = vpop.f32.mrf.mxu0  ;;  %v3806_v3 = vpop.f32.mrf.mxu1 }
 0x950   : > { %4157 = vst [vmem:[%s11437_s19 + $0x3a0] sm:$0xff] %v3693_v4  ;;  %v3919_v32 = vpop.f32.mrf.mxu2  ;;  %v4032_v25 = vpop.f32.mrf.mxu3 }
 0x951   : > { %4158 = vst [vmem:[%s11437_s19 + $0x3a8] sm:$0xff] %v3806_v3 }
 0x952   : > { %4159 = vst [vmem:[%s11437_s19 + $0x3b0] sm:$0xff] %v3919_v32  ;;  %8761 = vmatmul.msk.f32.gmra.mxu0 %vm3492_vm9, %v13720_v40  ;;  %8793 = vmatmul.msk.f32.gmra.mxu1 %vm3492_vm9, %v13720_v40  ;;  %v5357_v32 = vld [vmem:[#allocation2 + $0x8] sm:$0xff] }
 0x953   : > { %4160 = vst [vmem:[%s11437_s19 + $0x3b8] sm:$0xff] %v4032_v25  ;;  %5711 = vmatpush.msrb.mxu3 %v5357_v32  ;;  %v14512_v32 = vld [vmem:[%s11435_s4 + $0x48] sm:$0xff] }
 0x955   : > { %8826 = vmatmul.msk.f32.gmra.mxu2 %vm3492_vm9, %v13731_v24  ;;  %8858 = vmatmul.msk.f32.gmra.mxu3 %vm3492_vm9, %v13731_v24 }
 0x957   : > { %v3696_v43 = vpop.f32.mrf.mxu0  ;;  %v3809_v62 = vpop.f32.mrf.mxu1 }
 0x958   : > { %4161 = vst [vmem:[%s11437_s19 + $0x3c0] sm:$0xff] %v3696_v43  ;;  %v3922_v22 = vpop.f32.mrf.mxu2  ;;  %v4035_v44 = vpop.f32.mrf.mxu3 }
 0x959   : > { %4162 = vst [vmem:[%s11437_s19 + $0x3c8] sm:$0xff] %v3809_v62 }
 0x95a   : > { %4163 = vst [vmem:[%s11437_s19 + $0x3d0] sm:$0xff] %v3922_v22  ;;  %8762 = vmatmul.msk.f32.gmra.mxu0 %vm3492_vm9, %v13731_v24  ;;  %8794 = vmatmul.msk.f32.gmra.mxu1 %vm3492_vm9, %v13731_v24 }
 0x95b   : > { %4164 = vst [vmem:[%s11437_s19 + $0x3d8] sm:$0xff] %v4035_v44  ;;  %v5355_v44 = vld [vmem:[#allocation2] sm:$0xff] }
 0x95c   : > { %5485 = vmatpush.msrb.mxu1 %v5355_v44 }
 0x95d   : > { %8827 = vmatmul.msk.f32.gmra.mxu2 %vm3492_vm9, %v13742_v30  ;;  %8859 = vmatmul.msk.f32.gmra.mxu3 %vm3492_vm9, %v13742_v30 }
 0x95f   : > { %v3699_v40 = vpop.f32.mrf.mxu0  ;;  %v3812_v56 = vpop.f32.mrf.mxu1 }
 0x960   : > { %4165 = vst [vmem:[%s11437_s19 + $0x3e0] sm:$0xff] %v3699_v40  ;;  %v3925_v6 = vpop.f32.mrf.mxu2  ;;  %v4038_v51 = vpop.f32.mrf.mxu3 }
 0x961   : > { %4166 = vst [vmem:[%s11437_s19 + $0x3e8] sm:$0xff] %v3812_v56 }
 0x962   : > { %4167 = vst [vmem:[%s11437_s19 + $0x3f0] sm:$0xff] %v3925_v6  ;;  %8763 = vmatmul.msk.f32.gmra.mxu0 %vm3492_vm9, %v13742_v30  ;;  %8795 = vmatmul.msk.f32.gmra.mxu1 %vm3492_vm9, %v13742_v30 }
 0x963   : > { %4168 = vst [vmem:[%s11437_s19 + $0x3f8] sm:$0xff] %v4038_v51 }
 0x965   : > { %8828 = vmatmul.msk.f32.gmra.mxu2 %vm3492_vm9, %v13753_v57  ;;  %8860 = vmatmul.msk.f32.gmra.mxu3 %vm3492_vm9, %v13753_v57 }
 0x967   : > { %v4195_v24 = vpop.f32.mrf.mxu0  ;;  %v4308_v5 = vpop.f32.mrf.mxu1 }
 0x968   : > { %8876 = vst [vmem:[%s11437_s19 + $0x400] sm:$0xff] %v4195_v24  ;;  %v4421_v49 = vpop.f32.mrf.mxu2  ;;  %v4534_v46 = vpop.f32.mrf.mxu3 }
 0x969   : > { %8877 = vst [vmem:[%s11437_s19 + $0x408] sm:$0xff] %v4308_v5 }
 0x96a   : > { %8878 = vst [vmem:[%s11437_s19 + $0x410] sm:$0xff] %v4421_v49  ;;  %8764 = vmatmul.msk.f32.gmra.mxu0 %vm3492_vm9, %v13753_v57  ;;  %8796 = vmatmul.msk.f32.gmra.mxu1 %vm3492_vm9, %v13753_v57 }
 0x96b   : > { %8879 = vst [vmem:[%s11437_s19 + $0x418] sm:$0xff] %v4534_v46 }
 0x96d   : > { %8829 = vmatmul.msk.f32.gmra.mxu2 %vm3492_vm9, %v13767_v35  ;;  %8861 = vmatmul.msk.f32.gmra.mxu3 %vm3492_vm9, %v13767_v35 }
 0x96f   : > { %v4198_v30 = vpop.f32.mrf.mxu0  ;;  %v4311_v13 = vpop.f32.mrf.mxu1 }
 0x970   : > { %8880 = vst [vmem:[%s11437_s19 + $0x420] sm:$0xff] %v4198_v30  ;;  %v4424_v48 = vpop.f32.mrf.mxu2  ;;  %v4537_v16 = vpop.f32.mrf.mxu3 }
 0x971   : > { %8881 = vst [vmem:[%s11437_s19 + $0x428] sm:$0xff] %v4311_v13 }
 0x972   : > { %8882 = vst [vmem:[%s11437_s19 + $0x430] sm:$0xff] %v4424_v48  ;;  %8765 = vmatmul.msk.f32.gmra.mxu0 %vm3492_vm9, %v13767_v35  ;;  %8797 = vmatmul.msk.f32.gmra.mxu1 %vm3492_vm9, %v13767_v35 }
 0x973   : > { %8883 = vst [vmem:[%s11437_s19 + $0x438] sm:$0xff] %v4537_v16 }
 0x975   : > { %8830 = vmatmul.msk.f32.gmra.mxu2 %vm3492_vm9, %v13782_v19  ;;  %8862 = vmatmul.msk.f32.gmra.mxu3 %vm3492_vm9, %v13782_v19 }
 0x977   : > { %v4201_v57 = vpop.f32.mrf.mxu0  ;;  %v4314_v63 = vpop.f32.mrf.mxu1 }
 0x978   : > { %8884 = vst [vmem:[%s11437_s19 + $0x440] sm:$0xff] %v4201_v57  ;;  %v4427_v8 = vpop.f32.mrf.mxu2  ;;  %v4540_v47 = vpop.f32.mrf.mxu3 }
 0x979   : > { %8885 = vst [vmem:[%s11437_s19 + $0x448] sm:$0xff] %v4314_v63 }
 0x97a   : > { %8886 = vst [vmem:[%s11437_s19 + $0x450] sm:$0xff] %v4427_v8  ;;  %8766 = vmatmul.msk.f32.gmra.mxu0 %vm3492_vm9, %v13782_v19  ;;  %8798 = vmatmul.msk.f32.gmra.mxu1 %vm3492_vm9, %v13782_v19 }
 0x97b   : > { %8887 = vst [vmem:[%s11437_s19 + $0x458] sm:$0xff] %v4540_v47 }
 0x97d   : > { %8831 = vmatmul.msk.f32.gmra.mxu2 %vm3492_vm9, %v13797_v7  ;;  %8863 = vmatmul.msk.f32.gmra.mxu3 %vm3492_vm9, %v13797_v7 }
 0x97f   : > { %v4204_v35 = vpop.f32.mrf.mxu0  ;;  %v4317_v29 = vpop.f32.mrf.mxu1 }
 0x980   : > { %8888 = vst [vmem:[%s11437_s19 + $0x460] sm:$0xff] %v4204_v35  ;;  %v4430_v9 = vpop.f32.mrf.mxu2  ;;  %v4543_v58 = vpop.f32.mrf.mxu3 }
 0x981   : > { %8889 = vst [vmem:[%s11437_s19 + $0x468] sm:$0xff] %v4317_v29 }
 0x982   : > { %8890 = vst [vmem:[%s11437_s19 + $0x470] sm:$0xff] %v4430_v9  ;;  %8767 = vmatmul.msk.f32.gmra.mxu0 %vm3492_vm9, %v13797_v7  ;;  %8799 = vmatmul.msk.f32.gmra.mxu1 %vm3492_vm9, %v13797_v7  ;;  %v14407_v9 = vld [vmem:[%s11435_s4 + $0x10] sm:$0xff] }
 0x983   : > { %8891 = vst [vmem:[%s11437_s19 + $0x478] sm:$0xff] %v4543_v58 }
 0x985   : > { %8832 = vmatmul.msk.f32.gmra.mxu2 %vm3492_vm9, %v13812_v61  ;;  %8864 = vmatmul.msk.f32.gmra.mxu3 %vm3492_vm9, %v13812_v61 }
 0x987   : > { %v4207_v19 = vpop.f32.mrf.mxu0  ;;  %v4320_v15 = vpop.f32.mrf.mxu1 }
 0x988   : > { %8892 = vst [vmem:[%s11437_s19 + $0x480] sm:$0xff] %v4207_v19  ;;  %v4433_v26 = vpop.f32.mrf.mxu2  ;;  %v4546_v50 = vpop.f32.mrf.mxu3 }
 0x989   : > { %8893 = vst [vmem:[%s11437_s19 + $0x488] sm:$0xff] %v4320_v15 }
 0x98a   : > { %8894 = vst [vmem:[%s11437_s19 + $0x490] sm:$0xff] %v4433_v26  ;;  %8768 = vmatmul.msk.f32.gmra.mxu0 %vm3492_vm9, %v13812_v61  ;;  %8800 = vmatmul.msk.f32.gmra.mxu1 %vm3492_vm9, %v13812_v61 }
 0x98b   : > { %8895 = vst [vmem:[%s11437_s19 + $0x498] sm:$0xff] %v4546_v50  ;;  %v14422_v50 = vld [vmem:[%s11435_s4 + $0x18] sm:$0xff] }
 0x98d   : > { %8833 = vmatmul.msk.f32.gmra.mxu2 %vm3492_vm9, %v13827_v59  ;;  %8865 = vmatmul.msk.f32.gmra.mxu3 %vm3492_vm9, %v13827_v59 }
 0x98f   : > { %v4210_v7 = vpop.f32.mrf.mxu0  ;;  %v4323_v2 = vpop.f32.mrf.mxu1 }
 0x990   : > { %8896 = vst [vmem:[%s11437_s19 + $0x4a0] sm:$0xff] %v4210_v7  ;;  %v4436_v34 = vpop.f32.mrf.mxu2  ;;  %v4549_v37 = vpop.f32.mrf.mxu3 }
 0x991   : > { %8897 = vst [vmem:[%s11437_s19 + $0x4a8] sm:$0xff] %v4323_v2 }
 0x992   : > { %8898 = vst [vmem:[%s11437_s19 + $0x4b0] sm:$0xff] %v4436_v34  ;;  %8769 = vmatmul.msk.f32.gmra.mxu0 %vm3492_vm9, %v13827_v59  ;;  %8801 = vmatmul.msk.f32.gmra.mxu1 %vm3492_vm9, %v13827_v59 }
 0x993   : > { %8899 = vst [vmem:[%s11437_s19 + $0x4b8] sm:$0xff] %v4549_v37 }
 0x995   : > { %8834 = vmatmul.msk.f32.gmra.mxu2 %vm3492_vm9, %v13842_v31  ;;  %8866 = vmatmul.msk.f32.gmra.mxu3 %vm3492_vm9, %v13842_v31 }
 0x997   : > { %v4213_v61 = vpop.f32.mrf.mxu0  ;;  %v4326_v39 = vpop.f32.mrf.mxu1 }
 0x998   : > { %8900 = vst [vmem:[%s11437_s19 + $0x4c0] sm:$0xff] %v4213_v61  ;;  %v4439_v14 = vpop.f32.mrf.mxu2  ;;  %v4552_v1 = vpop.f32.mrf.mxu3  ;;  %v14437_v61 = vld [vmem:[%s11435_s4 + $0x20] sm:$0xff] }
 0x999   : > { %8901 = vst [vmem:[%s11437_s19 + $0x4c8] sm:$0xff] %v4326_v39 }
 0x99a   : > { %8902 = vst [vmem:[%s11437_s19 + $0x4d0] sm:$0xff] %v4439_v14  ;;  %8770 = vmatmul.msk.f32.gmra.mxu0 %vm3492_vm9, %v13842_v31  ;;  %8802 = vmatmul.msk.f32.gmra.mxu1 %vm3492_vm9, %v13842_v31 }
 0x99b   : > { %8903 = vst [vmem:[%s11437_s19 + $0x4d8] sm:$0xff] %v4552_v1 }
 0x99d   : > { %8835 = vmatmul.msk.f32.gmra.mxu2 %vm3492_vm9, %v13857_v0  ;;  %8867 = vmatmul.msk.f32.gmra.mxu3 %vm3492_vm9, %v13857_v0 }
 0x99f   : > { %v4216_v59 = vpop.f32.mrf.mxu0  ;;  %v4329_v28 = vpop.f32.mrf.mxu1 }
 0x9a0   : > { %8904 = vst [vmem:[%s11437_s19 + $0x4e0] sm:$0xff] %v4216_v59  ;;  %v4442_v36 = vpop.f32.mrf.mxu2  ;;  %v4555_v53 = vpop.f32.mrf.mxu3 }
 0x9a1   : > { %8905 = vst [vmem:[%s11437_s19 + $0x4e8] sm:$0xff] %v4329_v28  ;;  %v14452_v28 = vld [vmem:[%s11435_s4 + $0x28] sm:$0xff] }
 0x9a2   : > { %8906 = vst [vmem:[%s11437_s19 + $0x4f0] sm:$0xff] %v4442_v36  ;;  %8771 = vmatmul.msk.f32.gmra.mxu0 %vm3492_vm9, %v13857_v0  ;;  %8803 = vmatmul.msk.f32.gmra.mxu1 %vm3492_vm9, %v13857_v0 }
 0x9a3   : > { %8907 = vst [vmem:[%s11437_s19 + $0x4f8] sm:$0xff] %v4555_v53 }
 0x9a5   : > { %8836 = vmatmul.msk.f32.gmra.mxu2 %vm3492_vm9, %v13872_v20  ;;  %8868 = vmatmul.msk.f32.gmra.mxu3 %vm3492_vm9, %v13872_v20 }
 0x9a7   : > { %v4219_v31 = vpop.f32.mrf.mxu0  ;;  %v4332_v41 = vpop.f32.mrf.mxu1 }
 0x9a8   : > { %8908 = vst [vmem:[%s11437_s19 + $0x500] sm:$0xff] %v4219_v31  ;;  %v4445_v52 = vpop.f32.mrf.mxu2  ;;  %v4558_v17 = vpop.f32.mrf.mxu3 }
 0x9a9   : > { %8909 = vst [vmem:[%s11437_s19 + $0x508] sm:$0xff] %v4332_v41 }
 0x9aa   : > { %8910 = vst [vmem:[%s11437_s19 + $0x510] sm:$0xff] %v4445_v52  ;;  %8772 = vmatmul.msk.f32.gmra.mxu0 %vm3492_vm9, %v13872_v20  ;;  %8804 = vmatmul.msk.f32.gmra.mxu1 %vm3492_vm9, %v13872_v20  ;;  %v14467_v52 = vld [vmem:[%s11435_s4 + $0x30] sm:$0xff] }
 0x9ab   : > { %8911 = vst [vmem:[%s11437_s19 + $0x518] sm:$0xff] %v4558_v17 }
 0x9ad   : > { %8837 = vmatmul.msk.f32.gmra.mxu2 %vm3492_vm9, %v13887_v23  ;;  %8869 = vmatmul.msk.f32.gmra.mxu3 %vm3492_vm9, %v13887_v23 }
 0x9af   : > { %v4222_v0 = vpop.f32.mrf.mxu0  ;;  %v4335_v33 = vpop.f32.mrf.mxu1 }
 0x9b0   : > { %8912 = vst [vmem:[%s11437_s19 + $0x520] sm:$0xff] %v4222_v0  ;;  %v4448_v11 = vpop.f32.mrf.mxu2  ;;  %v4561_v45 = vpop.f32.mrf.mxu3 }
 0x9b1   : > { %8913 = vst [vmem:[%s11437_s19 + $0x528] sm:$0xff] %v4335_v33 }
 0x9b2   : > { %8914 = vst [vmem:[%s11437_s19 + $0x530] sm:$0xff] %v4448_v11  ;;  %8773 = vmatmul.msk.f32.gmra.mxu0 %vm3492_vm9, %v13887_v23  ;;  %8805 = vmatmul.msk.f32.gmra.mxu1 %vm3492_vm9, %v13887_v23 }
 0x9b3   : > { %8915 = vst [vmem:[%s11437_s19 + $0x538] sm:$0xff] %v4561_v45  ;;  %v14482_v45 = vld [vmem:[%s11435_s4 + $0x38] sm:$0xff] }
 0x9b5   : > { %8838 = vmatmul.msk.f32.gmra.mxu2 %vm3492_vm9, %v13902_v18  ;;  %8870 = vmatmul.msk.f32.gmra.mxu3 %vm3492_vm9, %v13902_v18 }
 0x9b7   : > { %v4225_v20 = vpop.f32.mrf.mxu0  ;;  %v4338_v42 = vpop.f32.mrf.mxu1 }
 0x9b8   : > { %8916 = vst [vmem:[%s11437_s19 + $0x540] sm:$0xff] %v4225_v20  ;;  %v4451_v60 = vpop.f32.mrf.mxu2  ;;  %v4564_v38 = vpop.f32.mrf.mxu3 }
 0x9b9   : > { %8917 = vst [vmem:[%s11437_s19 + $0x548] sm:$0xff] %v4338_v42 }
 0x9ba   : > { %8918 = vst [vmem:[%s11437_s19 + $0x550] sm:$0xff] %v4451_v60  ;;  %8774 = vmatmul.msk.f32.gmra.mxu0 %vm3492_vm9, %v13902_v18  ;;  %8806 = vmatmul.msk.f32.gmra.mxu1 %vm3492_vm9, %v13902_v18  ;;  %v5356_v18 = vld [vmem:[#allocation2 + $0xf0] sm:$0xff] }
 0x9bb   : > { %8919 = vst [vmem:[%s11437_s19 + $0x558] sm:$0xff] %v4564_v38  ;;  %5598 = vmatpush.msrb.mxu2 %v5356_v18 }
 0x9bd   : > { %8839 = vmatmul.msk.f32.gmra.mxu2 %vm3492_vm9, %v13917_v12  ;;  %8871 = vmatmul.msk.f32.gmra.mxu3 %vm3492_vm9, %v13917_v12 }
 0x9bf   : > { %v4228_v23 = vpop.f32.mrf.mxu0  ;;  %v4341_v54 = vpop.f32.mrf.mxu1 }
 0x9c0   : > { %8920 = vst [vmem:[%s11437_s19 + $0x560] sm:$0xff] %v4228_v23  ;;  %v4454_v4 = vpop.f32.mrf.mxu2  ;;  %v4567_v3 = vpop.f32.mrf.mxu3  ;;  %v14497_v23 = vld [vmem:[%s11435_s4 + $0x40] sm:$0xff] }
 0x9c1   : > { %8921 = vst [vmem:[%s11437_s19 + $0x568] sm:$0xff] %v4341_v54 }
 0x9c2   : > { %8922 = vst [vmem:[%s11437_s19 + $0x570] sm:$0xff] %v4454_v4  ;;  %8775 = vmatmul.msk.f32.gmra.mxu0 %vm3492_vm9, %v13917_v12  ;;  %8807 = vmatmul.msk.f32.gmra.mxu1 %vm3492_vm9, %v13917_v12  ;;  %v5354_v12 = vld [vmem:[#allocation2 + $0x1e0] sm:$0xff] }
 0x9c3   : > { %8923 = vst [vmem:[%s11437_s19 + $0x578] sm:$0xff] %v4567_v3  ;;  %5372 = vmatpush.msrb.mxu0 %v5354_v12  ;;  %v14527_v12 = vld [vmem:[%s11435_s4 + $0x50] sm:$0xff] }
 0x9c5   : > { %8840 = vmatmul.msk.f32.gmra.mxu2 %vm3492_vm9, %v13932_v10  ;;  %8872 = vmatmul.msk.f32.gmra.mxu3 %vm3492_vm9, %v13932_v10 }
 0x9c7   : > { %v4231_v25 = vpop.f32.mrf.mxu0  ;;  %v4344_v43 = vpop.f32.mrf.mxu1 }
 0x9c8   : > { %8924 = vst [vmem:[%s11437_s19 + $0x580] sm:$0xff] %v4231_v25  ;;  %v4457_v62 = vpop.f32.mrf.mxu2  ;;  %v4570_v22 = vpop.f32.mrf.mxu3 }
 0x9c9   : > { %8925 = vst [vmem:[%s11437_s19 + $0x588] sm:$0xff] %v4344_v43 }
 0x9ca   : > { %8926 = vst [vmem:[%s11437_s19 + $0x590] sm:$0xff] %v4457_v62  ;;  %8776 = vmatmul.msk.f32.gmra.mxu0 %vm3492_vm9, %v13932_v10  ;;  %8808 = vmatmul.msk.f32.gmra.mxu1 %vm3492_vm9, %v13932_v10 }
 0x9cb   : > { %8927 = vst [vmem:[%s11437_s19 + $0x598] sm:$0xff] %v4570_v22 }
 0x9cd   : > { %8841 = vmatmul.msk.f32.gmra.mxu2 %vm3492_vm9, %v13947_v27  ;;  %8873 = vmatmul.msk.f32.gmra.mxu3 %vm3492_vm9, %v13947_v27 }
 0x9cf   : > { %v4234_v40 = vpop.f32.mrf.mxu0  ;;  %v4347_v56 = vpop.f32.mrf.mxu1 }
 0x9d0   : > { %8928 = vst [vmem:[%s11437_s19 + $0x5a0] sm:$0xff] %v4234_v40  ;;  %v4460_v6 = vpop.f32.mrf.mxu2  ;;  %v4573_v10 = vpop.f32.mrf.mxu3 }
 0x9d1   : > { %8929 = vst [vmem:[%s11437_s19 + $0x5a8] sm:$0xff] %v4347_v56 }
 0x9d2   : > { %8930 = vst [vmem:[%s11437_s19 + $0x5b0] sm:$0xff] %v4460_v6  ;;  %8777 = vmatmul.msk.f32.gmra.mxu0 %vm3492_vm9, %v13947_v27  ;;  %8809 = vmatmul.msk.f32.gmra.mxu1 %vm3492_vm9, %v13947_v27 }
 0x9d3   : > { %8931 = vst [vmem:[%s11437_s19 + $0x5b8] sm:$0xff] %v4573_v10  ;;  %v14542_v10 = vld [vmem:[%s11435_s4 + $0x58] sm:$0xff] }
 0x9d5   : > { %8842 = vmatmul.msk.f32.gmra.mxu2 %vm3492_vm9, %v13962_v21  ;;  %8874 = vmatmul.msk.f32.gmra.mxu3 %vm3492_vm9, %v13962_v21 }
 0x9d7   : > { %v4237_v51 = vpop.f32.mrf.mxu0  ;;  %v4350_v24 = vpop.f32.mrf.mxu1 }
 0x9d8   : > { %8932 = vst [vmem:[%s11437_s19 + $0x5c0] sm:$0xff] %v4237_v51  ;;  %v4463_v5 = vpop.f32.mrf.mxu2  ;;  %v4576_v49 = vpop.f32.mrf.mxu3 }
 0x9d9   : > { %8933 = vst [vmem:[%s11437_s19 + $0x5c8] sm:$0xff] %v4350_v24 }
 0x9da   : > { %8934 = vst [vmem:[%s11437_s19 + $0x5d0] sm:$0xff] %v4463_v5  ;;  %8778 = vmatmul.msk.f32.gmra.mxu0 %vm3492_vm9, %v13962_v21  ;;  %8810 = vmatmul.msk.f32.gmra.mxu1 %vm3492_vm9, %v13962_v21  ;;  %v14377_v21 = vld [vmem:[%s11435_s4] sm:$0xff] }
 0x9db   : > { %8935 = vst [vmem:[%s11437_s19 + $0x5d8] sm:$0xff] %v4576_v49 }
 0x9dd   : > { %8843 = vmatmul.msk.f32.gmra.mxu2 %vm3492_vm9, %v13977_v55  ;;  %8875 = vmatmul.msk.f32.gmra.mxu3 %vm3492_vm9, %v13977_v55 }
 0x9df   : > { %v4240_v27 = vpop.f32.mrf.mxu0  ;;  %v4353_v46 = vpop.f32.mrf.mxu1 }
 0x9e0   : > { %8936 = vst [vmem:[%s11437_s19 + $0x5e0] sm:$0xff] %v4240_v27  ;;  %v4466_v30 = vpop.f32.mrf.mxu2  ;;  %v4579_v13 = vpop.f32.mrf.mxu3  ;;  %v14557_v27 = vld [vmem:[%s11435_s4 + $0x60] sm:$0xff] }
 0x9e1   : > { %8937 = vst [vmem:[%s11437_s19 + $0x5e8] sm:$0xff] %v4353_v46  ;;  %v5352_v46 = vld [vmem:[#allocation2 + $0x160] sm:$0xff] }
 0x9e2   : > { %8938 = vst [vmem:[%s11437_s19 + $0x5f0] sm:$0xff] %v4466_v30  ;;  %8779 = vmatmul.msk.f32.gmra.mxu0 %vm3492_vm9, %v13977_v55  ;;  %8811 = vmatmul.msk.f32.gmra.mxu1 %vm3492_vm9, %v13977_v55  ;;  %v14392_v55 = vld [vmem:[%s11435_s4 + $0x8] sm:$0xff]  ;;  %v5353_v30 = vld [vmem:[#allocation2 + $0x30] sm:$0xff] }
 0x9e3   : > { %8939 = vst [vmem:[%s11437_s19 + $0x5f8] sm:$0xff] %v4579_v13  ;;  %5599 = vmatpush.msrb.mxu2 %v5352_v46  ;;  %5712 = vmatpush.msrb.mxu3 %v5353_v30 }
 0x9e5   : > { %9068 = vmatmul.msk.f32.vlgmr.msra.gmra.mxu2 %vm3492_vm9, %v14377_v21  ;;  %9100 = vmatmul.msk.f32.vlgmr.msra.gmra.mxu3 %vm3492_vm9, %v14377_v21 }
 0x9e7   : > { %v4243_v48 = vpop.f32.mrf.mxu0  ;;  %v4356_v16 = vpop.f32.mrf.mxu1 }
 0x9e8   : > { %8940 = vst [vmem:[%s11437_s19 + $0x600] sm:$0xff] %v4243_v48  ;;  %v4469_v57 = vpop.f32.mrf.mxu2  ;;  %v4582_v63 = vpop.f32.mrf.mxu3 }
 0x9e9   : > { %8941 = vst [vmem:[%s11437_s19 + $0x608] sm:$0xff] %v4356_v16 }
 0x9ea   : > { %8942 = vst [vmem:[%s11437_s19 + $0x610] sm:$0xff] %v4469_v57  ;;  %9004 = vmatmul.msk.f32.vlgmr.msra.gmra.mxu0 %vm3492_vm9, %v14377_v21  ;;  %9036 = vmatmul.msk.f32.vlgmr.msra.gmra.mxu1 %vm3492_vm9, %v14377_v21 }
 0x9eb   : > { %8943 = vst [vmem:[%s11437_s19 + $0x618] sm:$0xff] %v4582_v63  ;;  %v5350_v63 = vld [vmem:[#allocation2 + $0x1e8] sm:$0xff] }
 0x9ec   : > { %5373 = vmatpush.msrb.mxu0 %v5350_v63 }
 0x9ed   : > { %9069 = vmatmul.msk.f32.gmra.mxu2 %vm3492_vm9, %v14392_v55  ;;  %9101 = vmatmul.msk.f32.gmra.mxu3 %vm3492_vm9, %v14392_v55 }
 0x9ef   : > { %v4246_v8 = vpop.f32.mrf.mxu0  ;;  %v4359_v47 = vpop.f32.mrf.mxu1 }
 0x9f0   : > { %8944 = vst [vmem:[%s11437_s19 + $0x620] sm:$0xff] %v4246_v8  ;;  %v4472_v35 = vpop.f32.mrf.mxu2  ;;  %v4585_v29 = vpop.f32.mrf.mxu3  ;;  %v5351_v8 = vld [vmem:[#allocation2 + $0xf8] sm:$0xff] }
 0x9f1   : > { %8945 = vst [vmem:[%s11437_s19 + $0x628] sm:$0xff] %v4359_v47  ;;  %5486 = vmatpush.msrb.mxu1 %v5351_v8  ;;  %v14572_v47 = vld [vmem:[%s11435_s4 + $0x68] sm:$0xff]  ;;  %v14722_v8 = vld [vmem:[%s11435_s4 + $0xb8] sm:$0xff] }
 0x9f2   : > { %8946 = vst [vmem:[%s11437_s19 + $0x630] sm:$0xff] %v4472_v35  ;;  %9005 = vmatmul.msk.f32.gmra.mxu0 %vm3492_vm9, %v14392_v55  ;;  %9037 = vmatmul.msk.f32.gmra.mxu1 %vm3492_vm9, %v14392_v55 }
 0x9f3   : > { %8947 = vst [vmem:[%s11437_s19 + $0x638] sm:$0xff] %v4585_v29 }
 0x9f5   : > { %9070 = vmatmul.msk.f32.gmra.mxu2 %vm3492_vm9, %v14407_v9  ;;  %9102 = vmatmul.msk.f32.gmra.mxu3 %vm3492_vm9, %v14407_v9 }
 0x9f7   : > { %v4249_v58 = vpop.f32.mrf.mxu0  ;;  %v4362_v19 = vpop.f32.mrf.mxu1 }
 0x9f8   : > { %8948 = vst [vmem:[%s11437_s19 + $0x640] sm:$0xff] %v4249_v58  ;;  %v4475_v15 = vpop.f32.mrf.mxu2  ;;  %v4588_v26 = vpop.f32.mrf.mxu3 }
 0x9f9   : > { %8949 = vst [vmem:[%s11437_s19 + $0x648] sm:$0xff] %v4362_v19 }
 0x9fa   : > { %8950 = vst [vmem:[%s11437_s19 + $0x650] sm:$0xff] %v4475_v15  ;;  %9006 = vmatmul.msk.f32.gmra.mxu0 %vm3492_vm9, %v14407_v9  ;;  %9038 = vmatmul.msk.f32.gmra.mxu1 %vm3492_vm9, %v14407_v9  ;;  %v14587_v15 = vld [vmem:[%s11435_s4 + $0x70] sm:$0xff] }
 0x9fb   : > { %8951 = vst [vmem:[%s11437_s19 + $0x658] sm:$0xff] %v4588_v26 }
 0x9fd   : > { %9071 = vmatmul.msk.f32.gmra.mxu2 %vm3492_vm9, %v14422_v50  ;;  %9103 = vmatmul.msk.f32.gmra.mxu3 %vm3492_vm9, %v14422_v50 }
 0x9ff   : > { %v4252_v7 = vpop.f32.mrf.mxu0  ;;  %v4365_v2 = vpop.f32.mrf.mxu1 }
 0xa00   : > { %8952 = vst [vmem:[%s11437_s19 + $0x660] sm:$0xff] %v4252_v7  ;;  %v4478_v34 = vpop.f32.mrf.mxu2  ;;  %v4591_v37 = vpop.f32.mrf.mxu3 }
 0xa01   : > { %8953 = vst [vmem:[%s11437_s19 + $0x668] sm:$0xff] %v4365_v2 }
 0xa02   : > { %8954 = vst [vmem:[%s11437_s19 + $0x670] sm:$0xff] %v4478_v34  ;;  %9007 = vmatmul.msk.f32.gmra.mxu0 %vm3492_vm9, %v14422_v50  ;;  %9039 = vmatmul.msk.f32.gmra.mxu1 %vm3492_vm9, %v14422_v50 }
 0xa03   : > { %8955 = vst [vmem:[%s11437_s19 + $0x678] sm:$0xff] %v4591_v37  ;;  %v14602_v37 = vld [vmem:[%s11435_s4 + $0x78] sm:$0xff] }
 0xa05   : > { %9072 = vmatmul.msk.f32.gmra.mxu2 %vm3492_vm9, %v14437_v61  ;;  %9104 = vmatmul.msk.f32.gmra.mxu3 %vm3492_vm9, %v14437_v61 }
 0xa07   : > { %v4255_v39 = vpop.f32.mrf.mxu0  ;;  %v4368_v14 = vpop.f32.mrf.mxu1 }
 0xa08   : > { %8956 = vst [vmem:[%s11437_s19 + $0x680] sm:$0xff] %v4255_v39  ;;  %v4481_v1 = vpop.f32.mrf.mxu2  ;;  %v4594_v59 = vpop.f32.mrf.mxu3 }
 0xa09   : > { %8957 = vst [vmem:[%s11437_s19 + $0x688] sm:$0xff] %v4368_v14 }
 0xa0a   : > { %8958 = vst [vmem:[%s11437_s19 + $0x690] sm:$0xff] %v4481_v1  ;;  %9008 = vmatmul.msk.f32.gmra.mxu0 %vm3492_vm9, %v14437_v61  ;;  %9040 = vmatmul.msk.f32.gmra.mxu1 %vm3492_vm9, %v14437_v61 }
 0xa0b   : > { %8959 = vst [vmem:[%s11437_s19 + $0x698] sm:$0xff] %v4594_v59 }
 0xa0d   : > { %9073 = vmatmul.msk.f32.gmra.mxu2 %vm3492_vm9, %v14452_v28  ;;  %9105 = vmatmul.msk.f32.gmra.mxu3 %vm3492_vm9, %v14452_v28 }
 0xa0f   : > { %v4258_v36 = vpop.f32.mrf.mxu0  ;;  %v4371_v53 = vpop.f32.mrf.mxu1 }
 0xa10   : > { %8960 = vst [vmem:[%s11437_s19 + $0x6a0] sm:$0xff] %v4258_v36  ;;  %v4484_v31 = vpop.f32.mrf.mxu2  ;;  %v4597_v41 = vpop.f32.mrf.mxu3  ;;  %v14617_v36 = vld [vmem:[%s11435_s4 + $0x80] sm:$0xff] }
 0xa11   : > { %8961 = vst [vmem:[%s11437_s19 + $0x6a8] sm:$0xff] %v4371_v53 }
 0xa12   : > { %8962 = vst [vmem:[%s11437_s19 + $0x6b0] sm:$0xff] %v4484_v31  ;;  %9009 = vmatmul.msk.f32.gmra.mxu0 %vm3492_vm9, %v14452_v28  ;;  %9041 = vmatmul.msk.f32.gmra.mxu1 %vm3492_vm9, %v14452_v28 }
 0xa13   : > { %8963 = vst [vmem:[%s11437_s19 + $0x6b8] sm:$0xff] %v4597_v41 }
 0xa15   : > { %9074 = vmatmul.msk.f32.gmra.mxu2 %vm3492_vm9, %v14467_v52  ;;  %9106 = vmatmul.msk.f32.gmra.mxu3 %vm3492_vm9, %v14467_v52 }
 0xa17   : > { %v4261_v17 = vpop.f32.mrf.mxu0  ;;  %v4374_v0 = vpop.f32.mrf.mxu1 }
 0xa18   : > { %8964 = vst [vmem:[%s11437_s19 + $0x6c0] sm:$0xff] %v4261_v17  ;;  %v4487_v33 = vpop.f32.mrf.mxu2  ;;  %v4600_v11 = vpop.f32.mrf.mxu3 }
 0xa19   : > { %8965 = vst [vmem:[%s11437_s19 + $0x6c8] sm:$0xff] %v4374_v0  ;;  %v14632_v0 = vld [vmem:[%s11435_s4 + $0x88] sm:$0xff] }
 0xa1a   : > { %8966 = vst [vmem:[%s11437_s19 + $0x6d0] sm:$0xff] %v4487_v33  ;;  %9010 = vmatmul.msk.f32.gmra.mxu0 %vm3492_vm9, %v14467_v52  ;;  %9042 = vmatmul.msk.f32.gmra.mxu1 %vm3492_vm9, %v14467_v52 }
 0xa1b   : > { %8967 = vst [vmem:[%s11437_s19 + $0x6d8] sm:$0xff] %v4600_v11 }
 0xa1d   : > { %9075 = vmatmul.msk.f32.gmra.mxu2 %vm3492_vm9, %v14482_v45  ;;  %9107 = vmatmul.msk.f32.gmra.mxu3 %vm3492_vm9, %v14482_v45 }
 0xa1f   : > { %v4264_v20 = vpop.f32.mrf.mxu0  ;;  %v4377_v42 = vpop.f32.mrf.mxu1 }
 0xa20   : > { %8968 = vst [vmem:[%s11437_s19 + $0x6e0] sm:$0xff] %v4264_v20  ;;  %v4490_v60 = vpop.f32.mrf.mxu2  ;;  %v4603_v38 = vpop.f32.mrf.mxu3 }
 0xa21   : > { %8969 = vst [vmem:[%s11437_s19 + $0x6e8] sm:$0xff] %v4377_v42 }
 0xa22   : > { %8970 = vst [vmem:[%s11437_s19 + $0x6f0] sm:$0xff] %v4490_v60  ;;  %9011 = vmatmul.msk.f32.gmra.mxu0 %vm3492_vm9, %v14482_v45  ;;  %9043 = vmatmul.msk.f32.gmra.mxu1 %vm3492_vm9, %v14482_v45  ;;  %v14647_v60 = vld [vmem:[%s11435_s4 + $0x90] sm:$0xff] }
 0xa23   : > { %8971 = vst [vmem:[%s11437_s19 + $0x6f8] sm:$0xff] %v4603_v38 }
 0xa25   : > { %9076 = vmatmul.msk.f32.gmra.mxu2 %vm3492_vm9, %v14497_v23  ;;  %9108 = vmatmul.msk.f32.gmra.mxu3 %vm3492_vm9, %v14497_v23 }
 0xa27   : > { %v4267_v54 = vpop.f32.mrf.mxu0  ;;  %v4380_v4 = vpop.f32.mrf.mxu1 }
 0xa28   : > { %8972 = vst [vmem:[%s11437_s19 + $0x700] sm:$0xff] %v4267_v54  ;;  %v4493_v3 = vpop.f32.mrf.mxu2  ;;  %v4606_v18 = vpop.f32.mrf.mxu3 }
 0xa29   : > { %8973 = vst [vmem:[%s11437_s19 + $0x708] sm:$0xff] %v4380_v4 }
 0xa2a   : > { %8974 = vst [vmem:[%s11437_s19 + $0x710] sm:$0xff] %v4493_v3  ;;  %9012 = vmatmul.msk.f32.gmra.mxu0 %vm3492_vm9, %v14497_v23  ;;  %9044 = vmatmul.msk.f32.gmra.mxu1 %vm3492_vm9, %v14497_v23 }
 0xa2b   : > { %8975 = vst [vmem:[%s11437_s19 + $0x718] sm:$0xff] %v4606_v18  ;;  %v14662_v18 = vld [vmem:[%s11435_s4 + $0x98] sm:$0xff] }
 0xa2d   : > { %9077 = vmatmul.msk.f32.gmra.mxu2 %vm3492_vm9, %v14512_v32  ;;  %9109 = vmatmul.msk.f32.gmra.mxu3 %vm3492_vm9, %v14512_v32 }
 0xa2f   : > { %v4270_v25 = vpop.f32.mrf.mxu0  ;;  %v4383_v43 = vpop.f32.mrf.mxu1 }
 0xa30   : > { %8976 = vst [vmem:[%s11437_s19 + $0x720] sm:$0xff] %v4270_v25  ;;  %v4496_v62 = vpop.f32.mrf.mxu2  ;;  %v4609_v22 = vpop.f32.mrf.mxu3 }
 0xa31   : > { %8977 = vst [vmem:[%s11437_s19 + $0x728] sm:$0xff] %v4383_v43 }
 0xa32   : > { %8978 = vst [vmem:[%s11437_s19 + $0x730] sm:$0xff] %v4496_v62  ;;  %9013 = vmatmul.msk.f32.gmra.mxu0 %vm3492_vm9, %v14512_v32  ;;  %9045 = vmatmul.msk.f32.gmra.mxu1 %vm3492_vm9, %v14512_v32 }
 0xa33   : > { %8979 = vst [vmem:[%s11437_s19 + $0x738] sm:$0xff] %v4609_v22 }
 0xa35   : > { %9078 = vmatmul.msk.f32.gmra.mxu2 %vm3492_vm9, %v14527_v12  ;;  %9110 = vmatmul.msk.f32.gmra.mxu3 %vm3492_vm9, %v14527_v12 }
 0xa37   : > { %v4273_v44 = vpop.f32.mrf.mxu0  ;;  %v4386_v40 = vpop.f32.mrf.mxu1 }
 0xa38   : > { %8980 = vst [vmem:[%s11437_s19 + $0x740] sm:$0xff] %v4273_v44  ;;  %v4499_v56 = vpop.f32.mrf.mxu2  ;;  %v4612_v6 = vpop.f32.mrf.mxu3  ;;  %v14677_v44 = vld [vmem:[%s11435_s4 + $0xa0] sm:$0xff] }
 0xa39   : > { %8981 = vst [vmem:[%s11437_s19 + $0x748] sm:$0xff] %v4386_v40 }
 0xa3a   : > { %8982 = vst [vmem:[%s11437_s19 + $0x750] sm:$0xff] %v4499_v56  ;;  %9014 = vmatmul.msk.f32.gmra.mxu0 %vm3492_vm9, %v14527_v12  ;;  %9046 = vmatmul.msk.f32.gmra.mxu1 %vm3492_vm9, %v14527_v12 }
 0xa3b   : > { %8983 = vst [vmem:[%s11437_s19 + $0x758] sm:$0xff] %v4612_v6 }
 0xa3d   : > { %9079 = vmatmul.msk.f32.gmra.mxu2 %vm3492_vm9, %v14542_v10  ;;  %9111 = vmatmul.msk.f32.gmra.mxu3 %vm3492_vm9, %v14542_v10 }
 0xa3f   : > { %v4276_v51 = vpop.f32.mrf.mxu0  ;;  %v4389_v24 = vpop.f32.mrf.mxu1 }
 0xa40   : > { %8984 = vst [vmem:[%s11437_s19 + $0x760] sm:$0xff] %v4276_v51  ;;  %v4502_v5 = vpop.f32.mrf.mxu2  ;;  %v4615_v49 = vpop.f32.mrf.mxu3 }
 0xa41   : > { %8985 = vst [vmem:[%s11437_s19 + $0x768] sm:$0xff] %v4389_v24  ;;  %v14692_v24 = vld [vmem:[%s11435_s4 + $0xa8] sm:$0xff] }
 0xa42   : > { %8986 = vst [vmem:[%s11437_s19 + $0x770] sm:$0xff] %v4502_v5  ;;  %9015 = vmatmul.msk.f32.gmra.mxu0 %vm3492_vm9, %v14542_v10  ;;  %9047 = vmatmul.msk.f32.gmra.mxu1 %vm3492_vm9, %v14542_v10 }
 0xa43   : > { %8987 = vst [vmem:[%s11437_s19 + $0x778] sm:$0xff] %v4615_v49 }
 0xa45   : > { %9080 = vmatmul.msk.f32.gmra.mxu2 %vm3492_vm9, %v14557_v27  ;;  %9112 = vmatmul.msk.f32.gmra.mxu3 %vm3492_vm9, %v14557_v27 }
 0xa47   : > { %v4279_v13 = vpop.f32.mrf.mxu0  ;;  %v4392_v48 = vpop.f32.mrf.mxu1 }
 0xa48   : > { %8988 = vst [vmem:[%s11437_s19 + $0x780] sm:$0xff] %v4279_v13  ;;  %v4505_v16 = vpop.f32.mrf.mxu2  ;;  %v4618_v57 = vpop.f32.mrf.mxu3  ;;  %v14707_v13 = vld [vmem:[%s11435_s4 + $0xb0] sm:$0xff] }
 0xa49   : > { %8989 = vst [vmem:[%s11437_s19 + $0x788] sm:$0xff] %v4392_v48 }
 0xa4a   : > { %8990 = vst [vmem:[%s11437_s19 + $0x790] sm:$0xff] %v4505_v16  ;;  %9016 = vmatmul.msk.f32.gmra.mxu0 %vm3492_vm9, %v14557_v27  ;;  %9048 = vmatmul.msk.f32.gmra.mxu1 %vm3492_vm9, %v14557_v27 }
 0xa4b   : > { %8991 = vst [vmem:[%s11437_s19 + $0x798] sm:$0xff] %v4618_v57 }
 0xa4d   : > { %9081 = vmatmul.msk.f32.gmra.mxu2 %vm3492_vm9, %v14572_v47  ;;  %9113 = vmatmul.msk.f32.gmra.mxu3 %vm3492_vm9, %v14572_v47 }
 0xa4f   : > { %v4282_v35 = vpop.f32.mrf.mxu0  ;;  %v4395_v29 = vpop.f32.mrf.mxu1 }
 0xa50   : > { %8992 = vst [vmem:[%s11437_s19 + $0x7a0] sm:$0xff] %v4282_v35  ;;  %v4508_v58 = vpop.f32.mrf.mxu2  ;;  %v4621_v19 = vpop.f32.mrf.mxu3 }
 0xa51   : > { %8993 = vst [vmem:[%s11437_s19 + $0x7a8] sm:$0xff] %v4395_v29 }
 0xa52   : > { %8994 = vst [vmem:[%s11437_s19 + $0x7b0] sm:$0xff] %v4508_v58  ;;  %9017 = vmatmul.msk.f32.gmra.mxu0 %vm3492_vm9, %v14572_v47  ;;  %9049 = vmatmul.msk.f32.gmra.mxu1 %vm3492_vm9, %v14572_v47 }
 0xa53   : > { %8995 = vst [vmem:[%s11437_s19 + $0x7b8] sm:$0xff] %v4621_v19 }
 0xa55   : > { %9082 = vmatmul.msk.f32.gmra.mxu2 %vm3492_vm9, %v14587_v15  ;;  %9114 = vmatmul.msk.f32.gmra.mxu3 %vm3492_vm9, %v14587_v15 }
 0xa57   : > { %v4285_v26 = vpop.f32.mrf.mxu0  ;;  %v4398_v7 = vpop.f32.mrf.mxu1 }
 0xa58   : > { %8996 = vst [vmem:[%s11437_s19 + $0x7c0] sm:$0xff] %v4285_v26  ;;  %v4511_v2 = vpop.f32.mrf.mxu2  ;;  %v4624_v34 = vpop.f32.mrf.mxu3  ;;  %v14737_v26 = vld [vmem:[%s11435_s4 + $0xc0] sm:$0xff] }
 0xa59   : > { %8997 = vst [vmem:[%s11437_s19 + $0x7c8] sm:$0xff] %v4398_v7 }
 0xa5a   : > { %8998 = vst [vmem:[%s11437_s19 + $0x7d0] sm:$0xff] %v4511_v2  ;;  %9018 = vmatmul.msk.f32.gmra.mxu0 %vm3492_vm9, %v14587_v15  ;;  %9050 = vmatmul.msk.f32.gmra.mxu1 %vm3492_vm9, %v14587_v15 }
 0xa5b   : > { %8999 = vst [vmem:[%s11437_s19 + $0x7d8] sm:$0xff] %v4624_v34 }
 0xa5d   : > { %9083 = vmatmul.msk.f32.gmra.mxu2 %vm3492_vm9, %v14602_v37  ;;  %9115 = vmatmul.msk.f32.gmra.mxu3 %vm3492_vm9, %v14602_v37 }
 0xa5f   : > { %v4288_v39 = vpop.f32.mrf.mxu0  ;;  %v4401_v14 = vpop.f32.mrf.mxu1 }
 0xa60   : > { %9000 = vst [vmem:[%s11437_s19 + $0x7e0] sm:$0xff] %v4288_v39  ;;  %v4514_v1 = vpop.f32.mrf.mxu2  ;;  %v4627_v59 = vpop.f32.mrf.mxu3 }
 0xa61   : > { %9001 = vst [vmem:[%s11437_s19 + $0x7e8] sm:$0xff] %v4401_v14  ;;  %v14752_v14 = vld [vmem:[%s11435_s4 + $0xc8] sm:$0xff] }
 0xa62   : > { %9002 = vst [vmem:[%s11437_s19 + $0x7f0] sm:$0xff] %v4514_v1  ;;  %9019 = vmatmul.msk.f32.gmra.mxu0 %vm3492_vm9, %v14602_v37  ;;  %9051 = vmatmul.msk.f32.gmra.mxu1 %vm3492_vm9, %v14602_v37 }
 0xa63   : > { %9003 = vst [vmem:[%s11437_s19 + $0x7f8] sm:$0xff] %v4627_v59 }
 0xa65   : > { %9084 = vmatmul.msk.f32.gmra.mxu2 %vm3492_vm9, %v14617_v36  ;;  %9116 = vmatmul.msk.f32.gmra.mxu3 %vm3492_vm9, %v14617_v36 }
 0xa67   : > { %v4785_v53 = vpop.f32.mrf.mxu0  ;;  %v4898_v31 = vpop.f32.mrf.mxu1 }
 0xa68   : > { %9132 = vst [vmem:[%s11437_s19 + $0x800] sm:$0xff] %v4785_v53  ;;  %v5011_v41 = vpop.f32.mrf.mxu2  ;;  %v5124_v17 = vpop.f32.mrf.mxu3 }
 0xa69   : > { %9133 = vst [vmem:[%s11437_s19 + $0x808] sm:$0xff] %v4898_v31 }
 0xa6a   : > { %9134 = vst [vmem:[%s11437_s19 + $0x810] sm:$0xff] %v5011_v41  ;;  %9020 = vmatmul.msk.f32.gmra.mxu0 %vm3492_vm9, %v14617_v36  ;;  %9052 = vmatmul.msk.f32.gmra.mxu1 %vm3492_vm9, %v14617_v36  ;;  %v14767_v41 = vld [vmem:[%s11435_s4 + $0xd0] sm:$0xff] }
 0xa6b   : > { %9135 = vst [vmem:[%s11437_s19 + $0x818] sm:$0xff] %v5124_v17 }
 0xa6d   : > { %9085 = vmatmul.msk.f32.gmra.mxu2 %vm3492_vm9, %v14632_v0  ;;  %9117 = vmatmul.msk.f32.gmra.mxu3 %vm3492_vm9, %v14632_v0 }
 0xa6f   : > { %v4788_v33 = vpop.f32.mrf.mxu0  ;;  %v4901_v11 = vpop.f32.mrf.mxu1 }
 0xa70   : > { %9136 = vst [vmem:[%s11437_s19 + $0x820] sm:$0xff] %v4788_v33  ;;  %v5014_v20 = vpop.f32.mrf.mxu2  ;;  %v5127_v42 = vpop.f32.mrf.mxu3 }
 0xa71   : > { %9137 = vst [vmem:[%s11437_s19 + $0x828] sm:$0xff] %v4901_v11 }
 0xa72   : > { %9138 = vst [vmem:[%s11437_s19 + $0x830] sm:$0xff] %v5014_v20  ;;  %9021 = vmatmul.msk.f32.gmra.mxu0 %vm3492_vm9, %v14632_v0  ;;  %9053 = vmatmul.msk.f32.gmra.mxu1 %vm3492_vm9, %v14632_v0 }
 0xa73   : > { %9139 = vst [vmem:[%s11437_s19 + $0x838] sm:$0xff] %v5127_v42  ;;  %v14782_v42 = vld [vmem:[%s11435_s4 + $0xd8] sm:$0xff] }
 0xa75   : > { %9086 = vmatmul.msk.f32.gmra.mxu2 %vm3492_vm9, %v14647_v60  ;;  %9118 = vmatmul.msk.f32.gmra.mxu3 %vm3492_vm9, %v14647_v60 }
 0xa77   : > { %v4791_v38 = vpop.f32.mrf.mxu0  ;;  %v4904_v54 = vpop.f32.mrf.mxu1 }
 0xa78   : > { %9140 = vst [vmem:[%s11437_s19 + $0x840] sm:$0xff] %v4791_v38  ;;  %v5017_v4 = vpop.f32.mrf.mxu2  ;;  %v5130_v3 = vpop.f32.mrf.mxu3 }
 0xa79   : > { %9141 = vst [vmem:[%s11437_s19 + $0x848] sm:$0xff] %v4904_v54 }
 0xa7a   : > { %9142 = vst [vmem:[%s11437_s19 + $0x850] sm:$0xff] %v5017_v4  ;;  %9022 = vmatmul.msk.f32.gmra.mxu0 %vm3492_vm9, %v14647_v60  ;;  %9054 = vmatmul.msk.f32.gmra.mxu1 %vm3492_vm9, %v14647_v60 }
 0xa7b   : > { %9143 = vst [vmem:[%s11437_s19 + $0x858] sm:$0xff] %v5130_v3 }
 0xa7d   : > { %9087 = vmatmul.msk.f32.gmra.mxu2 %vm3492_vm9, %v14662_v18  ;;  %9119 = vmatmul.msk.f32.gmra.mxu3 %vm3492_vm9, %v14662_v18 }
 0xa7f   : > { %v4794_v25 = vpop.f32.mrf.mxu0  ;;  %v4907_v43 = vpop.f32.mrf.mxu1 }
 0xa80   : > { %9144 = vst [vmem:[%s11437_s19 + $0x860] sm:$0xff] %v4794_v25  ;;  %v5020_v62 = vpop.f32.mrf.mxu2  ;;  %v5133_v22 = vpop.f32.mrf.mxu3  ;;  %v14797_v25 = vld [vmem:[%s11435_s4 + $0xe0] sm:$0xff] }
 0xa81   : > { %9145 = vst [vmem:[%s11437_s19 + $0x868] sm:$0xff] %v4907_v43  ;;  %v5946_v43 = vld [vmem:[#allocation2 + $0x20] sm:$0xff] }
 0xa82   : > { %9146 = vst [vmem:[%s11437_s19 + $0x870] sm:$0xff] %v5020_v62  ;;  %9023 = vmatmul.msk.f32.gmra.mxu0 %vm3492_vm9, %v14662_v18  ;;  %9055 = vmatmul.msk.f32.gmra.mxu1 %vm3492_vm9, %v14662_v18  ;;  %v5947_v62 = vld [vmem:[#allocation2 + $0x128] sm:$0xff] }
 0xa83   : > { %9147 = vst [vmem:[%s11437_s19 + $0x878] sm:$0xff] %v5133_v22  ;;  %6188 = vmatpush.msra.mxu2 %v5946_v43  ;;  %6301 = vmatpush.msra.mxu3 %v5947_v62 }
 0xa85   : > { %9088 = vmatmul.msk.f32.gmra.mxu2 %vm3492_vm9, %v14677_v44  ;;  %9120 = vmatmul.msk.f32.gmra.mxu3 %vm3492_vm9, %v14677_v44 }
 0xa87   : > { %v4797_v40 = vpop.f32.mrf.mxu0  ;;  %v4910_v56 = vpop.f32.mrf.mxu1 }
 0xa88   : > { %9148 = vst [vmem:[%s11437_s19 + $0x880] sm:$0xff] %v4797_v40  ;;  %v5023_v6 = vpop.f32.mrf.mxu2  ;;  %v5136_v51 = vpop.f32.mrf.mxu3 }
 0xa89   : > { %9149 = vst [vmem:[%s11437_s19 + $0x888] sm:$0xff] %v4910_v56 }
 0xa8a   : > { %9150 = vst [vmem:[%s11437_s19 + $0x890] sm:$0xff] %v5023_v6  ;;  %9024 = vmatmul.msk.f32.gmra.mxu0 %vm3492_vm9, %v14677_v44  ;;  %9056 = vmatmul.msk.f32.gmra.mxu1 %vm3492_vm9, %v14677_v44 }
 0xa8b   : > { %9151 = vst [vmem:[%s11437_s19 + $0x898] sm:$0xff] %v5136_v51  ;;  %v5944_v51 = vld [vmem:[#allocation2 + $0x40] sm:$0xff] }
 0xa8c   : > { %5962 = vmatpush.msra.mxu0 %v5944_v51 }
 0xa8d   : > { %9089 = vmatmul.msk.f32.gmra.mxu2 %vm3492_vm9, %v14692_v24  ;;  %9121 = vmatmul.msk.f32.gmra.mxu3 %vm3492_vm9, %v14692_v24 }
 0xa8f   : > { %v4800_v5 = vpop.f32.mrf.mxu0  ;;  %v4913_v49 = vpop.f32.mrf.mxu1 }
 0xa90   : > { %9152 = vst [vmem:[%s11437_s19 + $0x8a0] sm:$0xff] %v4800_v5  ;;  %v5026_v46 = vpop.f32.mrf.mxu2  ;;  %v5139_v30 = vpop.f32.mrf.mxu3  ;;  %v5945_v5 = vld [vmem:[#allocation2 + $0x1f8] sm:$0xff] }
 0xa91   : > { %9153 = vst [vmem:[%s11437_s19 + $0x8a8] sm:$0xff] %v4913_v49  ;;  %6075 = vmatpush.msra.mxu1 %v5945_v5  ;;  %v14812_v49 = vld [vmem:[%s11435_s4 + $0xe8] sm:$0xff] }
 0xa92   : > { %9154 = vst [vmem:[%s11437_s19 + $0x8b0] sm:$0xff] %v5026_v46  ;;  %9025 = vmatmul.msk.f32.gmra.mxu0 %vm3492_vm9, %v14692_v24  ;;  %9057 = vmatmul.msk.f32.gmra.mxu1 %vm3492_vm9, %v14692_v24 }
 0xa93   : > { %9155 = vst [vmem:[%s11437_s19 + $0x8b8] sm:$0xff] %v5139_v30 }
 0xa95   : > { %9090 = vmatmul.msk.f32.gmra.mxu2 %vm3492_vm9, %v14707_v13  ;;  %9122 = vmatmul.msk.f32.gmra.mxu3 %vm3492_vm9, %v14707_v13 }
 0xa97   : > { %v4803_v48 = vpop.f32.mrf.mxu0  ;;  %v4916_v16 = vpop.f32.mrf.mxu1 }
 0xa98   : > { %9156 = vst [vmem:[%s11437_s19 + $0x8c0] sm:$0xff] %v4803_v48  ;;  %v5029_v57 = vpop.f32.mrf.mxu2  ;;  %v5142_v63 = vpop.f32.mrf.mxu3 }
 0xa99   : > { %9157 = vst [vmem:[%s11437_s19 + $0x8c8] sm:$0xff] %v4916_v16 }
 0xa9a   : > { %9158 = vst [vmem:[%s11437_s19 + $0x8d0] sm:$0xff] %v5029_v57  ;;  %9026 = vmatmul.msk.f32.gmra.mxu0 %vm3492_vm9, %v14707_v13  ;;  %9058 = vmatmul.msk.f32.gmra.mxu1 %vm3492_vm9, %v14707_v13  ;;  %v14827_v57 = vld [vmem:[%s11435_s4 + $0xf0] sm:$0xff] }
 0xa9b   : > { %9159 = vst [vmem:[%s11437_s19 + $0x8d8] sm:$0xff] %v5142_v63 }
 0xa9d   : > { %9091 = vmatmul.msk.f32.gmra.mxu2 %vm3492_vm9, %v14722_v8  ;;  %9123 = vmatmul.msk.f32.gmra.mxu3 %vm3492_vm9, %v14722_v8 }
 0xa9f   : > { %v4806_v35 = vpop.f32.mrf.mxu0  ;;  %v4919_v29 = vpop.f32.mrf.mxu1 }
 0xaa0   : > { %9160 = vst [vmem:[%s11437_s19 + $0x8e0] sm:$0xff] %v4806_v35  ;;  %v5032_v58 = vpop.f32.mrf.mxu2  ;;  %v5145_v19 = vpop.f32.mrf.mxu3 }
 0xaa1   : > { %9161 = vst [vmem:[%s11437_s19 + $0x8e8] sm:$0xff] %v4919_v29 }
 0xaa2   : > { %9162 = vst [vmem:[%s11437_s19 + $0x8f0] sm:$0xff] %v5032_v58  ;;  %9027 = vmatmul.msk.f32.gmra.mxu0 %vm3492_vm9, %v14722_v8  ;;  %9059 = vmatmul.msk.f32.gmra.mxu1 %vm3492_vm9, %v14722_v8 }
 0xaa3   : > { %9163 = vst [vmem:[%s11437_s19 + $0x8f8] sm:$0xff] %v5145_v19  ;;  %v14842_v19 = vld [vmem:[%s11435_s4 + $0xf8] sm:$0xff] }
 0xaa5   : > { %9092 = vmatmul.msk.f32.gmra.mxu2 %vm3492_vm9, %v14737_v26  ;;  %9124 = vmatmul.msk.f32.gmra.mxu3 %vm3492_vm9, %v14737_v26 }
 0xaa7   : > { %v4809_v7 = vpop.f32.mrf.mxu0  ;;  %v4922_v2 = vpop.f32.mrf.mxu1 }
 0xaa8   : > { %9164 = vst [vmem:[%s11437_s19 + $0x900] sm:$0xff] %v4809_v7  ;;  %v5035_v34 = vpop.f32.mrf.mxu2  ;;  %v5148_v39 = vpop.f32.mrf.mxu3 }
 0xaa9   : > { %9165 = vst [vmem:[%s11437_s19 + $0x908] sm:$0xff] %v4922_v2 }
 0xaaa   : > { %9166 = vst [vmem:[%s11437_s19 + $0x910] sm:$0xff] %v5035_v34  ;;  %9028 = vmatmul.msk.f32.gmra.mxu0 %vm3492_vm9, %v14737_v26  ;;  %9060 = vmatmul.msk.f32.gmra.mxu1 %vm3492_vm9, %v14737_v26 }
 0xaab   : > { %9167 = vst [vmem:[%s11437_s19 + $0x918] sm:$0xff] %v5148_v39 }
 0xaad   : > { %9093 = vmatmul.msk.f32.gmra.mxu2 %vm3492_vm9, %v14752_v14  ;;  %9125 = vmatmul.msk.f32.gmra.mxu3 %vm3492_vm9, %v14752_v14 }
 0xaaf   : > { %v4812_v1 = vpop.f32.mrf.mxu0  ;;  %v4925_v59 = vpop.f32.mrf.mxu1 }
 0xab0   : > { %9168 = vst [vmem:[%s11437_s19 + $0x920] sm:$0xff] %v4812_v1  ;;  %v5038_v53 = vpop.f32.mrf.mxu2  ;;  %v5151_v31 = vpop.f32.mrf.mxu3 }
 0xab1   : > { %9169 = vst [vmem:[%s11437_s19 + $0x928] sm:$0xff] %v4925_v59 }
 0xab2   : > { %9170 = vst [vmem:[%s11437_s19 + $0x930] sm:$0xff] %v5038_v53  ;;  %9029 = vmatmul.msk.f32.gmra.mxu0 %vm3492_vm9, %v14752_v14  ;;  %9061 = vmatmul.msk.f32.gmra.mxu1 %vm3492_vm9, %v14752_v14 }
 0xab3   : > { %9171 = vst [vmem:[%s11437_s19 + $0x938] sm:$0xff] %v5151_v31 }
 0xab5   : > { %9094 = vmatmul.msk.f32.gmra.mxu2 %vm3492_vm9, %v14767_v41  ;;  %9126 = vmatmul.msk.f32.gmra.mxu3 %vm3492_vm9, %v14767_v41 }
 0xab7   : > { %v4815_v17 = vpop.f32.mrf.mxu0  ;;  %v4928_v33 = vpop.f32.mrf.mxu1 }
 0xab8   : > { %9172 = vst [vmem:[%s11437_s19 + $0x940] sm:$0xff] %v4815_v17  ;;  %v5041_v11 = vpop.f32.mrf.mxu2  ;;  %v5154_v20 = vpop.f32.mrf.mxu3 }
 0xab9   : > { %9173 = vst [vmem:[%s11437_s19 + $0x948] sm:$0xff] %v4928_v33 }
 0xaba   : > { %9174 = vst [vmem:[%s11437_s19 + $0x950] sm:$0xff] %v5041_v11  ;;  %9030 = vmatmul.msk.f32.gmra.mxu0 %vm3492_vm9, %v14767_v41  ;;  %9062 = vmatmul.msk.f32.gmra.mxu1 %vm3492_vm9, %v14767_v41 }
 0xabb   : > { %9175 = vst [vmem:[%s11437_s19 + $0x958] sm:$0xff] %v5154_v20 }
 0xabd   : > { %9095 = vmatmul.msk.f32.gmra.mxu2 %vm3492_vm9, %v14782_v42  ;;  %9127 = vmatmul.msk.f32.gmra.mxu3 %vm3492_vm9, %v14782_v42 }
 0xabf   : > { %v4818_v38 = vpop.f32.mrf.mxu0  ;;  %v4931_v54 = vpop.f32.mrf.mxu1 }
 0xac0   : > { %9176 = vst [vmem:[%s11437_s19 + $0x960] sm:$0xff] %v4818_v38  ;;  %v5044_v4 = vpop.f32.mrf.mxu2  ;;  %v5157_v3 = vpop.f32.mrf.mxu3 }
 0xac1   : > { %9177 = vst [vmem:[%s11437_s19 + $0x968] sm:$0xff] %v4931_v54 }
 0xac2   : > { %9178 = vst [vmem:[%s11437_s19 + $0x970] sm:$0xff] %v5044_v4  ;;  %9031 = vmatmul.msk.f32.gmra.mxu0 %vm3492_vm9, %v14782_v42  ;;  %9063 = vmatmul.msk.f32.gmra.mxu1 %vm3492_vm9, %v14782_v42 }
 0xac3   : > { %9179 = vst [vmem:[%s11437_s19 + $0x978] sm:$0xff] %v5157_v3 }
 0xac5   : > { %9096 = vmatmul.msk.f32.gmra.mxu2 %vm3492_vm9, %v14797_v25  ;;  %9128 = vmatmul.msk.f32.gmra.mxu3 %vm3492_vm9, %v14797_v25 }
 0xac7   : > { %v4821_v22 = vpop.f32.mrf.mxu0  ;;  %v4934_v40 = vpop.f32.mrf.mxu1 }
 0xac8   : > { %9180 = vst [vmem:[%s11437_s19 + $0x980] sm:$0xff] %v4821_v22  ;;  %v5047_v56 = vpop.f32.mrf.mxu2  ;;  %v5160_v6 = vpop.f32.mrf.mxu3 }
 0xac9   : > { %9181 = vst [vmem:[%s11437_s19 + $0x988] sm:$0xff] %v4934_v40 }
 0xaca   : > { %9182 = vst [vmem:[%s11437_s19 + $0x990] sm:$0xff] %v5047_v56  ;;  %9032 = vmatmul.msk.f32.gmra.mxu0 %vm3492_vm9, %v14797_v25  ;;  %9064 = vmatmul.msk.f32.gmra.mxu1 %vm3492_vm9, %v14797_v25 }
 0xacb   : > { %9183 = vst [vmem:[%s11437_s19 + $0x998] sm:$0xff] %v5160_v6 }
 0xacd   : > { %9097 = vmatmul.msk.f32.gmra.mxu2 %vm3492_vm9, %v14812_v49  ;;  %9129 = vmatmul.msk.f32.gmra.mxu3 %vm3492_vm9, %v14812_v49 }
 0xacf   : > { %v4824_v46 = vpop.f32.mrf.mxu0  ;;  %v4937_v30 = vpop.f32.mrf.mxu1 }
 0xad0   : > { %9184 = vst [vmem:[%s11437_s19 + $0x9a0] sm:$0xff] %v4824_v46  ;;  %v5050_v48 = vpop.f32.mrf.mxu2  ;;  %v5163_v16 = vpop.f32.mrf.mxu3 }
 0xad1   : > { %9185 = vst [vmem:[%s11437_s19 + $0x9a8] sm:$0xff] %v4937_v30 }
 0xad2   : > { %9186 = vst [vmem:[%s11437_s19 + $0x9b0] sm:$0xff] %v5050_v48  ;;  %9033 = vmatmul.msk.f32.gmra.mxu0 %vm3492_vm9, %v14812_v49  ;;  %9065 = vmatmul.msk.f32.gmra.mxu1 %vm3492_vm9, %v14812_v49 }
 0xad3   : > { %9187 = vst [vmem:[%s11437_s19 + $0x9b8] sm:$0xff] %v5163_v16 }
 0xad5   : > { %9098 = vmatmul.msk.f32.gmra.mxu2 %vm3492_vm9, %v14827_v57  ;;  %9130 = vmatmul.msk.f32.gmra.mxu3 %vm3492_vm9, %v14827_v57 }
 0xad7   : > { %v4827_v63 = vpop.f32.mrf.mxu0  ;;  %v4940_v35 = vpop.f32.mrf.mxu1 }
 0xad8   : > { %9188 = vst [vmem:[%s11437_s19 + $0x9c0] sm:$0xff] %v4827_v63  ;;  %v5053_v29 = vpop.f32.mrf.mxu2  ;;  %v5166_v58 = vpop.f32.mrf.mxu3 }
 0xad9   : > { %9189 = vst [vmem:[%s11437_s19 + $0x9c8] sm:$0xff] %v4940_v35 }
 0xada   : > { %9190 = vst [vmem:[%s11437_s19 + $0x9d0] sm:$0xff] %v5053_v29  ;;  %9034 = vmatmul.msk.f32.gmra.mxu0 %vm3492_vm9, %v14827_v57  ;;  %9066 = vmatmul.msk.f32.gmra.mxu1 %vm3492_vm9, %v14827_v57 }
 0xadb   : > { %9191 = vst [vmem:[%s11437_s19 + $0x9d8] sm:$0xff] %v5166_v58 }
 0xadd   : > { %9099 = vmatmul.msk.f32.gmra.mxu2 %vm3492_vm9, %v14842_v19  ;;  %9131 = vmatmul.msk.f32.gmra.mxu3 %vm3492_vm9, %v14842_v19 }
 0xadf   : > { %v4830_v7 = vpop.f32.mrf.mxu0  ;;  %v4943_v2 = vpop.f32.mrf.mxu1 }
 0xae0   : > { %9192 = vst [vmem:[%s11437_s19 + $0x9e0] sm:$0xff] %v4830_v7  ;;  %v5056_v34 = vpop.f32.mrf.mxu2  ;;  %v5169_v39 = vpop.f32.mrf.mxu3 }
 0xae1   : > { %9193 = vst [vmem:[%s11437_s19 + $0x9e8] sm:$0xff] %v4943_v2 }
 0xae2   : > { %9194 = vst [vmem:[%s11437_s19 + $0x9f0] sm:$0xff] %v5056_v34  ;;  %9035 = vmatmul.msk.f32.gmra.mxu0 %vm3492_vm9, %v14842_v19  ;;  %9067 = vmatmul.msk.f32.gmra.mxu1 %vm3492_vm9, %v14842_v19 }
 0xae3   : > { %9195 = vst [vmem:[%s11437_s19 + $0x9f8] sm:$0xff] %v5169_v39 }
 0xae5   : > { %9324 = vmatmul.msk.f32.vlgmr.msrb.gmra.mxu2 %vm3492_vm9, %v14377_v21  ;;  %9356 = vmatmul.msk.f32.vlgmr.msrb.gmra.mxu3 %vm3492_vm9, %v14377_v21 }
 0xae7   : > { %v4833_v1 = vpop.f32.mrf.mxu0  ;;  %v4946_v59 = vpop.f32.mrf.mxu1 }
 0xae8   : > { %9196 = vst [vmem:[%s11437_s19 + $0xa00] sm:$0xff] %v4833_v1  ;;  %v5059_v53 = vpop.f32.mrf.mxu2  ;;  %v5172_v31 = vpop.f32.mrf.mxu3 }
 0xae9   : > { %9197 = vst [vmem:[%s11437_s19 + $0xa08] sm:$0xff] %v4946_v59 }
 0xaea   : > { %9198 = vst [vmem:[%s11437_s19 + $0xa10] sm:$0xff] %v5059_v53  ;;  %9260 = vmatmul.msk.f32.vlgmr.msrb.gmra.mxu0 %vm3492_vm9, %v14377_v21  ;;  %9292 = vmatmul.msk.f32.vlgmr.msrb.gmra.mxu1 %vm3492_vm9, %v14377_v21 }
 0xaeb   : > { %9199 = vst [vmem:[%s11437_s19 + $0xa18] sm:$0xff] %v5172_v31 }
 0xaed   : > { %9325 = vmatmul.msk.f32.gmra.mxu2 %vm3492_vm9, %v14392_v55  ;;  %9357 = vmatmul.msk.f32.gmra.mxu3 %vm3492_vm9, %v14392_v55 }
 0xaef   : > { %v4836_v17 = vpop.f32.mrf.mxu0  ;;  %v4949_v33 = vpop.f32.mrf.mxu1 }
 0xaf0   : > { %9200 = vst [vmem:[%s11437_s19 + $0xa20] sm:$0xff] %v4836_v17  ;;  %v5062_v11 = vpop.f32.mrf.mxu2  ;;  %v5175_v20 = vpop.f32.mrf.mxu3 }
 0xaf1   : > { %9201 = vst [vmem:[%s11437_s19 + $0xa28] sm:$0xff] %v4949_v33 }
 0xaf2   : > { %9202 = vst [vmem:[%s11437_s19 + $0xa30] sm:$0xff] %v5062_v11  ;;  %9261 = vmatmul.msk.f32.gmra.mxu0 %vm3492_vm9, %v14392_v55  ;;  %9293 = vmatmul.msk.f32.gmra.mxu1 %vm3492_vm9, %v14392_v55  ;;  %v5943_v11 = vld [vmem:[#allocation2 + $0xc8] sm:$0xff] }
 0xaf3   : > { %9203 = vst [vmem:[%s11437_s19 + $0xa38] sm:$0xff] %v5175_v20  ;;  %6302 = vmatpush.msra.mxu3 %v5943_v11 }
 0xaf5   : > { %9326 = vmatmul.msk.f32.gmra.mxu2 %vm3492_vm9, %v14407_v9  ;;  %9358 = vmatmul.msk.f32.gmra.mxu3 %vm3492_vm9, %v14407_v9 }
 0xaf7   : > { %v4839_v21 = vpop.f32.mrf.mxu0  ;;  %v4952_v38 = vpop.f32.mrf.mxu1 }
 0xaf8   : > { %9204 = vst [vmem:[%s11437_s19 + $0xa40] sm:$0xff] %v4839_v21  ;;  %v5065_v54 = vpop.f32.mrf.mxu2  ;;  %v5178_v4 = vpop.f32.mrf.mxu3 }
 0xaf9   : > { %9205 = vst [vmem:[%s11437_s19 + $0xa48] sm:$0xff] %v4952_v38 }
 0xafa   : > { %9206 = vst [vmem:[%s11437_s19 + $0xa50] sm:$0xff] %v5065_v54  ;;  %9262 = vmatmul.msk.f32.gmra.mxu0 %vm3492_vm9, %v14407_v9  ;;  %9294 = vmatmul.msk.f32.gmra.mxu1 %vm3492_vm9, %v14407_v9 }
 0xafb   : > { %9207 = vst [vmem:[%s11437_s19 + $0xa58] sm:$0xff] %v5178_v4  ;;  %v5941_v4 = vld [vmem:[#allocation2 + $0x1d0] sm:$0xff] }
 0xafc   : > { %6076 = vmatpush.msra.mxu1 %v5941_v4 }
 0xafd   : > { %9327 = vmatmul.msk.f32.gmra.mxu2 %vm3492_vm9, %v14422_v50  ;;  %9359 = vmatmul.msk.f32.gmra.mxu3 %vm3492_vm9, %v14422_v50 }
 0xaff   : > { %v4842_v55 = vpop.f32.mrf.mxu0  ;;  %v4955_v3 = vpop.f32.mrf.mxu1 }
 0xb00   : > { %9208 = vst [vmem:[%s11437_s19 + $0xa60] sm:$0xff] %v4842_v55  ;;  %v5068_v43 = vpop.f32.mrf.mxu2  ;;  %v5181_v62 = vpop.f32.mrf.mxu3 }
 0xb01   : > { %9209 = vst [vmem:[%s11437_s19 + $0xa68] sm:$0xff] %v4955_v3 }
 0xb02   : > { %9210 = vst [vmem:[%s11437_s19 + $0xa70] sm:$0xff] %v5068_v43  ;;  %9263 = vmatmul.msk.f32.gmra.mxu0 %vm3492_vm9, %v14422_v50  ;;  %9295 = vmatmul.msk.f32.gmra.mxu1 %vm3492_vm9, %v14422_v50 }
 0xb03   : > { %9211 = vst [vmem:[%s11437_s19 + $0xa78] sm:$0xff] %v5181_v62 }
 0xb05   : > { %9328 = vmatmul.msk.f32.gmra.mxu2 %vm3492_vm9, %v14437_v61  ;;  %9360 = vmatmul.msk.f32.gmra.mxu3 %vm3492_vm9, %v14437_v61 }
 0xb07   : > { %v4845_v9 = vpop.f32.mrf.mxu0  ;;  %v4958_v22 = vpop.f32.mrf.mxu1 }
 0xb08   : > { %9212 = vst [vmem:[%s11437_s19 + $0xa80] sm:$0xff] %v4845_v9  ;;  %v5071_v40 = vpop.f32.mrf.mxu2  ;;  %v5184_v56 = vpop.f32.mrf.mxu3 }
 0xb09   : > { %9213 = vst [vmem:[%s11437_s19 + $0xa88] sm:$0xff] %v4958_v22 }
 0xb0a   : > { %9214 = vst [vmem:[%s11437_s19 + $0xa90] sm:$0xff] %v5071_v40  ;;  %9264 = vmatmul.msk.f32.gmra.mxu0 %vm3492_vm9, %v14437_v61  ;;  %9296 = vmatmul.msk.f32.gmra.mxu1 %vm3492_vm9, %v14437_v61 }
 0xb0b   : > { %9215 = vst [vmem:[%s11437_s19 + $0xa98] sm:$0xff] %v5184_v56 }
 0xb0d   : > { %9329 = vmatmul.msk.f32.gmra.mxu2 %vm3492_vm9, %v14452_v28  ;;  %9361 = vmatmul.msk.f32.gmra.mxu3 %vm3492_vm9, %v14452_v28 }
 0xb0f   : > { %v4848_v50 = vpop.f32.mrf.mxu0  ;;  %v4961_v6 = vpop.f32.mrf.mxu1 }
 0xb10   : > { %9216 = vst [vmem:[%s11437_s19 + $0xaa0] sm:$0xff] %v4848_v50  ;;  %v5074_v51 = vpop.f32.mrf.mxu2  ;;  %v5187_v5 = vpop.f32.mrf.mxu3 }
 0xb11   : > { %9217 = vst [vmem:[%s11437_s19 + $0xaa8] sm:$0xff] %v4961_v6 }
 0xb12   : > { %9218 = vst [vmem:[%s11437_s19 + $0xab0] sm:$0xff] %v5074_v51  ;;  %9265 = vmatmul.msk.f32.gmra.mxu0 %vm3492_vm9, %v14452_v28  ;;  %9297 = vmatmul.msk.f32.gmra.mxu1 %vm3492_vm9, %v14452_v28 }
 0xb13   : > { %9219 = vst [vmem:[%s11437_s19 + $0xab8] sm:$0xff] %v5187_v5 }
 0xb15   : > { %9330 = vmatmul.msk.f32.gmra.mxu2 %vm3492_vm9, %v14467_v52  ;;  %9362 = vmatmul.msk.f32.gmra.mxu3 %vm3492_vm9, %v14467_v52 }
 0xb17   : > { %v4851_v61 = vpop.f32.mrf.mxu0  ;;  %v4964_v46 = vpop.f32.mrf.mxu1 }
 0xb18   : > { %9220 = vst [vmem:[%s11437_s19 + $0xac0] sm:$0xff] %v4851_v61  ;;  %v5077_v30 = vpop.f32.mrf.mxu2  ;;  %v5190_v48 = vpop.f32.mrf.mxu3 }
 0xb19   : > { %9221 = vst [vmem:[%s11437_s19 + $0xac8] sm:$0xff] %v4964_v46 }
 0xb1a   : > { %9222 = vst [vmem:[%s11437_s19 + $0xad0] sm:$0xff] %v5077_v30  ;;  %9266 = vmatmul.msk.f32.gmra.mxu0 %vm3492_vm9, %v14467_v52  ;;  %9298 = vmatmul.msk.f32.gmra.mxu1 %vm3492_vm9, %v14467_v52 }
 0xb1b   : > { %9223 = vst [vmem:[%s11437_s19 + $0xad8] sm:$0xff] %v5190_v48 }
 0xb1d   : > { %9331 = vmatmul.msk.f32.gmra.mxu2 %vm3492_vm9, %v14482_v45  ;;  %9363 = vmatmul.msk.f32.gmra.mxu3 %vm3492_vm9, %v14482_v45 }
 0xb1f   : > { %v4854_v28 = vpop.f32.mrf.mxu0  ;;  %v4967_v16 = vpop.f32.mrf.mxu1 }
 0xb20   : > { %9224 = vst [vmem:[%s11437_s19 + $0xae0] sm:$0xff] %v4854_v28  ;;  %v5080_v63 = vpop.f32.mrf.mxu2  ;;  %v5193_v35 = vpop.f32.mrf.mxu3 }
 0xb21   : > { %9225 = vst [vmem:[%s11437_s19 + $0xae8] sm:$0xff] %v4967_v16 }
 0xb22   : > { %9226 = vst [vmem:[%s11437_s19 + $0xaf0] sm:$0xff] %v5080_v63  ;;  %9267 = vmatmul.msk.f32.gmra.mxu0 %vm3492_vm9, %v14482_v45  ;;  %9299 = vmatmul.msk.f32.gmra.mxu1 %vm3492_vm9, %v14482_v45 }
 0xb23   : > { %9227 = vst [vmem:[%s11437_s19 + $0xaf8] sm:$0xff] %v5193_v35 }
 0xb25   : > { %9332 = vmatmul.msk.f32.gmra.mxu2 %vm3492_vm9, %v14497_v23  ;;  %9364 = vmatmul.msk.f32.gmra.mxu3 %vm3492_vm9, %v14497_v23 }
 0xb27   : > { %v4857_v52 = vpop.f32.mrf.mxu0  ;;  %v4970_v29 = vpop.f32.mrf.mxu1 }
 0xb28   : > { %9228 = vst [vmem:[%s11437_s19 + $0xb00] sm:$0xff] %v4857_v52  ;;  %v5083_v58 = vpop.f32.mrf.mxu2  ;;  %v5196_v7 = vpop.f32.mrf.mxu3 }
 0xb29   : > { %9229 = vst [vmem:[%s11437_s19 + $0xb08] sm:$0xff] %v4970_v29 }
 0xb2a   : > { %9230 = vst [vmem:[%s11437_s19 + $0xb10] sm:$0xff] %v5083_v58  ;;  %9268 = vmatmul.msk.f32.gmra.mxu0 %vm3492_vm9, %v14497_v23  ;;  %9300 = vmatmul.msk.f32.gmra.mxu1 %vm3492_vm9, %v14497_v23 }
 0xb2b   : > { %9231 = vst [vmem:[%s11437_s19 + $0xb18] sm:$0xff] %v5196_v7 }
 0xb2d   : > { %9333 = vmatmul.msk.f32.gmra.mxu2 %vm3492_vm9, %v14512_v32  ;;  %9365 = vmatmul.msk.f32.gmra.mxu3 %vm3492_vm9, %v14512_v32 }
 0xb2f   : > { %v4860_v45 = vpop.f32.mrf.mxu0  ;;  %v4973_v2 = vpop.f32.mrf.mxu1 }
 0xb30   : > { %9232 = vst [vmem:[%s11437_s19 + $0xb20] sm:$0xff] %v4860_v45  ;;  %v5086_v34 = vpop.f32.mrf.mxu2  ;;  %v5199_v39 = vpop.f32.mrf.mxu3 }
 0xb31   : > { %9233 = vst [vmem:[%s11437_s19 + $0xb28] sm:$0xff] %v4973_v2 }
 0xb32   : > { %9234 = vst [vmem:[%s11437_s19 + $0xb30] sm:$0xff] %v5086_v34  ;;  %9269 = vmatmul.msk.f32.gmra.mxu0 %vm3492_vm9, %v14512_v32  ;;  %9301 = vmatmul.msk.f32.gmra.mxu1 %vm3492_vm9, %v14512_v32 }
 0xb33   : > { %9235 = vst [vmem:[%s11437_s19 + $0xb38] sm:$0xff] %v5199_v39 }
 0xb35   : > { %9334 = vmatmul.msk.f32.gmra.mxu2 %vm3492_vm9, %v14527_v12  ;;  %9366 = vmatmul.msk.f32.gmra.mxu3 %vm3492_vm9, %v14527_v12 }
 0xb37   : > { %v4863_v23 = vpop.f32.mrf.mxu0  ;;  %v4976_v1 = vpop.f32.mrf.mxu1 }
 0xb38   : > { %9236 = vst [vmem:[%s11437_s19 + $0xb40] sm:$0xff] %v4863_v23  ;;  %v5089_v59 = vpop.f32.mrf.mxu2  ;;  %v5202_v53 = vpop.f32.mrf.mxu3 }
 0xb39   : > { %9237 = vst [vmem:[%s11437_s19 + $0xb48] sm:$0xff] %v4976_v1 }
 0xb3a   : > { %9238 = vst [vmem:[%s11437_s19 + $0xb50] sm:$0xff] %v5089_v59  ;;  %9270 = vmatmul.msk.f32.gmra.mxu0 %vm3492_vm9, %v14527_v12  ;;  %9302 = vmatmul.msk.f32.gmra.mxu1 %vm3492_vm9, %v14527_v12  ;;  %v5942_v12 = vld [vmem:[#allocation2 + $0x100] sm:$0xff] }
 0xb3b   : > { %9239 = vst [vmem:[%s11437_s19 + $0xb58] sm:$0xff] %v5202_v53  ;;  %6189 = vmatpush.msra.mxu2 %v5942_v12 }
 0xb3d   : > { %9335 = vmatmul.msk.f32.gmra.mxu2 %vm3492_vm9, %v14542_v10  ;;  %9367 = vmatmul.msk.f32.gmra.mxu3 %vm3492_vm9, %v14542_v10 }
 0xb3f   : > { %v4866_v32 = vpop.f32.mrf.mxu0  ;;  %v4979_v31 = vpop.f32.mrf.mxu1 }
 0xb40   : > { %9240 = vst [vmem:[%s11437_s19 + $0xb60] sm:$0xff] %v4866_v32  ;;  %v5092_v17 = vpop.f32.mrf.mxu2  ;;  %v5205_v33 = vpop.f32.mrf.mxu3 }
 0xb41   : > { %9241 = vst [vmem:[%s11437_s19 + $0xb68] sm:$0xff] %v4979_v31 }
 0xb42   : > { %9242 = vst [vmem:[%s11437_s19 + $0xb70] sm:$0xff] %v5092_v17  ;;  %9271 = vmatmul.msk.f32.gmra.mxu0 %vm3492_vm9, %v14542_v10  ;;  %9303 = vmatmul.msk.f32.gmra.mxu1 %vm3492_vm9, %v14542_v10  ;;  %v5940_v10 = vld [vmem:[#allocation2 + $0x148] sm:$0xff] }
 0xb43   : > { %9243 = vst [vmem:[%s11437_s19 + $0xb78] sm:$0xff] %v5205_v33  ;;  %5963 = vmatpush.msra.mxu0 %v5940_v10 }
 0xb45   : > { %9336 = vmatmul.msk.f32.gmra.mxu2 %vm3492_vm9, %v14557_v27  ;;  %9368 = vmatmul.msk.f32.gmra.mxu3 %vm3492_vm9, %v14557_v27 }
 0xb47   : > { %v4869_v20 = vpop.f32.mrf.mxu0  ;;  %v4982_v21 = vpop.f32.mrf.mxu1 }
 0xb48   : > { %9244 = vst [vmem:[%s11437_s19 + $0xb80] sm:$0xff] %v4869_v20  ;;  %v5095_v38 = vpop.f32.mrf.mxu2  ;;  %v5208_v54 = vpop.f32.mrf.mxu3 }
 0xb49   : > { %9245 = vst [vmem:[%s11437_s19 + $0xb88] sm:$0xff] %v4982_v21 }
 0xb4a   : > { %9246 = vst [vmem:[%s11437_s19 + $0xb90] sm:$0xff] %v5095_v38  ;;  %9272 = vmatmul.msk.f32.gmra.mxu0 %vm3492_vm9, %v14557_v27  ;;  %9304 = vmatmul.msk.f32.gmra.mxu1 %vm3492_vm9, %v14557_v27 }
 0xb4b   : > { %9247 = vst [vmem:[%s11437_s19 + $0xb98] sm:$0xff] %v5208_v54 }
 0xb4d   : > { %9337 = vmatmul.msk.f32.gmra.mxu2 %vm3492_vm9, %v14572_v47  ;;  %9369 = vmatmul.msk.f32.gmra.mxu3 %vm3492_vm9, %v14572_v47 }
 0xb4f   : > { %v4872_v55 = vpop.f32.mrf.mxu0  ;;  %v4985_v3 = vpop.f32.mrf.mxu1 }
 0xb50   : > { %9248 = vst [vmem:[%s11437_s19 + $0xba0] sm:$0xff] %v4872_v55  ;;  %v5098_v43 = vpop.f32.mrf.mxu2  ;;  %v5211_v27 = vpop.f32.mrf.mxu3 }
 0xb51   : > { %9249 = vst [vmem:[%s11437_s19 + $0xba8] sm:$0xff] %v4985_v3 }
 0xb52   : > { %9250 = vst [vmem:[%s11437_s19 + $0xbb0] sm:$0xff] %v5098_v43  ;;  %9273 = vmatmul.msk.f32.gmra.mxu0 %vm3492_vm9, %v14572_v47  ;;  %9305 = vmatmul.msk.f32.gmra.mxu1 %vm3492_vm9, %v14572_v47  ;;  %v6537_v43 = vld [vmem:[#allocation2 + $0xd0] sm:$0xff] }
 0xb53   : > { %9251 = vst [vmem:[%s11437_s19 + $0xbb8] sm:$0xff] %v5211_v27  ;;  %6891 = vmatpush.msrb.mxu3 %v6537_v43  ;;  %v15376_v43 = vld [vmem:[%s11435_s4 + $0x48] sm:$0xff] }
 0xb55   : > { %9338 = vmatmul.msk.f32.gmra.mxu2 %vm3492_vm9, %v14587_v15  ;;  %9370 = vmatmul.msk.f32.gmra.mxu3 %vm3492_vm9, %v14587_v15 }
 0xb57   : > { %v4875_v62 = vpop.f32.mrf.mxu0  ;;  %v4988_v9 = vpop.f32.mrf.mxu1 }
 0xb58   : > { %9252 = vst [vmem:[%s11437_s19 + $0xbc0] sm:$0xff] %v4875_v62  ;;  %v5101_v22 = vpop.f32.mrf.mxu2  ;;  %v5214_v40 = vpop.f32.mrf.mxu3 }
 0xb59   : > { %9253 = vst [vmem:[%s11437_s19 + $0xbc8] sm:$0xff] %v4988_v9 }
 0xb5a   : > { %9254 = vst [vmem:[%s11437_s19 + $0xbd0] sm:$0xff] %v5101_v22  ;;  %9274 = vmatmul.msk.f32.gmra.mxu0 %vm3492_vm9, %v14587_v15  ;;  %9306 = vmatmul.msk.f32.gmra.mxu1 %vm3492_vm9, %v14587_v15 }
 0xb5b   : > { %9255 = vst [vmem:[%s11437_s19 + $0xbd8] sm:$0xff] %v5214_v40  ;;  %v6535_v40 = vld [vmem:[#allocation2 + $0x90] sm:$0xff] }
 0xb5c   : > { %6665 = vmatpush.msrb.mxu1 %v6535_v40 }
 0xb5d   : > { %9339 = vmatmul.msk.f32.gmra.mxu2 %vm3492_vm9, %v14602_v37  ;;  %9371 = vmatmul.msk.f32.gmra.mxu3 %vm3492_vm9, %v14602_v37 }
 0xb5f   : > { %v4878_v47 = vpop.f32.mrf.mxu0  ;;  %v4991_v56 = vpop.f32.mrf.mxu1 }
 0xb60   : > { %9256 = vst [vmem:[%s11437_s19 + $0xbe0] sm:$0xff] %v4878_v47  ;;  %v5104_v50 = vpop.f32.mrf.mxu2  ;;  %v5217_v6 = vpop.f32.mrf.mxu3 }
 0xb61   : > { %9257 = vst [vmem:[%s11437_s19 + $0xbe8] sm:$0xff] %v4991_v56 }
 0xb62   : > { %9258 = vst [vmem:[%s11437_s19 + $0xbf0] sm:$0xff] %v5104_v50  ;;  %9275 = vmatmul.msk.f32.gmra.mxu0 %vm3492_vm9, %v14602_v37  ;;  %9307 = vmatmul.msk.f32.gmra.mxu1 %vm3492_vm9, %v14602_v37 }
 0xb63   : > { %9259 = vst [vmem:[%s11437_s19 + $0xbf8] sm:$0xff] %v5217_v6 }
 0xb65   : > { %9340 = vmatmul.msk.f32.gmra.mxu2 %vm3492_vm9, %v14617_v36  ;;  %9372 = vmatmul.msk.f32.gmra.mxu3 %vm3492_vm9, %v14617_v36 }
 0xb67   : > { %v5375_v15 = vpop.f32.mrf.mxu0  ;;  %v5488_v51 = vpop.f32.mrf.mxu1 }
 0xb68   : > { %9388 = vst [vmem:[%s11437_s19 + $0xc00] sm:$0xff] %v5375_v15  ;;  %v5601_v5 = vpop.f32.mrf.mxu2  ;;  %v5714_v61 = vpop.f32.mrf.mxu3 }
 0xb69   : > { %9389 = vst [vmem:[%s11437_s19 + $0xc08] sm:$0xff] %v5488_v51 }
 0xb6a   : > { %9390 = vst [vmem:[%s11437_s19 + $0xc10] sm:$0xff] %v5601_v5  ;;  %9276 = vmatmul.msk.f32.gmra.mxu0 %vm3492_vm9, %v14617_v36  ;;  %9308 = vmatmul.msk.f32.gmra.mxu1 %vm3492_vm9, %v14617_v36 }
 0xb6b   : > { %9391 = vst [vmem:[%s11437_s19 + $0xc18] sm:$0xff] %v5714_v61 }
 0xb6d   : > { %9341 = vmatmul.msk.f32.gmra.mxu2 %vm3492_vm9, %v14632_v0  ;;  %9373 = vmatmul.msk.f32.gmra.mxu3 %vm3492_vm9, %v14632_v0 }
 0xb6f   : > { %v5378_v37 = vpop.f32.mrf.mxu0  ;;  %v5491_v46 = vpop.f32.mrf.mxu1 }
 0xb70   : > { %9392 = vst [vmem:[%s11437_s19 + $0xc20] sm:$0xff] %v5378_v37  ;;  %v5604_v30 = vpop.f32.mrf.mxu2  ;;  %v5717_v48 = vpop.f32.mrf.mxu3 }
 0xb71   : > { %9393 = vst [vmem:[%s11437_s19 + $0xc28] sm:$0xff] %v5491_v46 }
 0xb72   : > { %9394 = vst [vmem:[%s11437_s19 + $0xc30] sm:$0xff] %v5604_v30  ;;  %9277 = vmatmul.msk.f32.gmra.mxu0 %vm3492_vm9, %v14632_v0  ;;  %9309 = vmatmul.msk.f32.gmra.mxu1 %vm3492_vm9, %v14632_v0 }
 0xb73   : > { %9395 = vst [vmem:[%s11437_s19 + $0xc38] sm:$0xff] %v5717_v48 }
 0xb75   : > { %9342 = vmatmul.msk.f32.gmra.mxu2 %vm3492_vm9, %v14647_v60  ;;  %9374 = vmatmul.msk.f32.gmra.mxu3 %vm3492_vm9, %v14647_v60 }
 0xb77   : > { %v5381_v36 = vpop.f32.mrf.mxu0  ;;  %v5494_v28 = vpop.f32.mrf.mxu1 }
 0xb78   : > { %9396 = vst [vmem:[%s11437_s19 + $0xc40] sm:$0xff] %v5381_v36  ;;  %v5607_v16 = vpop.f32.mrf.mxu2  ;;  %v5720_v63 = vpop.f32.mrf.mxu3 }
 0xb79   : > { %9397 = vst [vmem:[%s11437_s19 + $0xc48] sm:$0xff] %v5494_v28 }
 0xb7a   : > { %9398 = vst [vmem:[%s11437_s19 + $0xc50] sm:$0xff] %v5607_v16  ;;  %9278 = vmatmul.msk.f32.gmra.mxu0 %vm3492_vm9, %v14647_v60  ;;  %9310 = vmatmul.msk.f32.gmra.mxu1 %vm3492_vm9, %v14647_v60 }
 0xb7b   : > { %9399 = vst [vmem:[%s11437_s19 + $0xc58] sm:$0xff] %v5720_v63 }
 0xb7d   : > { %9343 = vmatmul.msk.f32.gmra.mxu2 %vm3492_vm9, %v14662_v18  ;;  %9375 = vmatmul.msk.f32.gmra.mxu3 %vm3492_vm9, %v14662_v18 }
 0xb7f   : > { %v5384_v0 = vpop.f32.mrf.mxu0  ;;  %v5497_v35 = vpop.f32.mrf.mxu1 }
 0xb80   : > { %9400 = vst [vmem:[%s11437_s19 + $0xc60] sm:$0xff] %v5384_v0  ;;  %v5610_v52 = vpop.f32.mrf.mxu2  ;;  %v5723_v29 = vpop.f32.mrf.mxu3 }
 0xb81   : > { %9401 = vst [vmem:[%s11437_s19 + $0xc68] sm:$0xff] %v5497_v35 }
 0xb82   : > { %9402 = vst [vmem:[%s11437_s19 + $0xc70] sm:$0xff] %v5610_v52  ;;  %9279 = vmatmul.msk.f32.gmra.mxu0 %vm3492_vm9, %v14662_v18  ;;  %9311 = vmatmul.msk.f32.gmra.mxu1 %vm3492_vm9, %v14662_v18  ;;  %v15271_v52 = vld [vmem:[%s11435_s4 + $0x10] sm:$0xff] }
 0xb83   : > { %9403 = vst [vmem:[%s11437_s19 + $0xc78] sm:$0xff] %v5723_v29 }
 0xb85   : > { %9344 = vmatmul.msk.f32.gmra.mxu2 %vm3492_vm9, %v14677_v44  ;;  %9376 = vmatmul.msk.f32.gmra.mxu3 %vm3492_vm9, %v14677_v44 }
 0xb87   : > { %v5387_v60 = vpop.f32.mrf.mxu0  ;;  %v5500_v58 = vpop.f32.mrf.mxu1 }
 0xb88   : > { %9404 = vst [vmem:[%s11437_s19 + $0xc80] sm:$0xff] %v5387_v60  ;;  %v5613_v7 = vpop.f32.mrf.mxu2  ;;  %v5726_v45 = vpop.f32.mrf.mxu3 }
 0xb89   : > { %9405 = vst [vmem:[%s11437_s19 + $0xc88] sm:$0xff] %v5500_v58 }
 0xb8a   : > { %9406 = vst [vmem:[%s11437_s19 + $0xc90] sm:$0xff] %v5613_v7  ;;  %9280 = vmatmul.msk.f32.gmra.mxu0 %vm3492_vm9, %v14677_v44  ;;  %9312 = vmatmul.msk.f32.gmra.mxu1 %vm3492_vm9, %v14677_v44 }
 0xb8b   : > { %9407 = vst [vmem:[%s11437_s19 + $0xc98] sm:$0xff] %v5726_v45  ;;  %v15286_v45 = vld [vmem:[%s11435_s4 + $0x18] sm:$0xff] }
 0xb8d   : > { %9345 = vmatmul.msk.f32.gmra.mxu2 %vm3492_vm9, %v14692_v24  ;;  %9377 = vmatmul.msk.f32.gmra.mxu3 %vm3492_vm9, %v14692_v24 }
 0xb8f   : > { %v5390_v18 = vpop.f32.mrf.mxu0  ;;  %v5503_v2 = vpop.f32.mrf.mxu1 }
 0xb90   : > { %9408 = vst [vmem:[%s11437_s19 + $0xca0] sm:$0xff] %v5390_v18  ;;  %v5616_v34 = vpop.f32.mrf.mxu2  ;;  %v5729_v39 = vpop.f32.mrf.mxu3 }
 0xb91   : > { %9409 = vst [vmem:[%s11437_s19 + $0xca8] sm:$0xff] %v5503_v2 }
 0xb92   : > { %9410 = vst [vmem:[%s11437_s19 + $0xcb0] sm:$0xff] %v5616_v34  ;;  %9281 = vmatmul.msk.f32.gmra.mxu0 %vm3492_vm9, %v14692_v24  ;;  %9313 = vmatmul.msk.f32.gmra.mxu1 %vm3492_vm9, %v14692_v24 }
 0xb93   : > { %9411 = vst [vmem:[%s11437_s19 + $0xcb8] sm:$0xff] %v5729_v39 }
 0xb95   : > { %9346 = vmatmul.msk.f32.gmra.mxu2 %vm3492_vm9, %v14707_v13  ;;  %9378 = vmatmul.msk.f32.gmra.mxu3 %vm3492_vm9, %v14707_v13 }
 0xb97   : > { %v5393_v44 = vpop.f32.mrf.mxu0  ;;  %v5506_v23 = vpop.f32.mrf.mxu1 }
 0xb98   : > { %9412 = vst [vmem:[%s11437_s19 + $0xcc0] sm:$0xff] %v5393_v44  ;;  %v5619_v1 = vpop.f32.mrf.mxu2  ;;  %v5732_v59 = vpop.f32.mrf.mxu3  ;;  %v15301_v44 = vld [vmem:[%s11435_s4 + $0x20] sm:$0xff] }
 0xb99   : > { %9413 = vst [vmem:[%s11437_s19 + $0xcc8] sm:$0xff] %v5506_v23 }
 0xb9a   : > { %9414 = vst [vmem:[%s11437_s19 + $0xcd0] sm:$0xff] %v5619_v1  ;;  %9282 = vmatmul.msk.f32.gmra.mxu0 %vm3492_vm9, %v14707_v13  ;;  %9314 = vmatmul.msk.f32.gmra.mxu1 %vm3492_vm9, %v14707_v13 }
 0xb9b   : > { %9415 = vst [vmem:[%s11437_s19 + $0xcd8] sm:$0xff] %v5732_v59 }
 0xb9d   : > { %9347 = vmatmul.msk.f32.gmra.mxu2 %vm3492_vm9, %v14722_v8  ;;  %9379 = vmatmul.msk.f32.gmra.mxu3 %vm3492_vm9, %v14722_v8 }
 0xb9f   : > { %v5396_v24 = vpop.f32.mrf.mxu0  ;;  %v5509_v53 = vpop.f32.mrf.mxu1 }
 0xba0   : > { %9416 = vst [vmem:[%s11437_s19 + $0xce0] sm:$0xff] %v5396_v24  ;;  %v5622_v32 = vpop.f32.mrf.mxu2  ;;  %v5735_v31 = vpop.f32.mrf.mxu3 }
 0xba1   : > { %9417 = vst [vmem:[%s11437_s19 + $0xce8] sm:$0xff] %v5509_v53  ;;  %v15316_v53 = vld [vmem:[%s11435_s4 + $0x28] sm:$0xff] }
 0xba2   : > { %9418 = vst [vmem:[%s11437_s19 + $0xcf0] sm:$0xff] %v5622_v32  ;;  %9283 = vmatmul.msk.f32.gmra.mxu0 %vm3492_vm9, %v14722_v8  ;;  %9315 = vmatmul.msk.f32.gmra.mxu1 %vm3492_vm9, %v14722_v8 }
 0xba3   : > { %9419 = vst [vmem:[%s11437_s19 + $0xcf8] sm:$0xff] %v5735_v31 }
 0xba5   : > { %9348 = vmatmul.msk.f32.gmra.mxu2 %vm3492_vm9, %v14737_v26  ;;  %9380 = vmatmul.msk.f32.gmra.mxu3 %vm3492_vm9, %v14737_v26 }
 0xba7   : > { %v5399_v13 = vpop.f32.mrf.mxu0  ;;  %v5512_v17 = vpop.f32.mrf.mxu1 }
 0xba8   : > { %9420 = vst [vmem:[%s11437_s19 + $0xd00] sm:$0xff] %v5399_v13  ;;  %v5625_v33 = vpop.f32.mrf.mxu2  ;;  %v5738_v12 = vpop.f32.mrf.mxu3 }
 0xba9   : > { %9421 = vst [vmem:[%s11437_s19 + $0xd08] sm:$0xff] %v5512_v17 }
 0xbaa   : > { %9422 = vst [vmem:[%s11437_s19 + $0xd10] sm:$0xff] %v5625_v33  ;;  %9284 = vmatmul.msk.f32.gmra.mxu0 %vm3492_vm9, %v14737_v26  ;;  %9316 = vmatmul.msk.f32.gmra.mxu1 %vm3492_vm9, %v14737_v26  ;;  %v15331_v33 = vld [vmem:[%s11435_s4 + $0x30] sm:$0xff] }
 0xbab   : > { %9423 = vst [vmem:[%s11437_s19 + $0xd18] sm:$0xff] %v5738_v12 }
 0xbad   : > { %9349 = vmatmul.msk.f32.gmra.mxu2 %vm3492_vm9, %v14752_v14  ;;  %9381 = vmatmul.msk.f32.gmra.mxu3 %vm3492_vm9, %v14752_v14 }
 0xbaf   : > { %v5402_v8 = vpop.f32.mrf.mxu0  ;;  %v5515_v11 = vpop.f32.mrf.mxu1 }
 0xbb0   : > { %9424 = vst [vmem:[%s11437_s19 + $0xd20] sm:$0xff] %v5402_v8  ;;  %v5628_v20 = vpop.f32.mrf.mxu2  ;;  %v5741_v21 = vpop.f32.mrf.mxu3 }
 0xbb1   : > { %9425 = vst [vmem:[%s11437_s19 + $0xd28] sm:$0xff] %v5515_v11 }
 0xbb2   : > { %9426 = vst [vmem:[%s11437_s19 + $0xd30] sm:$0xff] %v5628_v20  ;;  %9285 = vmatmul.msk.f32.gmra.mxu0 %vm3492_vm9, %v14752_v14  ;;  %9317 = vmatmul.msk.f32.gmra.mxu1 %vm3492_vm9, %v14752_v14 }
 0xbb3   : > { %9427 = vst [vmem:[%s11437_s19 + $0xd38] sm:$0xff] %v5741_v21  ;;  %v15346_v21 = vld [vmem:[%s11435_s4 + $0x38] sm:$0xff] }
 0xbb5   : > { %9350 = vmatmul.msk.f32.gmra.mxu2 %vm3492_vm9, %v14767_v41  ;;  %9382 = vmatmul.msk.f32.gmra.mxu3 %vm3492_vm9, %v14767_v41 }
 0xbb7   : > { %v5405_v26 = vpop.f32.mrf.mxu0  ;;  %v5518_v38 = vpop.f32.mrf.mxu1 }
 0xbb8   : > { %9428 = vst [vmem:[%s11437_s19 + $0xd40] sm:$0xff] %v5405_v26  ;;  %v5631_v54 = vpop.f32.mrf.mxu2  ;;  %v5744_v10 = vpop.f32.mrf.mxu3 }
 0xbb9   : > { %9429 = vst [vmem:[%s11437_s19 + $0xd48] sm:$0xff] %v5518_v38 }
 0xbba   : > { %9430 = vst [vmem:[%s11437_s19 + $0xd50] sm:$0xff] %v5631_v54  ;;  %9286 = vmatmul.msk.f32.gmra.mxu0 %vm3492_vm9, %v14767_v41  ;;  %9318 = vmatmul.msk.f32.gmra.mxu1 %vm3492_vm9, %v14767_v41  ;;  %v6536_v41 = vld [vmem:[#allocation2 + $0x1d8] sm:$0xff] }
 0xbbb   : > { %9431 = vst [vmem:[%s11437_s19 + $0xd58] sm:$0xff] %v5744_v10  ;;  %6778 = vmatpush.msrb.mxu2 %v6536_v41 }
 0xbbd   : > { %9351 = vmatmul.msk.f32.gmra.mxu2 %vm3492_vm9, %v14782_v42  ;;  %9383 = vmatmul.msk.f32.gmra.mxu3 %vm3492_vm9, %v14782_v42 }
 0xbbf   : > { %v5408_v14 = vpop.f32.mrf.mxu0  ;;  %v5521_v4 = vpop.f32.mrf.mxu1 }
 0xbc0   : > { %9432 = vst [vmem:[%s11437_s19 + $0xd60] sm:$0xff] %v5408_v14  ;;  %v5634_v55 = vpop.f32.mrf.mxu2  ;;  %v5747_v3 = vpop.f32.mrf.mxu3  ;;  %v15361_v14 = vld [vmem:[%s11435_s4 + $0x40] sm:$0xff] }
 0xbc1   : > { %9433 = vst [vmem:[%s11437_s19 + $0xd68] sm:$0xff] %v5521_v4 }
 0xbc2   : > { %9434 = vst [vmem:[%s11437_s19 + $0xd70] sm:$0xff] %v5634_v55  ;;  %9287 = vmatmul.msk.f32.gmra.mxu0 %vm3492_vm9, %v14782_v42  ;;  %9319 = vmatmul.msk.f32.gmra.mxu1 %vm3492_vm9, %v14782_v42  ;;  %v6534_v42 = vld [vmem:[#allocation2 + $0x70] sm:$0xff] }
 0xbc3   : > { %9435 = vst [vmem:[%s11437_s19 + $0xd78] sm:$0xff] %v5747_v3  ;;  %6552 = vmatpush.msrb.mxu0 %v6534_v42  ;;  %v15391_v42 = vld [vmem:[%s11435_s4 + $0x50] sm:$0xff] }
 0xbc5   : > { %9352 = vmatmul.msk.f32.gmra.mxu2 %vm3492_vm9, %v14797_v25  ;;  %9384 = vmatmul.msk.f32.gmra.mxu3 %vm3492_vm9, %v14797_v25 }
 0xbc7   : > { %v5411_v27 = vpop.f32.mrf.mxu0  ;;  %v5524_v62 = vpop.f32.mrf.mxu1 }
 0xbc8   : > { %9436 = vst [vmem:[%s11437_s19 + $0xd80] sm:$0xff] %v5411_v27  ;;  %v5637_v9 = vpop.f32.mrf.mxu2  ;;  %v5750_v22 = vpop.f32.mrf.mxu3 }
 0xbc9   : > { %9437 = vst [vmem:[%s11437_s19 + $0xd88] sm:$0xff] %v5524_v62 }
 0xbca   : > { %9438 = vst [vmem:[%s11437_s19 + $0xd90] sm:$0xff] %v5637_v9  ;;  %9288 = vmatmul.msk.f32.gmra.mxu0 %vm3492_vm9, %v14797_v25  ;;  %9320 = vmatmul.msk.f32.gmra.mxu1 %vm3492_vm9, %v14797_v25 }
 0xbcb   : > { %9439 = vst [vmem:[%s11437_s19 + $0xd98] sm:$0xff] %v5750_v22 }
 0xbcd   : > { %9353 = vmatmul.msk.f32.gmra.mxu2 %vm3492_vm9, %v14812_v49  ;;  %9385 = vmatmul.msk.f32.gmra.mxu3 %vm3492_vm9, %v14812_v49 }
 0xbcf   : > { %v5414_v47 = vpop.f32.mrf.mxu0  ;;  %v5527_v56 = vpop.f32.mrf.mxu1 }
 0xbd0   : > { %9440 = vst [vmem:[%s11437_s19 + $0xda0] sm:$0xff] %v5414_v47  ;;  %v5640_v50 = vpop.f32.mrf.mxu2  ;;  %v5753_v25 = vpop.f32.mrf.mxu3 }
 0xbd1   : > { %9441 = vst [vmem:[%s11437_s19 + $0xda8] sm:$0xff] %v5527_v56 }
 0xbd2   : > { %9442 = vst [vmem:[%s11437_s19 + $0xdb0] sm:$0xff] %v5640_v50  ;;  %9289 = vmatmul.msk.f32.gmra.mxu0 %vm3492_vm9, %v14812_v49  ;;  %9321 = vmatmul.msk.f32.gmra.mxu1 %vm3492_vm9, %v14812_v49 }
 0xbd3   : > { %9443 = vst [vmem:[%s11437_s19 + $0xdb8] sm:$0xff] %v5753_v25  ;;  %v15406_v25 = vld [vmem:[%s11435_s4 + $0x58] sm:$0xff] }
 0xbd5   : > { %9354 = vmatmul.msk.f32.gmra.mxu2 %vm3492_vm9, %v14827_v57  ;;  %9386 = vmatmul.msk.f32.gmra.mxu3 %vm3492_vm9, %v14827_v57 }
 0xbd7   : > { %v5417_v6 = vpop.f32.mrf.mxu0  ;;  %v5530_v15 = vpop.f32.mrf.mxu1 }
 0xbd8   : > { %9444 = vst [vmem:[%s11437_s19 + $0xdc0] sm:$0xff] %v5417_v6  ;;  %v5643_v51 = vpop.f32.mrf.mxu2  ;;  %v5756_v5 = vpop.f32.mrf.mxu3 }
 0xbd9   : > { %9445 = vst [vmem:[%s11437_s19 + $0xdc8] sm:$0xff] %v5530_v15 }
 0xbda   : > { %9446 = vst [vmem:[%s11437_s19 + $0xdd0] sm:$0xff] %v5643_v51  ;;  %9290 = vmatmul.msk.f32.gmra.mxu0 %vm3492_vm9, %v14827_v57  ;;  %9322 = vmatmul.msk.f32.gmra.mxu1 %vm3492_vm9, %v14827_v57  ;;  %v15241_v57 = vld [vmem:[%s11435_s4] sm:$0xff] }
 0xbdb   : > { %9447 = vst [vmem:[%s11437_s19 + $0xdd8] sm:$0xff] %v5756_v5 }
 0xbdd   : > { %9355 = vmatmul.msk.f32.gmra.mxu2 %vm3492_vm9, %v14842_v19  ;;  %9387 = vmatmul.msk.f32.gmra.mxu3 %vm3492_vm9, %v14842_v19 }
 0xbdf   : > { %v5420_v49 = vpop.f32.mrf.mxu0  ;;  %v5533_v61 = vpop.f32.mrf.mxu1 }
 0xbe0   : > { %9448 = vst [vmem:[%s11437_s19 + $0xde0] sm:$0xff] %v5420_v49  ;;  %v5646_v37 = vpop.f32.mrf.mxu2  ;;  %v5759_v46 = vpop.f32.mrf.mxu3  ;;  %v15421_v49 = vld [vmem:[%s11435_s4 + $0x60] sm:$0xff] }
 0xbe1   : > { %9449 = vst [vmem:[%s11437_s19 + $0xde8] sm:$0xff] %v5533_v61  ;;  %v6532_v61 = vld [vmem:[#allocation2 + $0xe8] sm:$0xff] }
 0xbe2   : > { %9450 = vst [vmem:[%s11437_s19 + $0xdf0] sm:$0xff] %v5646_v37  ;;  %9291 = vmatmul.msk.f32.gmra.mxu0 %vm3492_vm9, %v14842_v19  ;;  %9323 = vmatmul.msk.f32.gmra.mxu1 %vm3492_vm9, %v14842_v19  ;;  %v15256_v19 = vld [vmem:[%s11435_s4 + $0x8] sm:$0xff]  ;;  %v6533_v37 = vld [vmem:[#allocation2 + $0x78] sm:$0xff] }
 0xbe3   : > { %9451 = vst [vmem:[%s11437_s19 + $0xdf8] sm:$0xff] %v5759_v46  ;;  %6779 = vmatpush.msrb.mxu2 %v6532_v61  ;;  %6892 = vmatpush.msrb.mxu3 %v6533_v37 }
 0xbe5   : > { %9580 = vmatmul.msk.f32.vlgmr.msra.gmra.mxu2 %vm3492_vm9, %v15241_v57  ;;  %9612 = vmatmul.msk.f32.vlgmr.msra.gmra.mxu3 %vm3492_vm9, %v15241_v57 }
 0xbe7   : > { %v5423_v30 = vpop.f32.mrf.mxu0  ;;  %v5536_v48 = vpop.f32.mrf.mxu1 }
 0xbe8   : > { %9452 = vst [vmem:[%s11437_s19 + $0xe00] sm:$0xff] %v5423_v30  ;;  %v5649_v36 = vpop.f32.mrf.mxu2  ;;  %v5762_v28 = vpop.f32.mrf.mxu3 }
 0xbe9   : > { %9453 = vst [vmem:[%s11437_s19 + $0xe08] sm:$0xff] %v5536_v48 }
 0xbea   : > { %9454 = vst [vmem:[%s11437_s19 + $0xe10] sm:$0xff] %v5649_v36  ;;  %9516 = vmatmul.msk.f32.vlgmr.msra.gmra.mxu0 %vm3492_vm9, %v15241_v57  ;;  %9548 = vmatmul.msk.f32.vlgmr.msra.gmra.mxu1 %vm3492_vm9, %v15241_v57 }
 0xbeb   : > { %9455 = vst [vmem:[%s11437_s19 + $0xe18] sm:$0xff] %v5762_v28  ;;  %v6530_v28 = vld [vmem:[#allocation2 + $0x1a0] sm:$0xff] }
 0xbec   : > { %6553 = vmatpush.msrb.mxu0 %v6530_v28 }
 0xbed   : > { %9581 = vmatmul.msk.f32.gmra.mxu2 %vm3492_vm9, %v15256_v19  ;;  %9613 = vmatmul.msk.f32.gmra.mxu3 %vm3492_vm9, %v15256_v19 }
 0xbef   : > { %v5426_v16 = vpop.f32.mrf.mxu0  ;;  %v5539_v63 = vpop.f32.mrf.mxu1 }
 0xbf0   : > { %9456 = vst [vmem:[%s11437_s19 + $0xe20] sm:$0xff] %v5426_v16  ;;  %v5652_v0 = vpop.f32.mrf.mxu2  ;;  %v5765_v35 = vpop.f32.mrf.mxu3  ;;  %v6531_v16 = vld [vmem:[#allocation2 + $0x1f0] sm:$0xff] }
 0xbf1   : > { %9457 = vst [vmem:[%s11437_s19 + $0xe28] sm:$0xff] %v5539_v63  ;;  %6666 = vmatpush.msrb.mxu1 %v6531_v16  ;;  %v15436_v63 = vld [vmem:[%s11435_s4 + $0x68] sm:$0xff]  ;;  %v15586_v16 = vld [vmem:[%s11435_s4 + $0xb8] sm:$0xff] }
 0xbf2   : > { %9458 = vst [vmem:[%s11437_s19 + $0xe30] sm:$0xff] %v5652_v0  ;;  %9517 = vmatmul.msk.f32.gmra.mxu0 %vm3492_vm9, %v15256_v19  ;;  %9549 = vmatmul.msk.f32.gmra.mxu1 %vm3492_vm9, %v15256_v19 }
 0xbf3   : > { %9459 = vst [vmem:[%s11437_s19 + $0xe38] sm:$0xff] %v5765_v35 }
 0xbf5   : > { %9582 = vmatmul.msk.f32.gmra.mxu2 %vm3492_vm9, %v15271_v52  ;;  %9614 = vmatmul.msk.f32.gmra.mxu3 %vm3492_vm9, %v15271_v52 }
 0xbf7   : > { %v5429_v29 = vpop.f32.mrf.mxu0  ;;  %v5542_v60 = vpop.f32.mrf.mxu1 }
 0xbf8   : > { %9460 = vst [vmem:[%s11437_s19 + $0xe40] sm:$0xff] %v5429_v29  ;;  %v5655_v58 = vpop.f32.mrf.mxu2  ;;  %v5768_v7 = vpop.f32.mrf.mxu3 }
 0xbf9   : > { %9461 = vst [vmem:[%s11437_s19 + $0xe48] sm:$0xff] %v5542_v60 }
 0xbfa   : > { %9462 = vst [vmem:[%s11437_s19 + $0xe50] sm:$0xff] %v5655_v58  ;;  %9518 = vmatmul.msk.f32.gmra.mxu0 %vm3492_vm9, %v15271_v52  ;;  %9550 = vmatmul.msk.f32.gmra.mxu1 %vm3492_vm9, %v15271_v52  ;;  %v15451_v58 = vld [vmem:[%s11435_s4 + $0x70] sm:$0xff] }
 0xbfb   : > { %9463 = vst [vmem:[%s11437_s19 + $0xe58] sm:$0xff] %v5768_v7 }
 0xbfd   : > { %9583 = vmatmul.msk.f32.gmra.mxu2 %vm3492_vm9, %v15286_v45  ;;  %9615 = vmatmul.msk.f32.gmra.mxu3 %vm3492_vm9, %v15286_v45 }
 0xbff   : > { %v5432_v18 = vpop.f32.mrf.mxu0  ;;  %v5545_v2 = vpop.f32.mrf.mxu1 }
 0xc00   : > { %9464 = vst [vmem:[%s11437_s19 + $0xe60] sm:$0xff] %v5432_v18  ;;  %v5658_v34 = vpop.f32.mrf.mxu2  ;;  %v5771_v39 = vpop.f32.mrf.mxu3 }
 0xc01   : > { %9465 = vst [vmem:[%s11437_s19 + $0xe68] sm:$0xff] %v5545_v2 }
 0xc02   : > { %9466 = vst [vmem:[%s11437_s19 + $0xe70] sm:$0xff] %v5658_v34  ;;  %9519 = vmatmul.msk.f32.gmra.mxu0 %vm3492_vm9, %v15286_v45  ;;  %9551 = vmatmul.msk.f32.gmra.mxu1 %vm3492_vm9, %v15286_v45 }
 0xc03   : > { %9467 = vst [vmem:[%s11437_s19 + $0xe78] sm:$0xff] %v5771_v39  ;;  %v15466_v39 = vld [vmem:[%s11435_s4 + $0x78] sm:$0xff] }
 0xc05   : > { %9584 = vmatmul.msk.f32.gmra.mxu2 %vm3492_vm9, %v15301_v44  ;;  %9616 = vmatmul.msk.f32.gmra.mxu3 %vm3492_vm9, %v15301_v44 }
 0xc07   : > { %v5435_v23 = vpop.f32.mrf.mxu0  ;;  %v5548_v1 = vpop.f32.mrf.mxu1 }
 0xc08   : > { %9468 = vst [vmem:[%s11437_s19 + $0xe80] sm:$0xff] %v5435_v23  ;;  %v5661_v59 = vpop.f32.mrf.mxu2  ;;  %v5774_v24 = vpop.f32.mrf.mxu3 }
 0xc09   : > { %9469 = vst [vmem:[%s11437_s19 + $0xe88] sm:$0xff] %v5548_v1 }
 0xc0a   : > { %9470 = vst [vmem:[%s11437_s19 + $0xe90] sm:$0xff] %v5661_v59  ;;  %9520 = vmatmul.msk.f32.gmra.mxu0 %vm3492_vm9, %v15301_v44  ;;  %9552 = vmatmul.msk.f32.gmra.mxu1 %vm3492_vm9, %v15301_v44 }
 0xc0b   : > { %9471 = vst [vmem:[%s11437_s19 + $0xe98] sm:$0xff] %v5774_v24 }
 0xc0d   : > { %9585 = vmatmul.msk.f32.gmra.mxu2 %vm3492_vm9, %v15316_v53  ;;  %9617 = vmatmul.msk.f32.gmra.mxu3 %vm3492_vm9, %v15316_v53 }
 0xc0f   : > { %v5438_v32 = vpop.f32.mrf.mxu0  ;;  %v5551_v31 = vpop.f32.mrf.mxu1 }
 0xc10   : > { %9472 = vst [vmem:[%s11437_s19 + $0xea0] sm:$0xff] %v5438_v32  ;;  %v5664_v13 = vpop.f32.mrf.mxu2  ;;  %v5777_v17 = vpop.f32.mrf.mxu3  ;;  %v15481_v32 = vld [vmem:[%s11435_s4 + $0x80] sm:$0xff] }
 0xc11   : > { %9473 = vst [vmem:[%s11437_s19 + $0xea8] sm:$0xff] %v5551_v31 }
 0xc12   : > { %9474 = vst [vmem:[%s11437_s19 + $0xeb0] sm:$0xff] %v5664_v13  ;;  %9521 = vmatmul.msk.f32.gmra.mxu0 %vm3492_vm9, %v15316_v53  ;;  %9553 = vmatmul.msk.f32.gmra.mxu1 %vm3492_vm9, %v15316_v53 }
 0xc13   : > { %9475 = vst [vmem:[%s11437_s19 + $0xeb8] sm:$0xff] %v5777_v17 }
 0xc15   : > { %9586 = vmatmul.msk.f32.gmra.mxu2 %vm3492_vm9, %v15331_v33  ;;  %9618 = vmatmul.msk.f32.gmra.mxu3 %vm3492_vm9, %v15331_v33 }
 0xc17   : > { %v5441_v12 = vpop.f32.mrf.mxu0  ;;  %v5554_v8 = vpop.f32.mrf.mxu1 }
 0xc18   : > { %9476 = vst [vmem:[%s11437_s19 + $0xec0] sm:$0xff] %v5441_v12  ;;  %v5667_v11 = vpop.f32.mrf.mxu2  ;;  %v5780_v20 = vpop.f32.mrf.mxu3 }
 0xc19   : > { %9477 = vst [vmem:[%s11437_s19 + $0xec8] sm:$0xff] %v5554_v8  ;;  %v15496_v8 = vld [vmem:[%s11435_s4 + $0x88] sm:$0xff] }
 0xc1a   : > { %9478 = vst [vmem:[%s11437_s19 + $0xed0] sm:$0xff] %v5667_v11  ;;  %9522 = vmatmul.msk.f32.gmra.mxu0 %vm3492_vm9, %v15331_v33  ;;  %9554 = vmatmul.msk.f32.gmra.mxu1 %vm3492_vm9, %v15331_v33 }
 0xc1b   : > { %9479 = vst [vmem:[%s11437_s19 + $0xed8] sm:$0xff] %v5780_v20 }
 0xc1d   : > { %9587 = vmatmul.msk.f32.gmra.mxu2 %vm3492_vm9, %v15346_v21  ;;  %9619 = vmatmul.msk.f32.gmra.mxu3 %vm3492_vm9, %v15346_v21 }
 0xc1f   : > { %v5444_v26 = vpop.f32.mrf.mxu0  ;;  %v5557_v38 = vpop.f32.mrf.mxu1 }
 0xc20   : > { %9480 = vst [vmem:[%s11437_s19 + $0xee0] sm:$0xff] %v5444_v26  ;;  %v5670_v54 = vpop.f32.mrf.mxu2  ;;  %v5783_v10 = vpop.f32.mrf.mxu3 }
 0xc21   : > { %9481 = vst [vmem:[%s11437_s19 + $0xee8] sm:$0xff] %v5557_v38 }
 0xc22   : > { %9482 = vst [vmem:[%s11437_s19 + $0xef0] sm:$0xff] %v5670_v54  ;;  %9523 = vmatmul.msk.f32.gmra.mxu0 %vm3492_vm9, %v15346_v21  ;;  %9555 = vmatmul.msk.f32.gmra.mxu1 %vm3492_vm9, %v15346_v21  ;;  %v15511_v54 = vld [vmem:[%s11435_s4 + $0x90] sm:$0xff] }
 0xc23   : > { %9483 = vst [vmem:[%s11437_s19 + $0xef8] sm:$0xff] %v5783_v10 }
 0xc25   : > { %9588 = vmatmul.msk.f32.gmra.mxu2 %vm3492_vm9, %v15361_v14  ;;  %9620 = vmatmul.msk.f32.gmra.mxu3 %vm3492_vm9, %v15361_v14 }
 0xc27   : > { %v5447_v4 = vpop.f32.mrf.mxu0  ;;  %v5560_v55 = vpop.f32.mrf.mxu1 }
 0xc28   : > { %9484 = vst [vmem:[%s11437_s19 + $0xf00] sm:$0xff] %v5447_v4  ;;  %v5673_v3 = vpop.f32.mrf.mxu2  ;;  %v5786_v41 = vpop.f32.mrf.mxu3 }
 0xc29   : > { %9485 = vst [vmem:[%s11437_s19 + $0xf08] sm:$0xff] %v5560_v55 }
 0xc2a   : > { %9486 = vst [vmem:[%s11437_s19 + $0xf10] sm:$0xff] %v5673_v3  ;;  %9524 = vmatmul.msk.f32.gmra.mxu0 %vm3492_vm9, %v15361_v14  ;;  %9556 = vmatmul.msk.f32.gmra.mxu1 %vm3492_vm9, %v15361_v14 }
 0xc2b   : > { %9487 = vst [vmem:[%s11437_s19 + $0xf18] sm:$0xff] %v5786_v41  ;;  %v15526_v41 = vld [vmem:[%s11435_s4 + $0x98] sm:$0xff] }
 0xc2d   : > { %9589 = vmatmul.msk.f32.gmra.mxu2 %vm3492_vm9, %v15376_v43  ;;  %9621 = vmatmul.msk.f32.gmra.mxu3 %vm3492_vm9, %v15376_v43 }
 0xc2f   : > { %v5450_v27 = vpop.f32.mrf.mxu0  ;;  %v5563_v62 = vpop.f32.mrf.mxu1 }
 0xc30   : > { %9488 = vst [vmem:[%s11437_s19 + $0xf20] sm:$0xff] %v5450_v27  ;;  %v5676_v9 = vpop.f32.mrf.mxu2  ;;  %v5789_v22 = vpop.f32.mrf.mxu3 }
 0xc31   : > { %9489 = vst [vmem:[%s11437_s19 + $0xf28] sm:$0xff] %v5563_v62 }
 0xc32   : > { %9490 = vst [vmem:[%s11437_s19 + $0xf30] sm:$0xff] %v5676_v9  ;;  %9525 = vmatmul.msk.f32.gmra.mxu0 %vm3492_vm9, %v15376_v43  ;;  %9557 = vmatmul.msk.f32.gmra.mxu1 %vm3492_vm9, %v15376_v43 }
 0xc33   : > { %9491 = vst [vmem:[%s11437_s19 + $0xf38] sm:$0xff] %v5789_v22 }
 0xc35   : > { %9590 = vmatmul.msk.f32.gmra.mxu2 %vm3492_vm9, %v15391_v42  ;;  %9622 = vmatmul.msk.f32.gmra.mxu3 %vm3492_vm9, %v15391_v42 }
 0xc37   : > { %v5453_v40 = vpop.f32.mrf.mxu0  ;;  %v5566_v47 = vpop.f32.mrf.mxu1 }
 0xc38   : > { %9492 = vst [vmem:[%s11437_s19 + $0xf40] sm:$0xff] %v5453_v40  ;;  %v5679_v56 = vpop.f32.mrf.mxu2  ;;  %v5792_v50 = vpop.f32.mrf.mxu3  ;;  %v15541_v40 = vld [vmem:[%s11435_s4 + $0xa0] sm:$0xff] }
 0xc39   : > { %9493 = vst [vmem:[%s11437_s19 + $0xf48] sm:$0xff] %v5566_v47 }
 0xc3a   : > { %9494 = vst [vmem:[%s11437_s19 + $0xf50] sm:$0xff] %v5679_v56  ;;  %9526 = vmatmul.msk.f32.gmra.mxu0 %vm3492_vm9, %v15391_v42  ;;  %9558 = vmatmul.msk.f32.gmra.mxu1 %vm3492_vm9, %v15391_v42 }
 0xc3b   : > { %9495 = vst [vmem:[%s11437_s19 + $0xf58] sm:$0xff] %v5792_v50 }
 0xc3d   : > { %9591 = vmatmul.msk.f32.gmra.mxu2 %vm3492_vm9, %v15406_v25  ;;  %9623 = vmatmul.msk.f32.gmra.mxu3 %vm3492_vm9, %v15406_v25 }
 0xc3f   : > { %v5456_v6 = vpop.f32.mrf.mxu0  ;;  %v5569_v15 = vpop.f32.mrf.mxu1 }
 0xc40   : > { %9496 = vst [vmem:[%s11437_s19 + $0xf60] sm:$0xff] %v5456_v6  ;;  %v5682_v51 = vpop.f32.mrf.mxu2  ;;  %v5795_v5 = vpop.f32.mrf.mxu3 }
 0xc41   : > { %9497 = vst [vmem:[%s11437_s19 + $0xf68] sm:$0xff] %v5569_v15  ;;  %v15556_v15 = vld [vmem:[%s11435_s4 + $0xa8] sm:$0xff] }
 0xc42   : > { %9498 = vst [vmem:[%s11437_s19 + $0xf70] sm:$0xff] %v5682_v51  ;;  %9527 = vmatmul.msk.f32.gmra.mxu0 %vm3492_vm9, %v15406_v25  ;;  %9559 = vmatmul.msk.f32.gmra.mxu1 %vm3492_vm9, %v15406_v25 }
 0xc43   : > { %9499 = vst [vmem:[%s11437_s19 + $0xf78] sm:$0xff] %v5795_v5 }
 0xc45   : > { %9592 = vmatmul.msk.f32.gmra.mxu2 %vm3492_vm9, %v15421_v49  ;;  %9624 = vmatmul.msk.f32.gmra.mxu3 %vm3492_vm9, %v15421_v49 }
 0xc47   : > { %v5459_v46 = vpop.f32.mrf.mxu0  ;;  %v5572_v30 = vpop.f32.mrf.mxu1 }
 0xc48   : > { %9500 = vst [vmem:[%s11437_s19 + $0xf80] sm:$0xff] %v5459_v46  ;;  %v5685_v48 = vpop.f32.mrf.mxu2  ;;  %v5798_v36 = vpop.f32.mrf.mxu3  ;;  %v15571_v46 = vld [vmem:[%s11435_s4 + $0xb0] sm:$0xff] }
 0xc49   : > { %9501 = vst [vmem:[%s11437_s19 + $0xf88] sm:$0xff] %v5572_v30 }
 0xc4a   : > { %9502 = vst [vmem:[%s11437_s19 + $0xf90] sm:$0xff] %v5685_v48  ;;  %9528 = vmatmul.msk.f32.gmra.mxu0 %vm3492_vm9, %v15421_v49  ;;  %9560 = vmatmul.msk.f32.gmra.mxu1 %vm3492_vm9, %v15421_v49 }
 0xc4b   : > { %9503 = vst [vmem:[%s11437_s19 + $0xf98] sm:$0xff] %v5798_v36 }
 0xc4d   : > { %9593 = vmatmul.msk.f32.gmra.mxu2 %vm3492_vm9, %v15436_v63  ;;  %9625 = vmatmul.msk.f32.gmra.mxu3 %vm3492_vm9, %v15436_v63 }
 0xc4f   : > { %v5462_v0 = vpop.f32.mrf.mxu0  ;;  %v5575_v35 = vpop.f32.mrf.mxu1 }
 0xc50   : > { %9504 = vst [vmem:[%s11437_s19 + $0xfa0] sm:$0xff] %v5462_v0  ;;  %v5688_v29 = vpop.f32.mrf.mxu2  ;;  %v5801_v60 = vpop.f32.mrf.mxu3 }
 0xc51   : > { %9505 = vst [vmem:[%s11437_s19 + $0xfa8] sm:$0xff] %v5575_v35 }
 0xc52   : > { %9506 = vst [vmem:[%s11437_s19 + $0xfb0] sm:$0xff] %v5688_v29  ;;  %9529 = vmatmul.msk.f32.gmra.mxu0 %vm3492_vm9, %v15436_v63  ;;  %9561 = vmatmul.msk.f32.gmra.mxu1 %vm3492_vm9, %v15436_v63 }
 0xc53   : > { %9507 = vst [vmem:[%s11437_s19 + $0xfb8] sm:$0xff] %v5801_v60 }
 0xc55   : > { %9594 = vmatmul.msk.f32.gmra.mxu2 %vm3492_vm9, %v15451_v58  ;;  %9626 = vmatmul.msk.f32.gmra.mxu3 %vm3492_vm9, %v15451_v58 }
 0xc57   : > { %v5465_v7 = vpop.f32.mrf.mxu0  ;;  %v5578_v18 = vpop.f32.mrf.mxu1 }
 0xc58   : > { %9508 = vst [vmem:[%s11437_s19 + $0xfc0] sm:$0xff] %v5465_v7  ;;  %v5691_v2 = vpop.f32.mrf.mxu2  ;;  %v5804_v34 = vpop.f32.mrf.mxu3  ;;  %v15601_v7 = vld [vmem:[%s11435_s4 + $0xc0] sm:$0xff] }
 0xc59   : > { %9509 = vst [vmem:[%s11437_s19 + $0xfc8] sm:$0xff] %v5578_v18 }
 0xc5a   : > { %9510 = vst [vmem:[%s11437_s19 + $0xfd0] sm:$0xff] %v5691_v2  ;;  %9530 = vmatmul.msk.f32.gmra.mxu0 %vm3492_vm9, %v15451_v58  ;;  %9562 = vmatmul.msk.f32.gmra.mxu1 %vm3492_vm9, %v15451_v58 }
 0xc5b   : > { %9511 = vst [vmem:[%s11437_s19 + $0xfd8] sm:$0xff] %v5804_v34 }
 0xc5d   : > { %9595 = vmatmul.msk.f32.gmra.mxu2 %vm3492_vm9, %v15466_v39  ;;  %9627 = vmatmul.msk.f32.gmra.mxu3 %vm3492_vm9, %v15466_v39 }
 0xc5f   : > { %v5468_v23 = vpop.f32.mrf.mxu0  ;;  %v5581_v1 = vpop.f32.mrf.mxu1 }
 0xc60   : > { %9512 = vst [vmem:[%s11437_s19 + $0xfe0] sm:$0xff] %v5468_v23  ;;  %v5694_v59 = vpop.f32.mrf.mxu2  ;;  %v5807_v24 = vpop.f32.mrf.mxu3 }
 0xc61   : > { %9513 = vst [vmem:[%s11437_s19 + $0xfe8] sm:$0xff] %v5581_v1  ;;  %v15616_v1 = vld [vmem:[%s11435_s4 + $0xc8] sm:$0xff] }
 0xc62   : > { %9514 = vst [vmem:[%s11437_s19 + $0xff0] sm:$0xff] %v5694_v59  ;;  %9531 = vmatmul.msk.f32.gmra.mxu0 %vm3492_vm9, %v15466_v39  ;;  %9563 = vmatmul.msk.f32.gmra.mxu1 %vm3492_vm9, %v15466_v39 }
 0xc63   : > { %9515 = vst [vmem:[%s11437_s19 + $0xff8] sm:$0xff] %v5807_v24 }
 0xc65   : > { %9596 = vmatmul.msk.f32.gmra.mxu2 %vm3492_vm9, %v15481_v32  ;;  %9628 = vmatmul.msk.f32.gmra.mxu3 %vm3492_vm9, %v15481_v32 }
 0xc67   : > { %v5965_v31 = vpop.f32.mrf.mxu0  ;;  %v6078_v13 = vpop.f32.mrf.mxu1 }
 0xc68   : > { %9644 = vst [vmem:[%s11437_s19 + $0x1000] sm:$0xff] %v5965_v31  ;;  %v6191_v17 = vpop.f32.mrf.mxu2  ;;  %v6304_v12 = vpop.f32.mrf.mxu3 }
 0xc69   : > { %9645 = vst [vmem:[%s11437_s19 + $0x1008] sm:$0xff] %v6078_v13 }
 0xc6a   : > { %9646 = vst [vmem:[%s11437_s19 + $0x1010] sm:$0xff] %v6191_v17  ;;  %9532 = vmatmul.msk.f32.gmra.mxu0 %vm3492_vm9, %v15481_v32  ;;  %9564 = vmatmul.msk.f32.gmra.mxu1 %vm3492_vm9, %v15481_v32  ;;  %v15631_v17 = vld [vmem:[%s11435_s4 + $0xd0] sm:$0xff] }
 0xc6b   : > { %9647 = vst [vmem:[%s11437_s19 + $0x1018] sm:$0xff] %v6304_v12 }
 0xc6d   : > { %9597 = vmatmul.msk.f32.gmra.mxu2 %vm3492_vm9, %v15496_v8  ;;  %9629 = vmatmul.msk.f32.gmra.mxu3 %vm3492_vm9, %v15496_v8 }
 0xc6f   : > { %v5968_v11 = vpop.f32.mrf.mxu0  ;;  %v6081_v20 = vpop.f32.mrf.mxu1 }
 0xc70   : > { %9648 = vst [vmem:[%s11437_s19 + $0x1020] sm:$0xff] %v5968_v11  ;;  %v6194_v26 = vpop.f32.mrf.mxu2  ;;  %v6307_v38 = vpop.f32.mrf.mxu3 }
 0xc71   : > { %9649 = vst [vmem:[%s11437_s19 + $0x1028] sm:$0xff] %v6081_v20 }
 0xc72   : > { %9650 = vst [vmem:[%s11437_s19 + $0x1030] sm:$0xff] %v6194_v26  ;;  %9533 = vmatmul.msk.f32.gmra.mxu0 %vm3492_vm9, %v15496_v8  ;;  %9565 = vmatmul.msk.f32.gmra.mxu1 %vm3492_vm9, %v15496_v8 }
 0xc73   : > { %9651 = vst [vmem:[%s11437_s19 + $0x1038] sm:$0xff] %v6307_v38  ;;  %v15646_v38 = vld [vmem:[%s11435_s4 + $0xd8] sm:$0xff] }
 0xc75   : > { %9598 = vmatmul.msk.f32.gmra.mxu2 %vm3492_vm9, %v15511_v54  ;;  %9630 = vmatmul.msk.f32.gmra.mxu3 %vm3492_vm9, %v15511_v54 }
 0xc77   : > { %v5971_v10 = vpop.f32.mrf.mxu0  ;;  %v6084_v4 = vpop.f32.mrf.mxu1 }
 0xc78   : > { %9652 = vst [vmem:[%s11437_s19 + $0x1040] sm:$0xff] %v5971_v10  ;;  %v6197_v55 = vpop.f32.mrf.mxu2  ;;  %v6310_v3 = vpop.f32.mrf.mxu3 }
 0xc79   : > { %9653 = vst [vmem:[%s11437_s19 + $0x1048] sm:$0xff] %v6084_v4 }
 0xc7a   : > { %9654 = vst [vmem:[%s11437_s19 + $0x1050] sm:$0xff] %v6197_v55  ;;  %9534 = vmatmul.msk.f32.gmra.mxu0 %vm3492_vm9, %v15511_v54  ;;  %9566 = vmatmul.msk.f32.gmra.mxu1 %vm3492_vm9, %v15511_v54 }
 0xc7b   : > { %9655 = vst [vmem:[%s11437_s19 + $0x1058] sm:$0xff] %v6310_v3 }
 0xc7d   : > { %9599 = vmatmul.msk.f32.gmra.mxu2 %vm3492_vm9, %v15526_v41  ;;  %9631 = vmatmul.msk.f32.gmra.mxu3 %vm3492_vm9, %v15526_v41 }
 0xc7f   : > { %v5974_v27 = vpop.f32.mrf.mxu0  ;;  %v6087_v62 = vpop.f32.mrf.mxu1 }
 0xc80   : > { %9656 = vst [vmem:[%s11437_s19 + $0x1060] sm:$0xff] %v5974_v27  ;;  %v6200_v9 = vpop.f32.mrf.mxu2  ;;  %v6313_v22 = vpop.f32.mrf.mxu3  ;;  %v15661_v27 = vld [vmem:[%s11435_s4 + $0xe0] sm:$0xff] }
 0xc81   : > { %9657 = vst [vmem:[%s11437_s19 + $0x1068] sm:$0xff] %v6087_v62  ;;  %v7126_v62 = vld [vmem:[#allocation2 + $0x68] sm:$0xff] }
 0xc82   : > { %9658 = vst [vmem:[%s11437_s19 + $0x1070] sm:$0xff] %v6200_v9  ;;  %9535 = vmatmul.msk.f32.gmra.mxu0 %vm3492_vm9, %v15526_v41  ;;  %9567 = vmatmul.msk.f32.gmra.mxu1 %vm3492_vm9, %v15526_v41  ;;  %v7127_v9 = vld [vmem:[#allocation2 + $0x190] sm:$0xff] }
 0xc83   : > { %9659 = vst [vmem:[%s11437_s19 + $0x1078] sm:$0xff] %v6313_v22  ;;  %7368 = vmatpush.msra.mxu2 %v7126_v62  ;;  %7481 = vmatpush.msra.mxu3 %v7127_v9 }
 0xc85   : > { %9600 = vmatmul.msk.f32.gmra.mxu2 %vm3492_vm9, %v15541_v40  ;;  %9632 = vmatmul.msk.f32.gmra.mxu3 %vm3492_vm9, %v15541_v40 }
 0xc87   : > { %v5977_v47 = vpop.f32.mrf.mxu0  ;;  %v6090_v56 = vpop.f32.mrf.mxu1 }
 0xc88   : > { %9660 = vst [vmem:[%s11437_s19 + $0x1080] sm:$0xff] %v5977_v47  ;;  %v6203_v50 = vpop.f32.mrf.mxu2  ;;  %v6316_v6 = vpop.f32.mrf.mxu3 }
 0xc89   : > { %9661 = vst [vmem:[%s11437_s19 + $0x1088] sm:$0xff] %v6090_v56 }
 0xc8a   : > { %9662 = vst [vmem:[%s11437_s19 + $0x1090] sm:$0xff] %v6203_v50  ;;  %9536 = vmatmul.msk.f32.gmra.mxu0 %vm3492_vm9, %v15541_v40  ;;  %9568 = vmatmul.msk.f32.gmra.mxu1 %vm3492_vm9, %v15541_v40 }
 0xc8b   : > { %9663 = vst [vmem:[%s11437_s19 + $0x1098] sm:$0xff] %v6316_v6  ;;  %v7124_v6 = vld [vmem:[#allocation2 + $0x170] sm:$0xff] }
 0xc8c   : > { %7142 = vmatpush.msra.mxu0 %v7124_v6 }
 0xc8d   : > { %9601 = vmatmul.msk.f32.gmra.mxu2 %vm3492_vm9, %v15556_v15  ;;  %9633 = vmatmul.msk.f32.gmra.mxu3 %vm3492_vm9, %v15556_v15 }
 0xc8f   : > { %v5980_v51 = vpop.f32.mrf.mxu0  ;;  %v6093_v5 = vpop.f32.mrf.mxu1 }
 0xc90   : > { %9664 = vst [vmem:[%s11437_s19 + $0x10a0] sm:$0xff] %v5980_v51  ;;  %v6206_v61 = vpop.f32.mrf.mxu2  ;;  %v6319_v37 = vpop.f32.mrf.mxu3  ;;  %v7125_v51 = vld [vmem:[#allocation2 + $0x178] sm:$0xff] }
 0xc91   : > { %9665 = vst [vmem:[%s11437_s19 + $0x10a8] sm:$0xff] %v6093_v5  ;;  %7255 = vmatpush.msra.mxu1 %v7125_v51  ;;  %v15676_v5 = vld [vmem:[%s11435_s4 + $0xe8] sm:$0xff] }
 0xc92   : > { %9666 = vst [vmem:[%s11437_s19 + $0x10b0] sm:$0xff] %v6206_v61  ;;  %9537 = vmatmul.msk.f32.gmra.mxu0 %vm3492_vm9, %v15556_v15  ;;  %9569 = vmatmul.msk.f32.gmra.mxu1 %vm3492_vm9, %v15556_v15 }
 0xc93   : > { %9667 = vst [vmem:[%s11437_s19 + $0x10b8] sm:$0xff] %v6319_v37 }
 0xc95   : > { %9602 = vmatmul.msk.f32.gmra.mxu2 %vm3492_vm9, %v15571_v46  ;;  %9634 = vmatmul.msk.f32.gmra.mxu3 %vm3492_vm9, %v15571_v46 }
 0xc97   : > { %v5983_v30 = vpop.f32.mrf.mxu0  ;;  %v6096_v48 = vpop.f32.mrf.mxu1 }
 0xc98   : > { %9668 = vst [vmem:[%s11437_s19 + $0x10c0] sm:$0xff] %v5983_v30  ;;  %v6209_v36 = vpop.f32.mrf.mxu2  ;;  %v6322_v28 = vpop.f32.mrf.mxu3 }
 0xc99   : > { %9669 = vst [vmem:[%s11437_s19 + $0x10c8] sm:$0xff] %v6096_v48 }
 0xc9a   : > { %9670 = vst [vmem:[%s11437_s19 + $0x10d0] sm:$0xff] %v6209_v36  ;;  %9538 = vmatmul.msk.f32.gmra.mxu0 %vm3492_vm9, %v15571_v46  ;;  %9570 = vmatmul.msk.f32.gmra.mxu1 %vm3492_vm9, %v15571_v46  ;;  %v15691_v36 = vld [vmem:[%s11435_s4 + $0xf0] sm:$0xff] }
 0xc9b   : > { %9671 = vst [vmem:[%s11437_s19 + $0x10d8] sm:$0xff] %v6322_v28 }
 0xc9d   : > { %9603 = vmatmul.msk.f32.gmra.mxu2 %vm3492_vm9, %v15586_v16  ;;  %9635 = vmatmul.msk.f32.gmra.mxu3 %vm3492_vm9, %v15586_v16 }
 0xc9f   : > { %v5986_v0 = vpop.f32.mrf.mxu0  ;;  %v6099_v35 = vpop.f32.mrf.mxu1 }
 0xca0   : > { %9672 = vst [vmem:[%s11437_s19 + $0x10e0] sm:$0xff] %v5986_v0  ;;  %v6212_v29 = vpop.f32.mrf.mxu2  ;;  %v6325_v60 = vpop.f32.mrf.mxu3 }
 0xca1   : > { %9673 = vst [vmem:[%s11437_s19 + $0x10e8] sm:$0xff] %v6099_v35 }
 0xca2   : > { %9674 = vst [vmem:[%s11437_s19 + $0x10f0] sm:$0xff] %v6212_v29  ;;  %9539 = vmatmul.msk.f32.gmra.mxu0 %vm3492_vm9, %v15586_v16  ;;  %9571 = vmatmul.msk.f32.gmra.mxu1 %vm3492_vm9, %v15586_v16 }
 0xca3   : > { %9675 = vst [vmem:[%s11437_s19 + $0x10f8] sm:$0xff] %v6325_v60  ;;  %v15706_v60 = vld [vmem:[%s11435_s4 + $0xf8] sm:$0xff] }
 0xca5   : > { %9604 = vmatmul.msk.f32.gmra.mxu2 %vm3492_vm9, %v15601_v7  ;;  %9636 = vmatmul.msk.f32.gmra.mxu3 %vm3492_vm9, %v15601_v7 }
 0xca7   : > { %v5989_v18 = vpop.f32.mrf.mxu0  ;;  %v6102_v2 = vpop.f32.mrf.mxu1 }
 0xca8   : > { %9676 = vst [vmem:[%s11437_s19 + $0x1100] sm:$0xff] %v5989_v18  ;;  %v6215_v34 = vpop.f32.mrf.mxu2  ;;  %v6328_v23 = vpop.f32.mrf.mxu3 }
 0xca9   : > { %9677 = vst [vmem:[%s11437_s19 + $0x1108] sm:$0xff] %v6102_v2 }
 0xcaa   : > { %9678 = vst [vmem:[%s11437_s19 + $0x1110] sm:$0xff] %v6215_v34  ;;  %9540 = vmatmul.msk.f32.gmra.mxu0 %vm3492_vm9, %v15601_v7  ;;  %9572 = vmatmul.msk.f32.gmra.mxu1 %vm3492_vm9, %v15601_v7 }
 0xcab   : > { %9679 = vst [vmem:[%s11437_s19 + $0x1118] sm:$0xff] %v6328_v23 }
 0xcad   : > { %9605 = vmatmul.msk.f32.gmra.mxu2 %vm3492_vm9, %v15616_v1  ;;  %9637 = vmatmul.msk.f32.gmra.mxu3 %vm3492_vm9, %v15616_v1 }
 0xcaf   : > { %v5992_v59 = vpop.f32.mrf.mxu0  ;;  %v6105_v24 = vpop.f32.mrf.mxu1 }
 0xcb0   : > { %9680 = vst [vmem:[%s11437_s19 + $0x1120] sm:$0xff] %v5992_v59  ;;  %v6218_v31 = vpop.f32.mrf.mxu2  ;;  %v6331_v13 = vpop.f32.mrf.mxu3 }
 0xcb1   : > { %9681 = vst [vmem:[%s11437_s19 + $0x1128] sm:$0xff] %v6105_v24 }
 0xcb2   : > { %9682 = vst [vmem:[%s11437_s19 + $0x1130] sm:$0xff] %v6218_v31  ;;  %9541 = vmatmul.msk.f32.gmra.mxu0 %vm3492_vm9, %v15616_v1  ;;  %9573 = vmatmul.msk.f32.gmra.mxu1 %vm3492_vm9, %v15616_v1 }
 0xcb3   : > { %9683 = vst [vmem:[%s11437_s19 + $0x1138] sm:$0xff] %v6331_v13 }
 0xcb5   : > { %9606 = vmatmul.msk.f32.gmra.mxu2 %vm3492_vm9, %v15631_v17  ;;  %9638 = vmatmul.msk.f32.gmra.mxu3 %vm3492_vm9, %v15631_v17 }
 0xcb7   : > { %v5995_v12 = vpop.f32.mrf.mxu0  ;;  %v6108_v11 = vpop.f32.mrf.mxu1 }
 0xcb8   : > { %9684 = vst [vmem:[%s11437_s19 + $0x1140] sm:$0xff] %v5995_v12  ;;  %v6221_v20 = vpop.f32.mrf.mxu2  ;;  %v6334_v26 = vpop.f32.mrf.mxu3 }
 0xcb9   : > { %9685 = vst [vmem:[%s11437_s19 + $0x1148] sm:$0xff] %v6108_v11 }
 0xcba   : > { %9686 = vst [vmem:[%s11437_s19 + $0x1150] sm:$0xff] %v6221_v20  ;;  %9542 = vmatmul.msk.f32.gmra.mxu0 %vm3492_vm9, %v15631_v17  ;;  %9574 = vmatmul.msk.f32.gmra.mxu1 %vm3492_vm9, %v15631_v17 }
 0xcbb   : > { %9687 = vst [vmem:[%s11437_s19 + $0x1158] sm:$0xff] %v6334_v26 }
 0xcbd   : > { %9607 = vmatmul.msk.f32.gmra.mxu2 %vm3492_vm9, %v15646_v38  ;;  %9639 = vmatmul.msk.f32.gmra.mxu3 %vm3492_vm9, %v15646_v38 }
 0xcbf   : > { %v5998_v10 = vpop.f32.mrf.mxu0  ;;  %v6111_v4 = vpop.f32.mrf.mxu1 }
 0xcc0   : > { %9688 = vst [vmem:[%s11437_s19 + $0x1160] sm:$0xff] %v5998_v10  ;;  %v6224_v55 = vpop.f32.mrf.mxu2  ;;  %v6337_v3 = vpop.f32.mrf.mxu3 }
 0xcc1   : > { %9689 = vst [vmem:[%s11437_s19 + $0x1168] sm:$0xff] %v6111_v4 }
 0xcc2   : > { %9690 = vst [vmem:[%s11437_s19 + $0x1170] sm:$0xff] %v6224_v55  ;;  %9543 = vmatmul.msk.f32.gmra.mxu0 %vm3492_vm9, %v15646_v38  ;;  %9575 = vmatmul.msk.f32.gmra.mxu1 %vm3492_vm9, %v15646_v38 }
 0xcc3   : > { %9691 = vst [vmem:[%s11437_s19 + $0x1178] sm:$0xff] %v6337_v3 }
 0xcc5   : > { %9608 = vmatmul.msk.f32.gmra.mxu2 %vm3492_vm9, %v15661_v27  ;;  %9640 = vmatmul.msk.f32.gmra.mxu3 %vm3492_vm9, %v15661_v27 }
 0xcc7   : > { %v6001_v22 = vpop.f32.mrf.mxu0  ;;  %v6114_v47 = vpop.f32.mrf.mxu1 }
 0xcc8   : > { %9692 = vst [vmem:[%s11437_s19 + $0x1180] sm:$0xff] %v6001_v22  ;;  %v6227_v56 = vpop.f32.mrf.mxu2  ;;  %v6340_v50 = vpop.f32.mrf.mxu3 }
 0xcc9   : > { %9693 = vst [vmem:[%s11437_s19 + $0x1188] sm:$0xff] %v6114_v47 }
 0xcca   : > { %9694 = vst [vmem:[%s11437_s19 + $0x1190] sm:$0xff] %v6227_v56  ;;  %9544 = vmatmul.msk.f32.gmra.mxu0 %vm3492_vm9, %v15661_v27  ;;  %9576 = vmatmul.msk.f32.gmra.mxu1 %vm3492_vm9, %v15661_v27 }
 0xccb   : > { %9695 = vst [vmem:[%s11437_s19 + $0x1198] sm:$0xff] %v6340_v50 }
 0xccd   : > { %9609 = vmatmul.msk.f32.gmra.mxu2 %vm3492_vm9, %v15676_v5  ;;  %9641 = vmatmul.msk.f32.gmra.mxu3 %vm3492_vm9, %v15676_v5 }
 0xccf   : > { %v6004_v61 = vpop.f32.mrf.mxu0  ;;  %v6117_v37 = vpop.f32.mrf.mxu1 }
 0xcd0   : > { %9696 = vst [vmem:[%s11437_s19 + $0x11a0] sm:$0xff] %v6004_v61  ;;  %v6230_v30 = vpop.f32.mrf.mxu2  ;;  %v6343_v48 = vpop.f32.mrf.mxu3 }
 0xcd1   : > { %9697 = vst [vmem:[%s11437_s19 + $0x11a8] sm:$0xff] %v6117_v37 }
 0xcd2   : > { %9698 = vst [vmem:[%s11437_s19 + $0x11b0] sm:$0xff] %v6230_v30  ;;  %9545 = vmatmul.msk.f32.gmra.mxu0 %vm3492_vm9, %v15676_v5  ;;  %9577 = vmatmul.msk.f32.gmra.mxu1 %vm3492_vm9, %v15676_v5 }
 0xcd3   : > { %9699 = vst [vmem:[%s11437_s19 + $0x11b8] sm:$0xff] %v6343_v48 }
 0xcd5   : > { %9610 = vmatmul.msk.f32.gmra.mxu2 %vm3492_vm9, %v15691_v36  ;;  %9642 = vmatmul.msk.f32.gmra.mxu3 %vm3492_vm9, %v15691_v36 }
 0xcd7   : > { %v6007_v28 = vpop.f32.mrf.mxu0  ;;  %v6120_v0 = vpop.f32.mrf.mxu1 }
 0xcd8   : > { %9700 = vst [vmem:[%s11437_s19 + $0x11c0] sm:$0xff] %v6007_v28  ;;  %v6233_v35 = vpop.f32.mrf.mxu2  ;;  %v6346_v29 = vpop.f32.mrf.mxu3 }
 0xcd9   : > { %9701 = vst [vmem:[%s11437_s19 + $0x11c8] sm:$0xff] %v6120_v0 }
 0xcda   : > { %9702 = vst [vmem:[%s11437_s19 + $0x11d0] sm:$0xff] %v6233_v35  ;;  %9546 = vmatmul.msk.f32.gmra.mxu0 %vm3492_vm9, %v15691_v36  ;;  %9578 = vmatmul.msk.f32.gmra.mxu1 %vm3492_vm9, %v15691_v36 }
 0xcdb   : > { %9703 = vst [vmem:[%s11437_s19 + $0x11d8] sm:$0xff] %v6346_v29 }
 0xcdd   : > { %9611 = vmatmul.msk.f32.gmra.mxu2 %vm3492_vm9, %v15706_v60  ;;  %9643 = vmatmul.msk.f32.gmra.mxu3 %vm3492_vm9, %v15706_v60 }
 0xcdf   : > { %v6010_v18 = vpop.f32.mrf.mxu0  ;;  %v6123_v2 = vpop.f32.mrf.mxu1 }
 0xce0   : > { %9704 = vst [vmem:[%s11437_s19 + $0x11e0] sm:$0xff] %v6010_v18  ;;  %v6236_v34 = vpop.f32.mrf.mxu2  ;;  %v6349_v23 = vpop.f32.mrf.mxu3 }
 0xce1   : > { %9705 = vst [vmem:[%s11437_s19 + $0x11e8] sm:$0xff] %v6123_v2 }
 0xce2   : > { %9706 = vst [vmem:[%s11437_s19 + $0x11f0] sm:$0xff] %v6236_v34  ;;  %9547 = vmatmul.msk.f32.gmra.mxu0 %vm3492_vm9, %v15706_v60  ;;  %9579 = vmatmul.msk.f32.gmra.mxu1 %vm3492_vm9, %v15706_v60 }
 0xce3   : > { %9707 = vst [vmem:[%s11437_s19 + $0x11f8] sm:$0xff] %v6349_v23 }
 0xce5   : > { %9836 = vmatmul.msk.f32.vlgmr.msrb.gmra.mxu2 %vm3492_vm9, %v15241_v57  ;;  %9868 = vmatmul.msk.f32.vlgmr.msrb.gmra.mxu3 %vm3492_vm9, %v15241_v57 }
 0xce7   : > { %v6013_v59 = vpop.f32.mrf.mxu0  ;;  %v6126_v24 = vpop.f32.mrf.mxu1 }
 0xce8   : > { %9708 = vst [vmem:[%s11437_s19 + $0x1200] sm:$0xff] %v6013_v59  ;;  %v6239_v31 = vpop.f32.mrf.mxu2  ;;  %v6352_v13 = vpop.f32.mrf.mxu3 }
 0xce9   : > { %9709 = vst [vmem:[%s11437_s19 + $0x1208] sm:$0xff] %v6126_v24 }
 0xcea   : > { %9710 = vst [vmem:[%s11437_s19 + $0x1210] sm:$0xff] %v6239_v31  ;;  %9772 = vmatmul.msk.f32.vlgmr.msrb.gmra.mxu0 %vm3492_vm9, %v15241_v57  ;;  %9804 = vmatmul.msk.f32.vlgmr.msrb.gmra.mxu1 %vm3492_vm9, %v15241_v57 }
 0xceb   : > { %9711 = vst [vmem:[%s11437_s19 + $0x1218] sm:$0xff] %v6352_v13 }
 0xced   : > { %9837 = vmatmul.msk.f32.gmra.mxu2 %vm3492_vm9, %v15256_v19  ;;  %9869 = vmatmul.msk.f32.gmra.mxu3 %vm3492_vm9, %v15256_v19 }
 0xcef   : > { %v6016_v12 = vpop.f32.mrf.mxu0  ;;  %v6129_v11 = vpop.f32.mrf.mxu1 }
 0xcf0   : > { %9712 = vst [vmem:[%s11437_s19 + $0x1220] sm:$0xff] %v6016_v12  ;;  %v6242_v20 = vpop.f32.mrf.mxu2  ;;  %v6355_v26 = vpop.f32.mrf.mxu3 }
 0xcf1   : > { %9713 = vst [vmem:[%s11437_s19 + $0x1228] sm:$0xff] %v6129_v11 }
 0xcf2   : > { %9714 = vst [vmem:[%s11437_s19 + $0x1230] sm:$0xff] %v6242_v20  ;;  %9773 = vmatmul.msk.f32.gmra.mxu0 %vm3492_vm9, %v15256_v19  ;;  %9805 = vmatmul.msk.f32.gmra.mxu1 %vm3492_vm9, %v15256_v19  ;;  %v7123_v20 = vld [vmem:[#allocation2 + $0x1c8] sm:$0xff] }
 0xcf3   : > { %9715 = vst [vmem:[%s11437_s19 + $0x1238] sm:$0xff] %v6355_v26  ;;  %7482 = vmatpush.msra.mxu3 %v7123_v20 }
 0xcf5   : > { %9838 = vmatmul.msk.f32.gmra.mxu2 %vm3492_vm9, %v15271_v52  ;;  %9870 = vmatmul.msk.f32.gmra.mxu3 %vm3492_vm9, %v15271_v52 }
 0xcf7   : > { %v6019_v57 = vpop.f32.mrf.mxu0  ;;  %v6132_v10 = vpop.f32.mrf.mxu1 }
 0xcf8   : > { %9716 = vst [vmem:[%s11437_s19 + $0x1240] sm:$0xff] %v6019_v57  ;;  %v6245_v4 = vpop.f32.mrf.mxu2  ;;  %v6358_v55 = vpop.f32.mrf.mxu3 }
 0xcf9   : > { %9717 = vst [vmem:[%s11437_s19 + $0x1248] sm:$0xff] %v6132_v10 }
 0xcfa   : > { %9718 = vst [vmem:[%s11437_s19 + $0x1250] sm:$0xff] %v6245_v4  ;;  %9774 = vmatmul.msk.f32.gmra.mxu0 %vm3492_vm9, %v15271_v52  ;;  %9806 = vmatmul.msk.f32.gmra.mxu1 %vm3492_vm9, %v15271_v52 }
 0xcfb   : > { %9719 = vst [vmem:[%s11437_s19 + $0x1258] sm:$0xff] %v6358_v55  ;;  %v7121_v55 = vld [vmem:[#allocation2 + $0x88] sm:$0xff] }
 0xcfc   : > { %7256 = vmatpush.msra.mxu1 %v7121_v55 }
 0xcfd   : > { %9839 = vmatmul.msk.f32.gmra.mxu2 %vm3492_vm9, %v15286_v45  ;;  %9871 = vmatmul.msk.f32.gmra.mxu3 %vm3492_vm9, %v15286_v45 }
 0xcff   : > { %v6022_v19 = vpop.f32.mrf.mxu0  ;;  %v6135_v3 = vpop.f32.mrf.mxu1 }
 0xd00   : > { %9720 = vst [vmem:[%s11437_s19 + $0x1260] sm:$0xff] %v6022_v19  ;;  %v6248_v62 = vpop.f32.mrf.mxu2  ;;  %v6361_v9 = vpop.f32.mrf.mxu3 }
 0xd01   : > { %9721 = vst [vmem:[%s11437_s19 + $0x1268] sm:$0xff] %v6135_v3 }
 0xd02   : > { %9722 = vst [vmem:[%s11437_s19 + $0x1270] sm:$0xff] %v6248_v62  ;;  %9775 = vmatmul.msk.f32.gmra.mxu0 %vm3492_vm9, %v15286_v45  ;;  %9807 = vmatmul.msk.f32.gmra.mxu1 %vm3492_vm9, %v15286_v45 }
 0xd03   : > { %9723 = vst [vmem:[%s11437_s19 + $0x1278] sm:$0xff] %v6361_v9 }
 0xd05   : > { %9840 = vmatmul.msk.f32.gmra.mxu2 %vm3492_vm9, %v15301_v44  ;;  %9872 = vmatmul.msk.f32.gmra.mxu3 %vm3492_vm9, %v15301_v44 }
 0xd07   : > { %v6025_v52 = vpop.f32.mrf.mxu0  ;;  %v6138_v22 = vpop.f32.mrf.mxu1 }
 0xd08   : > { %9724 = vst [vmem:[%s11437_s19 + $0x1280] sm:$0xff] %v6025_v52  ;;  %v6251_v47 = vpop.f32.mrf.mxu2  ;;  %v6364_v56 = vpop.f32.mrf.mxu3 }
 0xd09   : > { %9725 = vst [vmem:[%s11437_s19 + $0x1288] sm:$0xff] %v6138_v22 }
 0xd0a   : > { %9726 = vst [vmem:[%s11437_s19 + $0x1290] sm:$0xff] %v6251_v47  ;;  %9776 = vmatmul.msk.f32.gmra.mxu0 %vm3492_vm9, %v15301_v44  ;;  %9808 = vmatmul.msk.f32.gmra.mxu1 %vm3492_vm9, %v15301_v44 }
 0xd0b   : > { %9727 = vst [vmem:[%s11437_s19 + $0x1298] sm:$0xff] %v6364_v56 }
 0xd0d   : > { %9841 = vmatmul.msk.f32.gmra.mxu2 %vm3492_vm9, %v15316_v53  ;;  %9873 = vmatmul.msk.f32.gmra.mxu3 %vm3492_vm9, %v15316_v53 }
 0xd0f   : > { %v6028_v45 = vpop.f32.mrf.mxu0  ;;  %v6141_v50 = vpop.f32.mrf.mxu1 }
 0xd10   : > { %9728 = vst [vmem:[%s11437_s19 + $0x12a0] sm:$0xff] %v6028_v45  ;;  %v6254_v6 = vpop.f32.mrf.mxu2  ;;  %v6367_v51 = vpop.f32.mrf.mxu3 }
 0xd11   : > { %9729 = vst [vmem:[%s11437_s19 + $0x12a8] sm:$0xff] %v6141_v50 }
 0xd12   : > { %9730 = vst [vmem:[%s11437_s19 + $0x12b0] sm:$0xff] %v6254_v6  ;;  %9777 = vmatmul.msk.f32.gmra.mxu0 %vm3492_vm9, %v15316_v53  ;;  %9809 = vmatmul.msk.f32.gmra.mxu1 %vm3492_vm9, %v15316_v53 }
 0xd13   : > { %9731 = vst [vmem:[%s11437_s19 + $0x12b8] sm:$0xff] %v6367_v51 }
 0xd15   : > { %9842 = vmatmul.msk.f32.gmra.mxu2 %vm3492_vm9, %v15331_v33  ;;  %9874 = vmatmul.msk.f32.gmra.mxu3 %vm3492_vm9, %v15331_v33 }
 0xd17   : > { %v6031_v44 = vpop.f32.mrf.mxu0  ;;  %v6144_v61 = vpop.f32.mrf.mxu1 }
 0xd18   : > { %9732 = vst [vmem:[%s11437_s19 + $0x12c0] sm:$0xff] %v6031_v44  ;;  %v6257_v37 = vpop.f32.mrf.mxu2  ;;  %v6370_v30 = vpop.f32.mrf.mxu3 }
 0xd19   : > { %9733 = vst [vmem:[%s11437_s19 + $0x12c8] sm:$0xff] %v6144_v61 }
 0xd1a   : > { %9734 = vst [vmem:[%s11437_s19 + $0x12d0] sm:$0xff] %v6257_v37  ;;  %9778 = vmatmul.msk.f32.gmra.mxu0 %vm3492_vm9, %v15331_v33  ;;  %9810 = vmatmul.msk.f32.gmra.mxu1 %vm3492_vm9, %v15331_v33 }
 0xd1b   : > { %9735 = vst [vmem:[%s11437_s19 + $0x12d8] sm:$0xff] %v6370_v30 }
 0xd1d   : > { %9843 = vmatmul.msk.f32.gmra.mxu2 %vm3492_vm9, %v15346_v21  ;;  %9875 = vmatmul.msk.f32.gmra.mxu3 %vm3492_vm9, %v15346_v21 }
 0xd1f   : > { %v6034_v53 = vpop.f32.mrf.mxu0  ;;  %v6147_v48 = vpop.f32.mrf.mxu1 }
 0xd20   : > { %9736 = vst [vmem:[%s11437_s19 + $0x12e0] sm:$0xff] %v6034_v53  ;;  %v6260_v28 = vpop.f32.mrf.mxu2  ;;  %v6373_v0 = vpop.f32.mrf.mxu3 }
 0xd21   : > { %9737 = vst [vmem:[%s11437_s19 + $0x12e8] sm:$0xff] %v6147_v48 }
 0xd22   : > { %9738 = vst [vmem:[%s11437_s19 + $0x12f0] sm:$0xff] %v6260_v28  ;;  %9779 = vmatmul.msk.f32.gmra.mxu0 %vm3492_vm9, %v15346_v21  ;;  %9811 = vmatmul.msk.f32.gmra.mxu1 %vm3492_vm9, %v15346_v21 }
 0xd23   : > { %9739 = vst [vmem:[%s11437_s19 + $0x12f8] sm:$0xff] %v6373_v0 }
 0xd25   : > { %9844 = vmatmul.msk.f32.gmra.mxu2 %vm3492_vm9, %v15361_v14  ;;  %9876 = vmatmul.msk.f32.gmra.mxu3 %vm3492_vm9, %v15361_v14 }
 0xd27   : > { %v6037_v33 = vpop.f32.mrf.mxu0  ;;  %v6150_v35 = vpop.f32.mrf.mxu1 }
 0xd28   : > { %9740 = vst [vmem:[%s11437_s19 + $0x1300] sm:$0xff] %v6037_v33  ;;  %v6263_v29 = vpop.f32.mrf.mxu2  ;;  %v6376_v18 = vpop.f32.mrf.mxu3 }
 0xd29   : > { %9741 = vst [vmem:[%s11437_s19 + $0x1308] sm:$0xff] %v6150_v35 }
 0xd2a   : > { %9742 = vst [vmem:[%s11437_s19 + $0x1310] sm:$0xff] %v6263_v29  ;;  %9780 = vmatmul.msk.f32.gmra.mxu0 %vm3492_vm9, %v15361_v14  ;;  %9812 = vmatmul.msk.f32.gmra.mxu1 %vm3492_vm9, %v15361_v14 }
 0xd2b   : > { %9743 = vst [vmem:[%s11437_s19 + $0x1318] sm:$0xff] %v6376_v18 }
 0xd2d   : > { %9845 = vmatmul.msk.f32.gmra.mxu2 %vm3492_vm9, %v15376_v43  ;;  %9877 = vmatmul.msk.f32.gmra.mxu3 %vm3492_vm9, %v15376_v43 }
 0xd2f   : > { %v6040_v21 = vpop.f32.mrf.mxu0  ;;  %v6153_v2 = vpop.f32.mrf.mxu1 }
 0xd30   : > { %9744 = vst [vmem:[%s11437_s19 + $0x1320] sm:$0xff] %v6040_v21  ;;  %v6266_v34 = vpop.f32.mrf.mxu2  ;;  %v6379_v23 = vpop.f32.mrf.mxu3 }
 0xd31   : > { %9745 = vst [vmem:[%s11437_s19 + $0x1328] sm:$0xff] %v6153_v2 }
 0xd32   : > { %9746 = vst [vmem:[%s11437_s19 + $0x1330] sm:$0xff] %v6266_v34  ;;  %9781 = vmatmul.msk.f32.gmra.mxu0 %vm3492_vm9, %v15376_v43  ;;  %9813 = vmatmul.msk.f32.gmra.mxu1 %vm3492_vm9, %v15376_v43 }
 0xd33   : > { %9747 = vst [vmem:[%s11437_s19 + $0x1338] sm:$0xff] %v6379_v23 }
 0xd35   : > { %9846 = vmatmul.msk.f32.gmra.mxu2 %vm3492_vm9, %v15391_v42  ;;  %9878 = vmatmul.msk.f32.gmra.mxu3 %vm3492_vm9, %v15391_v42 }
 0xd37   : > { %v6043_v14 = vpop.f32.mrf.mxu0  ;;  %v6156_v59 = vpop.f32.mrf.mxu1 }
 0xd38   : > { %9748 = vst [vmem:[%s11437_s19 + $0x1340] sm:$0xff] %v6043_v14  ;;  %v6269_v24 = vpop.f32.mrf.mxu2  ;;  %v6382_v31 = vpop.f32.mrf.mxu3 }
 0xd39   : > { %9749 = vst [vmem:[%s11437_s19 + $0x1348] sm:$0xff] %v6156_v59 }
 0xd3a   : > { %9750 = vst [vmem:[%s11437_s19 + $0x1350] sm:$0xff] %v6269_v24  ;;  %9782 = vmatmul.msk.f32.gmra.mxu0 %vm3492_vm9, %v15391_v42  ;;  %9814 = vmatmul.msk.f32.gmra.mxu1 %vm3492_vm9, %v15391_v42  ;;  %v7122_v42 = vld [vmem:[#allocation2 + $0xa8] sm:$0xff] }
 0xd3b   : > { %9751 = vst [vmem:[%s11437_s19 + $0x1358] sm:$0xff] %v6382_v31  ;;  %7369 = vmatpush.msra.mxu2 %v7122_v42 }
 0xd3d   : > { %9847 = vmatmul.msk.f32.gmra.mxu2 %vm3492_vm9, %v15406_v25  ;;  %9879 = vmatmul.msk.f32.gmra.mxu3 %vm3492_vm9, %v15406_v25 }
 0xd3f   : > { %v6046_v43 = vpop.f32.mrf.mxu0  ;;  %v6159_v13 = vpop.f32.mrf.mxu1 }
 0xd40   : > { %9752 = vst [vmem:[%s11437_s19 + $0x1360] sm:$0xff] %v6046_v43  ;;  %v6272_v12 = vpop.f32.mrf.mxu2  ;;  %v6385_v11 = vpop.f32.mrf.mxu3 }
 0xd41   : > { %9753 = vst [vmem:[%s11437_s19 + $0x1368] sm:$0xff] %v6159_v13 }
 0xd42   : > { %9754 = vst [vmem:[%s11437_s19 + $0x1370] sm:$0xff] %v6272_v12  ;;  %9783 = vmatmul.msk.f32.gmra.mxu0 %vm3492_vm9, %v15406_v25  ;;  %9815 = vmatmul.msk.f32.gmra.mxu1 %vm3492_vm9, %v15406_v25  ;;  %v7120_v25 = vld [vmem:[#allocation2 + $0xb8] sm:$0xff] }
 0xd43   : > { %9755 = vst [vmem:[%s11437_s19 + $0x1378] sm:$0xff] %v6385_v11  ;;  %7143 = vmatpush.msra.mxu0 %v7120_v25 }
 0xd45   : > { %9848 = vmatmul.msk.f32.gmra.mxu2 %vm3492_vm9, %v15421_v49  ;;  %9880 = vmatmul.msk.f32.gmra.mxu3 %vm3492_vm9, %v15421_v49 }
 0xd47   : > { %v6049_v26 = vpop.f32.mrf.mxu0  ;;  %v6162_v57 = vpop.f32.mrf.mxu1 }
 0xd48   : > { %9756 = vst [vmem:[%s11437_s19 + $0x1380] sm:$0xff] %v6049_v26  ;;  %v6275_v10 = vpop.f32.mrf.mxu2  ;;  %v6388_v4 = vpop.f32.mrf.mxu3 }
 0xd49   : > { %9757 = vst [vmem:[%s11437_s19 + $0x1388] sm:$0xff] %v6162_v57 }
 0xd4a   : > { %9758 = vst [vmem:[%s11437_s19 + $0x1390] sm:$0xff] %v6275_v10  ;;  %9784 = vmatmul.msk.f32.gmra.mxu0 %vm3492_vm9, %v15421_v49  ;;  %9816 = vmatmul.msk.f32.gmra.mxu1 %vm3492_vm9, %v15421_v49 }
 0xd4b   : > { %9759 = vst [vmem:[%s11437_s19 + $0x1398] sm:$0xff] %v6388_v4 }
 0xd4d   : > { %9849 = vmatmul.msk.f32.gmra.mxu2 %vm3492_vm9, %v15436_v63  ;;  %9881 = vmatmul.msk.f32.gmra.mxu3 %vm3492_vm9, %v15436_v63 }
 0xd4f   : > { %v6052_v19 = vpop.f32.mrf.mxu0  ;;  %v6165_v3 = vpop.f32.mrf.mxu1 }
 0xd50   : > { %9760 = vst [vmem:[%s11437_s19 + $0x13a0] sm:$0xff] %v6052_v19  ;;  %v6278_v62 = vpop.f32.mrf.mxu2  ;;  %v6391_v49 = vpop.f32.mrf.mxu3 }
 0xd51   : > { %9761 = vst [vmem:[%s11437_s19 + $0x13a8] sm:$0xff] %v6165_v3 }
 0xd52   : > { %9762 = vst [vmem:[%s11437_s19 + $0x13b0] sm:$0xff] %v6278_v62  ;;  %9785 = vmatmul.msk.f32.gmra.mxu0 %vm3492_vm9, %v15436_v63  ;;  %9817 = vmatmul.msk.f32.gmra.mxu1 %vm3492_vm9, %v15436_v63  ;;  %v7717_v62 = vld [vmem:[#allocation2 + $0xa0] sm:$0xff] }
 0xd53   : > { %9763 = vst [vmem:[%s11437_s19 + $0x13b8] sm:$0xff] %v6391_v49  ;;  %8071 = vmatpush.msrb.mxu3 %v7717_v62  ;;  %v16240_v62 = vld [vmem:[%s11435_s4 + $0x48] sm:$0xff] }
 0xd55   : > { %9850 = vmatmul.msk.f32.gmra.mxu2 %vm3492_vm9, %v15451_v58  ;;  %9882 = vmatmul.msk.f32.gmra.mxu3 %vm3492_vm9, %v15451_v58 }
 0xd57   : > { %v6055_v9 = vpop.f32.mrf.mxu0  ;;  %v6168_v52 = vpop.f32.mrf.mxu1 }
 0xd58   : > { %9764 = vst [vmem:[%s11437_s19 + $0x13c0] sm:$0xff] %v6055_v9  ;;  %v6281_v22 = vpop.f32.mrf.mxu2  ;;  %v6394_v47 = vpop.f32.mrf.mxu3 }
 0xd59   : > { %9765 = vst [vmem:[%s11437_s19 + $0x13c8] sm:$0xff] %v6168_v52 }
 0xd5a   : > { %9766 = vst [vmem:[%s11437_s19 + $0x13d0] sm:$0xff] %v6281_v22  ;;  %9786 = vmatmul.msk.f32.gmra.mxu0 %vm3492_vm9, %v15451_v58  ;;  %9818 = vmatmul.msk.f32.gmra.mxu1 %vm3492_vm9, %v15451_v58 }
 0xd5b   : > { %9767 = vst [vmem:[%s11437_s19 + $0x13d8] sm:$0xff] %v6394_v47  ;;  %v7715_v47 = vld [vmem:[#allocation2 + $0x10] sm:$0xff] }
 0xd5c   : > { %7845 = vmatpush.msrb.mxu1 %v7715_v47 }
 0xd5d   : > { %9851 = vmatmul.msk.f32.gmra.mxu2 %vm3492_vm9, %v15466_v39  ;;  %9883 = vmatmul.msk.f32.gmra.mxu3 %vm3492_vm9, %v15466_v39 }
 0xd5f   : > { %v6058_v63 = vpop.f32.mrf.mxu0  ;;  %v6171_v56 = vpop.f32.mrf.mxu1 }
 0xd60   : > { %9768 = vst [vmem:[%s11437_s19 + $0x13e0] sm:$0xff] %v6058_v63  ;;  %v6284_v45 = vpop.f32.mrf.mxu2  ;;  %v6397_v50 = vpop.f32.mrf.mxu3 }
 0xd61   : > { %9769 = vst [vmem:[%s11437_s19 + $0x13e8] sm:$0xff] %v6171_v56 }
 0xd62   : > { %9770 = vst [vmem:[%s11437_s19 + $0x13f0] sm:$0xff] %v6284_v45  ;;  %9787 = vmatmul.msk.f32.gmra.mxu0 %vm3492_vm9, %v15466_v39  ;;  %9819 = vmatmul.msk.f32.gmra.mxu1 %vm3492_vm9, %v15466_v39 }
 0xd63   : > { %9771 = vst [vmem:[%s11437_s19 + $0x13f8] sm:$0xff] %v6397_v50 }
 0xd65   : > { %9852 = vmatmul.msk.f32.gmra.mxu2 %vm3492_vm9, %v15481_v32  ;;  %9884 = vmatmul.msk.f32.gmra.mxu3 %vm3492_vm9, %v15481_v32 }
 0xd67   : > { %v6555_v58 = vpop.f32.mrf.mxu0  ;;  %v6668_v6 = vpop.f32.mrf.mxu1 }
 0xd68   : > { %9900 = vst [vmem:[%s11437_s19 + $0x1400] sm:$0xff] %v6555_v58  ;;  %v6781_v51 = vpop.f32.mrf.mxu2  ;;  %v6894_v44 = vpop.f32.mrf.mxu3 }
 0xd69   : > { %9901 = vst [vmem:[%s11437_s19 + $0x1408] sm:$0xff] %v6668_v6 }
 0xd6a   : > { %9902 = vst [vmem:[%s11437_s19 + $0x1410] sm:$0xff] %v6781_v51  ;;  %9788 = vmatmul.msk.f32.gmra.mxu0 %vm3492_vm9, %v15481_v32  ;;  %9820 = vmatmul.msk.f32.gmra.mxu1 %vm3492_vm9, %v15481_v32 }
 0xd6b   : > { %9903 = vst [vmem:[%s11437_s19 + $0x1418] sm:$0xff] %v6894_v44 }
 0xd6d   : > { %9853 = vmatmul.msk.f32.gmra.mxu2 %vm3492_vm9, %v15496_v8  ;;  %9885 = vmatmul.msk.f32.gmra.mxu3 %vm3492_vm9, %v15496_v8 }
 0xd6f   : > { %v6558_v39 = vpop.f32.mrf.mxu0  ;;  %v6671_v61 = vpop.f32.mrf.mxu1 }
 0xd70   : > { %9904 = vst [vmem:[%s11437_s19 + $0x1420] sm:$0xff] %v6558_v39  ;;  %v6784_v37 = vpop.f32.mrf.mxu2  ;;  %v6897_v30 = vpop.f32.mrf.mxu3 }
 0xd71   : > { %9905 = vst [vmem:[%s11437_s19 + $0x1428] sm:$0xff] %v6671_v61 }
 0xd72   : > { %9906 = vst [vmem:[%s11437_s19 + $0x1430] sm:$0xff] %v6784_v37  ;;  %9789 = vmatmul.msk.f32.gmra.mxu0 %vm3492_vm9, %v15496_v8  ;;  %9821 = vmatmul.msk.f32.gmra.mxu1 %vm3492_vm9, %v15496_v8 }
 0xd73   : > { %9907 = vst [vmem:[%s11437_s19 + $0x1438] sm:$0xff] %v6897_v30 }
 0xd75   : > { %9854 = vmatmul.msk.f32.gmra.mxu2 %vm3492_vm9, %v15511_v54  ;;  %9886 = vmatmul.msk.f32.gmra.mxu3 %vm3492_vm9, %v15511_v54 }
 0xd77   : > { %v6561_v32 = vpop.f32.mrf.mxu0  ;;  %v6674_v53 = vpop.f32.mrf.mxu1 }
 0xd78   : > { %9908 = vst [vmem:[%s11437_s19 + $0x1440] sm:$0xff] %v6561_v32  ;;  %v6787_v48 = vpop.f32.mrf.mxu2  ;;  %v6900_v28 = vpop.f32.mrf.mxu3 }
 0xd79   : > { %9909 = vst [vmem:[%s11437_s19 + $0x1448] sm:$0xff] %v6674_v53 }
 0xd7a   : > { %9910 = vst [vmem:[%s11437_s19 + $0x1450] sm:$0xff] %v6787_v48  ;;  %9790 = vmatmul.msk.f32.gmra.mxu0 %vm3492_vm9, %v15511_v54  ;;  %9822 = vmatmul.msk.f32.gmra.mxu1 %vm3492_vm9, %v15511_v54 }
 0xd7b   : > { %9911 = vst [vmem:[%s11437_s19 + $0x1458] sm:$0xff] %v6900_v28 }
 0xd7d   : > { %9855 = vmatmul.msk.f32.gmra.mxu2 %vm3492_vm9, %v15526_v41  ;;  %9887 = vmatmul.msk.f32.gmra.mxu3 %vm3492_vm9, %v15526_v41 }
 0xd7f   : > { %v6564_v8 = vpop.f32.mrf.mxu0  ;;  %v6677_v0 = vpop.f32.mrf.mxu1 }
 0xd80   : > { %9912 = vst [vmem:[%s11437_s19 + $0x1460] sm:$0xff] %v6564_v8  ;;  %v6790_v33 = vpop.f32.mrf.mxu2  ;;  %v6903_v35 = vpop.f32.mrf.mxu3 }
 0xd81   : > { %9913 = vst [vmem:[%s11437_s19 + $0x1468] sm:$0xff] %v6677_v0 }
 0xd82   : > { %9914 = vst [vmem:[%s11437_s19 + $0x1470] sm:$0xff] %v6790_v33  ;;  %9791 = vmatmul.msk.f32.gmra.mxu0 %vm3492_vm9, %v15526_v41  ;;  %9823 = vmatmul.msk.f32.gmra.mxu1 %vm3492_vm9, %v15526_v41  ;;  %v16135_v33 = vld [vmem:[%s11435_s4 + $0x10] sm:$0xff] }
 0xd83   : > { %9915 = vst [vmem:[%s11437_s19 + $0x1478] sm:$0xff] %v6903_v35 }
 0xd85   : > { %9856 = vmatmul.msk.f32.gmra.mxu2 %vm3492_vm9, %v15541_v40  ;;  %9888 = vmatmul.msk.f32.gmra.mxu3 %vm3492_vm9, %v15541_v40 }
 0xd87   : > { %v6567_v54 = vpop.f32.mrf.mxu0  ;;  %v6680_v29 = vpop.f32.mrf.mxu1 }
 0xd88   : > { %9916 = vst [vmem:[%s11437_s19 + $0x1480] sm:$0xff] %v6567_v54  ;;  %v6793_v18 = vpop.f32.mrf.mxu2  ;;  %v6906_v21 = vpop.f32.mrf.mxu3 }
 0xd89   : > { %9917 = vst [vmem:[%s11437_s19 + $0x1488] sm:$0xff] %v6680_v29 }
 0xd8a   : > { %9918 = vst [vmem:[%s11437_s19 + $0x1490] sm:$0xff] %v6793_v18  ;;  %9792 = vmatmul.msk.f32.gmra.mxu0 %vm3492_vm9, %v15541_v40  ;;  %9824 = vmatmul.msk.f32.gmra.mxu1 %vm3492_vm9, %v15541_v40 }
 0xd8b   : > { %9919 = vst [vmem:[%s11437_s19 + $0x1498] sm:$0xff] %v6906_v21  ;;  %v16150_v21 = vld [vmem:[%s11435_s4 + $0x18] sm:$0xff] }
 0xd8d   : > { %9857 = vmatmul.msk.f32.gmra.mxu2 %vm3492_vm9, %v15556_v15  ;;  %9889 = vmatmul.msk.f32.gmra.mxu3 %vm3492_vm9, %v15556_v15 }
 0xd8f   : > { %v6570_v41 = vpop.f32.mrf.mxu0  ;;  %v6683_v2 = vpop.f32.mrf.mxu1 }
 0xd90   : > { %9920 = vst [vmem:[%s11437_s19 + $0x14a0] sm:$0xff] %v6570_v41  ;;  %v6796_v34 = vpop.f32.mrf.mxu2  ;;  %v6909_v23 = vpop.f32.mrf.mxu3 }
 0xd91   : > { %9921 = vst [vmem:[%s11437_s19 + $0x14a8] sm:$0xff] %v6683_v2 }
 0xd92   : > { %9922 = vst [vmem:[%s11437_s19 + $0x14b0] sm:$0xff] %v6796_v34  ;;  %9793 = vmatmul.msk.f32.gmra.mxu0 %vm3492_vm9, %v15556_v15  ;;  %9825 = vmatmul.msk.f32.gmra.mxu1 %vm3492_vm9, %v15556_v15 }
 0xd93   : > { %9923 = vst [vmem:[%s11437_s19 + $0x14b8] sm:$0xff] %v6909_v23 }
 0xd95   : > { %9858 = vmatmul.msk.f32.gmra.mxu2 %vm3492_vm9, %v15571_v46  ;;  %9890 = vmatmul.msk.f32.gmra.mxu3 %vm3492_vm9, %v15571_v46 }
 0xd97   : > { %v6573_v40 = vpop.f32.mrf.mxu0  ;;  %v6686_v14 = vpop.f32.mrf.mxu1 }
 0xd98   : > { %9924 = vst [vmem:[%s11437_s19 + $0x14c0] sm:$0xff] %v6573_v40  ;;  %v6799_v59 = vpop.f32.mrf.mxu2  ;;  %v6912_v24 = vpop.f32.mrf.mxu3  ;;  %v16165_v40 = vld [vmem:[%s11435_s4 + $0x20] sm:$0xff] }
 0xd99   : > { %9925 = vst [vmem:[%s11437_s19 + $0x14c8] sm:$0xff] %v6686_v14 }
 0xd9a   : > { %9926 = vst [vmem:[%s11437_s19 + $0x14d0] sm:$0xff] %v6799_v59  ;;  %9794 = vmatmul.msk.f32.gmra.mxu0 %vm3492_vm9, %v15571_v46  ;;  %9826 = vmatmul.msk.f32.gmra.mxu1 %vm3492_vm9, %v15571_v46 }
 0xd9b   : > { %9927 = vst [vmem:[%s11437_s19 + $0x14d8] sm:$0xff] %v6912_v24 }
 0xd9d   : > { %9859 = vmatmul.msk.f32.gmra.mxu2 %vm3492_vm9, %v15586_v16  ;;  %9891 = vmatmul.msk.f32.gmra.mxu3 %vm3492_vm9, %v15586_v16 }
 0xd9f   : > { %v6576_v15 = vpop.f32.mrf.mxu0  ;;  %v6689_v31 = vpop.f32.mrf.mxu1 }
 0xda0   : > { %9928 = vst [vmem:[%s11437_s19 + $0x14e0] sm:$0xff] %v6576_v15  ;;  %v6802_v43 = vpop.f32.mrf.mxu2  ;;  %v6915_v13 = vpop.f32.mrf.mxu3 }
 0xda1   : > { %9929 = vst [vmem:[%s11437_s19 + $0x14e8] sm:$0xff] %v6689_v31  ;;  %v16180_v31 = vld [vmem:[%s11435_s4 + $0x28] sm:$0xff] }
 0xda2   : > { %9930 = vst [vmem:[%s11437_s19 + $0x14f0] sm:$0xff] %v6802_v43  ;;  %9795 = vmatmul.msk.f32.gmra.mxu0 %vm3492_vm9, %v15586_v16  ;;  %9827 = vmatmul.msk.f32.gmra.mxu1 %vm3492_vm9, %v15586_v16 }
 0xda3   : > { %9931 = vst [vmem:[%s11437_s19 + $0x14f8] sm:$0xff] %v6915_v13 }
 0xda5   : > { %9860 = vmatmul.msk.f32.gmra.mxu2 %vm3492_vm9, %v15601_v7  ;;  %9892 = vmatmul.msk.f32.gmra.mxu3 %vm3492_vm9, %v15601_v7 }
 0xda7   : > { %v6579_v46 = vpop.f32.mrf.mxu0  ;;  %v6692_v12 = vpop.f32.mrf.mxu1 }
 0xda8   : > { %9932 = vst [vmem:[%s11437_s19 + $0x1500] sm:$0xff] %v6579_v46  ;;  %v6805_v11 = vpop.f32.mrf.mxu2  ;;  %v6918_v42 = vpop.f32.mrf.mxu3 }
 0xda9   : > { %9933 = vst [vmem:[%s11437_s19 + $0x1508] sm:$0xff] %v6692_v12 }
 0xdaa   : > { %9934 = vst [vmem:[%s11437_s19 + $0x1510] sm:$0xff] %v6805_v11  ;;  %9796 = vmatmul.msk.f32.gmra.mxu0 %vm3492_vm9, %v15601_v7  ;;  %9828 = vmatmul.msk.f32.gmra.mxu1 %vm3492_vm9, %v15601_v7  ;;  %v16195_v11 = vld [vmem:[%s11435_s4 + $0x30] sm:$0xff] }
 0xdab   : > { %9935 = vst [vmem:[%s11437_s19 + $0x1518] sm:$0xff] %v6918_v42 }
 0xdad   : > { %9861 = vmatmul.msk.f32.gmra.mxu2 %vm3492_vm9, %v15616_v1  ;;  %9893 = vmatmul.msk.f32.gmra.mxu3 %vm3492_vm9, %v15616_v1 }
 0xdaf   : > { %v6582_v16 = vpop.f32.mrf.mxu0  ;;  %v6695_v20 = vpop.f32.mrf.mxu1 }
 0xdb0   : > { %9936 = vst [vmem:[%s11437_s19 + $0x1520] sm:$0xff] %v6582_v16  ;;  %v6808_v26 = vpop.f32.mrf.mxu2  ;;  %v6921_v57 = vpop.f32.mrf.mxu3 }
 0xdb1   : > { %9937 = vst [vmem:[%s11437_s19 + $0x1528] sm:$0xff] %v6695_v20 }
 0xdb2   : > { %9938 = vst [vmem:[%s11437_s19 + $0x1530] sm:$0xff] %v6808_v26  ;;  %9797 = vmatmul.msk.f32.gmra.mxu0 %vm3492_vm9, %v15616_v1  ;;  %9829 = vmatmul.msk.f32.gmra.mxu1 %vm3492_vm9, %v15616_v1 }
 0xdb3   : > { %9939 = vst [vmem:[%s11437_s19 + $0x1538] sm:$0xff] %v6921_v57  ;;  %v16210_v57 = vld [vmem:[%s11435_s4 + $0x38] sm:$0xff] }
 0xdb5   : > { %9862 = vmatmul.msk.f32.gmra.mxu2 %vm3492_vm9, %v15631_v17  ;;  %9894 = vmatmul.msk.f32.gmra.mxu3 %vm3492_vm9, %v15631_v17 }
 0xdb7   : > { %v6585_v7 = vpop.f32.mrf.mxu0  ;;  %v6698_v10 = vpop.f32.mrf.mxu1 }
 0xdb8   : > { %9940 = vst [vmem:[%s11437_s19 + $0x1540] sm:$0xff] %v6585_v7  ;;  %v6811_v4 = vpop.f32.mrf.mxu2  ;;  %v6924_v25 = vpop.f32.mrf.mxu3 }
 0xdb9   : > { %9941 = vst [vmem:[%s11437_s19 + $0x1548] sm:$0xff] %v6698_v10 }
 0xdba   : > { %9942 = vst [vmem:[%s11437_s19 + $0x1550] sm:$0xff] %v6811_v4  ;;  %9798 = vmatmul.msk.f32.gmra.mxu0 %vm3492_vm9, %v15631_v17  ;;  %9830 = vmatmul.msk.f32.gmra.mxu1 %vm3492_vm9, %v15631_v17  ;;  %v7716_v17 = vld [vmem:[#allocation2 + $0x58] sm:$0xff] }
 0xdbb   : > { %9943 = vst [vmem:[%s11437_s19 + $0x1558] sm:$0xff] %v6924_v25  ;;  %7958 = vmatpush.msrb.mxu2 %v7716_v17 }
 0xdbd   : > { %9863 = vmatmul.msk.f32.gmra.mxu2 %vm3492_vm9, %v15646_v38  ;;  %9895 = vmatmul.msk.f32.gmra.mxu3 %vm3492_vm9, %v15646_v38 }
 0xdbf   : > { %v6588_v1 = vpop.f32.mrf.mxu0  ;;  %v6701_v55 = vpop.f32.mrf.mxu1 }
 0xdc0   : > { %9944 = vst [vmem:[%s11437_s19 + $0x1560] sm:$0xff] %v6588_v1  ;;  %v6814_v19 = vpop.f32.mrf.mxu2  ;;  %v6927_v3 = vpop.f32.mrf.mxu3  ;;  %v16225_v1 = vld [vmem:[%s11435_s4 + $0x40] sm:$0xff] }
 0xdc1   : > { %9945 = vst [vmem:[%s11437_s19 + $0x1568] sm:$0xff] %v6701_v55 }
 0xdc2   : > { %9946 = vst [vmem:[%s11437_s19 + $0x1570] sm:$0xff] %v6814_v19  ;;  %9799 = vmatmul.msk.f32.gmra.mxu0 %vm3492_vm9, %v15646_v38  ;;  %9831 = vmatmul.msk.f32.gmra.mxu1 %vm3492_vm9, %v15646_v38  ;;  %v7714_v38 = vld [vmem:[#allocation2 + $0x158] sm:$0xff] }
 0xdc3   : > { %9947 = vst [vmem:[%s11437_s19 + $0x1578] sm:$0xff] %v6927_v3  ;;  %7732 = vmatpush.msrb.mxu0 %v7714_v38  ;;  %v16255_v38 = vld [vmem:[%s11435_s4 + $0x50] sm:$0xff] }
 0xdc5   : > { %9864 = vmatmul.msk.f32.gmra.mxu2 %vm3492_vm9, %v15661_v27  ;;  %9896 = vmatmul.msk.f32.gmra.mxu3 %vm3492_vm9, %v15661_v27 }
 0xdc7   : > { %v6591_v49 = vpop.f32.mrf.mxu0  ;;  %v6704_v9 = vpop.f32.mrf.mxu1 }
 0xdc8   : > { %9948 = vst [vmem:[%s11437_s19 + $0x1580] sm:$0xff] %v6591_v49  ;;  %v6817_v52 = vpop.f32.mrf.mxu2  ;;  %v6930_v22 = vpop.f32.mrf.mxu3 }
 0xdc9   : > { %9949 = vst [vmem:[%s11437_s19 + $0x1588] sm:$0xff] %v6704_v9 }
 0xdca   : > { %9950 = vst [vmem:[%s11437_s19 + $0x1590] sm:$0xff] %v6817_v52  ;;  %9800 = vmatmul.msk.f32.gmra.mxu0 %vm3492_vm9, %v15661_v27  ;;  %9832 = vmatmul.msk.f32.gmra.mxu1 %vm3492_vm9, %v15661_v27 }
 0xdcb   : > { %9951 = vst [vmem:[%s11437_s19 + $0x1598] sm:$0xff] %v6930_v22 }
 0xdcd   : > { %9865 = vmatmul.msk.f32.gmra.mxu2 %vm3492_vm9, %v15676_v5  ;;  %9897 = vmatmul.msk.f32.gmra.mxu3 %vm3492_vm9, %v15676_v5 }
 0xdcf   : > { %v6594_v63 = vpop.f32.mrf.mxu0  ;;  %v6707_v56 = vpop.f32.mrf.mxu1 }
 0xdd0   : > { %9952 = vst [vmem:[%s11437_s19 + $0x15a0] sm:$0xff] %v6594_v63  ;;  %v6820_v45 = vpop.f32.mrf.mxu2  ;;  %v6933_v27 = vpop.f32.mrf.mxu3 }
 0xdd1   : > { %9953 = vst [vmem:[%s11437_s19 + $0x15a8] sm:$0xff] %v6707_v56 }
 0xdd2   : > { %9954 = vst [vmem:[%s11437_s19 + $0x15b0] sm:$0xff] %v6820_v45  ;;  %9801 = vmatmul.msk.f32.gmra.mxu0 %vm3492_vm9, %v15676_v5  ;;  %9833 = vmatmul.msk.f32.gmra.mxu1 %vm3492_vm9, %v15676_v5 }
 0xdd3   : > { %9955 = vst [vmem:[%s11437_s19 + $0x15b8] sm:$0xff] %v6933_v27  ;;  %v16270_v27 = vld [vmem:[%s11435_s4 + $0x58] sm:$0xff] }
 0xdd5   : > { %9866 = vmatmul.msk.f32.gmra.mxu2 %vm3492_vm9, %v15691_v36  ;;  %9898 = vmatmul.msk.f32.gmra.mxu3 %vm3492_vm9, %v15691_v36 }
 0xdd7   : > { %v6597_v50 = vpop.f32.mrf.mxu0  ;;  %v6710_v58 = vpop.f32.mrf.mxu1 }
 0xdd8   : > { %9956 = vst [vmem:[%s11437_s19 + $0x15c0] sm:$0xff] %v6597_v50  ;;  %v6823_v6 = vpop.f32.mrf.mxu2  ;;  %v6936_v51 = vpop.f32.mrf.mxu3 }
 0xdd9   : > { %9957 = vst [vmem:[%s11437_s19 + $0x15c8] sm:$0xff] %v6710_v58 }
 0xdda   : > { %9958 = vst [vmem:[%s11437_s19 + $0x15d0] sm:$0xff] %v6823_v6  ;;  %9802 = vmatmul.msk.f32.gmra.mxu0 %vm3492_vm9, %v15691_v36  ;;  %9834 = vmatmul.msk.f32.gmra.mxu1 %vm3492_vm9, %v15691_v36  ;;  %v16105_v36 = vld [vmem:[%s11435_s4] sm:$0xff] }
 0xddb   : > { %9959 = vst [vmem:[%s11437_s19 + $0x15d8] sm:$0xff] %v6936_v51 }
 0xddd   : > { %9867 = vmatmul.msk.f32.gmra.mxu2 %vm3492_vm9, %v15706_v60  ;;  %9899 = vmatmul.msk.f32.gmra.mxu3 %vm3492_vm9, %v15706_v60 }
 0xddf   : > { %v6600_v5 = vpop.f32.mrf.mxu0  ;;  %v6713_v44 = vpop.f32.mrf.mxu1 }
 0xde0   : > { %9960 = vst [vmem:[%s11437_s19 + $0x15e0] sm:$0xff] %v6600_v5  ;;  %v6826_v39 = vpop.f32.mrf.mxu2  ;;  %v6939_v61 = vpop.f32.mrf.mxu3  ;;  %v16285_v5 = vld [vmem:[%s11435_s4 + $0x60] sm:$0xff] }
 0xde1   : > { %9961 = vst [vmem:[%s11437_s19 + $0x15e8] sm:$0xff] %v6713_v44  ;;  %v7712_v44 = vld [vmem:[#allocation2 + $0xc0] sm:$0xff] }
 0xde2   : > { %9962 = vst [vmem:[%s11437_s19 + $0x15f0] sm:$0xff] %v6826_v39  ;;  %9803 = vmatmul.msk.f32.gmra.mxu0 %vm3492_vm9, %v15706_v60  ;;  %9835 = vmatmul.msk.f32.gmra.mxu1 %vm3492_vm9, %v15706_v60  ;;  %v16120_v60 = vld [vmem:[%s11435_s4 + $0x8] sm:$0xff]  ;;  %v7713_v39 = vld [vmem:[#allocation2 + $0x1c0] sm:$0xff] }
 0xde3   : > { %9963 = vst [vmem:[%s11437_s19 + $0x15f8] sm:$0xff] %v6939_v61  ;;  %7959 = vmatpush.msrb.mxu2 %v7712_v44  ;;  %8072 = vmatpush.msrb.mxu3 %v7713_v39 }
 0xde5   : > { %10092 = vmatmul.msk.f32.vlgmr.msra.gmra.mxu2 %vm3492_vm9, %v16105_v36  ;;  %10124 = vmatmul.msk.f32.vlgmr.msra.gmra.mxu3 %vm3492_vm9, %v16105_v36 }
 0xde7   : > { %v6603_v37 = vpop.f32.mrf.mxu0  ;;  %v6716_v30 = vpop.f32.mrf.mxu1 }
 0xde8   : > { %9964 = vst [vmem:[%s11437_s19 + $0x1600] sm:$0xff] %v6603_v37  ;;  %v6829_v32 = vpop.f32.mrf.mxu2  ;;  %v6942_v53 = vpop.f32.mrf.mxu3 }
 0xde9   : > { %9965 = vst [vmem:[%s11437_s19 + $0x1608] sm:$0xff] %v6716_v30 }
 0xdea   : > { %9966 = vst [vmem:[%s11437_s19 + $0x1610] sm:$0xff] %v6829_v32  ;;  %10028 = vmatmul.msk.f32.vlgmr.msra.gmra.mxu0 %vm3492_vm9, %v16105_v36  ;;  %10060 = vmatmul.msk.f32.vlgmr.msra.gmra.mxu1 %vm3492_vm9, %v16105_v36 }
 0xdeb   : > { %9967 = vst [vmem:[%s11437_s19 + $0x1618] sm:$0xff] %v6942_v53  ;;  %v7710_v53 = vld [vmem:[#allocation2 + $0x198] sm:$0xff] }
 0xdec   : > { %7733 = vmatpush.msrb.mxu0 %v7710_v53 }
 0xded   : > { %10093 = vmatmul.msk.f32.gmra.mxu2 %vm3492_vm9, %v16120_v60  ;;  %10125 = vmatmul.msk.f32.gmra.mxu3 %vm3492_vm9, %v16120_v60 }
 0xdef   : > { %v6606_v48 = vpop.f32.mrf.mxu0  ;;  %v6719_v28 = vpop.f32.mrf.mxu1 }
 0xdf0   : > { %9968 = vst [vmem:[%s11437_s19 + $0x1620] sm:$0xff] %v6606_v48  ;;  %v6832_v8 = vpop.f32.mrf.mxu2  ;;  %v6945_v0 = vpop.f32.mrf.mxu3  ;;  %v7711_v48 = vld [vmem:[#allocation2 + $0x38] sm:$0xff] }
 0xdf1   : > { %9969 = vst [vmem:[%s11437_s19 + $0x1628] sm:$0xff] %v6719_v28  ;;  %7846 = vmatpush.msrb.mxu1 %v7711_v48  ;;  %v16300_v28 = vld [vmem:[%s11435_s4 + $0x68] sm:$0xff]  ;;  %v16450_v48 = vld [vmem:[%s11435_s4 + $0xb8] sm:$0xff] }
 0xdf2   : > { %9970 = vst [vmem:[%s11437_s19 + $0x1630] sm:$0xff] %v6832_v8  ;;  %10029 = vmatmul.msk.f32.gmra.mxu0 %vm3492_vm9, %v16120_v60  ;;  %10061 = vmatmul.msk.f32.gmra.mxu1 %vm3492_vm9, %v16120_v60 }
 0xdf3   : > { %9971 = vst [vmem:[%s11437_s19 + $0x1638] sm:$0xff] %v6945_v0 }
 0xdf5   : > { %10094 = vmatmul.msk.f32.gmra.mxu2 %vm3492_vm9, %v16135_v33  ;;  %10126 = vmatmul.msk.f32.gmra.mxu3 %vm3492_vm9, %v16135_v33 }
 0xdf7   : > { %v6609_v35 = vpop.f32.mrf.mxu0  ;;  %v6722_v54 = vpop.f32.mrf.mxu1 }
 0xdf8   : > { %9972 = vst [vmem:[%s11437_s19 + $0x1640] sm:$0xff] %v6609_v35  ;;  %v6835_v29 = vpop.f32.mrf.mxu2  ;;  %v6948_v18 = vpop.f32.mrf.mxu3 }
 0xdf9   : > { %9973 = vst [vmem:[%s11437_s19 + $0x1648] sm:$0xff] %v6722_v54 }
 0xdfa   : > { %9974 = vst [vmem:[%s11437_s19 + $0x1650] sm:$0xff] %v6835_v29  ;;  %10030 = vmatmul.msk.f32.gmra.mxu0 %vm3492_vm9, %v16135_v33  ;;  %10062 = vmatmul.msk.f32.gmra.mxu1 %vm3492_vm9, %v16135_v33  ;;  %v16315_v29 = vld [vmem:[%s11435_s4 + $0x70] sm:$0xff] }
 0xdfb   : > { %9975 = vst [vmem:[%s11437_s19 + $0x1658] sm:$0xff] %v6948_v18 }
 0xdfd   : > { %10095 = vmatmul.msk.f32.gmra.mxu2 %vm3492_vm9, %v16150_v21  ;;  %10127 = vmatmul.msk.f32.gmra.mxu3 %vm3492_vm9, %v16150_v21 }
 0xdff   : > { %v6612_v41 = vpop.f32.mrf.mxu0  ;;  %v6725_v2 = vpop.f32.mrf.mxu1 }
 0xe00   : > { %9976 = vst [vmem:[%s11437_s19 + $0x1660] sm:$0xff] %v6612_v41  ;;  %v6838_v34 = vpop.f32.mrf.mxu2  ;;  %v6951_v23 = vpop.f32.mrf.mxu3 }
 0xe01   : > { %9977 = vst [vmem:[%s11437_s19 + $0x1668] sm:$0xff] %v6725_v2 }
 0xe02   : > { %9978 = vst [vmem:[%s11437_s19 + $0x1670] sm:$0xff] %v6838_v34  ;;  %10031 = vmatmul.msk.f32.gmra.mxu0 %vm3492_vm9, %v16150_v21  ;;  %10063 = vmatmul.msk.f32.gmra.mxu1 %vm3492_vm9, %v16150_v21 }
 0xe03   : > { %9979 = vst [vmem:[%s11437_s19 + $0x1678] sm:$0xff] %v6951_v23  ;;  %v16330_v23 = vld [vmem:[%s11435_s4 + $0x78] sm:$0xff] }
 0xe05   : > { %10096 = vmatmul.msk.f32.gmra.mxu2 %vm3492_vm9, %v16165_v40  ;;  %10128 = vmatmul.msk.f32.gmra.mxu3 %vm3492_vm9, %v16165_v40 }
 0xe07   : > { %v6615_v14 = vpop.f32.mrf.mxu0  ;;  %v6728_v59 = vpop.f32.mrf.mxu1 }
 0xe08   : > { %9980 = vst [vmem:[%s11437_s19 + $0x1680] sm:$0xff] %v6615_v14  ;;  %v6841_v24 = vpop.f32.mrf.mxu2  ;;  %v6954_v15 = vpop.f32.mrf.mxu3 }
 0xe09   : > { %9981 = vst [vmem:[%s11437_s19 + $0x1688] sm:$0xff] %v6728_v59 }
 0xe0a   : > { %9982 = vst [vmem:[%s11437_s19 + $0x1690] sm:$0xff] %v6841_v24  ;;  %10032 = vmatmul.msk.f32.gmra.mxu0 %vm3492_vm9, %v16165_v40  ;;  %10064 = vmatmul.msk.f32.gmra.mxu1 %vm3492_vm9, %v16165_v40 }
 0xe0b   : > { %9983 = vst [vmem:[%s11437_s19 + $0x1698] sm:$0xff] %v6954_v15 }
 0xe0d   : > { %10097 = vmatmul.msk.f32.gmra.mxu2 %vm3492_vm9, %v16180_v31  ;;  %10129 = vmatmul.msk.f32.gmra.mxu3 %vm3492_vm9, %v16180_v31 }
 0xe0f   : > { %v6618_v43 = vpop.f32.mrf.mxu0  ;;  %v6731_v13 = vpop.f32.mrf.mxu1 }
 0xe10   : > { %9984 = vst [vmem:[%s11437_s19 + $0x16a0] sm:$0xff] %v6618_v43  ;;  %v6844_v46 = vpop.f32.mrf.mxu2  ;;  %v6957_v12 = vpop.f32.mrf.mxu3  ;;  %v16345_v43 = vld [vmem:[%s11435_s4 + $0x80] sm:$0xff] }
 0xe11   : > { %9985 = vst [vmem:[%s11437_s19 + $0x16a8] sm:$0xff] %v6731_v13 }
 0xe12   : > { %9986 = vst [vmem:[%s11437_s19 + $0x16b0] sm:$0xff] %v6844_v46  ;;  %10033 = vmatmul.msk.f32.gmra.mxu0 %vm3492_vm9, %v16180_v31  ;;  %10065 = vmatmul.msk.f32.gmra.mxu1 %vm3492_vm9, %v16180_v31 }
 0xe13   : > { %9987 = vst [vmem:[%s11437_s19 + $0x16b8] sm:$0xff] %v6957_v12 }
 0xe15   : > { %10098 = vmatmul.msk.f32.gmra.mxu2 %vm3492_vm9, %v16195_v11  ;;  %10130 = vmatmul.msk.f32.gmra.mxu3 %vm3492_vm9, %v16195_v11 }
 0xe17   : > { %v6621_v42 = vpop.f32.mrf.mxu0  ;;  %v6734_v16 = vpop.f32.mrf.mxu1 }
 0xe18   : > { %9988 = vst [vmem:[%s11437_s19 + $0x16c0] sm:$0xff] %v6621_v42  ;;  %v6847_v20 = vpop.f32.mrf.mxu2  ;;  %v6960_v26 = vpop.f32.mrf.mxu3 }
 0xe19   : > { %9989 = vst [vmem:[%s11437_s19 + $0x16c8] sm:$0xff] %v6734_v16  ;;  %v16360_v16 = vld [vmem:[%s11435_s4 + $0x88] sm:$0xff] }
 0xe1a   : > { %9990 = vst [vmem:[%s11437_s19 + $0x16d0] sm:$0xff] %v6847_v20  ;;  %10034 = vmatmul.msk.f32.gmra.mxu0 %vm3492_vm9, %v16195_v11  ;;  %10066 = vmatmul.msk.f32.gmra.mxu1 %vm3492_vm9, %v16195_v11 }
 0xe1b   : > { %9991 = vst [vmem:[%s11437_s19 + $0x16d8] sm:$0xff] %v6960_v26 }
 0xe1d   : > { %10099 = vmatmul.msk.f32.gmra.mxu2 %vm3492_vm9, %v16210_v57  ;;  %10131 = vmatmul.msk.f32.gmra.mxu3 %vm3492_vm9, %v16210_v57 }
 0xe1f   : > { %v6624_v7 = vpop.f32.mrf.mxu0  ;;  %v6737_v10 = vpop.f32.mrf.mxu1 }
 0xe20   : > { %9992 = vst [vmem:[%s11437_s19 + $0x16e0] sm:$0xff] %v6624_v7  ;;  %v6850_v4 = vpop.f32.mrf.mxu2  ;;  %v6963_v25 = vpop.f32.mrf.mxu3 }
 0xe21   : > { %9993 = vst [vmem:[%s11437_s19 + $0x16e8] sm:$0xff] %v6737_v10 }
 0xe22   : > { %9994 = vst [vmem:[%s11437_s19 + $0x16f0] sm:$0xff] %v6850_v4  ;;  %10035 = vmatmul.msk.f32.gmra.mxu0 %vm3492_vm9, %v16210_v57  ;;  %10067 = vmatmul.msk.f32.gmra.mxu1 %vm3492_vm9, %v16210_v57  ;;  %v16375_v4 = vld [vmem:[%s11435_s4 + $0x90] sm:$0xff] }
 0xe23   : > { %9995 = vst [vmem:[%s11437_s19 + $0x16f8] sm:$0xff] %v6963_v25 }
 0xe25   : > { %10100 = vmatmul.msk.f32.gmra.mxu2 %vm3492_vm9, %v16225_v1  ;;  %10132 = vmatmul.msk.f32.gmra.mxu3 %vm3492_vm9, %v16225_v1 }
 0xe27   : > { %v6627_v55 = vpop.f32.mrf.mxu0  ;;  %v6740_v19 = vpop.f32.mrf.mxu1 }
 0xe28   : > { %9996 = vst [vmem:[%s11437_s19 + $0x1700] sm:$0xff] %v6627_v55  ;;  %v6853_v3 = vpop.f32.mrf.mxu2  ;;  %v6966_v17 = vpop.f32.mrf.mxu3 }
 0xe29   : > { %9997 = vst [vmem:[%s11437_s19 + $0x1708] sm:$0xff] %v6740_v19 }
 0xe2a   : > { %9998 = vst [vmem:[%s11437_s19 + $0x1710] sm:$0xff] %v6853_v3  ;;  %10036 = vmatmul.msk.f32.gmra.mxu0 %vm3492_vm9, %v16225_v1  ;;  %10068 = vmatmul.msk.f32.gmra.mxu1 %vm3492_vm9, %v16225_v1 }
 0xe2b   : > { %9999 = vst [vmem:[%s11437_s19 + $0x1718] sm:$0xff] %v6966_v17  ;;  %v16390_v17 = vld [vmem:[%s11435_s4 + $0x98] sm:$0xff] }
 0xe2d   : > { %10101 = vmatmul.msk.f32.gmra.mxu2 %vm3492_vm9, %v16240_v62  ;;  %10133 = vmatmul.msk.f32.gmra.mxu3 %vm3492_vm9, %v16240_v62 }
 0xe2f   : > { %v6630_v49 = vpop.f32.mrf.mxu0  ;;  %v6743_v9 = vpop.f32.mrf.mxu1 }
 0xe30   : > { %10000 = vst [vmem:[%s11437_s19 + $0x1720] sm:$0xff] %v6630_v49  ;;  %v6856_v52 = vpop.f32.mrf.mxu2  ;;  %v6969_v22 = vpop.f32.mrf.mxu3 }
 0xe31   : > { %10001 = vst [vmem:[%s11437_s19 + $0x1728] sm:$0xff] %v6743_v9 }
 0xe32   : > { %10002 = vst [vmem:[%s11437_s19 + $0x1730] sm:$0xff] %v6856_v52  ;;  %10037 = vmatmul.msk.f32.gmra.mxu0 %vm3492_vm9, %v16240_v62  ;;  %10069 = vmatmul.msk.f32.gmra.mxu1 %vm3492_vm9, %v16240_v62 }
 0xe33   : > { %10003 = vst [vmem:[%s11437_s19 + $0x1738] sm:$0xff] %v6969_v22 }
 0xe35   : > { %10102 = vmatmul.msk.f32.gmra.mxu2 %vm3492_vm9, %v16255_v38  ;;  %10134 = vmatmul.msk.f32.gmra.mxu3 %vm3492_vm9, %v16255_v38 }
 0xe37   : > { %v6633_v47 = vpop.f32.mrf.mxu0  ;;  %v6746_v63 = vpop.f32.mrf.mxu1 }
 0xe38   : > { %10004 = vst [vmem:[%s11437_s19 + $0x1740] sm:$0xff] %v6633_v47  ;;  %v6859_v56 = vpop.f32.mrf.mxu2  ;;  %v6972_v45 = vpop.f32.mrf.mxu3  ;;  %v16405_v47 = vld [vmem:[%s11435_s4 + $0xa0] sm:$0xff] }
 0xe39   : > { %10005 = vst [vmem:[%s11437_s19 + $0x1748] sm:$0xff] %v6746_v63 }
 0xe3a   : > { %10006 = vst [vmem:[%s11437_s19 + $0x1750] sm:$0xff] %v6859_v56  ;;  %10038 = vmatmul.msk.f32.gmra.mxu0 %vm3492_vm9, %v16255_v38  ;;  %10070 = vmatmul.msk.f32.gmra.mxu1 %vm3492_vm9, %v16255_v38 }
 0xe3b   : > { %10007 = vst [vmem:[%s11437_s19 + $0x1758] sm:$0xff] %v6972_v45 }
 0xe3d   : > { %10103 = vmatmul.msk.f32.gmra.mxu2 %vm3492_vm9, %v16270_v27  ;;  %10135 = vmatmul.msk.f32.gmra.mxu3 %vm3492_vm9, %v16270_v27 }
 0xe3f   : > { %v6636_v50 = vpop.f32.mrf.mxu0  ;;  %v6749_v58 = vpop.f32.mrf.mxu1 }
 0xe40   : > { %10008 = vst [vmem:[%s11437_s19 + $0x1760] sm:$0xff] %v6636_v50  ;;  %v6862_v6 = vpop.f32.mrf.mxu2  ;;  %v6975_v51 = vpop.f32.mrf.mxu3 }
 0xe41   : > { %10009 = vst [vmem:[%s11437_s19 + $0x1768] sm:$0xff] %v6749_v58  ;;  %v16420_v58 = vld [vmem:[%s11435_s4 + $0xa8] sm:$0xff] }
 0xe42   : > { %10010 = vst [vmem:[%s11437_s19 + $0x1770] sm:$0xff] %v6862_v6  ;;  %10039 = vmatmul.msk.f32.gmra.mxu0 %vm3492_vm9, %v16270_v27  ;;  %10071 = vmatmul.msk.f32.gmra.mxu1 %vm3492_vm9, %v16270_v27 }
 0xe43   : > { %10011 = vst [vmem:[%s11437_s19 + $0x1778] sm:$0xff] %v6975_v51 }
 0xe45   : > { %10104 = vmatmul.msk.f32.gmra.mxu2 %vm3492_vm9, %v16285_v5  ;;  %10136 = vmatmul.msk.f32.gmra.mxu3 %vm3492_vm9, %v16285_v5 }
 0xe47   : > { %v6639_v61 = vpop.f32.mrf.mxu0  ;;  %v6752_v37 = vpop.f32.mrf.mxu1 }
 0xe48   : > { %10012 = vst [vmem:[%s11437_s19 + $0x1780] sm:$0xff] %v6639_v61  ;;  %v6865_v30 = vpop.f32.mrf.mxu2  ;;  %v6978_v32 = vpop.f32.mrf.mxu3  ;;  %v16435_v61 = vld [vmem:[%s11435_s4 + $0xb0] sm:$0xff] }
 0xe49   : > { %10013 = vst [vmem:[%s11437_s19 + $0x1788] sm:$0xff] %v6752_v37 }
 0xe4a   : > { %10014 = vst [vmem:[%s11437_s19 + $0x1790] sm:$0xff] %v6865_v30  ;;  %10040 = vmatmul.msk.f32.gmra.mxu0 %vm3492_vm9, %v16285_v5  ;;  %10072 = vmatmul.msk.f32.gmra.mxu1 %vm3492_vm9, %v16285_v5 }
 0xe4b   : > { %10015 = vst [vmem:[%s11437_s19 + $0x1798] sm:$0xff] %v6978_v32 }
 0xe4d   : > { %10105 = vmatmul.msk.f32.gmra.mxu2 %vm3492_vm9, %v16300_v28  ;;  %10137 = vmatmul.msk.f32.gmra.mxu3 %vm3492_vm9, %v16300_v28 }
 0xe4f   : > { %v6642_v8 = vpop.f32.mrf.mxu0  ;;  %v6755_v0 = vpop.f32.mrf.mxu1 }
 0xe50   : > { %10016 = vst [vmem:[%s11437_s19 + $0x17a0] sm:$0xff] %v6642_v8  ;;  %v6868_v35 = vpop.f32.mrf.mxu2  ;;  %v6981_v54 = vpop.f32.mrf.mxu3 }
 0xe51   : > { %10017 = vst [vmem:[%s11437_s19 + $0x17a8] sm:$0xff] %v6755_v0 }
 0xe52   : > { %10018 = vst [vmem:[%s11437_s19 + $0x17b0] sm:$0xff] %v6868_v35  ;;  %10041 = vmatmul.msk.f32.gmra.mxu0 %vm3492_vm9, %v16300_v28  ;;  %10073 = vmatmul.msk.f32.gmra.mxu1 %vm3492_vm9, %v16300_v28 }
 0xe53   : > { %10019 = vst [vmem:[%s11437_s19 + $0x17b8] sm:$0xff] %v6981_v54 }
 0xe55   : > { %10106 = vmatmul.msk.f32.gmra.mxu2 %vm3492_vm9, %v16315_v29  ;;  %10138 = vmatmul.msk.f32.gmra.mxu3 %vm3492_vm9, %v16315_v29 }
 0xe57   : > { %v6645_v18 = vpop.f32.mrf.mxu0  ;;  %v6758_v41 = vpop.f32.mrf.mxu1 }
 0xe58   : > { %10020 = vst [vmem:[%s11437_s19 + $0x17c0] sm:$0xff] %v6645_v18  ;;  %v6871_v2 = vpop.f32.mrf.mxu2  ;;  %v6984_v34 = vpop.f32.mrf.mxu3  ;;  %v16465_v18 = vld [vmem:[%s11435_s4 + $0xc0] sm:$0xff] }
 0xe59   : > { %10021 = vst [vmem:[%s11437_s19 + $0x17c8] sm:$0xff] %v6758_v41 }
 0xe5a   : > { %10022 = vst [vmem:[%s11437_s19 + $0x17d0] sm:$0xff] %v6871_v2  ;;  %10042 = vmatmul.msk.f32.gmra.mxu0 %vm3492_vm9, %v16315_v29  ;;  %10074 = vmatmul.msk.f32.gmra.mxu1 %vm3492_vm9, %v16315_v29 }
 0xe5b   : > { %10023 = vst [vmem:[%s11437_s19 + $0x17d8] sm:$0xff] %v6984_v34 }
 0xe5d   : > { %10107 = vmatmul.msk.f32.gmra.mxu2 %vm3492_vm9, %v16330_v23  ;;  %10139 = vmatmul.msk.f32.gmra.mxu3 %vm3492_vm9, %v16330_v23 }
 0xe5f   : > { %v6648_v14 = vpop.f32.mrf.mxu0  ;;  %v6761_v59 = vpop.f32.mrf.mxu1 }
 0xe60   : > { %10024 = vst [vmem:[%s11437_s19 + $0x17e0] sm:$0xff] %v6648_v14  ;;  %v6874_v24 = vpop.f32.mrf.mxu2  ;;  %v6987_v15 = vpop.f32.mrf.mxu3 }
 0xe61   : > { %10025 = vst [vmem:[%s11437_s19 + $0x17e8] sm:$0xff] %v6761_v59  ;;  %v16480_v59 = vld [vmem:[%s11435_s4 + $0xc8] sm:$0xff] }
 0xe62   : > { %10026 = vst [vmem:[%s11437_s19 + $0x17f0] sm:$0xff] %v6874_v24  ;;  %10043 = vmatmul.msk.f32.gmra.mxu0 %vm3492_vm9, %v16330_v23  ;;  %10075 = vmatmul.msk.f32.gmra.mxu1 %vm3492_vm9, %v16330_v23 }
 0xe63   : > { %10027 = vst [vmem:[%s11437_s19 + $0x17f8] sm:$0xff] %v6987_v15 }
 0xe65   : > { %10108 = vmatmul.msk.f32.gmra.mxu2 %vm3492_vm9, %v16345_v43  ;;  %10140 = vmatmul.msk.f32.gmra.mxu3 %vm3492_vm9, %v16345_v43 }
 0xe67   : > { %v7145_v13 = vpop.f32.mrf.mxu0  ;;  %v7258_v46 = vpop.f32.mrf.mxu1 }
 0xe68   : > { %10156 = vst [vmem:[%s11437_s19 + $0x1800] sm:$0xff] %v7145_v13  ;;  %v7371_v12 = vpop.f32.mrf.mxu2  ;;  %v7484_v42 = vpop.f32.mrf.mxu3 }
 0xe69   : > { %10157 = vst [vmem:[%s11437_s19 + $0x1808] sm:$0xff] %v7258_v46 }
 0xe6a   : > { %10158 = vst [vmem:[%s11437_s19 + $0x1810] sm:$0xff] %v7371_v12  ;;  %10044 = vmatmul.msk.f32.gmra.mxu0 %vm3492_vm9, %v16345_v43  ;;  %10076 = vmatmul.msk.f32.gmra.mxu1 %vm3492_vm9, %v16345_v43  ;;  %v16495_v12 = vld [vmem:[%s11435_s4 + $0xd0] sm:$0xff] }
 0xe6b   : > { %10159 = vst [vmem:[%s11437_s19 + $0x1818] sm:$0xff] %v7484_v42 }
 0xe6d   : > { %10109 = vmatmul.msk.f32.gmra.mxu2 %vm3492_vm9, %v16360_v16  ;;  %10141 = vmatmul.msk.f32.gmra.mxu3 %vm3492_vm9, %v16360_v16 }
 0xe6f   : > { %v7148_v20 = vpop.f32.mrf.mxu0  ;;  %v7261_v26 = vpop.f32.mrf.mxu1 }
 0xe70   : > { %10160 = vst [vmem:[%s11437_s19 + $0x1820] sm:$0xff] %v7148_v20  ;;  %v7374_v7 = vpop.f32.mrf.mxu2  ;;  %v7487_v10 = vpop.f32.mrf.mxu3 }
 0xe71   : > { %10161 = vst [vmem:[%s11437_s19 + $0x1828] sm:$0xff] %v7261_v26 }
 0xe72   : > { %10162 = vst [vmem:[%s11437_s19 + $0x1830] sm:$0xff] %v7374_v7  ;;  %10045 = vmatmul.msk.f32.gmra.mxu0 %vm3492_vm9, %v16360_v16  ;;  %10077 = vmatmul.msk.f32.gmra.mxu1 %vm3492_vm9, %v16360_v16 }
 0xe73   : > { %10163 = vst [vmem:[%s11437_s19 + $0x1838] sm:$0xff] %v7487_v10  ;;  %v16510_v10 = vld [vmem:[%s11435_s4 + $0xd8] sm:$0xff] }
 0xe75   : > { %10110 = vmatmul.msk.f32.gmra.mxu2 %vm3492_vm9, %v16375_v4  ;;  %10142 = vmatmul.msk.f32.gmra.mxu3 %vm3492_vm9, %v16375_v4 }
 0xe77   : > { %v7151_v25 = vpop.f32.mrf.mxu0  ;;  %v7264_v55 = vpop.f32.mrf.mxu1 }
 0xe78   : > { %10164 = vst [vmem:[%s11437_s19 + $0x1840] sm:$0xff] %v7151_v25  ;;  %v7377_v19 = vpop.f32.mrf.mxu2  ;;  %v7490_v3 = vpop.f32.mrf.mxu3 }
 0xe79   : > { %10165 = vst [vmem:[%s11437_s19 + $0x1848] sm:$0xff] %v7264_v55 }
 0xe7a   : > { %10166 = vst [vmem:[%s11437_s19 + $0x1850] sm:$0xff] %v7377_v19  ;;  %10046 = vmatmul.msk.f32.gmra.mxu0 %vm3492_vm9, %v16375_v4  ;;  %10078 = vmatmul.msk.f32.gmra.mxu1 %vm3492_vm9, %v16375_v4 }
 0xe7b   : > { %10167 = vst [vmem:[%s11437_s19 + $0x1858] sm:$0xff] %v7490_v3 }
 0xe7d   : > { %10111 = vmatmul.msk.f32.gmra.mxu2 %vm3492_vm9, %v16390_v17  ;;  %10143 = vmatmul.msk.f32.gmra.mxu3 %vm3492_vm9, %v16390_v17 }
 0xe7f   : > { %v7154_v49 = vpop.f32.mrf.mxu0  ;;  %v7267_v9 = vpop.f32.mrf.mxu1 }
 0xe80   : > { %10168 = vst [vmem:[%s11437_s19 + $0x1860] sm:$0xff] %v7154_v49  ;;  %v7380_v52 = vpop.f32.mrf.mxu2  ;;  %v7493_v22 = vpop.f32.mrf.mxu3  ;;  %v16525_v49 = vld [vmem:[%s11435_s4 + $0xe0] sm:$0xff] }
 0xe81   : > { %10169 = vst [vmem:[%s11437_s19 + $0x1868] sm:$0xff] %v7267_v9 }
 0xe82   : > { %10170 = vst [vmem:[%s11437_s19 + $0x1870] sm:$0xff] %v7380_v52  ;;  %10047 = vmatmul.msk.f32.gmra.mxu0 %vm3492_vm9, %v16390_v17  ;;  %10079 = vmatmul.msk.f32.gmra.mxu1 %vm3492_vm9, %v16390_v17 }
 0xe83   : > { %10171 = vst [vmem:[%s11437_s19 + $0x1878] sm:$0xff] %v7493_v22 }
 0xe85   : > { %10112 = vmatmul.msk.f32.gmra.mxu2 %vm3492_vm9, %v16405_v47  ;;  %10144 = vmatmul.msk.f32.gmra.mxu3 %vm3492_vm9, %v16405_v47 }
 0xe87   : > { %v7157_v63 = vpop.f32.mrf.mxu0  ;;  %v7270_v56 = vpop.f32.mrf.mxu1 }
 0xe88   : > { %10172 = vst [vmem:[%s11437_s19 + $0x1880] sm:$0xff] %v7157_v63  ;;  %v7383_v45 = vpop.f32.mrf.mxu2  ;;  %v7496_v50 = vpop.f32.mrf.mxu3 }
 0xe89   : > { %10173 = vst [vmem:[%s11437_s19 + $0x1888] sm:$0xff] %v7270_v56  ;;  %v16540_v56 = vld [vmem:[%s11435_s4 + $0xe8] sm:$0xff] }
 0xe8a   : > { %10174 = vst [vmem:[%s11437_s19 + $0x1890] sm:$0xff] %v7383_v45  ;;  %10048 = vmatmul.msk.f32.gmra.mxu0 %vm3492_vm9, %v16405_v47  ;;  %10080 = vmatmul.msk.f32.gmra.mxu1 %vm3492_vm9, %v16405_v47 }
 0xe8b   : > { %10175 = vst [vmem:[%s11437_s19 + $0x1898] sm:$0xff] %v7496_v50 }
 0xe8d   : > { %10113 = vmatmul.msk.f32.gmra.mxu2 %vm3492_vm9, %v16420_v58  ;;  %10145 = vmatmul.msk.f32.gmra.mxu3 %vm3492_vm9, %v16420_v58 }
 0xe8f   : > { %v7160_v6 = vpop.f32.mrf.mxu0  ;;  %v7273_v51 = vpop.f32.mrf.mxu1 }
 0xe90   : > { %10176 = vst [vmem:[%s11437_s19 + $0x18a0] sm:$0xff] %v7160_v6  ;;  %v7386_v44 = vpop.f32.mrf.mxu2  ;;  %v7499_v39 = vpop.f32.mrf.mxu3 }
 0xe91   : > { %10177 = vst [vmem:[%s11437_s19 + $0x18a8] sm:$0xff] %v7273_v51 }
 0xe92   : > { %10178 = vst [vmem:[%s11437_s19 + $0x18b0] sm:$0xff] %v7386_v44  ;;  %10049 = vmatmul.msk.f32.gmra.mxu0 %vm3492_vm9, %v16420_v58  ;;  %10081 = vmatmul.msk.f32.gmra.mxu1 %vm3492_vm9, %v16420_v58  ;;  %v16555_v44 = vld [vmem:[%s11435_s4 + $0xf0] sm:$0xff] }
 0xe93   : > { %10179 = vst [vmem:[%s11437_s19 + $0x18b8] sm:$0xff] %v7499_v39 }
 0xe95   : > { %10114 = vmatmul.msk.f32.gmra.mxu2 %vm3492_vm9, %v16435_v61  ;;  %10146 = vmatmul.msk.f32.gmra.mxu3 %vm3492_vm9, %v16435_v61 }
 0xe97   : > { %v7163_v37 = vpop.f32.mrf.mxu0  ;;  %v7276_v30 = vpop.f32.mrf.mxu1 }
 0xe98   : > { %10180 = vst [vmem:[%s11437_s19 + $0x18c0] sm:$0xff] %v7163_v37  ;;  %v7389_v32 = vpop.f32.mrf.mxu2  ;;  %v7502_v53 = vpop.f32.mrf.mxu3 }
 0xe99   : > { %10181 = vst [vmem:[%s11437_s19 + $0x18c8] sm:$0xff] %v7276_v30 }
 0xe9a   : > { %10182 = vst [vmem:[%s11437_s19 + $0x18d0] sm:$0xff] %v7389_v32  ;;  %10050 = vmatmul.msk.f32.gmra.mxu0 %vm3492_vm9, %v16435_v61  ;;  %10082 = vmatmul.msk.f32.gmra.mxu1 %vm3492_vm9, %v16435_v61 }
 0xe9b   : > { %10183 = vst [vmem:[%s11437_s19 + $0x18d8] sm:$0xff] %v7502_v53  ;;  %v16570_v53 = vld [vmem:[%s11435_s4 + $0xf8] sm:$0xff]  ;;  %s17142_s4 = sand.u32 1, %s11165_s25  }
 0xe9c   : > { %s8300_s14 = scalar_lea.sflag [#allocation5], %s17142_s4 }
 0xe9d   : > { %10115 = vmatmul.msk.f32.gmra.mxu2 %vm3492_vm9, %v16450_v48  ;;  %10147 = vmatmul.msk.f32.gmra.mxu3 %vm3492_vm9, %v16450_v48 }
 0xe9f   : > { %v7166_v8 = vpop.f32.mrf.mxu0  ;;  %v7279_v0 = vpop.f32.mrf.mxu1 }
 0xea0   : > { %10184 = vst [vmem:[%s11437_s19 + $0x18e0] sm:$0xff] %v7166_v8  ;;  %v7392_v35 = vpop.f32.mrf.mxu2  ;;  %v7505_v54 = vpop.f32.mrf.mxu3 }
 0xea1   : > { %10185 = vst [vmem:[%s11437_s19 + $0x18e8] sm:$0xff] %v7279_v0 }
 0xea2   : > { %10186 = vst [vmem:[%s11437_s19 + $0x18f0] sm:$0xff] %v7392_v35  ;;  %10051 = vmatmul.msk.f32.gmra.mxu0 %vm3492_vm9, %v16450_v48  ;;  %10083 = vmatmul.msk.f32.gmra.mxu1 %vm3492_vm9, %v16450_v48 }
 0xea3   : > { %10187 = vst [vmem:[%s11437_s19 + $0x18f8] sm:$0xff] %v7505_v54 }
 0xea5   : > { %10116 = vmatmul.msk.f32.gmra.mxu2 %vm3492_vm9, %v16465_v18  ;;  %10148 = vmatmul.msk.f32.gmra.mxu3 %vm3492_vm9, %v16465_v18 }
 0xea7   : > { %v7169_v41 = vpop.f32.mrf.mxu0  ;;  %v7282_v2 = vpop.f32.mrf.mxu1 }
 0xea8   : > { %10188 = vst [vmem:[%s11437_s19 + $0x1900] sm:$0xff] %v7169_v41  ;;  %v7395_v34 = vpop.f32.mrf.mxu2  ;;  %v7508_v14 = vpop.f32.mrf.mxu3 }
 0xea9   : > { %10189 = vst [vmem:[%s11437_s19 + $0x1908] sm:$0xff] %v7282_v2 }
 0xeaa   : > { %10190 = vst [vmem:[%s11437_s19 + $0x1910] sm:$0xff] %v7395_v34  ;;  %10052 = vmatmul.msk.f32.gmra.mxu0 %vm3492_vm9, %v16465_v18  ;;  %10084 = vmatmul.msk.f32.gmra.mxu1 %vm3492_vm9, %v16465_v18 }
 0xeab   : > { %10191 = vst [vmem:[%s11437_s19 + $0x1918] sm:$0xff] %v7508_v14 }
 0xead   : > { %10117 = vmatmul.msk.f32.gmra.mxu2 %vm3492_vm9, %v16480_v59  ;;  %10149 = vmatmul.msk.f32.gmra.mxu3 %vm3492_vm9, %v16480_v59 }
 0xeaf   : > { %v7172_v24 = vpop.f32.mrf.mxu0  ;;  %v7285_v15 = vpop.f32.mrf.mxu1 }
 0xeb0   : > { %10192 = vst [vmem:[%s11437_s19 + $0x1920] sm:$0xff] %v7172_v24  ;;  %v7398_v13 = vpop.f32.mrf.mxu2  ;;  %v7511_v46 = vpop.f32.mrf.mxu3 }
 0xeb1   : > { %10193 = vst [vmem:[%s11437_s19 + $0x1928] sm:$0xff] %v7285_v15 }
 0xeb2   : > { %10194 = vst [vmem:[%s11437_s19 + $0x1930] sm:$0xff] %v7398_v13  ;;  %10053 = vmatmul.msk.f32.gmra.mxu0 %vm3492_vm9, %v16480_v59  ;;  %10085 = vmatmul.msk.f32.gmra.mxu1 %vm3492_vm9, %v16480_v59 }
 0xeb3   : > { %10195 = vst [vmem:[%s11437_s19 + $0x1938] sm:$0xff] %v7511_v46 }
 0xeb5   : > { %10118 = vmatmul.msk.f32.gmra.mxu2 %vm3492_vm9, %v16495_v12  ;;  %10150 = vmatmul.msk.f32.gmra.mxu3 %vm3492_vm9, %v16495_v12 }
 0xeb7   : > { %v7175_v42 = vpop.f32.mrf.mxu0  ;;  %v7288_v20 = vpop.f32.mrf.mxu1 }
 0xeb8   : > { %10196 = vst [vmem:[%s11437_s19 + $0x1940] sm:$0xff] %v7175_v42  ;;  %v7401_v26 = vpop.f32.mrf.mxu2  ;;  %v7514_v7 = vpop.f32.mrf.mxu3 }
 0xeb9   : > { %10197 = vst [vmem:[%s11437_s19 + $0x1948] sm:$0xff] %v7288_v20 }
 0xeba   : > { %10198 = vst [vmem:[%s11437_s19 + $0x1950] sm:$0xff] %v7401_v26  ;;  %10054 = vmatmul.msk.f32.gmra.mxu0 %vm3492_vm9, %v16495_v12  ;;  %10086 = vmatmul.msk.f32.gmra.mxu1 %vm3492_vm9, %v16495_v12 }
 0xebb   : > { %10199 = vst [vmem:[%s11437_s19 + $0x1958] sm:$0xff] %v7514_v7 }
 0xebd   : > { %10119 = vmatmul.msk.f32.gmra.mxu2 %vm3492_vm9, %v16510_v10  ;;  %10151 = vmatmul.msk.f32.gmra.mxu3 %vm3492_vm9, %v16510_v10 }
 0xebf   : > { %v7178_v25 = vpop.f32.mrf.mxu0  ;;  %v7291_v55 = vpop.f32.mrf.mxu1 }
 0xec0   : > { %10200 = vst [vmem:[%s11437_s19 + $0x1960] sm:$0xff] %v7178_v25  ;;  %v7404_v19 = vpop.f32.mrf.mxu2  ;;  %v7517_v3 = vpop.f32.mrf.mxu3 }
 0xec1   : > { %10201 = vst [vmem:[%s11437_s19 + $0x1968] sm:$0xff] %v7291_v55 }
 0xec2   : > { %10202 = vst [vmem:[%s11437_s19 + $0x1970] sm:$0xff] %v7404_v19  ;;  %10055 = vmatmul.msk.f32.gmra.mxu0 %vm3492_vm9, %v16510_v10  ;;  %10087 = vmatmul.msk.f32.gmra.mxu1 %vm3492_vm9, %v16510_v10 }
 0xec3   : > { %10203 = vst [vmem:[%s11437_s19 + $0x1978] sm:$0xff] %v7517_v3 }
 0xec5   : > { %10120 = vmatmul.msk.f32.gmra.mxu2 %vm3492_vm9, %v16525_v49  ;;  %10152 = vmatmul.msk.f32.gmra.mxu3 %vm3492_vm9, %v16525_v49 }
 0xec7   : > { %v7181_v9 = vpop.f32.mrf.mxu0  ;;  %v7294_v52 = vpop.f32.mrf.mxu1 }
 0xec8   : > { %10204 = vst [vmem:[%s11437_s19 + $0x1980] sm:$0xff] %v7181_v9  ;;  %v7407_v22 = vpop.f32.mrf.mxu2  ;;  %v7520_v63 = vpop.f32.mrf.mxu3 }
 0xec9   : > { %10205 = vst [vmem:[%s11437_s19 + $0x1988] sm:$0xff] %v7294_v52 }
 0xeca   : > { %10206 = vst [vmem:[%s11437_s19 + $0x1990] sm:$0xff] %v7407_v22  ;;  %10056 = vmatmul.msk.f32.gmra.mxu0 %vm3492_vm9, %v16525_v49  ;;  %10088 = vmatmul.msk.f32.gmra.mxu1 %vm3492_vm9, %v16525_v49 }
 0xecb   : > { %10207 = vst [vmem:[%s11437_s19 + $0x1998] sm:$0xff] %v7520_v63 }
 0xecd   : > { %10121 = vmatmul.msk.f32.gmra.mxu2 %vm3492_vm9, %v16540_v56  ;;  %10153 = vmatmul.msk.f32.gmra.mxu3 %vm3492_vm9, %v16540_v56 }
 0xecf   : > { %v7184_v45 = vpop.f32.mrf.mxu0  ;;  %v7297_v50 = vpop.f32.mrf.mxu1 }
 0xed0   : > { %10208 = vst [vmem:[%s11437_s19 + $0x19a0] sm:$0xff] %v7184_v45  ;;  %v7410_v6 = vpop.f32.mrf.mxu2  ;;  %v7523_v51 = vpop.f32.mrf.mxu3 }
 0xed1   : > { %10209 = vst [vmem:[%s11437_s19 + $0x19a8] sm:$0xff] %v7297_v50 }
 0xed2   : > { %10210 = vst [vmem:[%s11437_s19 + $0x19b0] sm:$0xff] %v7410_v6  ;;  %10057 = vmatmul.msk.f32.gmra.mxu0 %vm3492_vm9, %v16540_v56  ;;  %10089 = vmatmul.msk.f32.gmra.mxu1 %vm3492_vm9, %v16540_v56 }
 0xed3   : > { %10211 = vst [vmem:[%s11437_s19 + $0x19b8] sm:$0xff] %v7523_v51 }
 0xed5   : > { %10122 = vmatmul.msk.f32.gmra.mxu2 %vm3492_vm9, %v16555_v44  ;;  %10154 = vmatmul.msk.f32.gmra.mxu3 %vm3492_vm9, %v16555_v44 }
 0xed7   : > { %v7187_v39 = vpop.f32.mrf.mxu0  ;;  %v7300_v37 = vpop.f32.mrf.mxu1 }
 0xed8   : > { %10212 = vst [vmem:[%s11437_s19 + $0x19c0] sm:$0xff] %v7187_v39  ;;  %v7413_v30 = vpop.f32.mrf.mxu2  ;;  %v7526_v32 = vpop.f32.mrf.mxu3 }
 0xed9   : > { %10213 = vst [vmem:[%s11437_s19 + $0x19c8] sm:$0xff] %v7300_v37 }
 0xeda   : > { %10214 = vst [vmem:[%s11437_s19 + $0x19d0] sm:$0xff] %v7413_v30  ;;  %10058 = vmatmul.msk.f32.gmra.mxu0 %vm3492_vm9, %v16555_v44  ;;  %10090 = vmatmul.msk.f32.gmra.mxu1 %vm3492_vm9, %v16555_v44 }
 0xedb   : > { %10215 = vst [vmem:[%s11437_s19 + $0x19d8] sm:$0xff] %v7526_v32 }
 0xedd   : > { %10123 = vmatmul.msk.f32.gmra.mxu2 %vm3492_vm9, %v16570_v53  ;;  %10155 = vmatmul.msk.f32.gmra.mxu3 %vm3492_vm9, %v16570_v53 }
 0xedf   : > { %v7190_v8 = vpop.f32.mrf.mxu0  ;;  %v7303_v0 = vpop.f32.mrf.mxu1 }
 0xee0   : > { %10216 = vst [vmem:[%s11437_s19 + $0x19e0] sm:$0xff] %v7190_v8  ;;  %v7416_v35 = vpop.f32.mrf.mxu2  ;;  %v7529_v54 = vpop.f32.mrf.mxu3 }
 0xee1   : > { %10217 = vst [vmem:[%s11437_s19 + $0x19e8] sm:$0xff] %v7303_v0 }
 0xee2   : > { %10218 = vst [vmem:[%s11437_s19 + $0x19f0] sm:$0xff] %v7416_v35  ;;  %10059 = vmatmul.msk.f32.gmra.mxu0 %vm3492_vm9, %v16570_v53  ;;  %10091 = vmatmul.msk.f32.gmra.mxu1 %vm3492_vm9, %v16570_v53 }
 0xee3   : > { %10219 = vst [vmem:[%s11437_s19 + $0x19f8] sm:$0xff] %v7529_v54 }
 0xee5   : > { %10348 = vmatmul.msk.f32.vlgmr.msrb.gmra.mxu2 %vm3492_vm9, %v16105_v36  ;;  %10380 = vmatmul.msk.f32.vlgmr.msrb.gmra.mxu3 %vm3492_vm9, %v16105_v36 }
 0xee7   : > { %v7193_v41 = vpop.f32.mrf.mxu0  ;;  %v7306_v2 = vpop.f32.mrf.mxu1 }
 0xee8   : > { %10220 = vst [vmem:[%s11437_s19 + $0x1a00] sm:$0xff] %v7193_v41  ;;  %v7419_v34 = vpop.f32.mrf.mxu2  ;;  %v7532_v14 = vpop.f32.mrf.mxu3 }
 0xee9   : > { %10221 = vst [vmem:[%s11437_s19 + $0x1a08] sm:$0xff] %v7306_v2 }
 0xeea   : > { %10222 = vst [vmem:[%s11437_s19 + $0x1a10] sm:$0xff] %v7419_v34  ;;  %10284 = vmatmul.msk.f32.vlgmr.msrb.gmra.mxu0 %vm3492_vm9, %v16105_v36  ;;  %10316 = vmatmul.msk.f32.vlgmr.msrb.gmra.mxu1 %vm3492_vm9, %v16105_v36 }
 0xeeb   : > { %10223 = vst [vmem:[%s11437_s19 + $0x1a18] sm:$0xff] %v7532_v14 }
 0xeed   : > { %10349 = vmatmul.msk.f32.gmra.mxu2 %vm3492_vm9, %v16120_v60  ;;  %10381 = vmatmul.msk.f32.gmra.mxu3 %vm3492_vm9, %v16120_v60 }
 0xeef   : > { %v7196_v24 = vpop.f32.mrf.mxu0  ;;  %v7309_v15 = vpop.f32.mrf.mxu1 }
 0xef0   : > { %10224 = vst [vmem:[%s11437_s19 + $0x1a20] sm:$0xff] %v7196_v24  ;;  %v7422_v13 = vpop.f32.mrf.mxu2  ;;  %v7535_v46 = vpop.f32.mrf.mxu3 }
 0xef1   : > { %10225 = vst [vmem:[%s11437_s19 + $0x1a28] sm:$0xff] %v7309_v15 }
 0xef2   : > { %10226 = vst [vmem:[%s11437_s19 + $0x1a30] sm:$0xff] %v7422_v13  ;;  %10285 = vmatmul.msk.f32.gmra.mxu0 %vm3492_vm9, %v16120_v60  ;;  %10317 = vmatmul.msk.f32.gmra.mxu1 %vm3492_vm9, %v16120_v60 }
 0xef3   : > { %10227 = vst [vmem:[%s11437_s19 + $0x1a38] sm:$0xff] %v7535_v46 }
 0xef5   : > { %10350 = vmatmul.msk.f32.gmra.mxu2 %vm3492_vm9, %v16135_v33  ;;  %10382 = vmatmul.msk.f32.gmra.mxu3 %vm3492_vm9, %v16135_v33 }
 0xef7   : > { %v7199_v36 = vpop.f32.mrf.mxu0  ;;  %v7312_v42 = vpop.f32.mrf.mxu1 }
 0xef8   : > { %10228 = vst [vmem:[%s11437_s19 + $0x1a40] sm:$0xff] %v7199_v36  ;;  %v7425_v20 = vpop.f32.mrf.mxu2  ;;  %v7538_v26 = vpop.f32.mrf.mxu3 }
 0xef9   : > { %10229 = vst [vmem:[%s11437_s19 + $0x1a48] sm:$0xff] %v7312_v42 }
 0xefa   : > { %10230 = vst [vmem:[%s11437_s19 + $0x1a50] sm:$0xff] %v7425_v20  ;;  %10286 = vmatmul.msk.f32.gmra.mxu0 %vm3492_vm9, %v16135_v33  ;;  %10318 = vmatmul.msk.f32.gmra.mxu1 %vm3492_vm9, %v16135_v33 }
 0xefb   : > { %10231 = vst [vmem:[%s11437_s19 + $0x1a58] sm:$0xff] %v7538_v26 }
 0xefd   : > { %10351 = vmatmul.msk.f32.gmra.mxu2 %vm3492_vm9, %v16150_v21  ;;  %10383 = vmatmul.msk.f32.gmra.mxu3 %vm3492_vm9, %v16150_v21 }
 0xeff   : > { %v7202_v60 = vpop.f32.mrf.mxu0  ;;  %v7315_v7 = vpop.f32.mrf.mxu1 }
 0xf00   : > { %10232 = vst [vmem:[%s11437_s19 + $0x1a60] sm:$0xff] %v7202_v60  ;;  %v7428_v25 = vpop.f32.mrf.mxu2  ;;  %v7541_v55 = vpop.f32.mrf.mxu3 }
 0xf01   : > { %10233 = vst [vmem:[%s11437_s19 + $0x1a68] sm:$0xff] %v7315_v7 }
 0xf02   : > { %10234 = vst [vmem:[%s11437_s19 + $0x1a70] sm:$0xff] %v7428_v25  ;;  %10287 = vmatmul.msk.f32.gmra.mxu0 %vm3492_vm9, %v16150_v21  ;;  %10319 = vmatmul.msk.f32.gmra.mxu1 %vm3492_vm9, %v16150_v21 }
 0xf03   : > { %10235 = vst [vmem:[%s11437_s19 + $0x1a78] sm:$0xff] %v7541_v55 }
 0xf05   : > { %10352 = vmatmul.msk.f32.gmra.mxu2 %vm3492_vm9, %v16165_v40  ;;  %10384 = vmatmul.msk.f32.gmra.mxu3 %vm3492_vm9, %v16165_v40 }
 0xf07   : > { %v7205_v33 = vpop.f32.mrf.mxu0  ;;  %v7318_v19 = vpop.f32.mrf.mxu1 }
 0xf08   : > { %10236 = vst [vmem:[%s11437_s19 + $0x1a80] sm:$0xff] %v7205_v33  ;;  %v7431_v3 = vpop.f32.mrf.mxu2  ;;  %v7544_v9 = vpop.f32.mrf.mxu3 }
 0xf09   : > { %10237 = vst [vmem:[%s11437_s19 + $0x1a88] sm:$0xff] %v7318_v19 }
 0xf0a   : > { %10238 = vst [vmem:[%s11437_s19 + $0x1a90] sm:$0xff] %v7431_v3  ;;  %10288 = vmatmul.msk.f32.gmra.mxu0 %vm3492_vm9, %v16165_v40  ;;  %10320 = vmatmul.msk.f32.gmra.mxu1 %vm3492_vm9, %v16165_v40 }
 0xf0b   : > { %10239 = vst [vmem:[%s11437_s19 + $0x1a98] sm:$0xff] %v7544_v9 }
 0xf0d   : > { %10353 = vmatmul.msk.f32.gmra.mxu2 %vm3492_vm9, %v16180_v31  ;;  %10385 = vmatmul.msk.f32.gmra.mxu3 %vm3492_vm9, %v16180_v31 }
 0xf0f   : > { %v7208_v21 = vpop.f32.mrf.mxu0  ;;  %v7321_v52 = vpop.f32.mrf.mxu1 }
 0xf10   : > { %10240 = vst [vmem:[%s11437_s19 + $0x1aa0] sm:$0xff] %v7208_v21  ;;  %v7434_v22 = vpop.f32.mrf.mxu2  ;;  %v7547_v63 = vpop.f32.mrf.mxu3 }
 0xf11   : > { %10241 = vst [vmem:[%s11437_s19 + $0x1aa8] sm:$0xff] %v7321_v52 }
 0xf12   : > { %10242 = vst [vmem:[%s11437_s19 + $0x1ab0] sm:$0xff] %v7434_v22  ;;  %10289 = vmatmul.msk.f32.gmra.mxu0 %vm3492_vm9, %v16180_v31  ;;  %10321 = vmatmul.msk.f32.gmra.mxu1 %vm3492_vm9, %v16180_v31 }
 0xf13   : > { %10243 = vst [vmem:[%s11437_s19 + $0x1ab8] sm:$0xff] %v7547_v63 }
 0xf15   : > { %10354 = vmatmul.msk.f32.gmra.mxu2 %vm3492_vm9, %v16195_v11  ;;  %10386 = vmatmul.msk.f32.gmra.mxu3 %vm3492_vm9, %v16195_v11 }
 0xf17   : > { %v7211_v40 = vpop.f32.mrf.mxu0  ;;  %v7324_v45 = vpop.f32.mrf.mxu1 }
 0xf18   : > { %10244 = vst [vmem:[%s11437_s19 + $0x1ac0] sm:$0xff] %v7211_v40  ;;  %v7437_v50 = vpop.f32.mrf.mxu2  ;;  %v7550_v6 = vpop.f32.mrf.mxu3 }
 0xf19   : > { %10245 = vst [vmem:[%s11437_s19 + $0x1ac8] sm:$0xff] %v7324_v45 }
 0xf1a   : > { %10246 = vst [vmem:[%s11437_s19 + $0x1ad0] sm:$0xff] %v7437_v50  ;;  %10290 = vmatmul.msk.f32.gmra.mxu0 %vm3492_vm9, %v16195_v11  ;;  %10322 = vmatmul.msk.f32.gmra.mxu1 %vm3492_vm9, %v16195_v11 }
 0xf1b   : > { %10247 = vst [vmem:[%s11437_s19 + $0x1ad8] sm:$0xff] %v7550_v6 }
 0xf1d   : > { %10355 = vmatmul.msk.f32.gmra.mxu2 %vm3492_vm9, %v16210_v57  ;;  %10387 = vmatmul.msk.f32.gmra.mxu3 %vm3492_vm9, %v16210_v57 }
 0xf1f   : > { %v7214_v31 = vpop.f32.mrf.mxu0  ;;  %v7327_v51 = vpop.f32.mrf.mxu1 }
 0xf20   : > { %10248 = vst [vmem:[%s11437_s19 + $0x1ae0] sm:$0xff] %v7214_v31  ;;  %v7440_v39 = vpop.f32.mrf.mxu2  ;;  %v7553_v37 = vpop.f32.mrf.mxu3 }
 0xf21   : > { %10249 = vst [vmem:[%s11437_s19 + $0x1ae8] sm:$0xff] %v7327_v51 }
 0xf22   : > { %10250 = vst [vmem:[%s11437_s19 + $0x1af0] sm:$0xff] %v7440_v39  ;;  %10291 = vmatmul.msk.f32.gmra.mxu0 %vm3492_vm9, %v16210_v57  ;;  %10323 = vmatmul.msk.f32.gmra.mxu1 %vm3492_vm9, %v16210_v57 }
 0xf23   : > { %10251 = vst [vmem:[%s11437_s19 + $0x1af8] sm:$0xff] %v7553_v37 }
 0xf25   : > { %10356 = vmatmul.msk.f32.gmra.mxu2 %vm3492_vm9, %v16225_v1  ;;  %10388 = vmatmul.msk.f32.gmra.mxu3 %vm3492_vm9, %v16225_v1 }
 0xf27   : > { %v7217_v11 = vpop.f32.mrf.mxu0  ;;  %v7330_v30 = vpop.f32.mrf.mxu1 }
 0xf28   : > { %10252 = vst [vmem:[%s11437_s19 + $0x1b00] sm:$0xff] %v7217_v11  ;;  %v7443_v32 = vpop.f32.mrf.mxu2  ;;  %v7556_v8 = vpop.f32.mrf.mxu3 }
 0xf29   : > { %10253 = vst [vmem:[%s11437_s19 + $0x1b08] sm:$0xff] %v7330_v30 }
 0xf2a   : > { %10254 = vst [vmem:[%s11437_s19 + $0x1b10] sm:$0xff] %v7443_v32  ;;  %10292 = vmatmul.msk.f32.gmra.mxu0 %vm3492_vm9, %v16225_v1  ;;  %10324 = vmatmul.msk.f32.gmra.mxu1 %vm3492_vm9, %v16225_v1 }
 0xf2b   : > { %10255 = vst [vmem:[%s11437_s19 + $0x1b18] sm:$0xff] %v7556_v8 }
 0xf2d   : > { %10357 = vmatmul.msk.f32.gmra.mxu2 %vm3492_vm9, %v16240_v62  ;;  %10389 = vmatmul.msk.f32.gmra.mxu3 %vm3492_vm9, %v16240_v62 }
 0xf2f   : > { %v7220_v57 = vpop.f32.mrf.mxu0  ;;  %v7333_v0 = vpop.f32.mrf.mxu1 }
 0xf30   : > { %10256 = vst [vmem:[%s11437_s19 + $0x1b20] sm:$0xff] %v7220_v57  ;;  %v7446_v35 = vpop.f32.mrf.mxu2  ;;  %v7559_v54 = vpop.f32.mrf.mxu3 }
 0xf31   : > { %10257 = vst [vmem:[%s11437_s19 + $0x1b28] sm:$0xff] %v7333_v0 }
 0xf32   : > { %10258 = vst [vmem:[%s11437_s19 + $0x1b30] sm:$0xff] %v7446_v35  ;;  %10293 = vmatmul.msk.f32.gmra.mxu0 %vm3492_vm9, %v16240_v62  ;;  %10325 = vmatmul.msk.f32.gmra.mxu1 %vm3492_vm9, %v16240_v62 }
 0xf33   : > { %10259 = vst [vmem:[%s11437_s19 + $0x1b38] sm:$0xff] %v7559_v54 }
 0xf35   : > { %10358 = vmatmul.msk.f32.gmra.mxu2 %vm3492_vm9, %v16255_v38  ;;  %10390 = vmatmul.msk.f32.gmra.mxu3 %vm3492_vm9, %v16255_v38 }
 0xf37   : > { %v7223_v1 = vpop.f32.mrf.mxu0  ;;  %v7336_v41 = vpop.f32.mrf.mxu1 }
 0xf38   : > { %10260 = vst [vmem:[%s11437_s19 + $0x1b40] sm:$0xff] %v7223_v1  ;;  %v7449_v2 = vpop.f32.mrf.mxu2  ;;  %v7562_v34 = vpop.f32.mrf.mxu3 }
 0xf39   : > { %10261 = vst [vmem:[%s11437_s19 + $0x1b48] sm:$0xff] %v7336_v41 }
 0xf3a   : > { %10262 = vst [vmem:[%s11437_s19 + $0x1b50] sm:$0xff] %v7449_v2  ;;  %10294 = vmatmul.msk.f32.gmra.mxu0 %vm3492_vm9, %v16255_v38  ;;  %10326 = vmatmul.msk.f32.gmra.mxu1 %vm3492_vm9, %v16255_v38 }
 0xf3b   : > { %10263 = vst [vmem:[%s11437_s19 + $0x1b58] sm:$0xff] %v7562_v34 }
 0xf3d   : > { %10359 = vmatmul.msk.f32.gmra.mxu2 %vm3492_vm9, %v16270_v27  ;;  %10391 = vmatmul.msk.f32.gmra.mxu3 %vm3492_vm9, %v16270_v27 }
 0xf3f   : > { %v7226_v62 = vpop.f32.mrf.mxu0  ;;  %v7339_v14 = vpop.f32.mrf.mxu1 }
 0xf40   : > { %10264 = vst [vmem:[%s11437_s19 + $0x1b60] sm:$0xff] %v7226_v62  ;;  %v7452_v24 = vpop.f32.mrf.mxu2  ;;  %v7565_v15 = vpop.f32.mrf.mxu3 }
 0xf41   : > { %10265 = vst [vmem:[%s11437_s19 + $0x1b68] sm:$0xff] %v7339_v14 }
 0xf42   : > { %10266 = vst [vmem:[%s11437_s19 + $0x1b70] sm:$0xff] %v7452_v24  ;;  %10295 = vmatmul.msk.f32.gmra.mxu0 %vm3492_vm9, %v16270_v27  ;;  %10327 = vmatmul.msk.f32.gmra.mxu1 %vm3492_vm9, %v16270_v27 }
 0xf43   : > { %10267 = vst [vmem:[%s11437_s19 + $0x1b78] sm:$0xff] %v7565_v15 }
 0xf45   : > { %10360 = vmatmul.msk.f32.gmra.mxu2 %vm3492_vm9, %v16285_v5  ;;  %10392 = vmatmul.msk.f32.gmra.mxu3 %vm3492_vm9, %v16285_v5 }
 0xf47   : > { %v7229_v38 = vpop.f32.mrf.mxu0  ;;  %v7342_v13 = vpop.f32.mrf.mxu1 }
 0xf48   : > { %10268 = vst [vmem:[%s11437_s19 + $0x1b80] sm:$0xff] %v7229_v38  ;;  %v7455_v46 = vpop.f32.mrf.mxu2  ;;  %v7568_v36 = vpop.f32.mrf.mxu3 }
 0xf49   : > { %10269 = vst [vmem:[%s11437_s19 + $0x1b88] sm:$0xff] %v7342_v13 }
 0xf4a   : > { %10270 = vst [vmem:[%s11437_s19 + $0x1b90] sm:$0xff] %v7455_v46  ;;  %10296 = vmatmul.msk.f32.gmra.mxu0 %vm3492_vm9, %v16285_v5  ;;  %10328 = vmatmul.msk.f32.gmra.mxu1 %vm3492_vm9, %v16285_v5 }
 0xf4b   : > { %10271 = vst [vmem:[%s11437_s19 + $0x1b98] sm:$0xff] %v7568_v36 }
 0xf4d   : > { %10361 = vmatmul.msk.f32.gmra.mxu2 %vm3492_vm9, %v16300_v28  ;;  %10393 = vmatmul.msk.f32.gmra.mxu3 %vm3492_vm9, %v16300_v28 }
 0xf4f   : > { %v7232_v27 = vpop.f32.mrf.mxu0  ;;  %v7345_v42 = vpop.f32.mrf.mxu1 }
 0xf50   : > { %10272 = vst [vmem:[%s11437_s19 + $0x1ba0] sm:$0xff] %v7232_v27  ;;  %v7458_v20 = vpop.f32.mrf.mxu2  ;;  %v7571_v26 = vpop.f32.mrf.mxu3 }
 0xf51   : > { %10273 = vst [vmem:[%s11437_s19 + $0x1ba8] sm:$0xff] %v7345_v42 }
 0xf52   : > { %10274 = vst [vmem:[%s11437_s19 + $0x1bb0] sm:$0xff] %v7458_v20  ;;  %10297 = vmatmul.msk.f32.gmra.mxu0 %vm3492_vm9, %v16300_v28  ;;  %10329 = vmatmul.msk.f32.gmra.mxu1 %vm3492_vm9, %v16300_v28 }
 0xf53   : > { %10275 = vst [vmem:[%s11437_s19 + $0x1bb8] sm:$0xff] %v7571_v26 }
 0xf55   : > { %10362 = vmatmul.msk.f32.gmra.mxu2 %vm3492_vm9, %v16315_v29  ;;  %10394 = vmatmul.msk.f32.gmra.mxu3 %vm3492_vm9, %v16315_v29 }
 0xf57   : > { %v7235_v5 = vpop.f32.mrf.mxu0  ;;  %v7348_v60 = vpop.f32.mrf.mxu1 }
 0xf58   : > { %10276 = vst [vmem:[%s11437_s19 + $0x1bc0] sm:$0xff] %v7235_v5  ;;  %v7461_v7 = vpop.f32.mrf.mxu2  ;;  %v7574_v25 = vpop.f32.mrf.mxu3 }
 0xf59   : > { %10277 = vst [vmem:[%s11437_s19 + $0x1bc8] sm:$0xff] %v7348_v60 }
 0xf5a   : > { %10278 = vst [vmem:[%s11437_s19 + $0x1bd0] sm:$0xff] %v7461_v7  ;;  %10298 = vmatmul.msk.f32.gmra.mxu0 %vm3492_vm9, %v16315_v29  ;;  %10330 = vmatmul.msk.f32.gmra.mxu1 %vm3492_vm9, %v16315_v29 }
 0xf5b   : > { %10279 = vst [vmem:[%s11437_s19 + $0x1bd8] sm:$0xff] %v7574_v25 }
 0xf5d   : > { %10363 = vmatmul.msk.f32.gmra.mxu2 %vm3492_vm9, %v16330_v23  ;;  %10395 = vmatmul.msk.f32.gmra.mxu3 %vm3492_vm9, %v16330_v23 }
 0xf5f   : > { %v7238_v28 = vpop.f32.mrf.mxu0  ;;  %v7351_v55 = vpop.f32.mrf.mxu1 }
 0xf60   : > { %10280 = vst [vmem:[%s11437_s19 + $0x1be0] sm:$0xff] %v7238_v28  ;;  %v7464_v33 = vpop.f32.mrf.mxu2  ;;  %v7577_v19 = vpop.f32.mrf.mxu3 }
 0xf61   : > { %10281 = vst [vmem:[%s11437_s19 + $0x1be8] sm:$0xff] %v7351_v55 }
 0xf62   : > { %10282 = vst [vmem:[%s11437_s19 + $0x1bf0] sm:$0xff] %v7464_v33  ;;  %10299 = vmatmul.msk.f32.gmra.mxu0 %vm3492_vm9, %v16330_v23  ;;  %10331 = vmatmul.msk.f32.gmra.mxu1 %vm3492_vm9, %v16330_v23 }
 0xf63   : > { %10283 = vst [vmem:[%s11437_s19 + $0x1bf8] sm:$0xff] %v7577_v19 }
 0xf65   : > { %10364 = vmatmul.msk.f32.gmra.mxu2 %vm3492_vm9, %v16345_v43  ;;  %10396 = vmatmul.msk.f32.gmra.mxu3 %vm3492_vm9, %v16345_v43 }
 0xf67   : > { %v7735_v29 = vpop.f32.mrf.mxu0  ;;  %v7848_v3 = vpop.f32.mrf.mxu1 }
 0xf68   : > { %10412 = vst [vmem:[%s11437_s19 + $0x1c00] sm:$0xff] %v7735_v29  ;;  %v7961_v9 = vpop.f32.mrf.mxu2  ;;  %v8074_v21 = vpop.f32.mrf.mxu3 }
 0xf69   : > { %10413 = vst [vmem:[%s11437_s19 + $0x1c08] sm:$0xff] %v7848_v3 }
 0xf6a   : > { %10414 = vst [vmem:[%s11437_s19 + $0x1c10] sm:$0xff] %v7961_v9  ;;  %10300 = vmatmul.msk.f32.gmra.mxu0 %vm3492_vm9, %v16345_v43  ;;  %10332 = vmatmul.msk.f32.gmra.mxu1 %vm3492_vm9, %v16345_v43 }
 0xf6b   : > { %10415 = vst [vmem:[%s11437_s19 + $0x1c18] sm:$0xff] %v8074_v21 }
 0xf6d   : > { %10365 = vmatmul.msk.f32.gmra.mxu2 %vm3492_vm9, %v16360_v16  ;;  %10397 = vmatmul.msk.f32.gmra.mxu3 %vm3492_vm9, %v16360_v16 }
 0xf6f   : > { %v7738_v23 = vpop.f32.mrf.mxu0  ;;  %v7851_v52 = vpop.f32.mrf.mxu1 }
 0xf70   : > { %10416 = vst [vmem:[%s11437_s19 + $0x1c20] sm:$0xff] %v7738_v23  ;;  %v7964_v22 = vpop.f32.mrf.mxu2  ;;  %v8077_v63 = vpop.f32.mrf.mxu3 }
 0xf71   : > { %10417 = vst [vmem:[%s11437_s19 + $0x1c28] sm:$0xff] %v7851_v52 }
 0xf72   : > { %10418 = vst [vmem:[%s11437_s19 + $0x1c30] sm:$0xff] %v7964_v22  ;;  %10301 = vmatmul.msk.f32.gmra.mxu0 %vm3492_vm9, %v16360_v16  ;;  %10333 = vmatmul.msk.f32.gmra.mxu1 %vm3492_vm9, %v16360_v16 }
 0xf73   : > { %10419 = vst [vmem:[%s11437_s19 + $0x1c38] sm:$0xff] %v8077_v63 }
 0xf75   : > { %10366 = vmatmul.msk.f32.gmra.mxu2 %vm3492_vm9, %v16375_v4  ;;  %10398 = vmatmul.msk.f32.gmra.mxu3 %vm3492_vm9, %v16375_v4 }
 0xf77   : > { %v7741_v43 = vpop.f32.mrf.mxu0  ;;  %v7854_v40 = vpop.f32.mrf.mxu1 }
 0xf78   : > { %10420 = vst [vmem:[%s11437_s19 + $0x1c40] sm:$0xff] %v7741_v43  ;;  %v7967_v45 = vpop.f32.mrf.mxu2  ;;  %v8080_v50 = vpop.f32.mrf.mxu3 }
 0xf79   : > { %10421 = vst [vmem:[%s11437_s19 + $0x1c48] sm:$0xff] %v7854_v40 }
 0xf7a   : > { %10422 = vst [vmem:[%s11437_s19 + $0x1c50] sm:$0xff] %v7967_v45  ;;  %10302 = vmatmul.msk.f32.gmra.mxu0 %vm3492_vm9, %v16375_v4  ;;  %10334 = vmatmul.msk.f32.gmra.mxu1 %vm3492_vm9, %v16375_v4 }
 0xf7b   : > { %10423 = vst [vmem:[%s11437_s19 + $0x1c58] sm:$0xff] %v8080_v50 }
 0xf7d   : > { %10367 = vmatmul.msk.f32.gmra.mxu2 %vm3492_vm9, %v16390_v17  ;;  %10399 = vmatmul.msk.f32.gmra.mxu3 %vm3492_vm9, %v16390_v17 }
 0xf7f   : > { %v7744_v16 = vpop.f32.mrf.mxu0  ;;  %v7857_v6 = vpop.f32.mrf.mxu1 }
 0xf80   : > { %10424 = vst [vmem:[%s11437_s19 + $0x1c60] sm:$0xff] %v7744_v16  ;;  %v7970_v31 = vpop.f32.mrf.mxu2  ;;  %v8083_v51 = vpop.f32.mrf.mxu3 }
 0xf81   : > { %10425 = vst [vmem:[%s11437_s19 + $0x1c68] sm:$0xff] %v7857_v6 }
 0xf82   : > { %10426 = vst [vmem:[%s11437_s19 + $0x1c70] sm:$0xff] %v7970_v31  ;;  %10303 = vmatmul.msk.f32.gmra.mxu0 %vm3492_vm9, %v16390_v17  ;;  %10335 = vmatmul.msk.f32.gmra.mxu1 %vm3492_vm9, %v16390_v17 }
 0xf83   : > { %10427 = vst [vmem:[%s11437_s19 + $0x1c78] sm:$0xff] %v8083_v51 }
 0xf85   : > { %10368 = vmatmul.msk.f32.gmra.mxu2 %vm3492_vm9, %v16405_v47  ;;  %10400 = vmatmul.msk.f32.gmra.mxu3 %vm3492_vm9, %v16405_v47 }
 0xf87   : > { %v7747_v4 = vpop.f32.mrf.mxu0  ;;  %v7860_v39 = vpop.f32.mrf.mxu1 }
 0xf88   : > { %10428 = vst [vmem:[%s11437_s19 + $0x1c80] sm:$0xff] %v7747_v4  ;;  %v7973_v37 = vpop.f32.mrf.mxu2  ;;  %v8086_v11 = vpop.f32.mrf.mxu3 }
 0xf89   : > { %10429 = vst [vmem:[%s11437_s19 + $0x1c88] sm:$0xff] %v7860_v39 }
 0xf8a   : > { %10430 = vst [vmem:[%s11437_s19 + $0x1c90] sm:$0xff] %v7973_v37  ;;  %10304 = vmatmul.msk.f32.gmra.mxu0 %vm3492_vm9, %v16405_v47  ;;  %10336 = vmatmul.msk.f32.gmra.mxu1 %vm3492_vm9, %v16405_v47 }
 0xf8b   : > { %10431 = vst [vmem:[%s11437_s19 + $0x1c98] sm:$0xff] %v8086_v11 }
 0xf8d   : > { %10369 = vmatmul.msk.f32.gmra.mxu2 %vm3492_vm9, %v16420_v58  ;;  %10401 = vmatmul.msk.f32.gmra.mxu3 %vm3492_vm9, %v16420_v58 }
 0xf8f   : > { %v7750_v17 = vpop.f32.mrf.mxu0  ;;  %v7863_v30 = vpop.f32.mrf.mxu1 }
 0xf90   : > { %10432 = vst [vmem:[%s11437_s19 + $0x1ca0] sm:$0xff] %v7750_v17  ;;  %v7976_v32 = vpop.f32.mrf.mxu2  ;;  %v8089_v8 = vpop.f32.mrf.mxu3 }
 0xf91   : > { %10433 = vst [vmem:[%s11437_s19 + $0x1ca8] sm:$0xff] %v7863_v30 }
 0xf92   : > { %10434 = vst [vmem:[%s11437_s19 + $0x1cb0] sm:$0xff] %v7976_v32  ;;  %10305 = vmatmul.msk.f32.gmra.mxu0 %vm3492_vm9, %v16420_v58  ;;  %10337 = vmatmul.msk.f32.gmra.mxu1 %vm3492_vm9, %v16420_v58 }
 0xf93   : > { %10435 = vst [vmem:[%s11437_s19 + $0x1cb8] sm:$0xff] %v8089_v8 }
 0xf95   : > { %10370 = vmatmul.msk.f32.gmra.mxu2 %vm3492_vm9, %v16435_v61  ;;  %10402 = vmatmul.msk.f32.gmra.mxu3 %vm3492_vm9, %v16435_v61 }
 0xf97   : > { %v7753_v47 = vpop.f32.mrf.mxu0  ;;  %v7866_v57 = vpop.f32.mrf.mxu1 }
 0xf98   : > { %10436 = vst [vmem:[%s11437_s19 + $0x1cc0] sm:$0xff] %v7753_v47  ;;  %v7979_v0 = vpop.f32.mrf.mxu2  ;;  %v8092_v35 = vpop.f32.mrf.mxu3 }
 0xf99   : > { %10437 = vst [vmem:[%s11437_s19 + $0x1cc8] sm:$0xff] %v7866_v57 }
 0xf9a   : > { %10438 = vst [vmem:[%s11437_s19 + $0x1cd0] sm:$0xff] %v7979_v0  ;;  %10306 = vmatmul.msk.f32.gmra.mxu0 %vm3492_vm9, %v16435_v61  ;;  %10338 = vmatmul.msk.f32.gmra.mxu1 %vm3492_vm9, %v16435_v61 }
 0xf9b   : > { %10439 = vst [vmem:[%s11437_s19 + $0x1cd8] sm:$0xff] %v8092_v35 }
 0xf9d   : > { %10371 = vmatmul.msk.f32.gmra.mxu2 %vm3492_vm9, %v16450_v48  ;;  %10403 = vmatmul.msk.f32.gmra.mxu3 %vm3492_vm9, %v16450_v48 }
 0xf9f   : > { %v7756_v58 = vpop.f32.mrf.mxu0  ;;  %v7869_v54 = vpop.f32.mrf.mxu1 }
 0xfa0   : > { %10440 = vst [vmem:[%s11437_s19 + $0x1ce0] sm:$0xff] %v7756_v58  ;;  %v7982_v1 = vpop.f32.mrf.mxu2  ;;  %v8095_v41 = vpop.f32.mrf.mxu3 }
 0xfa1   : > { %10441 = vst [vmem:[%s11437_s19 + $0x1ce8] sm:$0xff] %v7869_v54 }
 0xfa2   : > { %10442 = vst [vmem:[%s11437_s19 + $0x1cf0] sm:$0xff] %v7982_v1  ;;  %10307 = vmatmul.msk.f32.gmra.mxu0 %vm3492_vm9, %v16450_v48  ;;  %10339 = vmatmul.msk.f32.gmra.mxu1 %vm3492_vm9, %v16450_v48 }
 0xfa3   : > { %10443 = vst [vmem:[%s11437_s19 + $0x1cf8] sm:$0xff] %v8095_v41 }
 0xfa5   : > { %10372 = vmatmul.msk.f32.gmra.mxu2 %vm3492_vm9, %v16465_v18  ;;  %10404 = vmatmul.msk.f32.gmra.mxu3 %vm3492_vm9, %v16465_v18 }
 0xfa7   : > { %v7759_v61 = vpop.f32.mrf.mxu0  ;;  %v7872_v2 = vpop.f32.mrf.mxu1 }
 0xfa8   : > { %10444 = vst [vmem:[%s11437_s19 + $0x1d00] sm:$0xff] %v7759_v61  ;;  %v7985_v34 = vpop.f32.mrf.mxu2  ;;  %v8098_v62 = vpop.f32.mrf.mxu3 }
 0xfa9   : > { %10445 = vst [vmem:[%s11437_s19 + $0x1d08] sm:$0xff] %v7872_v2 }
 0xfaa   : > { %10446 = vst [vmem:[%s11437_s19 + $0x1d10] sm:$0xff] %v7985_v34  ;;  %10308 = vmatmul.msk.f32.gmra.mxu0 %vm3492_vm9, %v16465_v18  ;;  %10340 = vmatmul.msk.f32.gmra.mxu1 %vm3492_vm9, %v16465_v18 }
 0xfab   : > { %10447 = vst [vmem:[%s11437_s19 + $0x1d18] sm:$0xff] %v8098_v62 }
 0xfad   : > { %10373 = vmatmul.msk.f32.gmra.mxu2 %vm3492_vm9, %v16480_v59  ;;  %10405 = vmatmul.msk.f32.gmra.mxu3 %vm3492_vm9, %v16480_v59 }
 0xfaf   : > { %v7762_v48 = vpop.f32.mrf.mxu0  ;;  %v7875_v14 = vpop.f32.mrf.mxu1 }
 0xfb0   : > { %10448 = vst [vmem:[%s11437_s19 + $0x1d20] sm:$0xff] %v7762_v48  ;;  %v7988_v24 = vpop.f32.mrf.mxu2  ;;  %v8101_v15 = vpop.f32.mrf.mxu3 }
 0xfb1   : > { %10449 = vst [vmem:[%s11437_s19 + $0x1d28] sm:$0xff] %v7875_v14 }
 0xfb2   : > { %10450 = vst [vmem:[%s11437_s19 + $0x1d30] sm:$0xff] %v7988_v24  ;;  %10309 = vmatmul.msk.f32.gmra.mxu0 %vm3492_vm9, %v16480_v59  ;;  %10341 = vmatmul.msk.f32.gmra.mxu1 %vm3492_vm9, %v16480_v59 }
 0xfb3   : > { %10451 = vst [vmem:[%s11437_s19 + $0x1d38] sm:$0xff] %v8101_v15 }
 0xfb5   : > { %10374 = vmatmul.msk.f32.gmra.mxu2 %vm3492_vm9, %v16495_v12  ;;  %10406 = vmatmul.msk.f32.gmra.mxu3 %vm3492_vm9, %v16495_v12 }
 0xfb7   : > { %v7765_v18 = vpop.f32.mrf.mxu0  ;;  %v7878_v38 = vpop.f32.mrf.mxu1 }
 0xfb8   : > { %10452 = vst [vmem:[%s11437_s19 + $0x1d40] sm:$0xff] %v7765_v18  ;;  %v7991_v13 = vpop.f32.mrf.mxu2  ;;  %v8104_v46 = vpop.f32.mrf.mxu3 }
 0xfb9   : > { %10453 = vst [vmem:[%s11437_s19 + $0x1d48] sm:$0xff] %v7878_v38 }
 0xfba   : > { %10454 = vst [vmem:[%s11437_s19 + $0x1d50] sm:$0xff] %v7991_v13  ;;  %10310 = vmatmul.msk.f32.gmra.mxu0 %vm3492_vm9, %v16495_v12  ;;  %10342 = vmatmul.msk.f32.gmra.mxu1 %vm3492_vm9, %v16495_v12 }
 0xfbb   : > { %10455 = vst [vmem:[%s11437_s19 + $0x1d58] sm:$0xff] %v8104_v46 }
 0xfbd   : > { %10375 = vmatmul.msk.f32.gmra.mxu2 %vm3492_vm9, %v16510_v10  ;;  %10407 = vmatmul.msk.f32.gmra.mxu3 %vm3492_vm9, %v16510_v10 }
 0xfbf   : > { %v7768_v59 = vpop.f32.mrf.mxu0  ;;  %v7881_v36 = vpop.f32.mrf.mxu1 }
 0xfc0   : > { %10456 = vst [vmem:[%s11437_s19 + $0x1d60] sm:$0xff] %v7768_v59  ;;  %v7994_v27 = vpop.f32.mrf.mxu2  ;;  %v8107_v42 = vpop.f32.mrf.mxu3 }
 0xfc1   : > { %10457 = vst [vmem:[%s11437_s19 + $0x1d68] sm:$0xff] %v7881_v36 }
 0xfc2   : > { %10458 = vst [vmem:[%s11437_s19 + $0x1d70] sm:$0xff] %v7994_v27  ;;  %10311 = vmatmul.msk.f32.gmra.mxu0 %vm3492_vm9, %v16510_v10  ;;  %10343 = vmatmul.msk.f32.gmra.mxu1 %vm3492_vm9, %v16510_v10 }
 0xfc3   : > { %10459 = vst [vmem:[%s11437_s19 + $0x1d78] sm:$0xff] %v8107_v42 }
 0xfc5   : > { %10376 = vmatmul.msk.f32.gmra.mxu2 %vm3492_vm9, %v16525_v49  ;;  %10408 = vmatmul.msk.f32.gmra.mxu3 %vm3492_vm9, %v16525_v49 }
 0xfc7   : > { %v7771_v12 = vpop.f32.mrf.mxu0  ;;  %v7884_v20 = vpop.f32.mrf.mxu1 }
 0xfc8   : > { %10460 = vst [vmem:[%s11437_s19 + $0x1d80] sm:$0xff] %v7771_v12  ;;  %v7997_v26 = vpop.f32.mrf.mxu2  ;;  %v8110_v5 = vpop.f32.mrf.mxu3 }
 0xfc9   : > { %10461 = vst [vmem:[%s11437_s19 + $0x1d88] sm:$0xff] %v7884_v20 }
 0xfca   : > { %10462 = vst [vmem:[%s11437_s19 + $0x1d90] sm:$0xff] %v7997_v26  ;;  %10312 = vmatmul.msk.f32.gmra.mxu0 %vm3492_vm9, %v16525_v49  ;;  %10344 = vmatmul.msk.f32.gmra.mxu1 %vm3492_vm9, %v16525_v49 }
 0xfcb   : > { %10463 = vst [vmem:[%s11437_s19 + $0x1d98] sm:$0xff] %v8110_v5 }
 0xfcd   : > { %10377 = vmatmul.msk.f32.gmra.mxu2 %vm3492_vm9, %v16540_v56  ;;  %10409 = vmatmul.msk.f32.gmra.mxu3 %vm3492_vm9, %v16540_v56 }
 0xfcf   : > { %v7774_v10 = vpop.f32.mrf.mxu0  ;;  %v7887_v60 = vpop.f32.mrf.mxu1 }
 0xfd0   : > { %10464 = vst [vmem:[%s11437_s19 + $0x1da0] sm:$0xff] %v7774_v10  ;;  %v8000_v7 = vpop.f32.mrf.mxu2  ;;  %v8113_v25 = vpop.f32.mrf.mxu3 }
 0xfd1   : > { %10465 = vst [vmem:[%s11437_s19 + $0x1da8] sm:$0xff] %v7887_v60 }
 0xfd2   : > { %10466 = vst [vmem:[%s11437_s19 + $0x1db0] sm:$0xff] %v8000_v7  ;;  %10313 = vmatmul.msk.f32.gmra.mxu0 %vm3492_vm9, %v16540_v56  ;;  %10345 = vmatmul.msk.f32.gmra.mxu1 %vm3492_vm9, %v16540_v56 }
 0xfd3   : > { %10467 = vst [vmem:[%s11437_s19 + $0x1db8] sm:$0xff] %v8113_v25 }
 0xfd5   : > { %10378 = vmatmul.msk.f32.gmra.mxu2 %vm3492_vm9, %v16555_v44  ;;  %10410 = vmatmul.msk.f32.gmra.mxu3 %vm3492_vm9, %v16555_v44 }
 0xfd7   : > { %v7777_v49 = vpop.f32.mrf.mxu0  ;;  %v7890_v28 = vpop.f32.mrf.mxu1 }
 0xfd8   : > { %10468 = vst [vmem:[%s11437_s19 + $0x1dc0] sm:$0xff] %v7777_v49  ;;  %v8003_v55 = vpop.f32.mrf.mxu2  ;;  %v8116_v33 = vpop.f32.mrf.mxu3 }
 0xfd9   : > { %10469 = vst [vmem:[%s11437_s19 + $0x1dc8] sm:$0xff] %v7890_v28 }
 0xfda   : > { %10470 = vst [vmem:[%s11437_s19 + $0x1dd0] sm:$0xff] %v8003_v55  ;;  %10314 = vmatmul.msk.f32.gmra.mxu0 %vm3492_vm9, %v16555_v44  ;;  %10346 = vmatmul.msk.f32.gmra.mxu1 %vm3492_vm9, %v16555_v44 }
 0xfdb   : > { %10471 = vst [vmem:[%s11437_s19 + $0x1dd8] sm:$0xff] %v8116_v33 }
 0xfdd   : > { %10379 = vmatmul.msk.f32.gmra.mxu2 %vm3492_vm9, %v16570_v53  ;;  %10411 = vmatmul.msk.f32.gmra.mxu3 %vm3492_vm9, %v16570_v53 }
 0xfdf   : > { %v7780_v56 = vpop.f32.mrf.mxu0  ;;  %v7893_v19 = vpop.f32.mrf.mxu1 }
 0xfe0   : > { %10472 = vst [vmem:[%s11437_s19 + $0x1de0] sm:$0xff] %v7780_v56  ;;  %v8006_v29 = vpop.f32.mrf.mxu2  ;;  %v8119_v3 = vpop.f32.mrf.mxu3 }
 0xfe1   : > { %10473 = vst [vmem:[%s11437_s19 + $0x1de8] sm:$0xff] %v7893_v19 }
 0xfe2   : > { %10474 = vst [vmem:[%s11437_s19 + $0x1df0] sm:$0xff] %v8006_v29  ;;  %10315 = vmatmul.msk.f32.gmra.mxu0 %vm3492_vm9, %v16570_v53  ;;  %10347 = vmatmul.msk.f32.gmra.mxu1 %vm3492_vm9, %v16570_v53 }
 0xfe3   : > { %10475 = vst [vmem:[%s11437_s19 + $0x1df8] sm:$0xff] %v8119_v3 }
 0xfe7   : > { %v7783_v44 = vpop.f32.mrf.mxu0  ;;  %v7896_v9 = vpop.f32.mrf.mxu1 }
 0xfe8   : > { %10476 = vst [vmem:[%s11437_s19 + $0x1e00] sm:$0xff] %v7783_v44  ;;  %v8009_v21 = vpop.f32.mrf.mxu2  ;;  %v8122_v23 = vpop.f32.mrf.mxu3 }
 0xfe9   : > { %10477 = vst [vmem:[%s11437_s19 + $0x1e08] sm:$0xff] %v7896_v9 }
 0xfea   : > { %10478 = vst [vmem:[%s11437_s19 + $0x1e10] sm:$0xff] %v8009_v21 }
 0xfeb   : > { %10479 = vst [vmem:[%s11437_s19 + $0x1e18] sm:$0xff] %v8122_v23 }
 0xfef   : > { %v7786_v52 = vpop.f32.mrf.mxu0  ;;  %v7899_v22 = vpop.f32.mrf.mxu1 }
 0xff0   : > { %10480 = vst [vmem:[%s11437_s19 + $0x1e20] sm:$0xff] %v7786_v52  ;;  %v8012_v53 = vpop.f32.mrf.mxu2  ;;  %v8125_v63 = vpop.f32.mrf.mxu3 }
 0xff1   : > { %10481 = vst [vmem:[%s11437_s19 + $0x1e28] sm:$0xff] %v7899_v22 }
 0xff2   : > { %10482 = vst [vmem:[%s11437_s19 + $0x1e30] sm:$0xff] %v8012_v53 }
 0xff3   : > { %10483 = vst [vmem:[%s11437_s19 + $0x1e38] sm:$0xff] %v8125_v63 }
 0xff7   : > { %v7789_v43 = vpop.f32.mrf.mxu0  ;;  %v7902_v40 = vpop.f32.mrf.mxu1 }
 0xff8   : > { %10484 = vst [vmem:[%s11437_s19 + $0x1e40] sm:$0xff] %v7789_v43  ;;  %v8015_v45 = vpop.f32.mrf.mxu2  ;;  %v8128_v50 = vpop.f32.mrf.mxu3 }
 0xff9   : > { %10485 = vst [vmem:[%s11437_s19 + $0x1e48] sm:$0xff] %v7902_v40 }
 0xffa   : > { %10486 = vst [vmem:[%s11437_s19 + $0x1e50] sm:$0xff] %v8015_v45 }
 0xffb   : > { %10487 = vst [vmem:[%s11437_s19 + $0x1e58] sm:$0xff] %v8128_v50 }
 0xfff   : > { %v7792_v16 = vpop.f32.mrf.mxu0  ;;  %v7905_v6 = vpop.f32.mrf.mxu1 }
0x1000   : > { %10488 = vst [vmem:[%s11437_s19 + $0x1e60] sm:$0xff] %v7792_v16  ;;  %v8018_v31 = vpop.f32.mrf.mxu2  ;;  %v8131_v51 = vpop.f32.mrf.mxu3 }
0x1001   : > { %10489 = vst [vmem:[%s11437_s19 + $0x1e68] sm:$0xff] %v7905_v6 }
0x1002   : > { %10490 = vst [vmem:[%s11437_s19 + $0x1e70] sm:$0xff] %v8018_v31 }
0x1003   : > { %10491 = vst [vmem:[%s11437_s19 + $0x1e78] sm:$0xff] %v8131_v51 }
0x1007   : > { %v7795_v4 = vpop.f32.mrf.mxu0  ;;  %v7908_v39 = vpop.f32.mrf.mxu1 }
0x1008   : > { %10492 = vst [vmem:[%s11437_s19 + $0x1e80] sm:$0xff] %v7795_v4  ;;  %v8021_v37 = vpop.f32.mrf.mxu2  ;;  %v8134_v11 = vpop.f32.mrf.mxu3 }
0x1009   : > { %10493 = vst [vmem:[%s11437_s19 + $0x1e88] sm:$0xff] %v7908_v39 }
0x100a   : > { %10494 = vst [vmem:[%s11437_s19 + $0x1e90] sm:$0xff] %v8021_v37 }
0x100b   : > { %10495 = vst [vmem:[%s11437_s19 + $0x1e98] sm:$0xff] %v8134_v11 }
0x100f   : > { %v7798_v17 = vpop.f32.mrf.mxu0  ;;  %v7911_v30 = vpop.f32.mrf.mxu1 }
0x1010   : > { %10496 = vst [vmem:[%s11437_s19 + $0x1ea0] sm:$0xff] %v7798_v17  ;;  %v8024_v32 = vpop.f32.mrf.mxu2  ;;  %v8137_v8 = vpop.f32.mrf.mxu3 }
0x1011   : > { %10497 = vst [vmem:[%s11437_s19 + $0x1ea8] sm:$0xff] %v7911_v30 }
0x1012   : > { %10498 = vst [vmem:[%s11437_s19 + $0x1eb0] sm:$0xff] %v8024_v32 }
0x1013   : > { %10499 = vst [vmem:[%s11437_s19 + $0x1eb8] sm:$0xff] %v8137_v8 }
0x1017   : > { %v7801_v47 = vpop.f32.mrf.mxu0  ;;  %v7914_v57 = vpop.f32.mrf.mxu1 }
0x1018   : > { %10500 = vst [vmem:[%s11437_s19 + $0x1ec0] sm:$0xff] %v7801_v47  ;;  %v8027_v0 = vpop.f32.mrf.mxu2  ;;  %v8140_v35 = vpop.f32.mrf.mxu3 }
0x1019   : > { %10501 = vst [vmem:[%s11437_s19 + $0x1ec8] sm:$0xff] %v7914_v57 }
0x101a   : > { %10502 = vst [vmem:[%s11437_s19 + $0x1ed0] sm:$0xff] %v8027_v0 }
0x101b   : > { %10503 = vst [vmem:[%s11437_s19 + $0x1ed8] sm:$0xff] %v8140_v35 }
0x101f   : > { %v7804_v58 = vpop.f32.mrf.mxu0  ;;  %v7917_v54 = vpop.f32.mrf.mxu1 }
0x1020   : > { %10504 = vst [vmem:[%s11437_s19 + $0x1ee0] sm:$0xff] %v7804_v58  ;;  %v8030_v1 = vpop.f32.mrf.mxu2  ;;  %v8143_v41 = vpop.f32.mrf.mxu3 }
0x1021   : > { %10505 = vst [vmem:[%s11437_s19 + $0x1ee8] sm:$0xff] %v7917_v54 }
0x1022   : > { %10506 = vst [vmem:[%s11437_s19 + $0x1ef0] sm:$0xff] %v8030_v1 }
0x1023   : > { %10507 = vst [vmem:[%s11437_s19 + $0x1ef8] sm:$0xff] %v8143_v41 }
0x1027   : > { %v7807_v61 = vpop.f32.mrf.mxu0  ;;  %v7920_v2 = vpop.f32.mrf.mxu1 }
0x1028   : > { %10508 = vst [vmem:[%s11437_s19 + $0x1f00] sm:$0xff] %v7807_v61  ;;  %v8033_v34 = vpop.f32.mrf.mxu2  ;;  %v8146_v62 = vpop.f32.mrf.mxu3 }
0x1029   : > { %10509 = vst [vmem:[%s11437_s19 + $0x1f08] sm:$0xff] %v7920_v2 }
0x102a   : > { %10510 = vst [vmem:[%s11437_s19 + $0x1f10] sm:$0xff] %v8033_v34 }
0x102b   : > { %10511 = vst [vmem:[%s11437_s19 + $0x1f18] sm:$0xff] %v8146_v62 }
0x102f   : > { %v7810_v48 = vpop.f32.mrf.mxu0  ;;  %v7923_v14 = vpop.f32.mrf.mxu1 }
0x1030   : > { %10512 = vst [vmem:[%s11437_s19 + $0x1f20] sm:$0xff] %v7810_v48  ;;  %v8036_v24 = vpop.f32.mrf.mxu2  ;;  %v8149_v15 = vpop.f32.mrf.mxu3 }
0x1031   : > { %10513 = vst [vmem:[%s11437_s19 + $0x1f28] sm:$0xff] %v7923_v14 }
0x1032   : > { %10514 = vst [vmem:[%s11437_s19 + $0x1f30] sm:$0xff] %v8036_v24 }
0x1033   : > { %10515 = vst [vmem:[%s11437_s19 + $0x1f38] sm:$0xff] %v8149_v15 }
0x1037   : > { %v7813_v18 = vpop.f32.mrf.mxu0  ;;  %v7926_v38 = vpop.f32.mrf.mxu1 }
0x1038   : > { %10516 = vst [vmem:[%s11437_s19 + $0x1f40] sm:$0xff] %v7813_v18  ;;  %v8039_v13 = vpop.f32.mrf.mxu2  ;;  %v8152_v46 = vpop.f32.mrf.mxu3 }
0x1039   : > { %10517 = vst [vmem:[%s11437_s19 + $0x1f48] sm:$0xff] %v7926_v38 }
0x103a   : > { %10518 = vst [vmem:[%s11437_s19 + $0x1f50] sm:$0xff] %v8039_v13 }
0x103b   : > { %10519 = vst [vmem:[%s11437_s19 + $0x1f58] sm:$0xff] %v8152_v46 }
0x103f   : > { %v7816_v59 = vpop.f32.mrf.mxu0  ;;  %v7929_v36 = vpop.f32.mrf.mxu1 }
0x1040   : > { %10520 = vst [vmem:[%s11437_s19 + $0x1f60] sm:$0xff] %v7816_v59  ;;  %v8042_v27 = vpop.f32.mrf.mxu2  ;;  %v8155_v42 = vpop.f32.mrf.mxu3 }
0x1041   : > { %10521 = vst [vmem:[%s11437_s19 + $0x1f68] sm:$0xff] %v7929_v36 }
0x1042   : > { %10522 = vst [vmem:[%s11437_s19 + $0x1f70] sm:$0xff] %v8042_v27 }
0x1043   : > { %10523 = vst [vmem:[%s11437_s19 + $0x1f78] sm:$0xff] %v8155_v42 }
0x1047   : > { %v7819_v12 = vpop.f32.mrf.mxu0  ;;  %v7932_v20 = vpop.f32.mrf.mxu1 }
0x1048   : > { %10524 = vst [vmem:[%s11437_s19 + $0x1f80] sm:$0xff] %v7819_v12  ;;  %v8045_v26 = vpop.f32.mrf.mxu2  ;;  %v8158_v5 = vpop.f32.mrf.mxu3 }
0x1049   : > { %10525 = vst [vmem:[%s11437_s19 + $0x1f88] sm:$0xff] %v7932_v20 }
0x104a   : > { %10526 = vst [vmem:[%s11437_s19 + $0x1f90] sm:$0xff] %v8045_v26 }
0x104b   : > { %10527 = vst [vmem:[%s11437_s19 + $0x1f98] sm:$0xff] %v8158_v5 }
0x104f   : > { %v7822_v10 = vpop.f32.mrf.mxu0  ;;  %v7935_v60 = vpop.f32.mrf.mxu1 }
0x1050   : > { %10528 = vst [vmem:[%s11437_s19 + $0x1fa0] sm:$0xff] %v7822_v10  ;;  %v8048_v7 = vpop.f32.mrf.mxu2  ;;  %v8161_v25 = vpop.f32.mrf.mxu3 }
0x1051   : > { %10529 = vst [vmem:[%s11437_s19 + $0x1fa8] sm:$0xff] %v7935_v60 }
0x1052   : > { %10530 = vst [vmem:[%s11437_s19 + $0x1fb0] sm:$0xff] %v8048_v7 }
0x1053   : > { %10531 = vst [vmem:[%s11437_s19 + $0x1fb8] sm:$0xff] %v8161_v25 }
0x1057   : > { %v7825_v49 = vpop.f32.mrf.mxu0  ;;  %v7938_v28 = vpop.f32.mrf.mxu1 }
0x1058   : > { %10532 = vst [vmem:[%s11437_s19 + $0x1fc0] sm:$0xff] %v7825_v49  ;;  %v8051_v55 = vpop.f32.mrf.mxu2  ;;  %v8164_v33 = vpop.f32.mrf.mxu3 }
0x1059   : > { %10533 = vst [vmem:[%s11437_s19 + $0x1fc8] sm:$0xff] %v7938_v28 }
0x105a   : > { %10534 = vst [vmem:[%s11437_s19 + $0x1fd0] sm:$0xff] %v8051_v55 }
0x105b   : > { %10535 = vst [vmem:[%s11437_s19 + $0x1fd8] sm:$0xff] %v8164_v33 }
0x105f   : > { %v7828_v56 = vpop.f32.mrf.mxu0  ;;  %v7941_v19 = vpop.f32.mrf.mxu1 }
0x1060   : > { %10536 = vst [vmem:[%s11437_s19 + $0x1fe0] sm:$0xff] %v7828_v56  ;;  %v8054_v29 = vpop.f32.mrf.mxu2  ;;  %v8167_v3 = vpop.f32.mrf.mxu3 }
0x1061   : > { %10537 = vst [vmem:[%s11437_s19 + $0x1fe8] sm:$0xff] %v7941_v19 }
0x1062   : > { %10538 = vst [vmem:[%s11437_s19 + $0x1ff0] sm:$0xff] %v8054_v29 }
0x1063   : > { %10539 = vst [vmem:[%s11437_s19 + $0x1ff8] sm:$0xff] %v8167_v3 }
0x1064   : > { %s17143_s23 = sld [smem:[#allocation19_spill]]  ;;  %s10548_s15 = sshll.u32 %s11185_s30, 7 }
0x1065   : > { %s8325_s6 = sshll.u32 %s11437_s19, 4  ;;  %s17145_s8 = sld [smem:[#allocation33_spill]]  ;;  %s8326_s6 = int_to_ptr.vmem [resolvable:$true] %s8325_s6 }
0x1066   : > { %s11220_s12 = smov 16384   ;;  %s11221_s13 = smov 32768  }
0x1067   : > { %10585 = sst [smem:[#allocation13]] (%p11337_p7), %s11220_s12  ;;  %s11222_s30 = smov 32  }
0x1068   : > { %10586 = sst [smem:[#allocation13 + $0x1]] (%p11337_p7), %s11221_s13  ;;  %s11223_s4 = smov 512  }
0x1069   : > { %10587 = sst [smem:[#allocation13 + $0x2]] (%p11337_p7), %s11222_s30  ;;  %s11224_s19 = smov [#allocation12]  }
0x106a   : > { %s10543_s27 = sshll.u32 %s17143_s23, 11  ;;  %10588 = sst [smem:[#allocation13 + $0x3]] (%p11337_p7), %s11223_s4 }
0x106b   : > { %s8312_s3 = sadd.s32 %s10548_s15, %s10543_s27  ;;  %10589 = sst [smem:[#allocation13 + $0x4]] (%p11337_p7), %s11223_s4 }
0x106c   : > { %s10544_s24 = sshll.u32 %s8312_s3, 3  ;;  %10590 = sst [smem:[#allocation13 + $0x5]] (%p11337_p7), %s11222_s30 }
0x106d   : > { %s8314_s16 = scalar_lea.hbm %s17145_s8, %s10544_s24  ;;  %s11225_s23 = smov 0  }
0x106e   : > { %s8327_s22 = sshll.u32 %s8314_s16, 4  ;;  %s8328_s22 = int_to_ptr.hbm [resolvable:$true] %s8327_s22 }
0x106f   : > { %10591 = dma.general (%p11337_p7), %s8326_s6, 131072, %s8328_s22, %s8300_s14, %s11224_s19, [#allocation13], %s11225_s23, 0  }
0x1070 PF: > { %s17146_s15 = sld [smem:[#allocation18_spill]]  ;;  %p10618_p1 = scmp.ge.s32.totalorder %s11201_s11, 2 }
0x1072   : > { %p10608_p0 = pnand %p10618_p1, %p11342_p9 }
0x1074   : > { %p10609_p2 = pneg %p10608_p0 }
0x1076   : > { %s8355_s3 = sand.u32 1, %s17146_s15  }
0x1077   : > { %s8356_s24 = scalar_lea.sflag [#allocation5], %s8355_s3 }
0x1078   : > { %11156 = dma.done.wait (%p10609_p2), %s8356_s24, 131072  }
0x1079   : > { %11158 = vsyncadd (%p10609_p2), %s8356_s24, 4294836224  ;;  %s25_s11 = sadd.s32 1, %s11201_s11   ;;  %s17148_s30 = sld [smem:[#allocation20_spill]] }
0x107a   : > { %p22_p4 = scmp.ge.s32.totalorder %s25_s11, 6   ;;  %s17149_s9 = sld [smem:[#allocation23_spill]] }
0x107b   : > { %s17150_s24 = smov %s11165_s25  ;;  %s17151_s25 = smov %s11169_s26 }
0x107c   : > { %s17152_s26 = smov %s11402_s18  ;;  %s17153_s27 = smov %s11177_s28 }
0x107d   : > { %s17154_s28 = smov %s11181_s29  ;;  %s17155_s29 = smov %s11397_s20 }
0x107e   : > { %s17156_s8 = smov %s11197_s10  ;;  %s17157_s10 = smov %s17163_s21 }
0x107f   :  { %24 = sbr.rel (!%p22_p4) target bundleno = 17 (0x11), region = 131 }
0x1084   :  { %8362 = vsyncpa [#allocation4], 1 }
0x1085   :  { %8364 = vsyncpa [#allocation4 + $0x1], 1 }
0x1086   :  { %8365 = vsyncpa [#allocation7], 1 }
0x1087   :  { %8366 = vsyncpa [#allocation10], 1 }
0x1088   :  { %8367 = vsyncpa [#allocation5], 1 }
0x1089   :  { %8369 = vsyncpa [#allocation5 + $0x1], 1 }

</bundles_post_ra>
